<compile_context>
chip_gen: v7x
topology: tpu7x:2x2x1
jax: 0.10.0
libtpu: 0.0.40
codegen_flags: <defaults>
</compile_context>

<pallas_src>
import functools

import numpy as np
import jax
import jax.numpy as jnp
from jax.experimental import pallas as pl
from jax.experimental.pallas import tpu as pltpu

NEG_SLOPE = 0.2
# Inputs to every jnp.dot are cast to this dtype (accumulation stays f32).
# jnp.bfloat16 gives full-rate MXU on v5e/v6e/v7x; kept at f32 to match the
# PyTorch f32 reference bit-for-bit-ish.  Flip after validating tolerance.
MXU_INPUT_DTYPE = jnp.float32

_VMEM = pl.BlockSpec(memory_space=pltpu.MemorySpace.VMEM)


# ----------------------------------------------------------------------------
# Single fused Pallas kernel: whole Decoder forward, all activations in VMEM.
# ----------------------------------------------------------------------------
def _decoder_fused_kernel(x_ref, wi_ref, bi_ref,
                          wb1_ref, bb1_ref, wb2_ref, bb2_ref,
                          wc_ref, bc_ref, ws_ref, bs_ref,
                          mt_ref, wlt_ref, blt_ref,
                          o_ref, *, n_blocks, neg_slope):
    """Shapes (C = conv_hid_chan, S = samp_hid_chan, Co = out channels):
      x_ref   : (B, H, W, Cin)            NHWC input
      wi/bi   : (9*Cin, C), (1, C)        init conv (im2col weight layout)
      wb1/bb1 : (nb, 9*C, C), (nb, 1, C)  first conv of each residual block
      wb2/bb2 : (nb, 9*C, C), (nb, 1, C)  second conv of each residual block
      wc/bc   : (9*C, C), (1, C)          conc conv
      ws/bs   : (9*C, S), (1, S)          samp conv
      mt_ref  : (B*H*W, B*Ho*Wo)          TRANSPOSED block-diag bilinear matrix
      wlt/blt : (Co, S), (Co, 1)          final 1x1 conv (transposed layout)
      o_ref   : (Co, B*Ho*Wo)             lane-dense output
    """
    f32 = jnp.float32
    B, H, W, _ = x_ref.shape

    def lrelu(v):
        return jnp.where(v >= 0, v, neg_slope * v)

    def mxu_dot(a, bm):
        return jnp.dot(a.astype(MXU_INPUT_DTYPE), bm.astype(MXU_INPUT_DTYPE),
                       preferred_element_type=f32)

    def conv3x3(a, w, b):
        """a: (B, H, W, C) f32 -> (B*H*W, Cout) f32.  3x3 / stride 1 / pad 1.

        Zero halo is built in VMEM by concatenating zero slabs; the nine taps
        are gathered into one (B*H*W, 9*C) im2col tensor so the conv is a
        single MXU matmul.
        """
        C = a.shape[-1]
        zrow = jnp.zeros((B, 1, W, C), f32)
        ap = jnp.concatenate([zrow, a, zrow], axis=1)           # (B, H+2, W, C)
        zcol = jnp.zeros((B, H + 2, 1, C), f32)
        ap = jnp.concatenate([zcol, ap, zcol], axis=2)          # (B, H+2, W+2, C)
        cols = [ap[:, dy:dy + H, dx:dx + W, :].reshape(B * H * W, C)
                for dy in range(3) for dx in range(3)]
        patches = jnp.concatenate(cols, axis=-1)                # (B*H*W, 9*C)
        return mxu_dot(patches, w) + b

    def unflat(v):
        return v.reshape(B, H, W, v.shape[-1])

    x = x_ref[...].astype(f32)

    # init_unit: Conv3x3 + LeakyReLU(0.2)
    y = lrelu(conv3x3(x, wi_ref[...], bi_ref[...]))             # (B*H*W, C)
    temp = y

    # conv_blocks: (Conv3x3 -> LeakyReLU -> Conv3x3) + residual
    for k in range(n_blocks):
        h = lrelu(conv3x3(unflat(y), wb1_ref[k], bb1_ref[k]))
        y = conv3x3(unflat(h), wb2_ref[k], bb2_ref[k]) + y

    # conc_unit: Conv3x3 + long skip (temp)
    y = conv3x3(unflat(y), wc_ref[...], bc_ref[...]) + temp

    # samp_unit (times == 0 path): Conv3x3 -> bilinear resize -> LeakyReLU.
    # The tail is computed transposed:  (M @ y_s)^T = y_s^T @ M^T, so the
    # final output is lane-dense (last dim = B*Ho*Wo, not Cout).
    y_s = conv3x3(unflat(y), ws_ref[...], bs_ref[...])          # (B*H*W, S)
    y_t = lrelu(mxu_dot(y_s.T, mt_ref[...]))                    # (S, B*Ho*Wo)

    # last_unit: 1x1 conv == channel matmul (transposed).
    o_ref[...] = (mxu_dot(wlt_ref[...], y_t) + blt_ref[...]).astype(o_ref.dtype)


# ----------------------------------------------------------------------------
# Wrapper: one fused pallas_call, tiny layout plumbing outside.
# ----------------------------------------------------------------------------
def decoder_forward(params, z_nchw, *, out_hw, n_blocks):
    B, _, H, W = z_nchw.shape
    Ho, Wo = out_hw
    Cout = params["last_w_t"].shape[0]

    # NCHW (PyTorch convention) -> NHWC (channels on the TPU lane axis).
    x = jnp.transpose(z_nchw, (0, 2, 3, 1)).astype(jnp.float32)

    # Transposed batch-block-diagonal bilinear interpolation matrix
    # (B*H*W, B*Ho*Wo): makes the resize a single MXU matmul with no
    # per-batch Python loop, and feeds the transposed (lane-dense) tail.
    # TODO(synk): switch to separable (A_h, A_w) interpolation at large
    # resolutions -- the kron matrix scales as O(B^2 * Ho*Wo * H*W).
    m_t_big = jnp.kron(jnp.eye(B, dtype=jnp.float32), params["interp_m_t"])

    args = (x,
            params["init_w"], params["init_b"],
            params["blk_w1"], params["blk_b1"],
            params["blk_w2"], params["blk_b2"],
            params["conc_w"], params["conc_b"],
            params["samp_w"], params["samp_b"],
            m_t_big,
            params["last_w_t"], params["last_b_t"])

    kern = functools.partial(_decoder_fused_kernel,
                             n_blocks=n_blocks, neg_slope=NEG_SLOPE)

    # Single fused, gridless call: all activations + weights (< 1 MiB total
    # here) stay resident in VMEM on v5e/v6e/v7x.
    # TODO(synk): for production sizes, add a batch/H grid with
    # dimension_semantics=("parallel",) so both v7x TensorCores are used and
    # tiles respect the smaller 64 MiB VMEM.
    out_t = pl.pallas_call(
        kern,
        out_shape=jax.ShapeDtypeStruct((Cout, B * Ho * Wo), jnp.float32),
        in_specs=[_VMEM] * len(args),
        out_specs=_VMEM,
    )(*args)

    # (Cout, B*Ho*Wo) -> (B, Cout, Ho, Wo)  (already channel-major).
    return jnp.transpose(out_t.reshape(Cout, B, Ho, Wo), (1, 0, 2, 3))


# ----------------------------------------------------------------------------
# Parameter construction (deterministic, mimics PyTorch Conv2d default init).
# Weights are stored directly in im2col / matmul layout.
# ----------------------------------------------------------------------------
def _conv_init(key, kh, kw, cin, cout):
    wkey, bkey = jax.random.split(key)
    bound = 1.0 / np.sqrt(kh * kw * cin)
    w = jax.random.uniform(wkey, (kh, kw, cin, cout), jnp.float32, -bound, bound)
    b = jax.random.uniform(bkey, (cout,), jnp.float32, -bound, bound)
    return w, b


def _interp_matrix(in_size, out_size):
    """1-D interpolation matrix for bilinear resize, align_corners=True."""
    if out_size == 1:
        m = np.zeros((1, in_size), np.float32)
        m[0, 0] = 1.0
        return m
    coords = np.arange(out_size, dtype=np.float64) * (in_size - 1) / (out_size - 1)
    lo = np.clip(np.floor(coords).astype(np.int64), 0, in_size - 1)
    hi = np.minimum(lo + 1, in_size - 1)
    frac = coords - lo
    m = np.zeros((out_size, in_size), np.float32)
    m[np.arange(out_size), lo] += (1.0 - frac).astype(np.float32)
    m[np.arange(out_size), hi] += frac.astype(np.float32)
    return m


def init_decoder_params(key, input_shape, output_shape, n_blocks,
                        conv_hid_chan, samp_hid_chan):
    Cin, H, W = input_shape
    Cout, Ho, Wo = output_shape
    ch = conv_hid_chan
    nb = max(n_blocks, 1)                     # keep stacked arrays non-empty
    keys = jax.random.split(key, 4 + 2 * nb)
    ki = iter(keys)

    p = {}
    w, b = _conv_init(next(ki), 3, 3, Cin, ch)
    p["init_w"], p["init_b"] = w.reshape(9 * Cin, ch), b.reshape(1, ch)

    w1s, b1s, w2s, b2s = [], [], [], []
    for _ in range(nb):
        w1, b1 = _conv_init(next(ki), 3, 3, ch, ch)
        w2, b2 = _conv_init(next(ki), 3, 3, ch, ch)
        w1s.append(w1.reshape(9 * ch, ch)); b1s.append(b1.reshape(1, ch))
        w2s.append(w2.reshape(9 * ch, ch)); b2s.append(b2.reshape(1, ch))
    p["blk_w1"], p["blk_b1"] = jnp.stack(w1s), jnp.stack(b1s)
    p["blk_w2"], p["blk_b2"] = jnp.stack(w2s), jnp.stack(b2s)

    w, b = _conv_init(next(ki), 3, 3, ch, ch)
    p["conc_w"], p["conc_b"] = w.reshape(9 * ch, ch), b.reshape(1, ch)

    w, b = _conv_init(next(ki), 3, 3, ch, samp_hid_chan)
    p["samp_w"], p["samp_b"] = w.reshape(9 * ch, samp_hid_chan), b.reshape(1, samp_hid_chan)

    # Final 1x1 conv stored transposed: (Cout, S) weight, (Cout, 1) bias,
    # feeding the lane-dense transposed tail of the kernel.
    w, b = _conv_init(next(ki), 1, 1, samp_hid_chan, Cout)
    p["last_w_t"] = jnp.transpose(w.reshape(samp_hid_chan, Cout))
    p["last_b_t"] = b.reshape(Cout, 1)

    # Per-image TRANSPOSED (H*W, Ho*Wo) bilinear matrix, align_corners=True.
    ah = _interp_matrix(H, Ho)
    aw = _interp_matrix(W, Wo)
    p["interp_m_t"] = jnp.asarray(np.kron(ah, aw).T)
    return p


# ----------------------------------------------------------------------------
if __name__ == "__main__":
    key = jax.random.PRNGKey(0)

    input_shape = (4, 8, 8)      # (C, H, W)
    output_shape = (3, 12, 12)   # ratio < 2 -> times == 0 (only valid config)
    n_blocks = 2
    conv_hid_chan = 16
    samp_hid_chan = 32
    batch = 2

    pkey, zkey = jax.random.split(key)
    params = init_decoder_params(pkey, input_shape, output_shape,
                                 n_blocks, conv_hid_chan, samp_hid_chan)
    z = jax.random.normal(zkey, (batch,) + input_shape, jnp.float32)

    fwd = jax.jit(functools.partial(decoder_forward,
                                    out_hw=output_shape[1:],
                                    n_blocks=n_blocks))
    out = jax.block_until_ready(fwd(params, z))

    assert out.shape == (batch,) + output_shape, out.shape
    assert out.dtype == jnp.float32
    assert bool(jnp.all(jnp.isfinite(out)))
    print("KERNEL_OK")
</pallas_src>

<mosaic_0001>
module attributes {stable_mosaic.version = 11 : i64} {
  func.func @_decoder_fused_kernel(%arg0: memref<2x8x8x4xf32, #tpu.memory_space<vmem>>, %arg1: memref<36x16xf32, #tpu.memory_space<vmem>>, %arg2: memref<1x16xf32, #tpu.memory_space<vmem>>, %arg3: memref<2x144x16xf32, #tpu.memory_space<vmem>>, %arg4: memref<2x1x16xf32, #tpu.memory_space<vmem>>, %arg5: memref<2x144x16xf32, #tpu.memory_space<vmem>>, %arg6: memref<2x1x16xf32, #tpu.memory_space<vmem>>, %arg7: memref<144x16xf32, #tpu.memory_space<vmem>>, %arg8: memref<1x16xf32, #tpu.memory_space<vmem>>, %arg9: memref<144x32xf32, #tpu.memory_space<vmem>>, %arg10: memref<1x32xf32, #tpu.memory_space<vmem>>, %arg11: memref<128x288xf32, #tpu.memory_space<vmem>>, %arg12: memref<3x32xf32, #tpu.memory_space<vmem>>, %arg13: memref<3x1xf32, #tpu.memory_space<vmem>>, %arg14: memref<3x288xf32, #tpu.memory_space<vmem>>) attributes {dimension_semantics = [], scalar_prefetch = 0 : i64, scratch_operands = 0 : i64, tpu.core_type = #tpu.core_type<tc>} {
    %c0 = arith.constant 0 : index
    %c0_0 = arith.constant 0 : index
    %c0_1 = arith.constant 0 : index
    %c0_2 = arith.constant 0 : index
    %0 = vector.load %arg0[%c0, %c0_0, %c0_1, %c0_2] : memref<2x8x8x4xf32, #tpu.memory_space<vmem>>, vector<2x8x8x4xf32>
    %c0_3 = arith.constant 0 : index
    %c0_4 = arith.constant 0 : index
    %1 = vector.load %arg1[%c0_3, %c0_4] : memref<36x16xf32, #tpu.memory_space<vmem>>, vector<36x16xf32>
    %c0_5 = arith.constant 0 : index
    %c0_6 = arith.constant 0 : index
    %2 = vector.load %arg2[%c0_5, %c0_6] : memref<1x16xf32, #tpu.memory_space<vmem>>, vector<1x16xf32>
    %cst = arith.constant 0.000000e+00 : f32
    %3 = vector.broadcast %cst : f32 to vector<2x1x8x4xf32>
    %4 = tpu.concatenate %3, %0, %3 in 1 : vector<2x1x8x4xf32>, vector<2x8x8x4xf32>, vector<2x1x8x4xf32> -> vector<2x10x8x4xf32>
    %cst_7 = arith.constant 0.000000e+00 : f32
    %5 = vector.broadcast %cst_7 : f32 to vector<2x10x1x4xf32>
    %6 = tpu.concatenate %5, %4, %5 in 2 : vector<2x10x1x4xf32>, vector<2x10x8x4xf32>, vector<2x10x1x4xf32> -> vector<2x10x10x4xf32>
    %7 = vector.extract_strided_slice %6 {offsets = [0, 0, 0, 0], sizes = [2, 8, 8, 4], strides = [1, 1, 1, 1]} : vector<2x10x10x4xf32> to vector<2x8x8x4xf32>
    %8 = vector.shape_cast %7 : vector<2x8x8x4xf32> to vector<128x4xf32>
    %9 = vector.extract_strided_slice %6 {offsets = [0, 0, 1, 0], sizes = [2, 8, 8, 4], strides = [1, 1, 1, 1]} : vector<2x10x10x4xf32> to vector<2x8x8x4xf32>
    %10 = vector.shape_cast %9 : vector<2x8x8x4xf32> to vector<128x4xf32>
    %11 = vector.extract_strided_slice %6 {offsets = [0, 0, 2, 0], sizes = [2, 8, 8, 4], strides = [1, 1, 1, 1]} : vector<2x10x10x4xf32> to vector<2x8x8x4xf32>
    %12 = vector.shape_cast %11 : vector<2x8x8x4xf32> to vector<128x4xf32>
    %13 = vector.extract_strided_slice %6 {offsets = [0, 1, 0, 0], sizes = [2, 8, 8, 4], strides = [1, 1, 1, 1]} : vector<2x10x10x4xf32> to vector<2x8x8x4xf32>
    %14 = vector.shape_cast %13 : vector<2x8x8x4xf32> to vector<128x4xf32>
    %15 = vector.extract_strided_slice %6 {offsets = [0, 1, 1, 0], sizes = [2, 8, 8, 4], strides = [1, 1, 1, 1]} : vector<2x10x10x4xf32> to vector<2x8x8x4xf32>
    %16 = vector.shape_cast %15 : vector<2x8x8x4xf32> to vector<128x4xf32>
    %17 = vector.extract_strided_slice %6 {offsets = [0, 1, 2, 0], sizes = [2, 8, 8, 4], strides = [1, 1, 1, 1]} : vector<2x10x10x4xf32> to vector<2x8x8x4xf32>
    %18 = vector.shape_cast %17 : vector<2x8x8x4xf32> to vector<128x4xf32>
    %19 = vector.extract_strided_slice %6 {offsets = [0, 2, 0, 0], sizes = [2, 8, 8, 4], strides = [1, 1, 1, 1]} : vector<2x10x10x4xf32> to vector<2x8x8x4xf32>
    %20 = vector.shape_cast %19 : vector<2x8x8x4xf32> to vector<128x4xf32>
    %21 = vector.extract_strided_slice %6 {offsets = [0, 2, 1, 0], sizes = [2, 8, 8, 4], strides = [1, 1, 1, 1]} : vector<2x10x10x4xf32> to vector<2x8x8x4xf32>
    %22 = vector.shape_cast %21 : vector<2x8x8x4xf32> to vector<128x4xf32>
    %23 = vector.extract_strided_slice %6 {offsets = [0, 2, 2, 0], sizes = [2, 8, 8, 4], strides = [1, 1, 1, 1]} : vector<2x10x10x4xf32> to vector<2x8x8x4xf32>
    %24 = vector.shape_cast %23 : vector<2x8x8x4xf32> to vector<128x4xf32>
    %25 = tpu.concatenate %8, %10, %12, %14, %16, %18, %20, %22, %24 in 1 : vector<128x4xf32>, vector<128x4xf32>, vector<128x4xf32>, vector<128x4xf32>, vector<128x4xf32>, vector<128x4xf32>, vector<128x4xf32>, vector<128x4xf32>, vector<128x4xf32> -> vector<128x36xf32>
    %cst_8 = arith.constant dense<0.000000e+00> : vector<128x16xf32>
    %26 = tpu.matmul %25, %1, %cst_8 {dimension_numbers = #tpu.dot_dimension_numbers<[1], [0], [0], [1], [0, 0, 1, 1], [], []>} : vector<128x36xf32>, vector<36x16xf32>, vector<128x16xf32> -> vector<128x16xf32>
    %27 = vector.broadcast %2 : vector<1x16xf32> to vector<128x16xf32>
    %28 = arith.addf %26, %27 : vector<128x16xf32>
    %cst_9 = arith.constant 0.000000e+00 : f32
    %29 = vector.broadcast %cst_9 : f32 to vector<128x16xf32>
    %30 = arith.cmpf oge, %28, %29 : vector<128x16xf32>
    %cst_10 = arith.constant 2.000000e-01 : f32
    %31 = vector.broadcast %cst_10 : f32 to vector<128x16xf32>
    %32 = arith.mulf %31, %28 : vector<128x16xf32>
    %33 = arith.select %30, %28, %32 : vector<128x16xi1>, vector<128x16xf32>
    %34 = vector.shape_cast %33 : vector<128x16xf32> to vector<2x8x8x16xf32>
    %c0_11 = arith.constant 0 : index
    %c0_12 = arith.constant 0 : index
    %c0_13 = arith.constant 0 : index
    %35 = vector.load %arg3[%c0_11, %c0_12, %c0_13] : memref<2x144x16xf32, #tpu.memory_space<vmem>>, vector<1x144x16xf32>
    %36 = vector.shape_cast %35 : vector<1x144x16xf32> to vector<144x16xf32>
    %c0_14 = arith.constant 0 : index
    %c0_15 = arith.constant 0 : index
    %c0_16 = arith.constant 0 : index
    %37 = vector.load %arg4[%c0_14, %c0_15, %c0_16] : memref<2x1x16xf32, #tpu.memory_space<vmem>>, vector<1x1x16xf32>
    %38 = vector.shape_cast %37 : vector<1x1x16xf32> to vector<1x16xf32>
    %cst_17 = arith.constant 0.000000e+00 : f32
    %39 = vector.broadcast %cst_17 : f32 to vector<2x1x8x16xf32>
    %40 = tpu.concatenate %39, %34, %39 in 1 : vector<2x1x8x16xf32>, vector<2x8x8x16xf32>, vector<2x1x8x16xf32> -> vector<2x10x8x16xf32>
    %cst_18 = arith.constant 0.000000e+00 : f32
    %41 = vector.broadcast %cst_18 : f32 to vector<2x10x1x16xf32>
    %42 = tpu.concatenate %41, %40, %41 in 2 : vector<2x10x1x16xf32>, vector<2x10x8x16xf32>, vector<2x10x1x16xf32> -> vector<2x10x10x16xf32>
    %43 = vector.extract_strided_slice %42 {offsets = [0, 0, 0, 0], sizes = [2, 8, 8, 16], strides = [1, 1, 1, 1]} : vector<2x10x10x16xf32> to vector<2x8x8x16xf32>
    %44 = vector.shape_cast %43 : vector<2x8x8x16xf32> to vector<128x16xf32>
    %45 = vector.extract_strided_slice %42 {offsets = [0, 0, 1, 0], sizes = [2, 8, 8, 16], strides = [1, 1, 1, 1]} : vector<2x10x10x16xf32> to vector<2x8x8x16xf32>
    %46 = vector.shape_cast %45 : vector<2x8x8x16xf32> to vector<128x16xf32>
    %47 = vector.extract_strided_slice %42 {offsets = [0, 0, 2, 0], sizes = [2, 8, 8, 16], strides = [1, 1, 1, 1]} : vector<2x10x10x16xf32> to vector<2x8x8x16xf32>
    %48 = vector.shape_cast %47 : vector<2x8x8x16xf32> to vector<128x16xf32>
    %49 = vector.extract_strided_slice %42 {offsets = [0, 1, 0, 0], sizes = [2, 8, 8, 16], strides = [1, 1, 1, 1]} : vector<2x10x10x16xf32> to vector<2x8x8x16xf32>
    %50 = vector.shape_cast %49 : vector<2x8x8x16xf32> to vector<128x16xf32>
    %51 = vector.extract_strided_slice %42 {offsets = [0, 1, 1, 0], sizes = [2, 8, 8, 16], strides = [1, 1, 1, 1]} : vector<2x10x10x16xf32> to vector<2x8x8x16xf32>
    %52 = vector.shape_cast %51 : vector<2x8x8x16xf32> to vector<128x16xf32>
    %53 = vector.extract_strided_slice %42 {offsets = [0, 1, 2, 0], sizes = [2, 8, 8, 16], strides = [1, 1, 1, 1]} : vector<2x10x10x16xf32> to vector<2x8x8x16xf32>
    %54 = vector.shape_cast %53 : vector<2x8x8x16xf32> to vector<128x16xf32>
    %55 = vector.extract_strided_slice %42 {offsets = [0, 2, 0, 0], sizes = [2, 8, 8, 16], strides = [1, 1, 1, 1]} : vector<2x10x10x16xf32> to vector<2x8x8x16xf32>
    %56 = vector.shape_cast %55 : vector<2x8x8x16xf32> to vector<128x16xf32>
    %57 = vector.extract_strided_slice %42 {offsets = [0, 2, 1, 0], sizes = [2, 8, 8, 16], strides = [1, 1, 1, 1]} : vector<2x10x10x16xf32> to vector<2x8x8x16xf32>
    %58 = vector.shape_cast %57 : vector<2x8x8x16xf32> to vector<128x16xf32>
    %59 = vector.extract_strided_slice %42 {offsets = [0, 2, 2, 0], sizes = [2, 8, 8, 16], strides = [1, 1, 1, 1]} : vector<2x10x10x16xf32> to vector<2x8x8x16xf32>
    %60 = vector.shape_cast %59 : vector<2x8x8x16xf32> to vector<128x16xf32>
    %61 = tpu.concatenate %44, %46, %48, %50, %52, %54, %56, %58, %60 in 1 : vector<128x16xf32>, vector<128x16xf32>, vector<128x16xf32>, vector<128x16xf32>, vector<128x16xf32>, vector<128x16xf32>, vector<128x16xf32>, vector<128x16xf32>, vector<128x16xf32> -> vector<128x144xf32>
    %cst_19 = arith.constant dense<0.000000e+00> : vector<128x16xf32>
    %62 = tpu.matmul %61, %36, %cst_19 {dimension_numbers = #tpu.dot_dimension_numbers<[1], [0], [0], [1], [0, 0, 1, 1], [], []>} : vector<128x144xf32>, vector<144x16xf32>, vector<128x16xf32> -> vector<128x16xf32>
    %63 = vector.broadcast %38 : vector<1x16xf32> to vector<128x16xf32>
    %64 = arith.addf %62, %63 : vector<128x16xf32>
    %cst_20 = arith.constant 0.000000e+00 : f32
    %65 = vector.broadcast %cst_20 : f32 to vector<128x16xf32>
    %66 = arith.cmpf oge, %64, %65 : vector<128x16xf32>
    %cst_21 = arith.constant 2.000000e-01 : f32
    %67 = vector.broadcast %cst_21 : f32 to vector<128x16xf32>
    %68 = arith.mulf %67, %64 : vector<128x16xf32>
    %69 = arith.select %66, %64, %68 : vector<128x16xi1>, vector<128x16xf32>
    %70 = vector.shape_cast %69 : vector<128x16xf32> to vector<2x8x8x16xf32>
    %c0_22 = arith.constant 0 : index
    %c0_23 = arith.constant 0 : index
    %c0_24 = arith.constant 0 : index
    %71 = vector.load %arg5[%c0_22, %c0_23, %c0_24] : memref<2x144x16xf32, #tpu.memory_space<vmem>>, vector<1x144x16xf32>
    %72 = vector.shape_cast %71 : vector<1x144x16xf32> to vector<144x16xf32>
    %c0_25 = arith.constant 0 : index
    %c0_26 = arith.constant 0 : index
    %c0_27 = arith.constant 0 : index
    %73 = vector.load %arg6[%c0_25, %c0_26, %c0_27] : memref<2x1x16xf32, #tpu.memory_space<vmem>>, vector<1x1x16xf32>
    %74 = vector.shape_cast %73 : vector<1x1x16xf32> to vector<1x16xf32>
    %cst_28 = arith.constant 0.000000e+00 : f32
    %75 = vector.broadcast %cst_28 : f32 to vector<2x1x8x16xf32>
    %76 = tpu.concatenate %75, %70, %75 in 1 : vector<2x1x8x16xf32>, vector<2x8x8x16xf32>, vector<2x1x8x16xf32> -> vector<2x10x8x16xf32>
    %cst_29 = arith.constant 0.000000e+00 : f32
    %77 = vector.broadcast %cst_29 : f32 to vector<2x10x1x16xf32>
    %78 = tpu.concatenate %77, %76, %77 in 2 : vector<2x10x1x16xf32>, vector<2x10x8x16xf32>, vector<2x10x1x16xf32> -> vector<2x10x10x16xf32>
    %79 = vector.extract_strided_slice %78 {offsets = [0, 0, 0, 0], sizes = [2, 8, 8, 16], strides = [1, 1, 1, 1]} : vector<2x10x10x16xf32> to vector<2x8x8x16xf32>
    %80 = vector.shape_cast %79 : vector<2x8x8x16xf32> to vector<128x16xf32>
    %81 = vector.extract_strided_slice %78 {offsets = [0, 0, 1, 0], sizes = [2, 8, 8, 16], strides = [1, 1, 1, 1]} : vector<2x10x10x16xf32> to vector<2x8x8x16xf32>
    %82 = vector.shape_cast %81 : vector<2x8x8x16xf32> to vector<128x16xf32>
    %83 = vector.extract_strided_slice %78 {offsets = [0, 0, 2, 0], sizes = [2, 8, 8, 16], strides = [1, 1, 1, 1]} : vector<2x10x10x16xf32> to vector<2x8x8x16xf32>
    %84 = vector.shape_cast %83 : vector<2x8x8x16xf32> to vector<128x16xf32>
    %85 = vector.extract_strided_slice %78 {offsets = [0, 1, 0, 0], sizes = [2, 8, 8, 16], strides = [1, 1, 1, 1]} : vector<2x10x10x16xf32> to vector<2x8x8x16xf32>
    %86 = vector.shape_cast %85 : vector<2x8x8x16xf32> to vector<128x16xf32>
    %87 = vector.extract_strided_slice %78 {offsets = [0, 1, 1, 0], sizes = [2, 8, 8, 16], strides = [1, 1, 1, 1]} : vector<2x10x10x16xf32> to vector<2x8x8x16xf32>
    %88 = vector.shape_cast %87 : vector<2x8x8x16xf32> to vector<128x16xf32>
    %89 = vector.extract_strided_slice %78 {offsets = [0, 1, 2, 0], sizes = [2, 8, 8, 16], strides = [1, 1, 1, 1]} : vector<2x10x10x16xf32> to vector<2x8x8x16xf32>
    %90 = vector.shape_cast %89 : vector<2x8x8x16xf32> to vector<128x16xf32>
    %91 = vector.extract_strided_slice %78 {offsets = [0, 2, 0, 0], sizes = [2, 8, 8, 16], strides = [1, 1, 1, 1]} : vector<2x10x10x16xf32> to vector<2x8x8x16xf32>
    %92 = vector.shape_cast %91 : vector<2x8x8x16xf32> to vector<128x16xf32>
    %93 = vector.extract_strided_slice %78 {offsets = [0, 2, 1, 0], sizes = [2, 8, 8, 16], strides = [1, 1, 1, 1]} : vector<2x10x10x16xf32> to vector<2x8x8x16xf32>
    %94 = vector.shape_cast %93 : vector<2x8x8x16xf32> to vector<128x16xf32>
    %95 = vector.extract_strided_slice %78 {offsets = [0, 2, 2, 0], sizes = [2, 8, 8, 16], strides = [1, 1, 1, 1]} : vector<2x10x10x16xf32> to vector<2x8x8x16xf32>
    %96 = vector.shape_cast %95 : vector<2x8x8x16xf32> to vector<128x16xf32>
    %97 = tpu.concatenate %80, %82, %84, %86, %88, %90, %92, %94, %96 in 1 : vector<128x16xf32>, vector<128x16xf32>, vector<128x16xf32>, vector<128x16xf32>, vector<128x16xf32>, vector<128x16xf32>, vector<128x16xf32>, vector<128x16xf32>, vector<128x16xf32> -> vector<128x144xf32>
    %cst_30 = arith.constant dense<0.000000e+00> : vector<128x16xf32>
    %98 = tpu.matmul %97, %72, %cst_30 {dimension_numbers = #tpu.dot_dimension_numbers<[1], [0], [0], [1], [0, 0, 1, 1], [], []>} : vector<128x144xf32>, vector<144x16xf32>, vector<128x16xf32> -> vector<128x16xf32>
    %99 = vector.broadcast %74 : vector<1x16xf32> to vector<128x16xf32>
    %100 = arith.addf %98, %99 : vector<128x16xf32>
    %101 = arith.addf %100, %33 : vector<128x16xf32>
    %102 = vector.shape_cast %101 : vector<128x16xf32> to vector<2x8x8x16xf32>
    %c1 = arith.constant 1 : index
    %c0_31 = arith.constant 0 : index
    %c0_32 = arith.constant 0 : index
    %103 = vector.load %arg3[%c1, %c0_31, %c0_32] : memref<2x144x16xf32, #tpu.memory_space<vmem>>, vector<1x144x16xf32>
    %104 = vector.shape_cast %103 : vector<1x144x16xf32> to vector<144x16xf32>
    %c1_33 = arith.constant 1 : index
    %c0_34 = arith.constant 0 : index
    %c0_35 = arith.constant 0 : index
    %105 = vector.load %arg4[%c1_33, %c0_34, %c0_35] : memref<2x1x16xf32, #tpu.memory_space<vmem>>, vector<1x1x16xf32>
    %106 = vector.shape_cast %105 : vector<1x1x16xf32> to vector<1x16xf32>
    %cst_36 = arith.constant 0.000000e+00 : f32
    %107 = vector.broadcast %cst_36 : f32 to vector<2x1x8x16xf32>
    %108 = tpu.concatenate %107, %102, %107 in 1 : vector<2x1x8x16xf32>, vector<2x8x8x16xf32>, vector<2x1x8x16xf32> -> vector<2x10x8x16xf32>
    %cst_37 = arith.constant 0.000000e+00 : f32
    %109 = vector.broadcast %cst_37 : f32 to vector<2x10x1x16xf32>
    %110 = tpu.concatenate %109, %108, %109 in 2 : vector<2x10x1x16xf32>, vector<2x10x8x16xf32>, vector<2x10x1x16xf32> -> vector<2x10x10x16xf32>
    %111 = vector.extract_strided_slice %110 {offsets = [0, 0, 0, 0], sizes = [2, 8, 8, 16], strides = [1, 1, 1, 1]} : vector<2x10x10x16xf32> to vector<2x8x8x16xf32>
    %112 = vector.shape_cast %111 : vector<2x8x8x16xf32> to vector<128x16xf32>
    %113 = vector.extract_strided_slice %110 {offsets = [0, 0, 1, 0], sizes = [2, 8, 8, 16], strides = [1, 1, 1, 1]} : vector<2x10x10x16xf32> to vector<2x8x8x16xf32>
    %114 = vector.shape_cast %113 : vector<2x8x8x16xf32> to vector<128x16xf32>
    %115 = vector.extract_strided_slice %110 {offsets = [0, 0, 2, 0], sizes = [2, 8, 8, 16], strides = [1, 1, 1, 1]} : vector<2x10x10x16xf32> to vector<2x8x8x16xf32>
    %116 = vector.shape_cast %115 : vector<2x8x8x16xf32> to vector<128x16xf32>
    %117 = vector.extract_strided_slice %110 {offsets = [0, 1, 0, 0], sizes = [2, 8, 8, 16], strides = [1, 1, 1, 1]} : vector<2x10x10x16xf32> to vector<2x8x8x16xf32>
    %118 = vector.shape_cast %117 : vector<2x8x8x16xf32> to vector<128x16xf32>
    %119 = vector.extract_strided_slice %110 {offsets = [0, 1, 1, 0], sizes = [2, 8, 8, 16], strides = [1, 1, 1, 1]} : vector<2x10x10x16xf32> to vector<2x8x8x16xf32>
    %120 = vector.shape_cast %119 : vector<2x8x8x16xf32> to vector<128x16xf32>
    %121 = vector.extract_strided_slice %110 {offsets = [0, 1, 2, 0], sizes = [2, 8, 8, 16], strides = [1, 1, 1, 1]} : vector<2x10x10x16xf32> to vector<2x8x8x16xf32>
    %122 = vector.shape_cast %121 : vector<2x8x8x16xf32> to vector<128x16xf32>
    %123 = vector.extract_strided_slice %110 {offsets = [0, 2, 0, 0], sizes = [2, 8, 8, 16], strides = [1, 1, 1, 1]} : vector<2x10x10x16xf32> to vector<2x8x8x16xf32>
    %124 = vector.shape_cast %123 : vector<2x8x8x16xf32> to vector<128x16xf32>
    %125 = vector.extract_strided_slice %110 {offsets = [0, 2, 1, 0], sizes = [2, 8, 8, 16], strides = [1, 1, 1, 1]} : vector<2x10x10x16xf32> to vector<2x8x8x16xf32>
    %126 = vector.shape_cast %125 : vector<2x8x8x16xf32> to vector<128x16xf32>
    %127 = vector.extract_strided_slice %110 {offsets = [0, 2, 2, 0], sizes = [2, 8, 8, 16], strides = [1, 1, 1, 1]} : vector<2x10x10x16xf32> to vector<2x8x8x16xf32>
    %128 = vector.shape_cast %127 : vector<2x8x8x16xf32> to vector<128x16xf32>
    %129 = tpu.concatenate %112, %114, %116, %118, %120, %122, %124, %126, %128 in 1 : vector<128x16xf32>, vector<128x16xf32>, vector<128x16xf32>, vector<128x16xf32>, vector<128x16xf32>, vector<128x16xf32>, vector<128x16xf32>, vector<128x16xf32>, vector<128x16xf32> -> vector<128x144xf32>
    %cst_38 = arith.constant dense<0.000000e+00> : vector<128x16xf32>
    %130 = tpu.matmul %129, %104, %cst_38 {dimension_numbers = #tpu.dot_dimension_numbers<[1], [0], [0], [1], [0, 0, 1, 1], [], []>} : vector<128x144xf32>, vector<144x16xf32>, vector<128x16xf32> -> vector<128x16xf32>
    %131 = vector.broadcast %106 : vector<1x16xf32> to vector<128x16xf32>
    %132 = arith.addf %130, %131 : vector<128x16xf32>
    %cst_39 = arith.constant 0.000000e+00 : f32
    %133 = vector.broadcast %cst_39 : f32 to vector<128x16xf32>
    %134 = arith.cmpf oge, %132, %133 : vector<128x16xf32>
    %cst_40 = arith.constant 2.000000e-01 : f32
    %135 = vector.broadcast %cst_40 : f32 to vector<128x16xf32>
    %136 = arith.mulf %135, %132 : vector<128x16xf32>
    %137 = arith.select %134, %132, %136 : vector<128x16xi1>, vector<128x16xf32>
    %138 = vector.shape_cast %137 : vector<128x16xf32> to vector<2x8x8x16xf32>
    %c1_41 = arith.constant 1 : index
    %c0_42 = arith.constant 0 : index
    %c0_43 = arith.constant 0 : index
    %139 = vector.load %arg5[%c1_41, %c0_42, %c0_43] : memref<2x144x16xf32, #tpu.memory_space<vmem>>, vector<1x144x16xf32>
    %140 = vector.shape_cast %139 : vector<1x144x16xf32> to vector<144x16xf32>
    %c1_44 = arith.constant 1 : index
    %c0_45 = arith.constant 0 : index
    %c0_46 = arith.constant 0 : index
    %141 = vector.load %arg6[%c1_44, %c0_45, %c0_46] : memref<2x1x16xf32, #tpu.memory_space<vmem>>, vector<1x1x16xf32>
    %142 = vector.shape_cast %141 : vector<1x1x16xf32> to vector<1x16xf32>
    %cst_47 = arith.constant 0.000000e+00 : f32
    %143 = vector.broadcast %cst_47 : f32 to vector<2x1x8x16xf32>
    %144 = tpu.concatenate %143, %138, %143 in 1 : vector<2x1x8x16xf32>, vector<2x8x8x16xf32>, vector<2x1x8x16xf32> -> vector<2x10x8x16xf32>
    %cst_48 = arith.constant 0.000000e+00 : f32
    %145 = vector.broadcast %cst_48 : f32 to vector<2x10x1x16xf32>
    %146 = tpu.concatenate %145, %144, %145 in 2 : vector<2x10x1x16xf32>, vector<2x10x8x16xf32>, vector<2x10x1x16xf32> -> vector<2x10x10x16xf32>
    %147 = vector.extract_strided_slice %146 {offsets = [0, 0, 0, 0], sizes = [2, 8, 8, 16], strides = [1, 1, 1, 1]} : vector<2x10x10x16xf32> to vector<2x8x8x16xf32>
    %148 = vector.shape_cast %147 : vector<2x8x8x16xf32> to vector<128x16xf32>
    %149 = vector.extract_strided_slice %146 {offsets = [0, 0, 1, 0], sizes = [2, 8, 8, 16], strides = [1, 1, 1, 1]} : vector<2x10x10x16xf32> to vector<2x8x8x16xf32>
    %150 = vector.shape_cast %149 : vector<2x8x8x16xf32> to vector<128x16xf32>
    %151 = vector.extract_strided_slice %146 {offsets = [0, 0, 2, 0], sizes = [2, 8, 8, 16], strides = [1, 1, 1, 1]} : vector<2x10x10x16xf32> to vector<2x8x8x16xf32>
    %152 = vector.shape_cast %151 : vector<2x8x8x16xf32> to vector<128x16xf32>
    %153 = vector.extract_strided_slice %146 {offsets = [0, 1, 0, 0], sizes = [2, 8, 8, 16], strides = [1, 1, 1, 1]} : vector<2x10x10x16xf32> to vector<2x8x8x16xf32>
    %154 = vector.shape_cast %153 : vector<2x8x8x16xf32> to vector<128x16xf32>
    %155 = vector.extract_strided_slice %146 {offsets = [0, 1, 1, 0], sizes = [2, 8, 8, 16], strides = [1, 1, 1, 1]} : vector<2x10x10x16xf32> to vector<2x8x8x16xf32>
    %156 = vector.shape_cast %155 : vector<2x8x8x16xf32> to vector<128x16xf32>
    %157 = vector.extract_strided_slice %146 {offsets = [0, 1, 2, 0], sizes = [2, 8, 8, 16], strides = [1, 1, 1, 1]} : vector<2x10x10x16xf32> to vector<2x8x8x16xf32>
    %158 = vector.shape_cast %157 : vector<2x8x8x16xf32> to vector<128x16xf32>
    %159 = vector.extract_strided_slice %146 {offsets = [0, 2, 0, 0], sizes = [2, 8, 8, 16], strides = [1, 1, 1, 1]} : vector<2x10x10x16xf32> to vector<2x8x8x16xf32>
    %160 = vector.shape_cast %159 : vector<2x8x8x16xf32> to vector<128x16xf32>
    %161 = vector.extract_strided_slice %146 {offsets = [0, 2, 1, 0], sizes = [2, 8, 8, 16], strides = [1, 1, 1, 1]} : vector<2x10x10x16xf32> to vector<2x8x8x16xf32>
    %162 = vector.shape_cast %161 : vector<2x8x8x16xf32> to vector<128x16xf32>
    %163 = vector.extract_strided_slice %146 {offsets = [0, 2, 2, 0], sizes = [2, 8, 8, 16], strides = [1, 1, 1, 1]} : vector<2x10x10x16xf32> to vector<2x8x8x16xf32>
    %164 = vector.shape_cast %163 : vector<2x8x8x16xf32> to vector<128x16xf32>
    %165 = tpu.concatenate %148, %150, %152, %154, %156, %158, %160, %162, %164 in 1 : vector<128x16xf32>, vector<128x16xf32>, vector<128x16xf32>, vector<128x16xf32>, vector<128x16xf32>, vector<128x16xf32>, vector<128x16xf32>, vector<128x16xf32>, vector<128x16xf32> -> vector<128x144xf32>
    %cst_49 = arith.constant dense<0.000000e+00> : vector<128x16xf32>
    %166 = tpu.matmul %165, %140, %cst_49 {dimension_numbers = #tpu.dot_dimension_numbers<[1], [0], [0], [1], [0, 0, 1, 1], [], []>} : vector<128x144xf32>, vector<144x16xf32>, vector<128x16xf32> -> vector<128x16xf32>
    %167 = vector.broadcast %142 : vector<1x16xf32> to vector<128x16xf32>
    %168 = arith.addf %166, %167 : vector<128x16xf32>
    %169 = arith.addf %168, %101 : vector<128x16xf32>
    %170 = vector.shape_cast %169 : vector<128x16xf32> to vector<2x8x8x16xf32>
    %c0_50 = arith.constant 0 : index
    %c0_51 = arith.constant 0 : index
    %171 = vector.load %arg7[%c0_50, %c0_51] : memref<144x16xf32, #tpu.memory_space<vmem>>, vector<144x16xf32>
    %c0_52 = arith.constant 0 : index
    %c0_53 = arith.constant 0 : index
    %172 = vector.load %arg8[%c0_52, %c0_53] : memref<1x16xf32, #tpu.memory_space<vmem>>, vector<1x16xf32>
    %cst_54 = arith.constant 0.000000e+00 : f32
    %173 = vector.broadcast %cst_54 : f32 to vector<2x1x8x16xf32>
    %174 = tpu.concatenate %173, %170, %173 in 1 : vector<2x1x8x16xf32>, vector<2x8x8x16xf32>, vector<2x1x8x16xf32> -> vector<2x10x8x16xf32>
    %cst_55 = arith.constant 0.000000e+00 : f32
    %175 = vector.broadcast %cst_55 : f32 to vector<2x10x1x16xf32>
    %176 = tpu.concatenate %175, %174, %175 in 2 : vector<2x10x1x16xf32>, vector<2x10x8x16xf32>, vector<2x10x1x16xf32> -> vector<2x10x10x16xf32>
    %177 = vector.extract_strided_slice %176 {offsets = [0, 0, 0, 0], sizes = [2, 8, 8, 16], strides = [1, 1, 1, 1]} : vector<2x10x10x16xf32> to vector<2x8x8x16xf32>
    %178 = vector.shape_cast %177 : vector<2x8x8x16xf32> to vector<128x16xf32>
    %179 = vector.extract_strided_slice %176 {offsets = [0, 0, 1, 0], sizes = [2, 8, 8, 16], strides = [1, 1, 1, 1]} : vector<2x10x10x16xf32> to vector<2x8x8x16xf32>
    %180 = vector.shape_cast %179 : vector<2x8x8x16xf32> to vector<128x16xf32>
    %181 = vector.extract_strided_slice %176 {offsets = [0, 0, 2, 0], sizes = [2, 8, 8, 16], strides = [1, 1, 1, 1]} : vector<2x10x10x16xf32> to vector<2x8x8x16xf32>
    %182 = vector.shape_cast %181 : vector<2x8x8x16xf32> to vector<128x16xf32>
    %183 = vector.extract_strided_slice %176 {offsets = [0, 1, 0, 0], sizes = [2, 8, 8, 16], strides = [1, 1, 1, 1]} : vector<2x10x10x16xf32> to vector<2x8x8x16xf32>
    %184 = vector.shape_cast %183 : vector<2x8x8x16xf32> to vector<128x16xf32>
    %185 = vector.extract_strided_slice %176 {offsets = [0, 1, 1, 0], sizes = [2, 8, 8, 16], strides = [1, 1, 1, 1]} : vector<2x10x10x16xf32> to vector<2x8x8x16xf32>
    %186 = vector.shape_cast %185 : vector<2x8x8x16xf32> to vector<128x16xf32>
    %187 = vector.extract_strided_slice %176 {offsets = [0, 1, 2, 0], sizes = [2, 8, 8, 16], strides = [1, 1, 1, 1]} : vector<2x10x10x16xf32> to vector<2x8x8x16xf32>
    %188 = vector.shape_cast %187 : vector<2x8x8x16xf32> to vector<128x16xf32>
    %189 = vector.extract_strided_slice %176 {offsets = [0, 2, 0, 0], sizes = [2, 8, 8, 16], strides = [1, 1, 1, 1]} : vector<2x10x10x16xf32> to vector<2x8x8x16xf32>
    %190 = vector.shape_cast %189 : vector<2x8x8x16xf32> to vector<128x16xf32>
    %191 = vector.extract_strided_slice %176 {offsets = [0, 2, 1, 0], sizes = [2, 8, 8, 16], strides = [1, 1, 1, 1]} : vector<2x10x10x16xf32> to vector<2x8x8x16xf32>
    %192 = vector.shape_cast %191 : vector<2x8x8x16xf32> to vector<128x16xf32>
    %193 = vector.extract_strided_slice %176 {offsets = [0, 2, 2, 0], sizes = [2, 8, 8, 16], strides = [1, 1, 1, 1]} : vector<2x10x10x16xf32> to vector<2x8x8x16xf32>
    %194 = vector.shape_cast %193 : vector<2x8x8x16xf32> to vector<128x16xf32>
    %195 = tpu.concatenate %178, %180, %182, %184, %186, %188, %190, %192, %194 in 1 : vector<128x16xf32>, vector<128x16xf32>, vector<128x16xf32>, vector<128x16xf32>, vector<128x16xf32>, vector<128x16xf32>, vector<128x16xf32>, vector<128x16xf32>, vector<128x16xf32> -> vector<128x144xf32>
    %cst_56 = arith.constant dense<0.000000e+00> : vector<128x16xf32>
    %196 = tpu.matmul %195, %171, %cst_56 {dimension_numbers = #tpu.dot_dimension_numbers<[1], [0], [0], [1], [0, 0, 1, 1], [], []>} : vector<128x144xf32>, vector<144x16xf32>, vector<128x16xf32> -> vector<128x16xf32>
    %197 = vector.broadcast %172 : vector<1x16xf32> to vector<128x16xf32>
    %198 = arith.addf %196, %197 : vector<128x16xf32>
    %199 = arith.addf %198, %33 : vector<128x16xf32>
    %200 = vector.shape_cast %199 : vector<128x16xf32> to vector<2x8x8x16xf32>
    %c0_57 = arith.constant 0 : index
    %c0_58 = arith.constant 0 : index
    %201 = vector.load %arg9[%c0_57, %c0_58] : memref<144x32xf32, #tpu.memory_space<vmem>>, vector<144x32xf32>
    %c0_59 = arith.constant 0 : index
    %c0_60 = arith.constant 0 : index
    %202 = vector.load %arg10[%c0_59, %c0_60] : memref<1x32xf32, #tpu.memory_space<vmem>>, vector<1x32xf32>
    %cst_61 = arith.constant 0.000000e+00 : f32
    %203 = vector.broadcast %cst_61 : f32 to vector<2x1x8x16xf32>
    %204 = tpu.concatenate %203, %200, %203 in 1 : vector<2x1x8x16xf32>, vector<2x8x8x16xf32>, vector<2x1x8x16xf32> -> vector<2x10x8x16xf32>
    %cst_62 = arith.constant 0.000000e+00 : f32
    %205 = vector.broadcast %cst_62 : f32 to vector<2x10x1x16xf32>
    %206 = tpu.concatenate %205, %204, %205 in 2 : vector<2x10x1x16xf32>, vector<2x10x8x16xf32>, vector<2x10x1x16xf32> -> vector<2x10x10x16xf32>
    %207 = vector.extract_strided_slice %206 {offsets = [0, 0, 0, 0], sizes = [2, 8, 8, 16], strides = [1, 1, 1, 1]} : vector<2x10x10x16xf32> to vector<2x8x8x16xf32>
    %208 = vector.shape_cast %207 : vector<2x8x8x16xf32> to vector<128x16xf32>
    %209 = vector.extract_strided_slice %206 {offsets = [0, 0, 1, 0], sizes = [2, 8, 8, 16], strides = [1, 1, 1, 1]} : vector<2x10x10x16xf32> to vector<2x8x8x16xf32>
    %210 = vector.shape_cast %209 : vector<2x8x8x16xf32> to vector<128x16xf32>
    %211 = vector.extract_strided_slice %206 {offsets = [0, 0, 2, 0], sizes = [2, 8, 8, 16], strides = [1, 1, 1, 1]} : vector<2x10x10x16xf32> to vector<2x8x8x16xf32>
    %212 = vector.shape_cast %211 : vector<2x8x8x16xf32> to vector<128x16xf32>
    %213 = vector.extract_strided_slice %206 {offsets = [0, 1, 0, 0], sizes = [2, 8, 8, 16], strides = [1, 1, 1, 1]} : vector<2x10x10x16xf32> to vector<2x8x8x16xf32>
    %214 = vector.shape_cast %213 : vector<2x8x8x16xf32> to vector<128x16xf32>
    %215 = vector.extract_strided_slice %206 {offsets = [0, 1, 1, 0], sizes = [2, 8, 8, 16], strides = [1, 1, 1, 1]} : vector<2x10x10x16xf32> to vector<2x8x8x16xf32>
    %216 = vector.shape_cast %215 : vector<2x8x8x16xf32> to vector<128x16xf32>
    %217 = vector.extract_strided_slice %206 {offsets = [0, 1, 2, 0], sizes = [2, 8, 8, 16], strides = [1, 1, 1, 1]} : vector<2x10x10x16xf32> to vector<2x8x8x16xf32>
    %218 = vector.shape_cast %217 : vector<2x8x8x16xf32> to vector<128x16xf32>
    %219 = vector.extract_strided_slice %206 {offsets = [0, 2, 0, 0], sizes = [2, 8, 8, 16], strides = [1, 1, 1, 1]} : vector<2x10x10x16xf32> to vector<2x8x8x16xf32>
    %220 = vector.shape_cast %219 : vector<2x8x8x16xf32> to vector<128x16xf32>
    %221 = vector.extract_strided_slice %206 {offsets = [0, 2, 1, 0], sizes = [2, 8, 8, 16], strides = [1, 1, 1, 1]} : vector<2x10x10x16xf32> to vector<2x8x8x16xf32>
    %222 = vector.shape_cast %221 : vector<2x8x8x16xf32> to vector<128x16xf32>
    %223 = vector.extract_strided_slice %206 {offsets = [0, 2, 2, 0], sizes = [2, 8, 8, 16], strides = [1, 1, 1, 1]} : vector<2x10x10x16xf32> to vector<2x8x8x16xf32>
    %224 = vector.shape_cast %223 : vector<2x8x8x16xf32> to vector<128x16xf32>
    %225 = tpu.concatenate %208, %210, %212, %214, %216, %218, %220, %222, %224 in 1 : vector<128x16xf32>, vector<128x16xf32>, vector<128x16xf32>, vector<128x16xf32>, vector<128x16xf32>, vector<128x16xf32>, vector<128x16xf32>, vector<128x16xf32>, vector<128x16xf32> -> vector<128x144xf32>
    %cst_63 = arith.constant dense<0.000000e+00> : vector<128x32xf32>
    %226 = tpu.matmul %225, %201, %cst_63 {dimension_numbers = #tpu.dot_dimension_numbers<[1], [0], [0], [1], [0, 0, 1, 1], [], []>} : vector<128x144xf32>, vector<144x32xf32>, vector<128x32xf32> -> vector<128x32xf32>
    %227 = vector.broadcast %202 : vector<1x32xf32> to vector<128x32xf32>
    %228 = arith.addf %226, %227 : vector<128x32xf32>
    %229 = tpu.transpose %228, [1, 0] : vector<128x32xf32> -> vector<32x128xf32>
    %c0_64 = arith.constant 0 : index
    %c0_65 = arith.constant 0 : index
    %230 = vector.load %arg11[%c0_64, %c0_65] : memref<128x288xf32, #tpu.memory_space<vmem>>, vector<128x288xf32>
    %cst_66 = arith.constant dense<0.000000e+00> : vector<32x288xf32>
    %231 = tpu.matmul %229, %230, %cst_66 {dimension_numbers = #tpu.dot_dimension_numbers<[1], [0], [0], [1], [0, 0, 1, 1], [], []>} : vector<32x128xf32>, vector<128x288xf32>, vector<32x288xf32> -> vector<32x288xf32>
    %cst_67 = arith.constant 0.000000e+00 : f32
    %232 = vector.broadcast %cst_67 : f32 to vector<32x288xf32>
    %233 = arith.cmpf oge, %231, %232 : vector<32x288xf32>
    %cst_68 = arith.constant 2.000000e-01 : f32
    %234 = vector.broadcast %cst_68 : f32 to vector<32x288xf32>
    %235 = arith.mulf %234, %231 : vector<32x288xf32>
    %236 = arith.select %233, %231, %235 : vector<32x288xi1>, vector<32x288xf32>
    %c0_69 = arith.constant 0 : index
    %c0_70 = arith.constant 0 : index
    %237 = vector.load %arg12[%c0_69, %c0_70] : memref<3x32xf32, #tpu.memory_space<vmem>>, vector<3x32xf32>
    %cst_71 = arith.constant dense<0.000000e+00> : vector<3x288xf32>
    %238 = tpu.matmul %237, %236, %cst_71 {dimension_numbers = #tpu.dot_dimension_numbers<[1], [0], [0], [1], [0, 0, 1, 1], [], []>} : vector<3x32xf32>, vector<32x288xf32>, vector<3x288xf32> -> vector<3x288xf32>
    %c0_72 = arith.constant 0 : index
    %c0_73 = arith.constant 0 : index
    %239 = vector.load %arg13[%c0_72, %c0_73] : memref<3x1xf32, #tpu.memory_space<vmem>>, vector<3x1xf32>
    %240 = vector.broadcast %239 : vector<3x1xf32> to vector<3x288xf32>
    %241 = arith.addf %238, %240 : vector<3x288xf32>
    %c0_74 = arith.constant 0 : index
    %c0_75 = arith.constant 0 : index
    %242 = vector.load %arg14[%c0_74, %c0_75] : memref<3x288xf32, #tpu.memory_space<vmem>>, vector<3x288xf32>
    tpu.vector_store %arg14[%c0_74, %c0_75], %241 {strides = array<i32>} : memref<3x288xf32, #tpu.memory_space<vmem>>, vector<3x288xf32>,
    return
  }
}

</mosaic_0001>

<bundles_post_ra>
// kernel: decoder_forward.1
= control target key start
LH: loop header
LB: loop body
LE: loop exit
PB: predicated region body
PF: predicated region fallthrough
CT: control target
= control target key end

     0   :  { %vm120_vm0 = vcmask 1040384   ;;  %v12739_v2 = vmov 0.0   ;;  %vm231_vm1 = vcmask 1045504   ;;  %vm185_vm2 = vcmask 1046528   ;;  %s8653_s17 = smov 12   ;;  %s8654_s18 = smov 8   ;;  %s12724_s0 = inlined_call_operand.vmem [shape: f32[2,8,8,4], index: 0, kind: input, shape index: {}]   ;;  %s12725_s1 = inlined_call_operand.vmem [shape: f32[36,16], index: 1, kind: input, shape index: {}]   ;;  %s12726_s2 = inlined_call_operand.vmem [shape: f32[1,16], index: 2, kind: input, shape index: {}]   ;;  %s12727_s3 = inlined_call_operand.vmem [shape: f32[2,144,16], index: 3, kind: input, shape index: {}]   ;;  %s12728_s4 = inlined_call_operand.vmem [shape: f32[2,1,16], index: 4, kind: input, shape index: {}]   ;;  %s12729_s5 = inlined_call_operand.vmem [shape: f32[2,144,16], index: 5, kind: input, shape index: {}]   ;;  %s12730_s6 = inlined_call_operand.vmem [shape: f32[2,1,16], index: 6, kind: input, shape index: {}]   ;;  %s12731_s7 = inlined_call_operand.vmem [shape: f32[144,16], index: 7, kind: input, shape index: {}]   ;;  %s12732_s8 = inlined_call_operand.vmem [shape: f32[1,16], index: 8, kind: input, shape index: {}]   ;;  %s12733_s9 = inlined_call_operand.vmem [shape: f32[144,32], index: 9, kind: input, shape index: {}]   ;;  %s12734_s11 = inlined_call_operand.vmem [shape: f32[128,288], index: 11, kind: input, shape index: {}]   ;;  %s12735_s10 = inlined_call_operand.vmem [shape: f32[1,32], index: 10, kind: input, shape index: {}]   ;;  %s12736_s13 = inlined_call_operand.vmem [shape: f32[3,1], index: 13, kind: input, shape index: {}]   ;;  %s12737_s12 = inlined_call_operand.vmem [shape: f32[3,32], index: 12, kind: input, shape index: {}]   ;;  %s12738_s14 = inlined_call_operand.vmem [shape: f32[3,288], index: 14, kind: output, shape index: {}]  }
   0x1   :  { %v48_v0 = vld [vmem:[%s12724_s0 + $0x8] sm:$0xff]  ;;  %v47_v1 = vld [vmem:[%s12724_s0] sm:$0xff]  ;;  %v86_v3 = vrot.slane %v12739_v2, 7  ;;  %s8655_s19 = smov 4   ;;  %v49_v29 = vld [vmem:[%s12724_s0 + $0x10] sm:$0xff]  ;;  %s8656_s22 = smov 16  }
   0x2   :  { %v88_v4 = vrot.slane %v48_v0, 7  ;;  %v87_v5 = vrot.slane %v47_v1, 7  ;;  %v89_v31 = vrot.slane %v49_v29, 7  ;;  %s8657_s23 = smov 20   ;;  %v63_v32 = vld [vmem:[%s12725_s1] sm:$0xff]  ;;  %v64_v33 = vld [vmem:[%s12725_s1 + $0x8] sm:$0xff] }
   0x3   :  { %v8752_v6 = vsel %vm120_vm0, 0.0, %v86_v3  ;;  %v138_v7 = vsel %vm120_vm0, %v86_v3, 0.0  ;;  %v6911_v36 = vpack.c.bf16 %v64_v33, %v63_v32  ;;  %s8658_s28 = smov 24   ;;  %v65_v39 = vld [vmem:[%s12725_s1 + $0x10] sm:$0xff]  ;;  %v66_v40 = vld [vmem:[%s12725_s1 + $0x18] sm:$0xff]  ;;  %s8659_s20 = smov 28  }
   0x4   :  { %v8756_v8 = vsel %vm120_vm0, 0.0, %v88_v4  ;;  %v8759_v9 = vsel %vm120_vm0, 0.0, %v87_v5  ;;  %v232_v10 = vrot.slane %v8752_v6, 2  ;;  %v233_v11 = vrot.slane %v138_v7, 2  ;;  %v67_v43 = vld [vmem:[%s12725_s1 + $0x20] sm:$0xf] }
   0x5   :  { %385 = vrot.lane.b32.xlu1 %v8756_v8, %s8653_s17  ;;  %383 = vrot.lane.b32.xlu0 %v8759_v9, %s8653_s17  ;;  %v186_v12 = vrot.slane %v8752_v6, 1  ;;  %v187_v13 = vrot.slane %v138_v7, 1  ;;  %v139_v14 = vsel %vm120_vm0, %v87_v5, 0.0  ;;  %v235_v15 = vrot.slane %v8759_v9, 2  ;;  %v50_v44 = vld [vmem:[%s12724_s0 + $0x18] sm:$0xff]  ;;  %s8660_s27 = smov 32  }
   0x6   :  { %v8770_v16 = vsel %vm231_vm1, %v232_v10, %v233_v11  ;;  %v236_v17 = vrot.slane %v139_v14, 2  ;;  %v189_v18 = vrot.slane %v8759_v9, 1  ;;  %v190_v19 = vrot.slane %v139_v14, 1  ;;  %6912 = vmatprep.subr.bf16.mxu0 %v6911_v36  ;;  %v51_v53 = vld [vmem:[%s12724_s0 + $0x20] sm:$0xff]  ;;  %v52_v3 = vld [vmem:[%s12724_s0 + $0x28] sm:$0xff]  ;;  %s8663_s26 = smov 80  }
   0x7   :  { %v8774_v20 = vsel %vm185_vm2, %v186_v12, %v187_v13  ;;  %v140_v21 = vsel %vm120_vm0, %v88_v4, 0.0  ;;  %v192_v24 = vrot.slane %v8756_v8, 1  ;;  %v238_v27 = vrot.slane %v8756_v8, 2  ;;  %6914 = vmatpush3.bf16.msra.mxu0 %v6911_v36  ;;  %v53_v13 = vld [vmem:[%s12724_s0 + $0x30] sm:$0xff]  ;;  %s8664_s1 = smov 64   ;;  %s8665_s24 = smov 96  }
   0x8   :  { %v237_v22 = vsel %vm231_vm1, %v235_v15, %v236_v17  ;;  %v191_v23 = vsel %vm185_vm2, %v189_v18, %v190_v19  ;;  %v193_v25 = vrot.slane %v140_v21, 1  ;;  %v239_v28 = vrot.slane %v140_v21, 2  ;;  %s8666_s25 = smov 112  }
   0x9   :  { %338 = vrot.lane.b32.xlu1 %v8770_v16, %s8654_s18  ;;  %293 = vrot.lane.b32.xlu0 %v8774_v20, %s8655_s19  ;;  %v8803_v34 = vsel %vm120_vm0, 0.0, %v89_v31  ;;  %v141_v35 = vsel %vm120_vm0, %v89_v31, 0.0  ;;  %v6915_v41 = vpack.c.bf16 %v66_v40, %v65_v39  ;;  %vm851_vm3 = vcmask 1043456   ;;  %v55_v40 = vld [vmem:[%s12724_s0 + $0x40] sm:$0xff] }
   0xa   :  { %v194_v26 = vsel %vm185_vm2, %v192_v24, %v193_v25  ;;  %v240_v30 = vsel %vm231_vm1, %v238_v27, %v239_v28  ;;  %v195_v37 = vrot.slane %v8803_v34, 1  ;;  %v196_v38 = vrot.slane %v141_v35, 1  ;;  %v54_v28 = vld [vmem:[%s12724_s0 + $0x38] sm:$0xff] }
   0xb   :  { %6916 = vmatprep.subr.bf16.mxu0 %v6915_v41  ;;  %v241_v45 = vrot.slane %v8803_v34, 2  ;;  %v242_v46 = vrot.slane %v141_v35, 2  ;;  %v90_v47 = vrot.slane %v50_v44, 7  ;;  %v91_v57 = vrot.slane %v51_v53, 7 }
   0xc   :  { %v197_v42 = vsel %vm185_vm2, %v195_v37, %v196_v38  ;;  %6918 = vmatpush3.bf16.msra.mxu0 %v6915_v41  ;;  %v92_v5 = vrot.slane %v52_v3, 7  ;;  %v93_v18 = vrot.slane %v53_v13, 7  ;;  %vm662_vm4 = vcmask 31744  }
   0xd   :  { %340 = vrot.lane.b32.xlu1 %v237_v22, %s8654_s18  ;;  %295 = vrot.lane.b32.xlu0 %v191_v23, %s8655_s19  ;;  %v243_v48 = vsel %vm231_vm1, %v241_v45, %v242_v46  ;;  %v8833_v49 = vsel %vm120_vm0, 0.0, %v90_v47  ;;  %v142_v50 = vsel %vm120_vm0, %v90_v47, 0.0  ;;  %v8852_v59 = vsel %vm120_vm0, 0.0, %v91_v57 }
   0xe   :  { %6836 = vmatprep.subr.msk.mxu0 %vm851_vm3, %v67_v43  ;;  %v198_v51 = vrot.slane %v8833_v49, 1  ;;  %v199_v52 = vrot.slane %v142_v50, 1  ;;  %v244_v55 = vrot.slane %v8833_v49, 2  ;;  %v245_v56 = vrot.slane %v142_v50, 2 }
   0xf   :  { %v143_v60 = vsel %vm120_vm0, %v91_v57, 0.0  ;;  %v201_v61 = vrot.slane %v8852_v59, 1  ;;  %v247_v0 = vrot.slane %v8852_v59, 2  ;;  %v8875_v7 = vsel %vm120_vm0, 0.0, %v92_v5 }
  0x10   :  { %6837 = vmatpush3.msk.msra.mxu0 %vm851_vm3, %v67_v43  ;;  %v200_v54 = vsel %vm185_vm2, %v198_v51, %v199_v52  ;;  %v246_v58 = vsel %vm231_vm1, %v244_v55, %v245_v56  ;;  %v202_v62 = vrot.slane %v143_v60, 1  ;;  %v248_v1 = vrot.slane %v143_v60, 2 }
  0x11   :  { %433 = vrot.lane.b32.xlu1 %v194_v26, %s8656_s22  ;;  %431 = vrot.lane.b32.xlu0 %v191_v23, %s8656_s22  ;;  %v144_v10 = vsel %vm120_vm0, %v92_v5, 0.0  ;;  %v204_v11 = vrot.slane %v8875_v7, 1  ;;  %v250_v15 = vrot.slane %v8875_v7, 2  ;;  %v8894_v21 = vsel %vm120_vm0, 0.0, %v93_v18 }
  0x12   :  { %v203_v63 = vsel %vm185_vm2, %v201_v61, %v202_v62  ;;  %v249_v4 = vsel %vm231_vm1, %v247_v0, %v248_v1  ;;  %v205_v12 = vrot.slane %v144_v10, 1  ;;  %v251_v17 = vrot.slane %v144_v10, 2 }
  0x13   :  { %v207_v23 = vrot.slane %v8894_v21, 1  ;;  %v95_v43 = vrot.slane %v55_v40, 7  ;;  %vm678_vm5 = vcmask 64512   ;;  %vm694_vm6 = vcmask 97280  }
  0x14   :  { %v206_v14 = vsel %vm185_vm2, %v204_v11, %v205_v12  ;;  %v252_v19 = vsel %vm231_vm1, %v250_v15, %v251_v17  ;;  %v57_v15 = vld [vmem:[%s12724_s0 + $0x50] sm:$0xff]  ;;  %vm711_vm7 = vcmask 130048   ;;  %vm728_vm8 = vcmask 162816  }
  0x15   :  { %481 = vrot.lane.b32.xlu1 %v240_v30, %s8657_s23  ;;  %479 = vrot.lane.b32.xlu0 %v237_v22, %s8657_s23  ;;  %v145_v22 = vsel %vm120_vm0, %v93_v18, 0.0  ;;  %v8938_v46 = vsel %vm120_vm0, 0.0, %v95_v43  ;;  %v147_v47 = vsel %vm120_vm0, %v95_v43, 0.0  ;;  %vm745_vm9 = vcmask 195584  }
  0x16   :  { %v208_v24 = vrot.slane %v145_v22, 1  ;;  %v254_v27 = vrot.slane %v145_v22, 2  ;;  %v256_v50 = vrot.slane %v8938_v46, 2  ;;  %v257_v51 = vrot.slane %v147_v47, 2 }
  0x17   :  { %v210_v52 = vrot.slane %v8938_v46, 1  ;;  %v211_v53 = vrot.slane %v147_v47, 1  ;;  %vm762_vm10 = vcmask 228352   ;;  %vm779_vm11 = vcmask 261120  }
  0x18   :  { %v209_v25 = vsel %vm185_vm2, %v207_v23, %v208_v24  ;;  %v258_v57 = vsel %vm231_vm1, %v256_v50, %v257_v51  ;;  %vm802_vm12 = vcmask 293888   ;;  %v58_v51 = vld [vmem:[%s12724_s0 + $0x58] sm:$0xff] }
  0x19   :  { %529 = vrot.lane.b32.xlu1 %v8803_v34, %s8658_s28  ;;  %527 = vrot.lane.b32.xlu0 %v8756_v8, %s8658_s28 }
  0x1d   :  { %297 = vrot.lane.b32.xlu1 %v194_v26, %s8655_s19  ;;  %572 = vrot.lane.b32.xlu0 %v194_v26, %s8659_s20  ;;  %v253_v26 = vrot.slane %v8894_v21, 2 }
  0x1f   :  { %v255_v29 = vsel %vm231_vm1, %v253_v26, %v254_v27 }
  0x21   :  { %617 = vrot.lane.b32.xlu1 %v240_v30, %s8660_s27  ;;  %574 = vrot.lane.b32.xlu0 %v197_v42, %s8659_s20 }
  0x25   :  { %342 = vrot.lane.b32.xlu1 %v240_v30, %s8654_s18  ;;  %299 = vrot.lane.b32.xlu0 %v197_v42, %s8655_s19  ;;  %v94_v30 = vrot.slane %v54_v28, 7 }
  0x27   :  { %v129_v31 = vsel %vm120_vm0, 0.0, %v94_v30  ;;  %v146_v32 = vsel %vm120_vm0, %v94_v30, 0.0 }
  0x28   :  { %v281_v33 = vrot.slane %v129_v31, 1  ;;  %v282_v35 = vrot.slane %v146_v32, 1  ;;  %v287_v37 = vrot.slane %v129_v31, 2  ;;  %v288_v38 = vrot.slane %v146_v32, 2 }
  0x29   :  { %344 = vrot.lane.b32.xlu1 %v243_v48, %s8654_s18  ;;  %619 = vrot.lane.b32.xlu0 %v243_v48, %s8660_s27 }
  0x2a   :  { %v283_v36 = vsel %vm185_vm2, %v281_v33, %v282_v35  ;;  %v289_v39 = vsel %vm231_vm1, %v287_v37, %v288_v38 }
  0x2d   :  { %389 = vrot.lane.b32.xlu1 %v8833_v49, %s8653_s17  ;;  %387 = vrot.lane.b32.xlu0 %v8803_v34, %s8653_s17 }
  0x31   :  { %437 = vrot.lane.b32.xlu1 %v200_v54, %s8656_s22  ;;  %435 = vrot.lane.b32.xlu0 %v197_v42, %s8656_s22 }
  0x35   :  { %485 = vrot.lane.b32.xlu1 %v246_v58, %s8657_s23  ;;  %483 = vrot.lane.b32.xlu0 %v243_v48, %s8657_s23  ;;  %v56_v48 = vld [vmem:[%s12724_s0 + $0x48] sm:$0xff] }
  0x36   :  { %v96_v56 = vrot.slane %v56_v48, 7 }
  0x38   :  { %v8955_v62 = vsel %vm120_vm0, 0.0, %v96_v56 }
  0x39   :  { %533 = vrot.lane.b32.xlu1 %v8852_v59, %s8658_s28  ;;  %531 = vrot.lane.b32.xlu0 %v8833_v49, %s8658_s28  ;;  %v213_v0 = vrot.slane %v8955_v62, 1  ;;  %v259_v11 = vrot.slane %v8955_v62, 2 }
  0x3d   :  { %578 = vrot.lane.b32.xlu1 %v203_v63, %s8659_s20  ;;  %576 = vrot.lane.b32.xlu0 %v200_v54, %s8659_s20 }
  0x41   :  { %301 = vrot.lane.b32.xlu1 %v200_v54, %s8655_s19  ;;  %621 = vrot.lane.b32.xlu0 %v246_v58, %s8660_s27 }
  0x45   :  { %303 = vrot.lane.b32.xlu1 %v203_v63, %s8655_s19  ;;  %623 = vrot.lane.b32.xlu0 %v249_v4, %s8660_s27 }
  0x49   :  { %348 = vrot.lane.b32.xlu1 %v249_v4, %s8654_s18  ;;  %346 = vrot.lane.b32.xlu0 %v246_v58, %s8654_s18  ;;  %v212_v58 = vsel %vm185_vm2, %v210_v52, %v211_v53 }
  0x4d   :  { %393 = vrot.lane.b32.xlu1 %v8875_v7, %s8653_s17  ;;  %391 = vrot.lane.b32.xlu0 %v8852_v59, %s8653_s17 }
  0x51   :  { %441 = vrot.lane.b32.xlu1 %v206_v14, %s8656_s22  ;;  %439 = vrot.lane.b32.xlu0 %v203_v63, %s8656_s22  ;;  %v148_v63 = vsel %vm120_vm0, %v96_v56, 0.0  ;;  %v98_v56 = vrot.slane %v58_v51, 7 }
  0x52   :  { %v214_v1 = vrot.slane %v148_v63, 1  ;;  %v260_v12 = vrot.slane %v148_v63, 2 }
  0x53   :  { %v150_v63 = vsel %vm120_vm0, %v98_v56, 0.0 }
  0x54   :  { %v215_v10 = vsel %vm185_vm2, %v213_v0, %v214_v1  ;;  %v261_v18 = vsel %vm231_vm1, %v259_v11, %v260_v12  ;;  %v220_v1 = vrot.slane %v150_v63, 1  ;;  %v266_v12 = vrot.slane %v150_v63, 2 }
  0x55   :  { %489 = vrot.lane.b32.xlu1 %v252_v19, %s8657_s23  ;;  %487 = vrot.lane.b32.xlu0 %v249_v4, %s8657_s23 }
  0x59   :  { %537 = vrot.lane.b32.xlu1 %v8894_v21, %s8658_s28  ;;  %535 = vrot.lane.b32.xlu0 %v8875_v7, %s8658_s28 }
  0x5d   :  { %582 = vrot.lane.b32.xlu1 %v209_v25, %s8659_s20  ;;  %580 = vrot.lane.b32.xlu0 %v206_v14, %s8659_s20 }
  0x61   :  { %305 = vrot.lane.b32.xlu1 %v206_v14, %s8655_s19  ;;  %625 = vrot.lane.b32.xlu0 %v252_v19, %s8660_s27 }
  0x65   :  { %307 = vrot.lane.b32.xlu1 %v209_v25, %s8655_s19  ;;  %627 = vrot.lane.b32.xlu0 %v255_v29, %s8660_s27 }
  0x69   :  { %352 = vrot.lane.b32.xlu1 %v255_v29, %s8654_s18  ;;  %350 = vrot.lane.b32.xlu0 %v252_v19, %s8654_s18  ;;  %v97_v19 = vrot.slane %v57_v15, 7 }
  0x6b   :  { %v149_v33 = vsel %vm120_vm0, %v97_v19, 0.0 }
  0x6c   :  { %v217_v38 = vrot.slane %v149_v33, 1  ;;  %v263_v53 = vrot.slane %v149_v33, 2 }
  0x6d   :  { %397 = vrot.lane.b32.xlu1 %v129_v31, %s8653_s17  ;;  %395 = vrot.lane.b32.xlu0 %v8894_v21, %s8653_s17 }
  0x71   :  { %445 = vrot.lane.b32.xlu1 %v283_v36, %s8656_s22  ;;  %443 = vrot.lane.b32.xlu0 %v209_v25, %s8656_s22 }
  0x75   :  { %493 = vrot.lane.b32.xlu1 %v289_v39, %s8657_s23  ;;  %491 = vrot.lane.b32.xlu0 %v255_v29, %s8657_s23  ;;  %v8991_v29 = vsel %vm120_vm0, 0.0, %v97_v19 }
  0x76   :  { %v216_v37 = vrot.slane %v8991_v29, 1  ;;  %v262_v52 = vrot.slane %v8991_v29, 2 }
  0x77   :  { %v8932_v41 = vpop.permute.xlu1 %385  ;;  %v384_v42 = vpop.permute.xlu0 %383 }
  0x79   :  { %541 = vrot.lane.b32.xlu1 %v8752_v6, %s8658_s28  ;;  %539 = vrot.lane.b32.xlu0 %v129_v31, %s8658_s28 }
  0x7b   :  { %v339_v44 = vpop.permute.xlu1 %338  ;;  %v294_v45 = vpop.permute.xlu0 %293 }
  0x7c   :  { %v663_v5 = vsel %vm662_vm4, %v8752_v6, %v294_v45 }
  0x7d   :  { %586 = vrot.lane.b32.xlu1 %v8774_v20, %s8659_s20  ;;  %584 = vrot.lane.b32.xlu0 %v283_v36, %s8659_s20  ;;  %v8973_v17 = vsel %vm678_vm5, %v663_v5, %v339_v44  ;;  %v218_v44 = vsel %vm185_vm2, %v216_v37, %v217_v38  ;;  %v59_v5 = vld [vmem:[%s12724_s0 + $0x60] sm:$0xff] }
  0x7e   :  { %v695_v23 = vsel %vm694_vm6, %v8973_v17, %v384_v42  ;;  %v99_v15 = vrot.slane %v59_v5, 7 }
  0x7f   :  { %v341_v54 = vpop.permute.xlu1 %340  ;;  %v296_v55 = vpop.permute.xlu0 %295 }
  0x80   :  { %v664_v22 = vsel %vm662_vm4, %v8759_v9, %v296_v55 }
  0x81   :  { %631 = vrot.lane.b32.xlu1 %v8770_v16, %s8660_s27  ;;  %629 = vrot.lane.b32.xlu0 %v289_v39, %s8660_s27  ;;  %v680_v28 = vsel %vm678_vm5, %v664_v22, %v341_v54 }
  0x82   :  { %v696_v36 = vsel %vm694_vm6, %v680_v28, %v8932_v41  ;;  %v151_v28 = vsel %vm120_vm0, %v99_v15, 0.0 }
  0x83   :  { %v434_v60 = vpop.permute.xlu1 %433  ;;  %v432_v61 = vpop.permute.xlu0 %431  ;;  %v223_v33 = vrot.slane %v151_v28, 1 }
  0x84   :  { %v712_v26 = vsel %vm711_vm7, %v695_v23, %v432_v61  ;;  %v713_v42 = vsel %vm711_vm7, %v696_v36, %v434_v60  ;;  %v9023_v61 = vsel %vm120_vm0, 0.0, %v98_v56 }
  0x85   :  { %354 = vrot.lane.b32.xlu1 %v258_v57, %s8654_s18  ;;  %309 = vrot.lane.b32.xlu0 %v212_v58, %s8655_s19  ;;  %v219_v0 = vrot.slane %v9023_v61, 1  ;;  %v265_v11 = vrot.slane %v9023_v61, 2 }
  0x87   :  { %v482_v3 = vpop.permute.xlu1 %481  ;;  %v480_v4 = vpop.permute.xlu0 %479  ;;  %v267_v22 = vsel %vm231_vm1, %v265_v11, %v266_v12 }
  0x88   :  { %v729_v27 = vsel %vm728_vm8, %v712_v26, %v480_v4  ;;  %v730_v43 = vsel %vm728_vm8, %v713_v42, %v482_v3 }
  0x89   :  { %401 = vrot.lane.b32.xlu1 %v8955_v62, %s8653_s17  ;;  %399 = vrot.lane.b32.xlu0 %v8938_v46, %s8653_s17 }
  0x8b   :  { %v530_v13 = vpop.permute.xlu1 %529  ;;  %v528_v14 = vpop.permute.xlu0 %527 }
  0x8c   :  { %v746_v9 = vsel %vm745_vm9, %v729_v27, %v528_v14  ;;  %v747_v41 = vsel %vm745_vm9, %v730_v43, %v530_v13  ;;  %v9047_v27 = vsel %vm120_vm0, 0.0, %v99_v15 }
  0x8d   :  { %449 = vrot.lane.b32.xlu1 %v215_v10, %s8656_s22  ;;  %447 = vrot.lane.b32.xlu0 %v212_v58, %s8656_s22 }
  0x8f   :  { %v8982_v24 = vpop.permute.xlu1 %297  ;;  %v573_v25 = vpop.permute.xlu0 %572 }
  0x90   :  { %v763_v30 = vsel %vm762_vm10, %v746_v9, %v573_v25 }
  0x91   :  { %497 = vrot.lane.b32.xlu1 %v261_v18, %s8657_s23  ;;  %495 = vrot.lane.b32.xlu0 %v258_v57, %s8657_s23  ;;  %v264_v57 = vsel %vm231_vm1, %v262_v52, %v263_v53  ;;  %v60_v53 = vld [vmem:[%s12724_s0 + $0x68] sm:$0xff] }
  0x93   :  { %v618_v31 = vpop.permute.xlu1 %617  ;;  %v575_v32 = vpop.permute.xlu0 %574 }
  0x94   :  { %v780_v35 = vsel %vm779_vm11, %v763_v30, %v618_v31  ;;  %v764_v45 = vsel %vm762_vm10, %v747_v41, %v575_v32  ;;  %v222_v32 = vrot.slane %v9047_v27, 1 }
  0x95   :  { %545 = vrot.lane.b32.xlu1 %v8991_v29, %s8658_s28  ;;  %543 = vrot.lane.b32.xlu0 %v8955_v62, %s8658_s28 }
  0x96   :  { %6838 = vmatprep.mubr.msk.f32.mxu0 %vm802_vm12, %v780_v35  ;;  %v224_v43 = vsel %vm185_vm2, %v222_v32, %v223_v33 }
  0x97   :  { %v343_v39 = vpop.permute.xlu1 %342  ;;  %v300_v40 = vpop.permute.xlu0 %299 }
  0x99   :  { %311 = vrot.lane.b32.xlu1 %v215_v10, %s8655_s19  ;;  %588 = vrot.lane.b32.xlu0 %v215_v10, %s8659_s20  ;;  %v221_v10 = vsel %vm185_vm2, %v219_v0, %v220_v1 }
  0x9b   :  { %v345_v47 = vpop.permute.xlu1 %344  ;;  %v620_v48 = vpop.permute.xlu0 %619 }
  0x9c   :  { %v781_v50 = vsel %vm779_vm11, %v764_v45, %v620_v48  ;;  %v268_v48 = vrot.slane %v9047_v27, 2 }
  0x9d   :  { %633 = vrot.lane.b32.xlu1 %v261_v18, %s8660_s27  ;;  %590 = vrot.lane.b32.xlu0 %v218_v44, %s8659_s20 }
  0x9e   :  { %6839 = vmatmul.mubr.msk.f32.vlgmr.msra.gmra.mrb[0].mxu0 %vm802_vm12, %v781_v50  ;;  %v269_v50 = vrot.slane %v151_v28, 2 }
  0x9f   :  { %v390_v54 = vpop.permute.xlu1 %389  ;;  %v388_v55 = vpop.permute.xlu0 %387 }
  0xa1   :  { %356 = vrot.lane.b32.xlu1 %v261_v18, %s8654_s18  ;;  %313 = vrot.lane.b32.xlu0 %v218_v44, %s8655_s19  ;;  %v665_v18 = vsel %vm662_vm4, %v8756_v8, %v8982_v24  ;;  %v666_v8 = vsel %vm662_vm4, %v8803_v34, %v300_v40 }
  0xa2   :  { %v681_v19 = vsel %vm678_vm5, %v665_v18, %v343_v39  ;;  %v682_v30 = vsel %vm678_vm5, %v666_v8, %v345_v47 }
  0xa3   :  { %v438_v58 = vpop.permute.xlu1 %437  ;;  %v436_v60 = vpop.permute.xlu0 %435  ;;  %v697_v23 = vsel %vm694_vm6, %v681_v19, %v388_v55  ;;  %v698_v35 = vsel %vm694_vm6, %v682_v30, %v390_v54  ;;  %v270_v54 = vsel %vm231_vm1, %v268_v48, %v269_v50 }
  0xa4   :  { %v714_v9 = vsel %vm711_vm7, %v697_v23, %v436_v60  ;;  %v715_v34 = vsel %vm711_vm7, %v698_v35, %v438_v58 }
  0xa5   :  { %358 = vrot.lane.b32.xlu1 %v264_v57, %s8654_s18  ;;  %635 = vrot.lane.b32.xlu0 %v264_v57, %s8660_s27 }
  0xa7   :  { %v486_v3 = vpop.permute.xlu1 %485  ;;  %v484_v4 = vpop.permute.xlu0 %483 }
  0xa8   :  { %v731_v24 = vsel %vm728_vm8, %v714_v9, %v484_v4  ;;  %v732_v40 = vsel %vm728_vm8, %v715_v34, %v486_v3 }
  0xa9   :  { %405 = vrot.lane.b32.xlu1 %v9023_v61, %s8653_s17  ;;  %403 = vrot.lane.b32.xlu0 %v8991_v29, %s8653_s17 }
  0xab   :  { %v534_v13 = vpop.permute.xlu1 %533  ;;  %v532_v14 = vpop.permute.xlu0 %531 }
  0xac   :  { %v748_v31 = vsel %vm745_vm9, %v731_v24, %v532_v14  ;;  %v749_v42 = vsel %vm745_vm9, %v732_v40, %v534_v13 }
  0xad   :  { %453 = vrot.lane.b32.xlu1 %v221_v10, %s8656_s22  ;;  %451 = vrot.lane.b32.xlu0 %v218_v44, %s8656_s22 }
  0xaf   :  { %v579_v25 = vpop.permute.xlu1 %578  ;;  %v577_v26 = vpop.permute.xlu0 %576 }
  0xb0   :  { %v765_v36 = vsel %vm762_vm10, %v748_v31, %v577_v26  ;;  %v766_v41 = vsel %vm762_vm10, %v749_v42, %v579_v25 }
  0xb1   :  { %501 = vrot.lane.b32.xlu1 %v267_v22, %s8657_s23  ;;  %499 = vrot.lane.b32.xlu0 %v264_v57, %s8657_s23  ;;  %v100_v57 = vrot.slane %v60_v53, 7  ;;  %v62_v53 = vld [vmem:[%s12724_s0 + $0x78] sm:$0xff] }
  0xb3   :  { %v302_v37 = vpop.permute.xlu1 %301  ;;  %v622_v38 = vpop.permute.xlu0 %621  ;;  %v9086_v63 = vsel %vm120_vm0, 0.0, %v100_v57  ;;  %v152_v0 = vsel %vm120_vm0, %v100_v57, 0.0  ;;  %v102_v57 = vrot.slane %v62_v53, 7 }
  0xb4   :  { %v782_v39 = vsel %vm779_vm11, %v765_v36, %v622_v38  ;;  %v225_v1 = vrot.slane %v9086_v63, 1  ;;  %v226_v3 = vrot.slane %v152_v0, 1  ;;  %v271_v12 = vrot.slane %v9086_v63, 2 }
  0xb5   :  { %549 = vrot.lane.b32.xlu1 %v9047_v27, %s8658_s28  ;;  %547 = vrot.lane.b32.xlu0 %v9023_v61, %s8658_s28  ;;  %v272_v13 = vrot.slane %v152_v0, 2  ;;  %v667_v19 = vsel %vm662_vm4, %v8833_v49, %v302_v37  ;;  %v137_v0 = vsel %vm120_vm0, 0.0, %v102_v57 }
  0xb6   :  { %6841 = vmatprep.mubr.msk.f32.mxu0 %vm802_vm12, %v782_v39  ;;  %v227_v11 = vsel %vm185_vm2, %v225_v1, %v226_v3  ;;  %v154_v1 = vsel %vm120_vm0, %v102_v57, 0.0  ;;  %v284_v3 = vrot.slane %v137_v0, 1 }
  0xb7   :  { %v304_v44 = vpop.permute.xlu1 %303  ;;  %v624_v45 = vpop.permute.xlu0 %623  ;;  %v273_v23 = vsel %vm231_vm1, %v271_v12, %v272_v13  ;;  %v291_v13 = vrot.slane %v154_v1, 2 }
  0xb8   :  { %v783_v47 = vsel %vm779_vm11, %v766_v41, %v624_v45  ;;  %v668_v25 = vsel %vm662_vm4, %v8852_v59, %v304_v44 }
  0xb9   :  { %594 = vrot.lane.b32.xlu1 %v224_v43, %s8659_s20  ;;  %592 = vrot.lane.b32.xlu0 %v221_v10, %s8659_s20 }
  0xba   :  { %6842 = vmatmul.mubr.msk.f32.gmra.mrb[2].mxu0 %vm802_vm12, %v783_v47 }
  0xbb   :  { %v349_v51 = vpop.permute.xlu1 %348  ;;  %v347_v52 = vpop.permute.xlu0 %346 }
  0xbc   :  { %v684_v31 = vsel %vm678_vm5, %v668_v25, %v349_v51 }
  0xbd   :  { %315 = vrot.lane.b32.xlu1 %v221_v10, %s8655_s19  ;;  %637 = vrot.lane.b32.xlu0 %v267_v22, %s8660_s27  ;;  %v61_v10 = vld [vmem:[%s12724_s0 + $0x70] sm:$0xff] }
  0xbe   :  { %v101_v18 = vrot.slane %v61_v10, 7 }
  0xbf   :  { %v394_v55 = vpop.permute.xlu1 %393  ;;  %v392_v56 = vpop.permute.xlu0 %391 }
  0xc0   :  { %v9111_v8 = vsel %vm120_vm0, 0.0, %v101_v18  ;;  %v153_v49 = vsel %vm120_vm0, %v101_v18, 0.0  ;;  %v700_v35 = vsel %vm694_vm6, %v684_v31, %v394_v55 }
  0xc1   :  { %317 = vrot.lane.b32.xlu1 %v224_v43, %s8655_s19  ;;  %639 = vrot.lane.b32.xlu0 %v270_v54, %s8660_s27  ;;  %v228_v32 = vrot.slane %v9111_v8, 1  ;;  %v229_v33 = vrot.slane %v153_v49, 1  ;;  %v274_v48 = vrot.slane %v9111_v8, 2  ;;  %v275_v50 = vrot.slane %v153_v49, 2 }
  0xc3   :  { %v442_v58 = vpop.permute.xlu1 %441  ;;  %v440_v60 = vpop.permute.xlu0 %439 }
  0xc4   :  { %v717_v34 = vsel %vm711_vm7, %v700_v35, %v442_v58 }
  0xc5   :  { %362 = vrot.lane.b32.xlu1 %v270_v54, %s8654_s18  ;;  %360 = vrot.lane.b32.xlu0 %v267_v22, %s8654_s18  ;;  %v683_v22 = vsel %vm678_vm5, %v667_v19, %v347_v52 }
  0xc6   :  { %v699_v26 = vsel %vm694_vm6, %v683_v22, %v392_v56 }
  0xc7   :  { %v490_v4 = vpop.permute.xlu1 %489  ;;  %v488_v5 = vpop.permute.xlu0 %487  ;;  %v716_v24 = vsel %vm711_vm7, %v699_v26, %v440_v60 }
  0xc8   :  { %v733_v30 = vsel %vm728_vm8, %v716_v24, %v488_v5  ;;  %v734_v40 = vsel %vm728_vm8, %v717_v34, %v490_v4  ;;  %v285_v4 = vrot.slane %v154_v1, 1 }
  0xc9   :  { %409 = vrot.lane.b32.xlu1 %v9086_v63, %s8653_s17  ;;  %407 = vrot.lane.b32.xlu0 %v9047_v27, %s8653_s17 }
  0xca   :  { %v286_v12 = vsel %vm185_vm2, %v284_v3, %v285_v4 }
  0xcb   :  { %v538_v14 = vpop.permute.xlu1 %537  ;;  %v536_v15 = vpop.permute.xlu0 %535 }
  0xcc   :  { %v750_v59 = vsel %vm745_vm9, %v733_v30, %v536_v15  ;;  %v751_v42 = vsel %vm745_vm9, %v734_v40, %v538_v14 }
  0xcd   :  { %457 = vrot.lane.b32.xlu1 %v227_v11, %s8656_s22  ;;  %455 = vrot.lane.b32.xlu0 %v224_v43, %s8656_s22  ;;  %v230_v43 = vsel %vm185_vm2, %v228_v32, %v229_v33 }
  0xcf   :  { %v583_v28 = vpop.permute.xlu1 %582  ;;  %v581_v9 = vpop.permute.xlu0 %580 }
  0xd0   :  { %v767_v36 = vsel %vm762_vm10, %v750_v59, %v581_v9  ;;  %v768_v41 = vsel %vm762_vm10, %v751_v42, %v583_v28 }
  0xd1   :  { %505 = vrot.lane.b32.xlu1 %v273_v23, %s8657_s23  ;;  %503 = vrot.lane.b32.xlu0 %v270_v54, %s8657_s23  ;;  %v276_v54 = vsel %vm231_vm1, %v274_v48, %v275_v50 }
  0xd3   :  { %v306_v37 = vpop.permute.xlu1 %305  ;;  %v626_v38 = vpop.permute.xlu0 %625 }
  0xd4   :  { %v784_v39 = vsel %vm779_vm11, %v767_v36, %v626_v38  ;;  %v669_v19 = vsel %vm662_vm4, %v8875_v7, %v306_v37 }
  0xd5   :  { %553 = vrot.lane.b32.xlu1 %v9111_v8, %s8658_s28  ;;  %551 = vrot.lane.b32.xlu0 %v9086_v63, %s8658_s28 }
  0xd6   :  { %6844 = vmatprep.mubr.msk.f32.mxu0 %vm802_vm12, %v784_v39 }
  0xd7   :  { %v308_v44 = vpop.permute.xlu1 %307  ;;  %v628_v45 = vpop.permute.xlu0 %627 }
  0xd8   :  { %v785_v47 = vsel %vm779_vm11, %v768_v41, %v628_v45  ;;  %v670_v14 = vsel %vm662_vm4, %v8894_v21, %v308_v44 }
  0xd9   :  { %598 = vrot.lane.b32.xlu1 %v230_v43, %s8659_s20  ;;  %596 = vrot.lane.b32.xlu0 %v227_v11, %s8659_s20 }
  0xda   :  { %6845 = vmatmul.mubr.msk.f32.gmra.mrb[4].mxu0 %vm802_vm12, %v785_v47 }
  0xdb   :  { %v353_v51 = vpop.permute.xlu1 %352  ;;  %v351_v52 = vpop.permute.xlu0 %350 }
  0xdc   :  { %v686_v22 = vsel %vm678_vm5, %v670_v14, %v353_v51 }
  0xdd   :  { %319 = vrot.lane.b32.xlu1 %v227_v11, %s8655_s19  ;;  %641 = vrot.lane.b32.xlu0 %v273_v23, %s8660_s27  ;;  %v290_v11 = vrot.slane %v137_v0, 2 }
  0xdf   :  { %v398_v55 = vpop.permute.xlu1 %397  ;;  %v396_v56 = vpop.permute.xlu0 %395  ;;  %v292_v25 = vsel %vm231_vm1, %v290_v11, %v291_v13 }
  0xe0   :  { %v702_v26 = vsel %vm694_vm6, %v686_v22, %v398_v55 }
  0xe1   :  { %321 = vrot.lane.b32.xlu1 %v230_v43, %s8655_s19  ;;  %643 = vrot.lane.b32.xlu0 %v276_v54, %s8660_s27 }
  0xe3   :  { %v446_v58 = vpop.permute.xlu1 %445  ;;  %v444_v60 = vpop.permute.xlu0 %443 }
  0xe4   :  { %v719_v49 = vsel %vm711_vm7, %v702_v26, %v446_v58 }
  0xe5   :  { %366 = vrot.lane.b32.xlu1 %v276_v54, %s8654_s18  ;;  %364 = vrot.lane.b32.xlu0 %v273_v23, %s8654_s18  ;;  %v685_v23 = vsel %vm678_vm5, %v669_v19, %v351_v52 }
  0xe6   :  { %v701_v21 = vsel %vm694_vm6, %v685_v23, %v396_v56 }
  0xe7   :  { %v494_v5 = vpop.permute.xlu1 %493  ;;  %v492_v10 = vpop.permute.xlu0 %491  ;;  %v718_v7 = vsel %vm711_vm7, %v701_v21, %v444_v60 }
  0xe8   :  { %v736_v24 = vsel %vm728_vm8, %v719_v49, %v494_v5  ;;  %v735_v30 = vsel %vm728_vm8, %v718_v7, %v492_v10 }
  0xe9   :  { %413 = vrot.lane.b32.xlu1 %v137_v0, %s8653_s17  ;;  %411 = vrot.lane.b32.xlu0 %v9111_v8, %s8653_s17  ;;  %s8662_s17 = smov 48  }
  0xeb   :  { %v9157_v15 = vpop.permute.xlu1 %541  ;;  %v540_v18 = vpop.permute.xlu0 %539 }
  0xec   :  { %v753_v31 = vsel %vm745_vm9, %v736_v24, %v9157_v15  ;;  %v752_v59 = vsel %vm745_vm9, %v735_v30, %v540_v18 }
  0xed   :  { %461 = vrot.lane.b32.xlu1 %v286_v12, %s8656_s22  ;;  %459 = vrot.lane.b32.xlu0 %v230_v43, %s8656_s22 }
  0xef   :  { %v9168_v28 = vpop.permute.xlu1 %586  ;;  %v585_v9 = vpop.permute.xlu0 %584 }
  0xf0   :  { %v770_v32 = vsel %vm762_vm10, %v753_v31, %v9168_v28  ;;  %v769_v33 = vsel %vm762_vm10, %v752_v59, %v585_v9 }
  0xf1   :  { %509 = vrot.lane.b32.xlu1 %v292_v25, %s8657_s23  ;;  %507 = vrot.lane.b32.xlu0 %v276_v54, %s8657_s23 }
  0xf3   :  { %v9182_v35 = vpop.permute.xlu1 %631  ;;  %v630_v36 = vpop.permute.xlu0 %629 }
  0xf4   :  { %v786_v37 = vsel %vm779_vm11, %v769_v33, %v630_v36  ;;  %v787_v38 = vsel %vm779_vm11, %v770_v32, %v9182_v35 }
  0xf5   :  { %555 = vrot.lane.b32.xlu0 %v137_v0, %s8658_s28  ;;  %6847 = vmatprep.mubr.msk.f32.mxu0 %vm802_vm12, %v786_v37 }
  0xf6   :  { %600 = vrot.lane.b32.xlu1 %v286_v12, %s8659_s20  ;;  %6848 = vmatmul.mubr.msk.f32.gmra.mrb[6].mxu0 %vm802_vm12, %v787_v38 }
  0xf7   :  { %v355_v34 = vpop.permute.xlu1 %354  ;;  %v310_v39 = vpop.permute.xlu0 %309 }
  0xf8   :  { %v671_v56 = vsel %vm662_vm4, %v8938_v46, %v310_v39 }
  0xf9   :  { %645 = vrot.lane.b32.xlu0 %v292_v25, %s8660_s27 }
  0xfb   :  { %v402_v40 = vpop.permute.xlu1 %401  ;;  %v400_v42 = vpop.permute.xlu0 %399 }
  0xfc   :  { %v703_v50 = vsel %vm694_vm6, %v8973_v17, %v400_v42  ;;  %v687_v17 = vsel %vm678_vm5, %v671_v56, %v355_v34 }
  0xfd   :  { %v704_v1 = vsel %vm694_vm6, %v687_v17, %v402_v40 }
  0xff   :  { %v450_v43 = vpop.permute.xlu1 %449  ;;  %v448_v41 = vpop.permute.xlu0 %447 }
 0x100   :  { %v720_v53 = vsel %vm711_vm7, %v703_v50, %v448_v41  ;;  %v721_v5 = vsel %vm711_vm7, %v704_v1, %v450_v43 }
 0x103   :  { %v498_v44 = vpop.permute.xlu1 %497  ;;  %v496_v45 = vpop.permute.xlu0 %495 }
 0x104   :  { %v737_v54 = vsel %vm728_vm8, %v720_v53, %v496_v45  ;;  %v738_v10 = vsel %vm728_vm8, %v721_v5, %v498_v44 }
 0x107   :  { %v546_v47 = vpop.permute.xlu1 %545  ;;  %v544_v48 = vpop.permute.xlu0 %543 }
 0x108   :  { %v754_v55 = vsel %vm745_vm9, %v737_v54, %v544_v48  ;;  %v755_v46 = vsel %vm745_vm9, %v738_v10, %v546_v47 }
 0x10b   :  { %v312_v51 = vpop.permute.xlu1 %311  ;;  %v589_v52 = vpop.permute.xlu0 %588 }
 0x10c   :  { %v771_v57 = vsel %vm762_vm10, %v754_v55, %v589_v52  ;;  %v672_v49 = vsel %vm662_vm4, %v8955_v62, %v312_v51 }
 0x10f   :  { %v634_v58 = vpop.permute.xlu1 %633  ;;  %v591_v60 = vpop.permute.xlu0 %590 }
 0x110   :  { %v788_v0 = vsel %vm779_vm11, %v771_v57, %v634_v58  ;;  %v772_v11 = vsel %vm762_vm10, %v755_v46, %v591_v60 }
 0x111   :  { %6850 = vmatprep.mubr.msk.f32.mxu0 %vm802_vm12, %v788_v0 }
 0x113   :  { %v357_v3 = vpop.permute.xlu1 %356  ;;  %v314_v4 = vpop.permute.xlu0 %313 }
 0x114   :  { %v688_v7 = vsel %vm678_vm5, %v672_v49, %v357_v3  ;;  %v673_v32 = vsel %vm662_vm4, %v8991_v29, %v314_v4 }
 0x117   :  { %v359_v12 = vpop.permute.xlu1 %358  ;;  %v636_v13 = vpop.permute.xlu0 %635 }
 0x118   :  { %v789_v14 = vsel %vm779_vm11, %v772_v11, %v636_v13  ;;  %v689_v36 = vsel %vm678_vm5, %v673_v32, %v359_v12 }
 0x119   :  { %6851 = vmatmul.mubr.msk.f32.gmra.mrb[8].mxu0 %vm802_vm12, %v789_v14 }
 0x11b   :  { %v406_v18 = vpop.permute.xlu1 %405  ;;  %v404_v19 = vpop.permute.xlu0 %403 }
 0x11c   :  { %v705_v24 = vsel %vm694_vm6, %v688_v7, %v404_v19  ;;  %v706_v38 = vsel %vm694_vm6, %v689_v36, %v406_v18 }
 0x11f   :  { %v454_v22 = vpop.permute.xlu1 %453  ;;  %v452_v23 = vpop.permute.xlu0 %451 }
 0x120   :  { %v722_v59 = vsel %vm711_vm7, %v705_v24, %v452_v23  ;;  %v723_v40 = vsel %vm711_vm7, %v706_v38, %v454_v22 }
 0x123   :  { %v502_v25 = vpop.permute.xlu1 %501  ;;  %v500_v26 = vpop.permute.xlu0 %499 }
 0x124   :  { %v739_v33 = vsel %vm728_vm8, %v722_v59, %v500_v26  ;;  %v740_v43 = vsel %vm728_vm8, %v723_v40, %v502_v25 }
 0x127   :  { %v550_v21 = vpop.permute.xlu1 %549  ;;  %v548_v9 = vpop.permute.xlu0 %547 }
 0x128   :  { %v756_v37 = vsel %vm745_vm9, %v739_v33, %v548_v9  ;;  %v757_v29 = vsel %vm745_vm9, %v740_v43, %v550_v21 }
 0x12b   :  { %v595_v30 = vpop.permute.xlu1 %594  ;;  %v593_v31 = vpop.permute.xlu0 %592 }
 0x12c   :  { %v773_v62 = vsel %vm762_vm10, %v756_v37, %v593_v31  ;;  %v774_v41 = vsel %vm762_vm10, %v757_v29, %v595_v30 }
 0x12f   :  { %v316_v34 = vpop.permute.xlu1 %315  ;;  %v638_v39 = vpop.permute.xlu0 %637 }
 0x130   :  { %v790_v42 = vsel %vm779_vm11, %v773_v62, %v638_v39  ;;  %v674_v60 = vsel %vm662_vm4, %v9023_v61, %v316_v34 }
 0x131   :  { %6853 = vmatprep.mubr.msk.f32.mxu0 %vm802_vm12, %v790_v42 }
 0x133   :  { %v318_v44 = vpop.permute.xlu1 %317  ;;  %v640_v45 = vpop.permute.xlu0 %639 }
 0x134   :  { %v791_v47 = vsel %vm779_vm11, %v774_v41, %v640_v45  ;;  %v675_v17 = vsel %vm662_vm4, %v9047_v27, %v318_v44 }
 0x135   :  { %6854 = vmatmul.mubr.msk.f32.gmra.mrb[10].mxu0 %vm802_vm12, %v791_v47 }
 0x137   :  { %v363_v48 = vpop.permute.xlu1 %362  ;;  %v361_v50 = vpop.permute.xlu0 %360 }
 0x138   :  { %v690_v0 = vsel %vm678_vm5, %v674_v60, %v361_v50  ;;  %v691_v46 = vsel %vm678_vm5, %v675_v17, %v363_v48  ;;  %v1050_v60 = vld [vmem:[%s12727_s3 + $0x10] sm:$0xff] }
 0x13b   :  { %v410_v51 = vpop.permute.xlu1 %409  ;;  %v408_v52 = vpop.permute.xlu0 %407 }
 0x13c   :  { %v707_v1 = vsel %vm694_vm6, %v690_v0, %v408_v52  ;;  %v708_v12 = vsel %vm694_vm6, %v691_v46, %v410_v51  ;;  %v1049_v51 = vld [vmem:[%s12727_s3 + $0x8] sm:$0xff]  ;;  %v1051_v0 = vld [vmem:[%s12727_s3 + $0x18] sm:$0xff]  ;;  %v1052_v46 = vld [vmem:[%s12727_s3 + $0x20] sm:$0xff] }
 0x13f   :  { %v458_v53 = vpop.permute.xlu1 %457  ;;  %v456_v54 = vpop.permute.xlu0 %455 }
 0x140   :  { %v724_v5 = vsel %vm711_vm7, %v707_v1, %v456_v54  ;;  %v725_v27 = vsel %vm711_vm7, %v708_v12, %v458_v53  ;;  %v6923_v1 = vpack.c.bf16 %v1051_v0, %v1050_v60 }
 0x143   :  { %v506_v55 = vpop.permute.xlu1 %505  ;;  %v504_v56 = vpop.permute.xlu0 %503 }
 0x144   :  { %v741_v10 = vsel %vm728_vm8, %v724_v5, %v504_v56  ;;  %v742_v19 = vsel %vm728_vm8, %v725_v27, %v506_v55  ;;  %v12741_v56 = vmov 0.0|0.0  }
 0x145   :  { %6919 = vmatprep.subr.bf16.mxu1 %v12741_v56  ;;  %6946 = vmatprep.subr.bf16.mxu0 %v12741_v56 }
 0x147   :  { %v554_v57 = vpop.permute.xlu1 %553  ;;  %v552_v58 = vpop.permute.xlu0 %551 }
 0x148   :  { %v758_v11 = vsel %vm745_vm9, %v741_v10, %v552_v58  ;;  %v759_v22 = vsel %vm745_vm9, %v742_v19, %v554_v57 }
 0x14b   :  { %v599_v3 = vpop.permute.xlu1 %598  ;;  %v597_v4 = vpop.permute.xlu0 %596 }
 0x14c   :  { %v775_v61 = vsel %vm762_vm10, %v758_v11, %v597_v4  ;;  %v776_v23 = vsel %vm762_vm10, %v759_v22, %v599_v3  ;;  %v1053_v11 = vld [vmem:[%s12727_s3 + $0x28] sm:$0xff] }
 0x14f   :  { %v320_v13 = vpop.permute.xlu1 %319  ;;  %v642_v14 = vpop.permute.xlu0 %641 }
 0x150   :  { %v792_v18 = vsel %vm779_vm11, %v775_v61, %v642_v14  ;;  %v676_v36 = vsel %vm662_vm4, %v9086_v63, %v320_v13  ;;  %v6926_v13 = vpack.c.bf16 %v1053_v11, %v1052_v46 }
 0x151   :  { %6856 = vmatprep.mubr.msk.f32.mxu0 %vm802_vm12, %v792_v18 }
 0x153   :  { %v322_v25 = vpop.permute.xlu1 %321  ;;  %v644_v26 = vpop.permute.xlu0 %643 }
 0x154   :  { %v793_v21 = vsel %vm779_vm11, %v776_v23, %v644_v26  ;;  %v677_v30 = vsel %vm662_vm4, %v9111_v8, %v322_v25 }
 0x155   :  { %6857 = vmatmul.mubr.msk.f32.gmra.mrb[12].mxu0 %vm802_vm12, %v793_v21 }
 0x157   :  { %v367_v9 = vpop.permute.xlu1 %366  ;;  %v365_v49 = vpop.permute.xlu0 %364 }
 0x158   :  { %v693_v32 = vsel %vm678_vm5, %v677_v30, %v367_v9  ;;  %v692_v34 = vsel %vm678_vm5, %v676_v36, %v365_v49 }
 0x15b   :  { %v414_v7 = vpop.permute.xlu1 %413  ;;  %v412_v24 = vpop.permute.xlu0 %411 }
 0x15c   :  { %v710_v33 = vsel %vm694_vm6, %v693_v32, %v414_v7  ;;  %v709_v40 = vsel %vm694_vm6, %v692_v34, %v412_v24  ;;  %v1054_v7 = vld [vmem:[%s12727_s3 + $0x30] sm:$0xff]  ;;  %v1055_v24 = vld [vmem:[%s12727_s3 + $0x38] sm:$0xff] }
 0x15f   :  { %v462_v31 = vpop.permute.xlu1 %461  ;;  %v460_v59 = vpop.permute.xlu0 %459 }
 0x160   :  { %v727_v37 = vsel %vm711_vm7, %v710_v33, %v462_v31  ;;  %v726_v8 = vsel %vm711_vm7, %v709_v40, %v460_v59  ;;  %v6929_v59 = vpack.c.bf16 %v1055_v24, %v1054_v7  ;;  %v1059_v40 = vld [vmem:[%s12727_s3 + $0x58] sm:$0xff] }
 0x163   :  { %v510_v38 = vpop.permute.xlu1 %509  ;;  %v508_v62 = vpop.permute.xlu0 %507 }
 0x164   :  { %v744_v39 = vsel %vm728_vm8, %v727_v37, %v510_v38  ;;  %v743_v43 = vsel %vm728_vm8, %v726_v8, %v508_v62  ;;  %v1056_v37 = vld [vmem:[%s12727_s3 + $0x40] sm:$0xff]  ;;  %v1057_v38 = vld [vmem:[%s12727_s3 + $0x48] sm:$0xff] }
 0x165   :  { %v761_v42 = vsel %vm745_vm9, %v744_v39, %v9157_v15  ;;  %v9276_v15 = vld [vmem:[%s12726_s2] ss:$0 sm:$0xff]  ;;  %v6932_v34 = vpack.c.bf16 %v1057_v38, %v1056_v37  ;;  %v1058_v39 = vld [vmem:[%s12727_s3 + $0x50] sm:$0xff] }
 0x166   :  { %v778_v44 = vsel %vm762_vm10, %v761_v42, %v9168_v28  ;;  %v1048_v28 = vld [vmem:[%s12727_s3] sm:$0xff]  ;;  %v6935_v42 = vpack.c.bf16 %v1059_v40, %v1058_v39 }
 0x167   :  { %v556_v29 = vpop.permute.xlu0 %555  ;;  %v795_v50 = vsel %vm779_vm11, %v778_v44, %v9182_v35  ;;  %v6920_v53 = vpack.c.bf16 %v1049_v51, %v1048_v28  ;;  %v1063_v44 = vld [vmem:[%s12727_s3 + $0x78] sm:$0xff] }
 0x168   :  { %v760_v63 = vsel %vm745_vm9, %v743_v43, %v556_v29  ;;  %v601_v41 = vpop.permute.xlu1 %600  ;;  %v1060_v43 = vld [vmem:[%s12727_s3 + $0x60] sm:$0xff]  ;;  %v1061_v29 = vld [vmem:[%s12727_s3 + $0x68] sm:$0xff] }
 0x169   :  { %v777_v45 = vsel %vm762_vm10, %v760_v63, %v601_v41  ;;  %6921 = vmatpush1.bf16.msra.mxu1 %v6920_v53  ;;  %v6938_v63 = vpack.c.bf16 %v1061_v29, %v1060_v43  ;;  %v1062_v41 = vld [vmem:[%s12727_s3 + $0x70] sm:$0xff]  ;;  %v1065_v53 = vld [vmem:[%s12727_s3 + $0x88] sm:$0xff] }
 0x16a   :  { %6922 = vmatprep.subr.bf16.mxu1 %v12741_v56 }
 0x16b   :  { %v646_v47 = vpop.permute.xlu0 %645 }
 0x16c   :  { %v794_v48 = vsel %vm779_vm11, %v777_v45, %v646_v47  ;;  %v6941_v47 = vpack.c.bf16 %v1063_v44, %v1062_v41 }
 0x16d   :  { %6859 = vmatprep.mubr.msk.f32.mxu0 %vm802_vm12, %v794_v48  ;;  %6924 = vmatpush1.bf16.msra.mxu1 %v6923_v1 }
 0x16e   :  { %6860 = vmatmul.mubr.msk.f32.gmra.mrb[14].mxu0 %vm802_vm12, %v795_v50  ;;  %6925 = vmatprep.subr.bf16.mxu1 %v12741_v56  ;;  %vm1626_vm12 = vcmask 392192  }
 0x171   :  { %v6840_v52 = vpop.f32.mrb[0].mxu0  ;;  %6927 = vmatpush1.bf16.msra.mxu1 %v6926_v13 }
 0x172   :  { %v927_v54 = vadd.f32 %v6840_v52, %v9276_v15  ;;  %v921_v55 = vpop.f32.mrb[1].mxu0  ;;  %6928 = vmatprep.subr.bf16.mxu1 %v12741_v56  ;;  %v1064_v52 = vld [vmem:[%s12727_s3 + $0x80] sm:$0xff] }
 0x173   :  { %v922_v57 = vadd.f32 %v9276_v15, %v921_v55  ;;  %v6944_v55 = vpack.c.bf16 %v1065_v53, %v1064_v52 }
 0x174   :  { %vm1001_vm13 = vcmp.ge.f32.partialorder %v927_v54, 0.0  ;;  %v1017_v58 = vmul.f32 0.2, %v927_v54 }
 0x175   :  { %vm1000_vm14 = vcmp.ge.f32.partialorder %v922_v57, 0.0  ;;  %v1016_v17 = vmul.f32 0.2, %v922_v57  ;;  %6930 = vmatpush1.bf16.msra.mxu1 %v6929_v59 }
 0x176   :  { %v9295_v3 = vsel %vm1001_vm13, %v927_v54, %v1017_v58  ;;  %6931 = vmatprep.subr.bf16.mxu1 %v12741_v56  ;;  %vm1643_vm13 = vcmask 523264  }
 0x177   :  { %12766 = vst [vmem:[#allocation2_spill] sm:$0xff] %v9295_v3  ;;  %v1084_v4 = vrot.slane %v9295_v3, 7  ;;  %v9298_v5 = vsel %vm1000_vm14, %v922_v57, %v1016_v17 }
 0x178   :  { %12767 = vst [vmem:[#allocation3_spill] sm:$0xff] %v9298_v5  ;;  %v1083_v10 = vrot.slane %v9298_v5, 7 }
 0x179   :  { %v9309_v12 = vsel %vm120_vm0, 0.0, %v1084_v4  ;;  %v1132_v61 = vsel %vm120_vm0, %v1084_v4, 0.0  ;;  %6933 = vmatpush1.bf16.msra.mxu1 %v6932_v34 }
 0x17a   :  { %v9313_v14 = vsel %vm120_vm0, 0.0, %v1083_v10  ;;  %v1131_v27 = vsel %vm120_vm0, %v1083_v10, 0.0  ;;  %v1220_v18 = vrot.slane %v9309_v12, 2  ;;  %v1221_v25 = vrot.slane %v1132_v61, 2  ;;  %6934 = vmatprep.subr.bf16.mxu1 %v12741_v56 }
 0x17b   :  { %v1176_v19 = vrot.slane %v1131_v27, 1  ;;  %v1217_v22 = vrot.slane %v9313_v14, 2  ;;  %v1218_v23 = vrot.slane %v1131_v27, 2  ;;  %v1179_v26 = vrot.slane %v1132_v61, 1 }
 0x17c   :  { %v7176_v21 = vpack.i.bf16 %v9309_v12, %v9313_v14  ;;  %v1175_v9 = vrot.slane %v9313_v14, 1  ;;  %v1178_v49 = vrot.slane %v9309_v12, 1  ;;  %v1222_v31 = vsel %vm231_vm1, %v1220_v18, %v1221_v25 }
 0x17d   :  { %v1219_v30 = vsel %vm231_vm1, %v1217_v22, %v1218_v23  ;;  %6641 = vmatprep.mubr.msk.f32.mxu1 %vm711_vm7, %v1222_v31  ;;  %6936 = vmatpush1.bf16.msra.mxu1 %v6935_v42 }
 0x17e   :  { %v7191_v32 = vpack.i.bf16 %v1222_v31, %v1219_v30  ;;  %7177 = vrot.lane.b32.xlu0 %v7176_v21, %s8662_s17  ;;  %v1177_v33 = vsel %vm185_vm2, %v1175_v9, %v1176_v19  ;;  %v9342_v62 = vsel %vm185_vm2, %v1178_v49, %v1179_v26  ;;  %6937 = vmatprep.subr.bf16.mxu1 %v12741_v56 }
 0x17f   :  { %v7181_v36 = vpack.i.bf16 %v1177_v33, %v8774_v20  ;;  %v7186_v8 = vpack.i.bf16 %v9342_v62, %v1177_v33 }
 0x181   :  { %7182 = vrot.lane.b32.xlu1 %v7181_v36, %s8656_s22  ;;  %6939 = vmatpush1.bf16.msra.mxu1 %v6938_v63 }
 0x182   :  { %7192 = vrot.lane.b32.xlu0 %v7191_v32, %s8663_s26  ;;  %6940 = vmatprep.subr.bf16.mxu1 %v12741_v56 }
 0x185   :  { %7187 = vrot.lane.b32.xlu1 %v7186_v8, %s8664_s1  ;;  %6942 = vmatpush1.bf16.msra.mxu1 %v6941_v47 }
 0x186   :  { %6943 = vmatprep.subr.bf16.mxu1 %v12741_v56 }
 0x189   :  { %7197 = vrot.lane.b32.xlu1 %v7191_v32, %s8660_s27  ;;  %6945 = vmatpush1.bf16.msra.mxu1 %v6944_v55 }
 0x18a   :  { %6973 = vmatprep.subr.bf16.mxu1 %v12741_v56 }
 0x18d   :  { %v6843_v45 = vpop.f32.mrb[2].mxu0 }
 0x18e   :  { %v937_v48 = vadd.f32 %v6843_v45, %v9276_v15  ;;  %v931_v50 = vpop.f32.mrb[3].mxu0 }
 0x18f   :  { %v932_v28 = vadd.f32 %v9276_v15, %v931_v50 }
 0x190   :  { %vm1003_vm15 = vcmp.ge.f32.partialorder %v937_v48, 0.0  ;;  %v1019_v51 = vmul.f32 0.2, %v937_v48 }
 0x191   :  { %vm1002_vm3 = vcmp.ge.f32.partialorder %v932_v28, 0.0  ;;  %v1018_v54 = vmul.f32 0.2, %v932_v28 }
 0x192   :  { %v9380_v57 = vsel %vm1003_vm15, %v937_v48, %v1019_v51 }
 0x193   :  { %12768 = vst [vmem:[#allocation4_spill] sm:$0xff] %v9380_v57  ;;  %v1086_v58 = vrot.slane %v9380_v57, 7  ;;  %v9383_v60 = vsel %vm1002_vm3, %v932_v28, %v1018_v54  ;;  %vm1660_vm3 = vcmask 654336  }
 0x194   :  { %12769 = vst [vmem:[#allocation5_spill] sm:$0xff] %v9383_v60  ;;  %v1085_v0 = vrot.slane %v9383_v60, 7 }
 0x195   :  { %v9388_v17 = vsel %vm120_vm0, 0.0, %v1086_v58  ;;  %v1134_v1 = vsel %vm120_vm0, %v1086_v58, 0.0 }
 0x196   :  { %v1185_v4 = vrot.slane %v1134_v1, 1  ;;  %v1227_v10 = vrot.slane %v1134_v1, 2  ;;  %v9392_v46 = vsel %vm120_vm0, 0.0, %v1085_v0  ;;  %v1133_v11 = vsel %vm120_vm0, %v1085_v0, 0.0 }
 0x197   :  { %v1182_v61 = vrot.slane %v1133_v11, 1  ;;  %v1224_v13 = vrot.slane %v1133_v11, 2  ;;  %v7206_v27 = vpack.i.bf16 %v9388_v17, %v9392_v46  ;;  %v7201_v18 = vpack.i.bf16 %v9392_v46, %v9309_v12 }
 0x198   :  { %v1181_v19 = vrot.slane %v9392_v46, 1  ;;  %v1223_v22 = vrot.slane %v9392_v46, 2  ;;  %v1226_v23 = vrot.slane %v9388_v17, 2  ;;  %v1184_v25 = vrot.slane %v9388_v17, 1 }
 0x199   :  { %7207 = vrot.lane.b32.xlu1 %v7206_v27, %s8662_s17  ;;  %7202 = vrot.lane.b32.xlu0 %v7201_v18, %s8665_s24 }
 0x19a   :  { %v1183_v26 = vsel %vm185_vm2, %v1181_v19, %v1182_v61  ;;  %v9408_v9 = vsel %vm231_vm1, %v1223_v22, %v1224_v13  ;;  %v9411_v49 = vsel %vm231_vm1, %v1226_v23, %v1227_v10  ;;  %v1186_v7 = vsel %vm185_vm2, %v1184_v25, %v1185_v4 }
 0x19b   :  { %v7216_v21 = vpack.i.bf16 %v1183_v26, %v9342_v62  ;;  %v7226_v24 = vpack.i.bf16 %v9411_v49, %v9408_v9  ;;  %v7221_v30 = vpack.i.bf16 %v1186_v7, %v1183_v26 }
 0x19d   :  { %7217 = vrot.lane.b32.xlu0 %v7216_v21, %s8656_s22  ;;  %7212 = vrot.lane.b32.xlu1 %v7216_v21, %s8666_s25 }
 0x1a1   :  { %7227 = vrot.lane.b32.xlu1 %v7226_v24, %s8663_s26  ;;  %7222 = vrot.lane.b32.xlu0 %v7221_v30, %s8664_s1 }
 0x1a5   :  { %7232 = vrot.lane.b32.xlu0 %v7226_v24, %s8660_s27 }
 0x1ad   :  { %v6846_v31 = vpop.f32.mrb[4].mxu0 }
 0x1ae   :  { %v947_v59 = vadd.f32 %v6846_v31, %v9276_v15  ;;  %v941_v32 = vpop.f32.mrb[5].mxu0 }
 0x1af   :  { %v942_v33 = vadd.f32 %v9276_v15, %v941_v32 }
 0x1b0   :  { %vm1005_vm4 = vcmp.ge.f32.partialorder %v947_v59, 0.0  ;;  %v1021_v36 = vmul.f32 0.2, %v947_v59 }
 0x1b1   :  { %vm1004_vm5 = vcmp.ge.f32.partialorder %v942_v33, 0.0  ;;  %v1020_v37 = vmul.f32 0.2, %v942_v33 }
 0x1b2   :  { %v9423_v38 = vsel %vm1005_vm4, %v947_v59, %v1021_v36  ;;  %vm1677_vm4 = vcmask 785408  }
 0x1b3   :  { %12770 = vst [vmem:[#allocation6_spill] sm:$0xff] %v9423_v38  ;;  %v1088_v62 = vrot.slane %v9423_v38, 7  ;;  %v9426_v34 = vsel %vm1004_vm5, %v942_v33, %v1020_v37  ;;  %vm1694_vm5 = vcmask 916480  }
 0x1b4   :  { %12771 = vst [vmem:[#allocation7_spill] sm:$0xff] %v9426_v34  ;;  %v1087_v39 = vrot.slane %v9426_v34, 7 }
 0x1b5   :  { %v9430_v40 = vsel %vm120_vm0, 0.0, %v1088_v62  ;;  %v1136_v8 = vsel %vm120_vm0, %v1088_v62, 0.0 }
 0x1b6   :  { %v1191_v42 = vrot.slane %v1136_v8, 1  ;;  %v1233_v43 = vrot.slane %v1136_v8, 2  ;;  %v9434_v29 = vsel %vm120_vm0, 0.0, %v1087_v39  ;;  %v1135_v63 = vsel %vm120_vm0, %v1087_v39, 0.0 }
 0x1b7   :  { %v1188_v41 = vrot.slane %v1135_v63, 1  ;;  %v1230_v44 = vrot.slane %v1135_v63, 2  ;;  %v7241_v45 = vpack.i.bf16 %v9430_v40, %v9434_v29  ;;  %v7236_v47 = vpack.i.bf16 %v9434_v29, %v9388_v17 }
 0x1b8   :  { %v1187_v48 = vrot.slane %v9434_v29, 1  ;;  %v1190_v50 = vrot.slane %v9430_v40, 1  ;;  %v1229_v28 = vrot.slane %v9434_v29, 2  ;;  %v1232_v51 = vrot.slane %v9430_v40, 2 }
 0x1b9   :  { %7242 = vrot.lane.b32.xlu0 %v7241_v45, %s8662_s17  ;;  %7237 = vrot.lane.b32.xlu1 %v7236_v47, %s8665_s24 }
 0x1ba   :  { %v1189_v52 = vsel %vm185_vm2, %v1187_v48, %v1188_v41  ;;  %v1192_v54 = vsel %vm185_vm2, %v1190_v50, %v1191_v42  ;;  %v9450_v55 = vsel %vm231_vm1, %v1229_v28, %v1230_v44  ;;  %v9453_v58 = vsel %vm231_vm1, %v1232_v51, %v1233_v43 }
 0x1bb   :  { %v7251_v53 = vpack.i.bf16 %v1189_v52, %v1186_v7  ;;  %v7256_v0 = vpack.i.bf16 %v1192_v54, %v1189_v52  ;;  %v7261_v1 = vpack.i.bf16 %v9453_v58, %v9450_v55 }
 0x1bd   :  { %7252 = vrot.lane.b32.xlu1 %v7251_v53, %s8656_s22  ;;  %7247 = vrot.lane.b32.xlu0 %v7251_v53, %s8666_s25 }
 0x1c1   :  { %7257 = vrot.lane.b32.xlu1 %v7256_v0, %s8664_s1  ;;  %7262 = vrot.lane.b32.xlu0 %v7261_v1, %s8663_s26 }
 0x1c5   :  { %7267 = vrot.lane.b32.xlu1 %v7261_v1, %s8660_s27 }
 0x1c9   :  { %v6849_v4 = vpop.f32.mrb[6].mxu0 }
 0x1ca   :  { %v957_v10 = vadd.f32 %v6849_v4, %v9276_v15  ;;  %v951_v11 = vpop.f32.mrb[7].mxu0 }
 0x1cb   :  { %v952_v61 = vadd.f32 %v9276_v15, %v951_v11 }
 0x1cc   :  { %vm1007_vm6 = vcmp.ge.f32.partialorder %v957_v10, 0.0  ;;  %v1023_v13 = vmul.f32 0.2, %v957_v10 }
 0x1cd   :  { %vm1006_vm8 = vcmp.ge.f32.partialorder %v952_v61, 0.0  ;;  %v1022_v27 = vmul.f32 0.2, %v952_v61 }
 0x1ce   :  { %v9464_v18 = vsel %vm1007_vm6, %v957_v10, %v1023_v13 }
 0x1cf   :  { %12772 = vst [vmem:[#allocation8_spill] sm:$0xff] %v9464_v18  ;;  %v1090_v19 = vrot.slane %v9464_v18, 7  ;;  %v9467_v22 = vsel %vm1006_vm8, %v952_v61, %v1022_v27 }
 0x1d0   :  { %12773 = vst [vmem:[#allocation9_spill] sm:$0xff] %v9467_v22  ;;  %v1089_v23 = vrot.slane %v9467_v22, 7 }
 0x1d1   :  { %v1122_v25 = vsel %vm120_vm0, 0.0, %v1090_v19  ;;  %v1138_v26 = vsel %vm120_vm0, %v1090_v19, 0.0 }
 0x1d2   :  { %v1264_v21 = vrot.slane %v1138_v26, 1  ;;  %v9473_v7 = vsel %vm120_vm0, 0.0, %v1089_v23  ;;  %v1137_v24 = vsel %vm120_vm0, %v1089_v23, 0.0  ;;  %v7271_v30 = vpack.i.bf16 %v8752_v6, %v1122_v25 }
 0x1d3   :  { %v7276_v31 = vpack.i.bf16 %v9473_v7, %v9430_v40  ;;  %v1194_v59 = vrot.slane %v1137_v24, 1  ;;  %v1263_v32 = vrot.slane %v1122_v25, 1  ;;  %v1193_v33 = vrot.slane %v9473_v7, 1 }
 0x1d4   :  { %7272 = vrot.lane.b32.xlu1 %v7271_v30, %s8665_s24  ;;  %v1270_v37 = vrot.slane %v1138_v26, 2  ;;  %v7281_v62 = vpack.i.bf16 %v1122_v25, %v9473_v7  ;;  %v1236_v8 = vrot.slane %v1137_v24, 2  ;;  %v1235_v43 = vrot.slane %v9473_v7, 2 }
 0x1d5   :  { %7277 = vrot.lane.b32.xlu0 %v7276_v31, %s8665_s24  ;;  %v1265_v36 = vsel %vm185_vm2, %v1263_v32, %v1264_v21  ;;  %v1195_v42 = vsel %vm185_vm2, %v1193_v33, %v1194_v59  ;;  %v1269_v63 = vrot.slane %v1122_v25, 2 }
 0x1d6   :  { %v7286_v39 = vpack.i.bf16 %v8774_v20, %v1265_v36  ;;  %v7291_v41 = vpack.i.bf16 %v1195_v42, %v1192_v54  ;;  %v9490_v44 = vsel %vm231_vm1, %v1235_v43, %v1236_v8  ;;  %v7301_v47 = vpack.i.bf16 %v1265_v36, %v1195_v42 }
 0x1d7   :  { %v9493_v45 = vsel %vm231_vm1, %v1269_v63, %v1270_v37 }
 0x1d8   :  { %7282 = vrot.lane.b32.xlu1 %v7281_v62, %s8662_s17  ;;  %v7306_v20 = vpack.i.bf16 %v9493_v45, %v9490_v44 }
 0x1d9   :  { %7287 = vrot.lane.b32.xlu0 %v7286_v39, %s8666_s25 }
 0x1dc   :  { %7292 = vrot.lane.b32.xlu1 %v7291_v41, %s8666_s25 }
 0x1dd   :  { %7297 = vrot.lane.b32.xlu0 %v7291_v41, %s8656_s22 }
 0x1e0   :  { %7307 = vrot.lane.b32.xlu1 %v7306_v20, %s8663_s26 }
 0x1e1   :  { %7302 = vrot.lane.b32.xlu0 %v7301_v47, %s8664_s1 }
 0x1ec   :  { %v6852_v48 = vpop.f32.mrb[8].mxu0 }
 0x1ed   :  { %v967_v50 = vadd.f32 %v6852_v48, %v9276_v15  ;;  %v961_v28 = vpop.f32.mrb[9].mxu0 }
 0x1ee   :  { %v962_v51 = vadd.f32 %v9276_v15, %v961_v28 }
 0x1ef   :  { %vm1009_vm9 = vcmp.ge.f32.partialorder %v967_v50, 0.0  ;;  %v1025_v52 = vmul.f32 0.2, %v967_v50 }
 0x1f0   :  { %vm1008_vm10 = vcmp.ge.f32.partialorder %v962_v51, 0.0  ;;  %v1024_v53 = vmul.f32 0.2, %v962_v51  ;;  %v7178_v43 = vpop.permute.xlu0 %7177 }
 0x1f1   :  { %v9503_v54 = vsel %vm1009_vm9, %v967_v50, %v1025_v52 }
 0x1f2   :  { %12774 = vst [vmem:[#allocation10_spill] sm:$0xff] %v9503_v54  ;;  %v1092_v0 = vrot.slane %v9503_v54, 7  ;;  %v9506_v1 = vsel %vm1008_vm10, %v962_v51, %v1024_v53  ;;  %v7179_v51 = vunpack.i.l.bf16 %v7178_v43 }
 0x1f3   :  { %12775 = vst [vmem:[#allocation11_spill] sm:$0xff] %v9506_v1  ;;  %v1091_v4 = vrot.slane %v9506_v1, 7  ;;  %v7183_v26 = vpop.permute.xlu1 %7182 }
 0x1f4   :  { %v9510_v10 = vsel %vm120_vm0, 0.0, %v1092_v0  ;;  %v1140_v11 = vsel %vm120_vm0, %v1092_v0, 0.0  ;;  %v7184_v8 = vunpack.i.l.bf16 %v7183_v26  ;;  %v7185_v47 = vunpack.i.h.bf16 %v7183_v26  ;;  %v7193_v50 = vpop.permute.xlu0 %7192 }
 0x1f5   :  { %v9514_v61 = vsel %vm120_vm0, 0.0, %v1091_v4  ;;  %v1139_v13 = vsel %vm120_vm0, %v1091_v4, 0.0  ;;  %v1200_v19 = vrot.slane %v1140_v11, 1  ;;  %v1199_v30 = vrot.slane %v9510_v10, 1 }
 0x1f6   :  { %v1239_v27 = vrot.slane %v1139_v13, 2  ;;  %v1197_v23 = vrot.slane %v1139_v13, 1  ;;  %v7311_v25 = vpack.i.bf16 %v9510_v10, %v9514_v61  ;;  %v1238_v21 = vrot.slane %v9514_v61, 2 }
 0x1f7   :  { %v1196_v24 = vrot.slane %v9514_v61, 1  ;;  %v9527_v33 = vsel %vm185_vm2, %v1199_v30, %v1200_v19  ;;  %v1242_v36 = vrot.slane %v1140_v11, 2  ;;  %v1241_v62 = vrot.slane %v9510_v10, 2  ;;  %v7188_v39 = vpop.permute.xlu1 %7187 }
 0x1f8   :  { %7312 = vrot.lane.b32.xlu1 %v7311_v25, %s8662_s17  ;;  %v1240_v31 = vsel %vm231_vm1, %v1238_v21, %v1239_v27  ;;  %v1596_v41 = vsel %vm711_vm7, %v8752_v6, %v7184_v8  ;;  %v7189_v53 = vunpack.i.l.bf16 %v7188_v39  ;;  %v1597_v6 = vsel %vm711_vm7, %v9313_v14, %v7185_v47 }
 0x1f9   :  { %v7316_v59 = vpack.i.bf16 %v1240_v31, %v9490_v44  ;;  %v1198_v32 = vsel %vm185_vm2, %v1196_v24, %v1197_v23  ;;  %v9534_v42 = vsel %vm231_vm1, %v1241_v62, %v1242_v36  ;;  %v9545_v48 = vsel %vm779_vm11, %v1596_v41, %v9182_v35 }
 0x1fa   :  { %v7326_v37 = vpack.i.bf16 %v9527_v33, %v1198_v32  ;;  %v7331_v63 = vpack.i.bf16 %v9534_v42, %v1240_v31  ;;  %v1627_v11 = vsel %vm1626_vm12, %v9545_v48, %v7179_v51  ;;  %v7180_v25 = vunpack.i.h.bf16 %v7178_v43 }
 0x1fb   :  { %7317 = vrot.lane.b32.xlu0 %v7316_v59, %s8660_s27  ;;  %v9540_v20 = vpop.permute.xlu1 %7197  ;;  %v1644_v21 = vsel %vm1643_vm13, %v1627_v11, %v7189_v53  ;;  %v7194_v32 = vunpack.i.l.bf16 %v7193_v50  ;;  %v7190_v36 = vunpack.i.h.bf16 %v7188_v39  ;;  %v7195_v8 = vunpack.i.h.bf16 %v7193_v50 }
 0x1fc   :  { %7327 = vrot.lane.b32.xlu1 %v7326_v37, %s8656_s22  ;;  %v7199_v28 = vunpack.i.l.bf16 %v9540_v20 }
 0x1fe   :  { %v1612_v13 = vsel %vm779_vm11, %v1597_v6, %v7199_v28  ;;  %v1661_v28 = vsel %vm1660_vm3, %v1644_v21, %v7194_v32 }
 0x1ff   :  { %7322 = vrot.lane.b32.xlu0 %v7326_v37, %s8664_s1  ;;  %v1628_v14 = vsel %vm1626_vm12, %v1612_v13, %v7180_v25 }
 0x200   :  { %v1645_v51 = vsel %vm1643_vm13, %v1628_v14, %v7190_v36 }
 0x203   :  { %7332 = vrot.lane.b32.xlu0 %v7331_v63, %s8663_s26 }
 0x208   :  { %v6855_v52 = vpop.f32.mrb[10].mxu0 }
 0x209   :  { %v977_v0 = vadd.f32 %v6855_v52, %v9276_v15  ;;  %v971_v4 = vpop.f32.mrb[11].mxu0 }
 0x20a   :  { %v972_v35 = vadd.f32 %v9276_v15, %v971_v4 }
 0x20b   :  { %vm1011_vm14 = vcmp.ge.f32.partialorder %v977_v0, 0.0  ;;  %v1027_v27 = vmul.f32 0.2, %v977_v0  ;;  %v9555_v19 = vpop.permute.xlu1 %7207  ;;  %v7203_v23 = vpop.permute.xlu0 %7202 }
 0x20c   :  { %vm1010_vm15 = vcmp.ge.f32.partialorder %v972_v35, 0.0  ;;  %v1026_v26 = vmul.f32 0.2, %v972_v35  ;;  %v7204_v59 = vunpack.i.l.bf16 %v7203_v23  ;;  %v7205_v52 = vunpack.i.h.bf16 %v7203_v23 }
 0x20d   :  { %v9558_v24 = vsel %vm1011_vm14, %v977_v0, %v1027_v27  ;;  %v1662_v27 = vsel %vm1660_vm3, %v1645_v51, %v7195_v8 }
 0x20e   :  { %12776 = vst [vmem:[#allocation12_spill] sm:$0xff] %v9558_v24  ;;  %v1094_v30 = vrot.slane %v9558_v24, 7  ;;  %v9562_v31 = vsel %vm1010_vm15, %v972_v35, %v1026_v26  ;;  %v1678_v50 = vsel %vm1677_vm4, %v1661_v28, %v7204_v59  ;;  %v1679_v25 = vsel %vm1677_vm4, %v1662_v27, %v7205_v52 }
 0x20f   :  { %12777 = vst [vmem:[#allocation13_spill] sm:$0xff] %v9562_v31  ;;  %v1093_v37 = vrot.slane %v9562_v31, 7  ;;  %v7213_v62 = vpop.permute.xlu1 %7212  ;;  %v7218_v8 = vpop.permute.xlu0 %7217  ;;  %v7200_v52 = vunpack.i.h.bf16 %v9540_v20 }
 0x210   :  { %v9566_v43 = vsel %vm120_vm0, 0.0, %v1094_v30  ;;  %v7214_v63 = vunpack.i.l.bf16 %v7213_v62  ;;  %v1142_v39 = vsel %vm120_vm0, %v1094_v30, 0.0  ;;  %v7215_v53 = vunpack.i.h.bf16 %v7213_v62 }
 0x211   :  { %v9569_v41 = vsel %vm120_vm0, 0.0, %v1093_v37  ;;  %v1141_v47 = vsel %vm120_vm0, %v1093_v37, 0.0  ;;  %v1206_v13 = vrot.slane %v1142_v39, 1  ;;  %v1205_v21 = vrot.slane %v9566_v43, 1 }
 0x212   :  { %v1245_v0 = vrot.slane %v1141_v47, 2  ;;  %v1695_v4 = vsel %vm1694_vm5, %v1678_v50, %v7214_v63  ;;  %v7341_v6 = vpack.i.bf16 %v9566_v43, %v9569_v41  ;;  %v7336_v11 = vpack.i.bf16 %v9569_v41, %v9510_v10 }
 0x213   :  { %v1203_v35 = vrot.slane %v1141_v47, 1  ;;  %1812 = vmatmul.mubr.f32.vlgmr.msra.gmra.mrb[0].mxu1 %v1695_v4  ;;  %v1244_v23 = vrot.slane %v9569_v41, 2  ;;  %v1202_v26 = vrot.slane %v9569_v41, 1  ;;  %v1696_v14 = vsel %vm1694_vm5, %v1679_v25, %v7215_v53  ;;  %v7228_v4 = vpop.permute.xlu1 %7227 }
 0x214   :  { %6642 = vmatprep.mubr.msk.f32.mxu1 %vm711_vm7, %v9408_v9  ;;  %7342 = vrot.lane.b32.xlu0 %v7341_v6, %s8662_s17  ;;  %v1248_v32 = vrot.slane %v1142_v39, 2  ;;  %v9601_v37 = vsel %vm185_vm2, %v1205_v21, %v1206_v13  ;;  %v1247_v62 = vrot.slane %v9566_v43, 2  ;;  %v7219_v28 = vunpack.i.l.bf16 %v7218_v8 }
 0x215   :  { %7337 = vrot.lane.b32.xlu1 %v7336_v11, %s8665_s24  ;;  %v9592_v30 = vsel %vm231_vm1, %v1244_v23, %v1245_v0  ;;  %v1204_v59 = vsel %vm185_vm2, %v1202_v26, %v1203_v35  ;;  %v7220_v53 = vunpack.i.h.bf16 %v7218_v8  ;;  %v7209_v13 = vunpack.i.l.bf16 %v9555_v19 }
 0x216   :  { %v7351_v9 = vpack.i.bf16 %v9592_v30, %v9534_v42  ;;  %v7346_v36 = vpack.i.bf16 %v1204_v59, %v9527_v33  ;;  %v7356_v63 = vpack.i.bf16 %v9601_v37, %v1204_v59  ;;  %v9608_v47 = vsel %vm231_vm1, %v1247_v62, %v1248_v32 }
 0x217   :  { %1817 = vmatmul.mubr.f32.gmra.mrb[2].mxu1 %v1696_v14  ;;  %v7366_v33 = vpack.i.bf16 %v9608_v47, %v9592_v30  ;;  %v1598_v51 = vsel %vm711_vm7, %v9309_v12, %v7219_v28  ;;  %v1599_v20 = vsel %vm711_vm7, %v9392_v46, %v7220_v53  ;;  %v7210_v32 = vunpack.i.h.bf16 %v9555_v19 }
 0x218   :  { %6643 = vmatprep.mubr.msk.f32.mxu1 %vm711_vm7, %v9411_v49  ;;  %7347 = vrot.lane.b32.xlu0 %v7346_v36, %s8666_s25  ;;  %v7223_v49 = vpop.permute.xlu0 %7222  ;;  %v1613_v0 = vsel %vm779_vm11, %v1598_v51, %v7200_v52  ;;  %v7229_v36 = vunpack.i.l.bf16 %v7228_v4 }
 0x219   :  { %7352 = vrot.lane.b32.xlu1 %v7351_v9, %s8660_s27  ;;  %v7224_v23 = vunpack.i.l.bf16 %v7223_v49  ;;  %v1629_v26 = vsel %vm1626_vm12, %v1613_v0, %v7209_v13  ;;  %v7225_v53 = vunpack.i.h.bf16 %v7223_v49 }
 0x21c   :  { %7362 = vrot.lane.b32.xlu0 %v7356_v63, %s8656_s22  ;;  %v9617_v39 = vpop.permute.xlu0 %7232 }
 0x21d   :  { %7357 = vrot.lane.b32.xlu1 %v7356_v63, %s8664_s1  ;;  %v7234_v6 = vunpack.i.l.bf16 %v9617_v39  ;;  %v1646_v63 = vsel %vm1643_vm13, %v1629_v26, %v7224_v23 }
 0x21e   :  { %v1663_v0 = vsel %vm1660_vm3, %v1646_v63, %v7229_v36 }
 0x21f   :  { %v1614_v14 = vsel %vm779_vm11, %v1599_v20, %v7234_v6  ;;  %v7230_v20 = vunpack.i.h.bf16 %v7228_v4 }
 0x221   :  { %7367 = vrot.lane.b32.xlu1 %v7366_v33, %s8663_s26  ;;  %v1630_v33 = vsel %vm1626_vm12, %v1614_v14, %v7210_v32 }
 0x222   :  { %v1647_v13 = vsel %vm1643_vm13, %v1630_v33, %v7225_v53 }
 0x223   :  { %v1664_v4 = vsel %vm1660_vm3, %v1647_v13, %v7230_v20 }
 0x228   :  { %v6858_v50 = vpop.f32.mrb[12].mxu0 }
 0x229   :  { %v987_v11 = vadd.f32 %v6858_v50, %v9276_v15  ;;  %v981_v35 = vpop.f32.mrb[13].mxu0 }
 0x22a   :  { %v982_v27 = vadd.f32 %v9276_v15, %v981_v35 }
 0x22b   :  { %vm1013_vm6 = vcmp.ge.f32.partialorder %v987_v11, 0.0  ;;  %v1029_v12 = vmul.f32 0.2, %v987_v11  ;;  %v9625_v25 = vpop.permute.xlu0 %7242  ;;  %v7238_v59 = vpop.permute.xlu1 %7237 }
 0x22c   :  { %vm1012_vm8 = vcmp.ge.f32.partialorder %v982_v27, 0.0  ;;  %v1028_v21 = vmul.f32 0.2, %v982_v27  ;;  %v7239_v51 = vunpack.i.l.bf16 %v7238_v59 }
 0x22d   :  { %v9631_v9 = vsel %vm1013_vm6, %v987_v11, %v1029_v12  ;;  %v7240_v12 = vunpack.i.h.bf16 %v7238_v59 }
 0x22e   :  { %12778 = vst [vmem:[#allocation14_spill] sm:$0xff] %v9631_v9  ;;  %v1096_v62 = vrot.slane %v9631_v9, 7  ;;  %v9635_v8 = vsel %vm1012_vm8, %v982_v27, %v1028_v21  ;;  %v1680_v49 = vsel %vm1677_vm4, %v1663_v0, %v7239_v51 }
 0x22f   :  { %12779 = vst [vmem:[#allocation15_spill] sm:$0xff] %v9635_v8  ;;  %v1095_v46 = vrot.slane %v9635_v8, 7  ;;  %v7248_v52 = vpop.permute.xlu0 %7247  ;;  %v7253_v59 = vpop.permute.xlu1 %7252 }
 0x230   :  { %v9641_v28 = vsel %vm120_vm0, 0.0, %v1096_v62  ;;  %v1144_v6 = vsel %vm120_vm0, %v1096_v62, 0.0  ;;  %v7249_v11 = vunpack.i.l.bf16 %v7248_v52  ;;  %v7250_v26 = vunpack.i.h.bf16 %v7248_v52 }
 0x231   :  { %v9644_v50 = vsel %vm120_vm0, 0.0, %v1095_v46  ;;  %v1143_v19 = vsel %vm120_vm0, %v1095_v46, 0.0  ;;  %v1212_v32 = vrot.slane %v1144_v6, 1  ;;  %v1211_v63 = vrot.slane %v9641_v28, 1 }
 0x232   :  { %v7376_v35 = vpack.i.bf16 %v9641_v28, %v9644_v50  ;;  %v1209_v27 = vrot.slane %v1143_v19, 1  ;;  %v1251_v23 = vrot.slane %v1143_v19, 2  ;;  %v1697_v21 = vsel %vm1694_vm5, %v1680_v49, %v7249_v11 }
 0x233   :  { %v7371_v14 = vpack.i.bf16 %v9644_v50, %v9566_v43  ;;  %1822 = vmatmul.mubr.f32.gmra.mrb[4].mxu1 %v1697_v21  ;;  %v1250_v36 = vrot.slane %v9644_v50, 2  ;;  %v1208_v62 = vrot.slane %v9644_v50, 1  ;;  %v1681_v46 = vsel %vm1677_vm4, %v1664_v4, %v7240_v12  ;;  %v9694_v20 = vpop.permute.xlu0 %7262 }
 0x234   :  { %7377 = vrot.lane.b32.xlu1 %v7376_v35, %s8662_s17  ;;  %6644 = vmatprep.mubr.msk.f32.mxu1 %vm711_vm7, %v9450_v55  ;;  %v1698_v52 = vsel %vm1694_vm5, %v1681_v46, %v7250_v26  ;;  %v1254_v0 = vrot.slane %v1144_v6, 2  ;;  %v9674_v55 = vsel %vm185_vm2, %v1211_v63, %v1212_v32  ;;  %v1253_v11 = vrot.slane %v9641_v28, 2  ;;  %v9681_v35 = vpop.permute.xlu1 %7257 }
 0x235   :  { %7372 = vrot.lane.b32.xlu0 %v7371_v14, %s8665_s24  ;;  %v9666_v33 = vsel %vm231_vm1, %v1250_v36, %v1251_v23  ;;  %v1210_v51 = vsel %vm185_vm2, %v1208_v62, %v1209_v27  ;;  %v7254_v6 = vunpack.i.l.bf16 %v7253_v59  ;;  %v7235_v14 = vunpack.i.h.bf16 %v9617_v39 }
 0x236   :  { %v7386_v53 = vpack.i.bf16 %v9666_v33, %v9608_v47  ;;  %v7381_v19 = vpack.i.bf16 %v1210_v51, %v9601_v37  ;;  %v7391_v13 = vpack.i.bf16 %v9674_v55, %v1210_v51  ;;  %v9685_v37 = vsel %vm231_vm1, %v1253_v11, %v1254_v0 }
 0x237   :  { %1827 = vmatmul.mubr.f32.gmra.mrb[6].mxu1 %v1698_v52  ;;  %v7401_v27 = vpack.i.bf16 %v9685_v37, %v9666_v33  ;;  %v1600_v49 = vsel %vm711_vm7, %v9388_v17, %v7254_v6  ;;  %v7255_v62 = vunpack.i.h.bf16 %v7253_v59  ;;  %v7244_v17 = vunpack.i.l.bf16 %v9625_v25 }
 0x238   :  { %6645 = vmatprep.mubr.msk.f32.mxu1 %vm711_vm7, %v9453_v58  ;;  %7382 = vrot.lane.b32.xlu1 %v7381_v19, %s8666_s25  ;;  %v9696_v26 = vpop.permute.xlu1 %7267  ;;  %v1615_v63 = vsel %vm779_vm11, %v1600_v49, %v7235_v14  ;;  %v7245_v59 = vunpack.i.h.bf16 %v9625_v25 }
 0x239   :  { %7387 = vrot.lane.b32.xlu0 %v7386_v53, %s8660_s27  ;;  %v7269_v46 = vunpack.i.l.bf16 %v9696_v26  ;;  %v7259_v53 = vunpack.i.l.bf16 %v9681_v35  ;;  %v1631_v0 = vsel %vm1626_vm12, %v1615_v63, %v7244_v17  ;;  %v1601_v6 = vsel %vm711_vm7, %v9434_v29, %v7255_v62 }
 0x23b   :  { %v1616_v25 = vsel %vm779_vm11, %v1601_v6, %v7269_v46  ;;  %v7260_v6 = vunpack.i.h.bf16 %v9681_v35 }
 0x23c   :  { %7397 = vrot.lane.b32.xlu1 %v7391_v13, %s8656_s22 }
 0x23d   :  { %7392 = vrot.lane.b32.xlu0 %v7391_v13, %s8664_s1 }
 0x241   :  { %v6861_v58 = vpop.f32.mrb[14].mxu0  ;;  %7402 = vrot.lane.b32.xlu0 %v7401_v27, %s8663_s26  ;;  %v7264_v27 = vunpack.i.l.bf16 %v9694_v20 }
 0x242   :  { %v997_v23 = vadd.f32 %v6861_v58, %v9276_v15  ;;  %v991_v12 = vpop.f32.mrb[15].mxu0 }
 0x243   :  { %v992_v21 = vadd.f32 %v9276_v15, %v991_v12 }
 0x244   :  { %vm1015_vm9 = vcmp.ge.f32.partialorder %v997_v23, 0.0  ;;  %v1031_v32 = vmul.f32 0.2, %v997_v23 }
 0x245   :  { %vm1014_vm10 = vcmp.ge.f32.partialorder %v992_v21, 0.0  ;;  %v1030_v36 = vmul.f32 0.2, %v992_v21 }
 0x246   :  { %v9702_v4 = vsel %vm1015_vm9, %v997_v23, %v1031_v32  ;;  %v9709_v15 = vpop.permute.xlu1 %7272  ;;  %v1648_v32 = vsel %vm1643_vm13, %v1631_v0, %v7259_v53  ;;  %v7270_v53 = vunpack.i.h.bf16 %v9696_v26 }
 0x247   :  { %12780 = vst [vmem:[#allocation16_spill] sm:$0xff] %v9702_v4  ;;  %v1098_v51 = vrot.slane %v9702_v4, 7  ;;  %v9707_v52 = vsel %vm1014_vm10, %v992_v21, %v1030_v36  ;;  %v7278_v39 = vpop.permute.xlu0 %7277  ;;  %v1665_v56 = vsel %vm1660_vm3, %v1648_v32, %v7264_v27 }
 0x248   :  { %12781 = vst [vmem:[#allocation17_spill] sm:$0xff] %v9707_v52  ;;  %v1097_v19 = vrot.slane %v9707_v52, 7  ;;  %v7279_v17 = vunpack.i.l.bf16 %v7278_v39  ;;  %v7280_v9 = vunpack.i.h.bf16 %v7278_v39 }
 0x249   :  { %v9716_v11 = vsel %vm120_vm0, 0.0, %v1098_v51  ;;  %v9719_v13 = vsel %vm120_vm0, %v1098_v51, 0.0 }
 0x24a   :  { %v9725_v58 = vsel %vm120_vm0, 0.0, %v1097_v19  ;;  %v1145_v23 = vsel %vm120_vm0, %v1097_v19, 0.0  ;;  %v9729_v49 = vpop.permute.xlu1 %7282  ;;  %v1266_v62 = vrot.slane %v9716_v11, 1  ;;  %v1267_v63 = vrot.slane %v9719_v13, 1 }
 0x24b   :  { %v1215_v12 = vrot.slane %v1145_v23, 1  ;;  %v9731_v21 = vpop.permute.xlu0 %7287  ;;  %v7411_v14 = vpack.i.bf16 %v9716_v11, %v9725_v58  ;;  %v7406_v29 = vpack.i.bf16 %v9725_v58, %v9641_v28  ;;  %v1257_v36 = vrot.slane %v1145_v23, 2 }
 0x24c   :  { %v1214_v46 = vrot.slane %v9725_v58, 1  ;;  %v1256_v51 = vrot.slane %v9725_v58, 2  ;;  %v1632_v19 = vsel %vm1626_vm12, %v1616_v25, %v7245_v59  ;;  %v1682_v26 = vsel %vm1677_vm4, %v1665_v56, %v7279_v17 }
 0x24d   :  { %7412 = vrot.lane.b32.xlu0 %v7411_v14, %s8662_s17  ;;  %7407 = vrot.lane.b32.xlu1 %v7406_v29, %s8665_s24  ;;  %v1268_v29 = vsel %vm185_vm2, %v1266_v62, %v1267_v63  ;;  %v1649_v59 = vsel %vm1643_vm13, %v1632_v19, %v7260_v6  ;;  %v7265_v25 = vunpack.i.h.bf16 %v9694_v20  ;;  %v7289_v6 = vunpack.i.l.bf16 %v9731_v21 }
 0x24e   :  { %v7293_v0 = vpop.permute.xlu1 %7292  ;;  %v1216_v2 = vsel %vm185_vm2, %v1214_v46, %v1215_v12  ;;  %v9751_v52 = vsel %vm231_vm1, %v1256_v51, %v1257_v36  ;;  %v7284_v36 = vunpack.i.l.bf16 %v9729_v49  ;;  %v7274_v46 = vunpack.i.l.bf16 %v9709_v15 }
 0x24f   :  { %v7298_v23 = vpop.permute.xlu0 %7297  ;;  %v7294_v4 = vunpack.i.l.bf16 %v7293_v0  ;;  %v7416_v35 = vpack.i.bf16 %v1216_v2, %v9674_v55  ;;  %v7295_v12 = vunpack.i.h.bf16 %v7293_v0  ;;  %v7421_v56 = vpack.i.bf16 %v9751_v52, %v9685_v37 }
 0x250   :  { %v7299_v14 = vunpack.i.l.bf16 %v7298_v23  ;;  %v1272_v0 = vrot.slane %v9716_v11, 2 }
 0x251   :  { %1579 = vrot.lane.b32.xlu1 %v1268_v29, %s8666_s25  ;;  %v1699_v32 = vsel %vm1694_vm5, %v1682_v26, %v7294_v4  ;;  %7417 = vrot.lane.b32.xlu0 %v7416_v35, %s8666_s25 }
 0x252   :  { %v1602_v27 = vsel %vm711_vm7, %v9430_v40, %v7299_v14  ;;  %v7308_v62 = vpop.permute.xlu1 %7307  ;;  %1832 = vmatmul.mubr.f32.gmra.mrb[8].mxu1 %v1699_v32  ;;  %v1666_v40 = vsel %vm1660_vm3, %v1649_v59, %v7265_v25  ;;  %v1273_v14 = vrot.slane %v9719_v13, 2 }
 0x253   :  { %v1617_v39 = vsel %vm779_vm11, %v1602_v27, %v7270_v53  ;;  %v7303_v55 = vpop.permute.xlu0 %7302  ;;  %6646 = vmatprep.mubr.msk.f32.mxu1 %vm711_vm7, %v9490_v44  ;;  %v7309_v20 = vunpack.i.l.bf16 %v7308_v62  ;;  %v1683_v17 = vsel %vm1677_vm4, %v1666_v40, %v7280_v9  ;;  %v9803_v27 = vunpack.i.h.bf16 %v9709_v15 }
 0x254   :  { %v7304_v63 = vunpack.i.l.bf16 %v7303_v55  ;;  %v1633_v4 = vsel %vm1626_vm12, %v1617_v39, %v7284_v36  ;;  %v1700_v19 = vsel %vm1694_vm5, %v1683_v17, %v7295_v12  ;;  %v7305_v59 = vunpack.i.h.bf16 %v7303_v55 }
 0x255   :  { %7422 = vrot.lane.b32.xlu1 %v7421_v56, %s8660_s27  ;;  %1534 = vrot.lane.b32.xlu0 %v9716_v11, %s8665_s24  ;;  %v7285_v11 = vunpack.i.h.bf16 %v9729_v49  ;;  %v7310_v12 = vunpack.i.h.bf16 %v7308_v62 }
 0x256   :  { %v1650_v51 = vsel %vm1643_vm13, %v1633_v4, %v7304_v63  ;;  %1837 = vmatmul.mubr.f32.gmra.mrb[10].mxu1 %v1700_v19 }
 0x257   :  { %v1667_v44 = vsel %vm1660_vm3, %v1650_v51, %v7309_v20  ;;  %6647 = vmatprep.mubr.msk.f32.mxu1 %vm711_vm7, %v9493_v45  ;;  %v9793_v45 = vsel %vm231_vm1, %v1272_v0, %v1273_v14 }
 0x258   :  { %v1684_v53 = vsel %vm1677_vm4, %v1667_v44, %v7274_v46 }
 0x259   :  { %1438 = vrot.lane.b32.xlu1 %v1216_v2, %s8664_s1  ;;  %v1701_v9 = vsel %vm1694_vm5, %v1684_v53, %v7289_v6  ;;  %1303 = vrot.lane.b32.xlu0 %v1216_v2, %s8656_s22  ;;  %v7300_v2 = vunpack.i.h.bf16 %v7298_v23  ;;  %v9807_v23 = vunpack.i.h.bf16 %v9731_v21 }
 0x25a   :  { %1842 = vmatmul.mubr.f32.gmra.mrb[12].mxu1 %v1701_v9 }
 0x25b   :  { %6648 = vmatprep.mubr.msk.f32.mxu1 %vm711_vm7, %v8770_v16  ;;  %v1603_v13 = vsel %vm711_vm7, %v9473_v7, %v7300_v2 }
 0x25d   :  { %1486 = vrot.lane.b32.xlu1 %v9751_v52, %s8663_s26  ;;  %1440 = vrot.lane.b32.xlu0 %v1268_v29, %s8664_s1 }
 0x261   :  { %1488 = vrot.lane.b32.xlu1 %v9793_v45, %s8663_s26 }
 0x26a   :  { %v7313_v39 = vpop.permute.xlu1 %7312 }
 0x26b   :  { %v7314_v21 = vunpack.i.l.bf16 %v7313_v39  ;;  %v7315_v6 = vunpack.i.h.bf16 %v7313_v39 }
 0x26d   :  { %v7318_v35 = vpop.permute.xlu0 %7317 }
 0x26e   :  { %v7319_v26 = vunpack.i.l.bf16 %v7318_v35  ;;  %v7328_v62 = vpop.permute.xlu1 %7327  ;;  %v7320_v4 = vunpack.i.h.bf16 %v7318_v35 }
 0x26f   :  { %v7329_v56 = vunpack.i.l.bf16 %v7328_v62 }
 0x270   :  { %v1618_v25 = vsel %vm779_vm11, %v1603_v13, %v7319_v26 }
 0x271   :  { %v1634_v29 = vsel %vm1626_vm12, %v1618_v25, %v7285_v11  ;;  %v7323_v15 = vpop.permute.xlu0 %7322  ;;  %v1604_v40 = vsel %vm711_vm7, %v9514_v61, %v7329_v56 }
 0x272   :  { %v1651_v32 = vsel %vm1643_vm13, %v1634_v29, %v7305_v59  ;;  %v7324_v17 = vunpack.i.l.bf16 %v7323_v15  ;;  %v1619_v51 = vsel %vm779_vm11, %v1604_v40, %v7320_v4  ;;  %v7325_v44 = vunpack.i.h.bf16 %v7323_v15 }
 0x273   :  { %v1668_v36 = vsel %vm1660_vm3, %v1651_v32, %v7310_v12  ;;  %v1636_v0 = vsel %vm1626_vm12, %v1619_v51, %v7315_v6  ;;  %v7330_v15 = vunpack.i.h.bf16 %v7328_v62 }
 0x274   :  { %v1685_v49 = vsel %vm1677_vm4, %v1668_v36, %v9803_v27  ;;  %v1653_v59 = vsel %vm1643_vm13, %v1636_v0, %v7325_v44 }
 0x275   :  { %v1702_v7 = vsel %vm1694_vm5, %v1685_v49, %v9807_v23  ;;  %v7333_v55 = vpop.permute.xlu0 %7332  ;;  %v1605_v40 = vsel %vm711_vm7, %v9510_v10, %v7330_v15 }
 0x276   :  { %1847 = vmatmul.mubr.f32.gmra.mrb[14].mxu1 %v1702_v7  ;;  %v7334_v46 = vunpack.i.l.bf16 %v7333_v55  ;;  %v7335_v14 = vunpack.i.h.bf16 %v7333_v55 }
 0x277   :  { %6649 = vmatprep.mubr.msk.f32.mxu1 %vm711_vm7, %v9534_v42  ;;  %v1635_v42 = vsel %vm1626_vm12, %v9545_v48, %v7314_v21 }
 0x278   :  { %v1652_v53 = vsel %vm1643_vm13, %v1635_v42, %v7324_v17  ;;  %v1670_v25 = vsel %vm1660_vm3, %v1653_v59, %v7335_v14 }
 0x279   :  { %v1669_v61 = vsel %vm1660_vm3, %v1652_v53, %v7334_v46 }
 0x286   :  { %v7343_v63 = vpop.permute.xlu0 %7342 }
 0x287   :  { %v7338_v20 = vpop.permute.xlu1 %7337  ;;  %v7345_v46 = vunpack.i.h.bf16 %v7343_v63  ;;  %v7344_v51 = vunpack.i.l.bf16 %v7343_v63 }
 0x288   :  { %v7339_v19 = vunpack.i.l.bf16 %v7338_v20  ;;  %v7340_v35 = vunpack.i.h.bf16 %v7338_v20 }
 0x28a   :  { %v7348_v9 = vpop.permute.xlu0 %7347  ;;  %v1686_v26 = vsel %vm1677_vm4, %v1669_v61, %v7339_v19  ;;  %v1687_v12 = vsel %vm1677_vm4, %v1670_v25, %v7340_v35 }
 0x28b   :  { %v7349_v2 = vunpack.i.l.bf16 %v7348_v9  ;;  %v7350_v11 = vunpack.i.h.bf16 %v7348_v9  ;;  %v7353_v32 = vpop.permute.xlu1 %7352 }
 0x28c   :  { %v7354_v55 = vunpack.i.l.bf16 %v7353_v32  ;;  %v7355_v56 = vunpack.i.h.bf16 %v7353_v32 }
 0x28d   :  { %v1703_v13 = vsel %vm1694_vm5, %v1686_v26, %v7349_v2  ;;  %v1704_v29 = vsel %vm1694_vm5, %v1687_v12, %v7350_v11 }
 0x28e   :  { %1852 = vmatmul.mubr.f32.gmra.mrb[16].mxu1 %v1703_v13  ;;  %v7363_v49 = vpop.permute.xlu0 %7362  ;;  %v1620_v4 = vsel %vm779_vm11, %v1605_v40, %v7354_v55 }
 0x28f   :  { %6650 = vmatprep.mubr.msk.f32.mxu1 %vm711_vm7, %v9592_v30  ;;  %v7358_v36 = vpop.permute.xlu1 %7357  ;;  %v7364_v7 = vunpack.i.l.bf16 %v7363_v49  ;;  %v1637_v62 = vsel %vm1626_vm12, %v1620_v4, %v7344_v51 }
 0x290   :  { %v7359_v17 = vunpack.i.l.bf16 %v7358_v36 }
 0x291   :  { %v1606_v30 = vsel %vm711_vm7, %v9569_v41, %v7364_v7  ;;  %v7360_v41 = vunpack.i.h.bf16 %v7358_v36  ;;  %v7365_v36 = vunpack.i.h.bf16 %v7363_v49 }
 0x292   :  { %1857 = vmatmul.mubr.f32.gmra.mrb[18].mxu1 %v1704_v29  ;;  %v1654_v44 = vsel %vm1643_vm13, %v1637_v62, %v7359_v17 }
 0x293   :  { %6651 = vmatprep.mubr.msk.f32.mxu1 %vm711_vm7, %v9608_v47  ;;  %v7368_v39 = vpop.permute.xlu1 %7367  ;;  %v1621_v47 = vsel %vm779_vm11, %v1606_v30, %v7355_v56  ;;  %v1607_v30 = vsel %vm711_vm7, %v9566_v43, %v7365_v36 }
 0x294   :  { %v7369_v19 = vunpack.i.l.bf16 %v7368_v39  ;;  %v1638_v42 = vsel %vm1626_vm12, %v1621_v47, %v7345_v46  ;;  %v7370_v9 = vunpack.i.h.bf16 %v7368_v39 }
 0x295   :  { %v1655_v63 = vsel %vm1643_vm13, %v1638_v42, %v7360_v41 }
 0x296   :  { %v1671_v14 = vsel %vm1660_vm3, %v1654_v44, %v7369_v19  ;;  %v1672_v11 = vsel %vm1660_vm3, %v1655_v63, %v7370_v9 }
 0x2a6   :  { %v7378_v21 = vpop.permute.xlu1 %7377 }
 0x2a7   :  { %v7373_v20 = vpop.permute.xlu0 %7372  ;;  %v7380_v4 = vunpack.i.h.bf16 %v7378_v21 }
 0x2a8   :  { %v7374_v6 = vunpack.i.l.bf16 %v7373_v20  ;;  %v7375_v2 = vunpack.i.h.bf16 %v7373_v20 }
 0x2aa   :  { %v7383_v53 = vpop.permute.xlu1 %7382  ;;  %v1688_v61 = vsel %vm1677_vm4, %v1671_v14, %v7374_v6  ;;  %v1689_v13 = vsel %vm1677_vm4, %v1672_v11, %v7375_v2 }
 0x2ab   :  { %v7384_v10 = vunpack.i.l.bf16 %v7383_v53  ;;  %v7388_v0 = vpop.permute.xlu0 %7387  ;;  %v7385_v35 = vunpack.i.h.bf16 %v7383_v53 }
 0x2ac   :  { %v7389_v7 = vunpack.i.l.bf16 %v7388_v0 }
 0x2ad   :  { %v1705_v26 = vsel %vm1694_vm5, %v1688_v61, %v7384_v10  ;;  %v1706_v25 = vsel %vm1694_vm5, %v1689_v13, %v7385_v35 }
 0x2ae   :  { %1862 = vmatmul.mubr.f32.gmra.mrb[20].mxu1 %v1705_v26  ;;  %v7398_v12 = vpop.permute.xlu1 %7397  ;;  %v1622_v56 = vsel %vm779_vm11, %v1607_v30, %v7389_v7 }
 0x2af   :  { %6652 = vmatprep.mubr.msk.f32.mxu1 %vm711_vm7, %v9666_v33  ;;  %v7393_v59 = vpop.permute.xlu0 %7392  ;;  %v7399_v29 = vunpack.i.l.bf16 %v7398_v12  ;;  %v7390_v33 = vunpack.i.h.bf16 %v7388_v0  ;;  %v7400_v51 = vunpack.i.h.bf16 %v7398_v12 }
 0x2b0   :  { %v7394_v20 = vunpack.i.l.bf16 %v7393_v59  ;;  %v7395_v19 = vunpack.i.h.bf16 %v7393_v59 }
 0x2b1   :  { %v1608_v39 = vsel %vm711_vm7, %v9644_v50, %v7399_v29  ;;  %v1609_v2 = vsel %vm711_vm7, %v9641_v28, %v7400_v51 }
 0x2b2   :  { %1867 = vmatmul.mubr.f32.gmra.mrb[22].mxu1 %v1706_v25  ;;  %v1623_v40 = vsel %vm779_vm11, %v1608_v39, %v7390_v33 }
 0x2b3   :  { %6653 = vmatprep.mubr.msk.f32.mxu1 %vm711_vm7, %v9685_v37  ;;  %v7403_v32 = vpop.permute.xlu0 %7402  ;;  %v7379_v37 = vunpack.i.l.bf16 %v7378_v21  ;;  %v1640_v50 = vsel %vm1626_vm12, %v1623_v40, %v7380_v4  ;;  %v9897_v4 = vld [vmem:[%s12728_s4] ss:$0 sm:$0xff] }
 0x2b4   :  { %v7404_v17 = vunpack.i.l.bf16 %v7403_v32  ;;  %v7405_v43 = vunpack.i.h.bf16 %v7403_v32  ;;  %v1657_v44 = vsel %vm1643_vm13, %v1640_v50, %v7395_v19 }
 0x2b5   :  { %v1639_v46 = vsel %vm1626_vm12, %v1622_v56, %v7379_v37 }
 0x2b6   :  { %v1656_v6 = vsel %vm1643_vm13, %v1639_v46, %v7394_v20  ;;  %v1674_v26 = vsel %vm1660_vm3, %v1657_v44, %v7405_v43  ;;  %v1941_v46 = vld [vmem:[%s12729_s5 + $0x8] sm:$0xff]  ;;  %v1942_v44 = vld [vmem:[%s12729_s5 + $0x10] sm:$0xff] }
 0x2b7   :  { %v1673_v41 = vsel %vm1660_vm3, %v1656_v6, %v7404_v17 }
 0x2bf   :  { %v7408_v15 = vpop.permute.xlu1 %7407  ;;  %v7413_v55 = vpop.permute.xlu0 %7412 }
 0x2c0   :  { %v7409_v47 = vunpack.i.l.bf16 %v7408_v15  ;;  %v7410_v53 = vunpack.i.h.bf16 %v7408_v15  ;;  %v7414_v63 = vunpack.i.l.bf16 %v7413_v55  ;;  %v7415_v28 = vunpack.i.h.bf16 %v7413_v55 }
 0x2c2   :  { %v1690_v9 = vsel %vm1677_vm4, %v1673_v41, %v7409_v47  ;;  %v1691_v13 = vsel %vm1677_vm4, %v1674_v26, %v7410_v53  ;;  %v12782_v41 = vmov 0.0|0.0   ;;  %v1943_v53 = vld [vmem:[%s12729_s5 + $0x18] sm:$0xff] }
 0x2c3   :  { %v1580_v49 = vpop.permute.xlu1 %1579  ;;  %v7418_v62 = vpop.permute.xlu0 %7417 }
 0x2c4   :  { %v7419_v42 = vunpack.i.l.bf16 %v7418_v62  ;;  %v7420_v10 = vunpack.i.h.bf16 %v7418_v62 }
 0x2c6   :  { %v1707_v14 = vsel %vm1694_vm5, %v1690_v9, %v7419_v42  ;;  %v1708_v25 = vsel %vm1694_vm5, %v1691_v13, %v7420_v10  ;;  %v6950_v9 = vpack.c.bf16 %v1943_v53, %v1942_v44  ;;  %v1956_v53 = vld [vmem:[%s12729_s5 + $0x80] sm:$0xff] }
 0x2c7   :  { %v7423_v21 = vpop.permute.xlu1 %7422  ;;  %v1535_v61 = vpop.permute.xlu0 %1534  ;;  %1872 = vmatmul.mubr.f32.gmra.mrb[24].mxu1 %v1707_v14 }
 0x2c8   :  { %v7424_v0 = vunpack.i.l.bf16 %v7423_v21  ;;  %6654 = vmatprep.mubr.msk.f32.mxu1 %vm711_vm7, %v9751_v52  ;;  %v7425_v12 = vunpack.i.h.bf16 %v7423_v21 }
 0x2ca   :  { %v1624_v35 = vsel %vm779_vm11, %v1609_v2, %v7424_v0 }
 0x2cb   :  { %v1439_v11 = vpop.permute.xlu1 %1438  ;;  %v1641_v59 = vsel %vm1626_vm12, %v1624_v35, %v7414_v63  ;;  %v1304_v29 = vpop.permute.xlu0 %1303  ;;  %1877 = vmatmul.mubr.f32.gmra.mrb[26].mxu1 %v1708_v25  ;;  %v1945_v63 = vld [vmem:[%s12729_s5 + $0x28] sm:$0xff] }
 0x2cc   :  { %v1610_v32 = vsel %vm711_vm7, %v9725_v58, %v1304_v29  ;;  %6655 = vmatprep.mubr.msk.f32.mxu1 %vm711_vm7, %v9793_v45  ;;  %v1658_v52 = vsel %vm1643_vm13, %v1641_v59, %v1439_v11 }
 0x2cd   :  { %v1625_v36 = vsel %vm779_vm11, %v1610_v32, %v7425_v12 }
 0x2ce   :  { %v1642_v33 = vsel %vm1626_vm12, %v1625_v36, %v7415_v28 }
 0x2cf   :  { %v1487_v7 = vpop.permute.xlu1 %1486  ;;  %v1441_v15 = vpop.permute.xlu0 %1440 }
 0x2d0   :  { %v1675_v39 = vsel %vm1660_vm3, %v1658_v52, %v1487_v7  ;;  %v1659_v56 = vsel %vm1643_vm13, %v1642_v33, %v1441_v15  ;;  %v1946_v7 = vld [vmem:[%s12729_s5 + $0x30] sm:$0xff] }
 0x2d1   :  { %v1692_v30 = vsel %vm1677_vm4, %v1675_v39, %v1535_v61  ;;  %v1944_v61 = vld [vmem:[%s12729_s5 + $0x20] sm:$0xff]  ;;  %v1947_v39 = vld [vmem:[%s12729_s5 + $0x38] sm:$0xff] }
 0x2d2   :  { %v1709_v55 = vsel %vm1694_vm5, %v1692_v30, %v1580_v49  ;;  %v1940_v49 = vld [vmem:[%s12729_s5] sm:$0xff]  ;;  %v6953_v11 = vpack.c.bf16 %v1945_v63, %v1944_v61  ;;  %v6956_v30 = vpack.c.bf16 %v1947_v39, %v1946_v7 }
 0x2d3   :  { %v1489_v58 = vpop.permute.xlu1 %1488  ;;  %1882 = vmatmul.mubr.f32.gmra.mrb[28].mxu1 %v1709_v55  ;;  %v6947_v51 = vpack.c.bf16 %v1941_v46, %v1940_v49  ;;  %v1952_v46 = vld [vmem:[%s12729_s5 + $0x60] sm:$0xff] }
 0x2d4   :  { %v1676_v45 = vsel %vm1660_vm3, %v1659_v56, %v1489_v58  ;;  %6656 = vmatprep.mubr.msk.f32.mxu1 %vm711_vm7, %v8770_v16 }
 0x2d5   :  { %v1693_v40 = vsel %vm1677_vm4, %v1676_v45, %v9803_v27  ;;  %6948 = vmatpush1.bf16.msra.mxu0 %v6947_v51 }
 0x2d6   :  { %v1710_v20 = vsel %vm1694_vm5, %v1693_v40, %v9807_v23  ;;  %6949 = vmatprep.subr.bf16.mxu0 %v12782_v41  ;;  %v1948_v40 = vld [vmem:[%s12729_s5 + $0x40] sm:$0xff] }
 0x2d7   :  { %1887 = vmatmul.mubr.f32.gmra.mrb[30].mxu1 %v1710_v20  ;;  %v1949_v20 = vld [vmem:[%s12729_s5 + $0x48] sm:$0xff] }
 0x2d9   :  { %6951 = vmatpush1.bf16.msra.mxu0 %v6950_v9 }
 0x2da   :  { %6952 = vmatprep.subr.bf16.mxu0 %v12782_v41 }
 0x2dd   :  { %6954 = vmatpush1.bf16.msra.mxu0 %v6953_v11 }
 0x2de   :  { %6955 = vmatprep.subr.bf16.mxu0 %v12782_v41 }
 0x2e1   :  { %6957 = vmatpush1.bf16.msra.mxu0 %v6956_v30 }
 0x2e2   :  { %6958 = vmatprep.subr.bf16.mxu0 %v12782_v41 }
 0x2e6   :  { %v1813_v37 = vpop.f32.mrb[0].mxu1 }
 0x2e7   :  { %v1814_v17 = vadd.f32 %v9897_v4, %v1813_v37  ;;  %v1815_v47 = vpop.f32.mrb[1].mxu1  ;;  %v6959_v37 = vpack.c.bf16 %v1949_v20, %v1948_v40 }
 0x2e8   :  { %v1951_v47 = vld [vmem:[%s12729_s5 + $0x58] sm:$0xff] }
 0x2e9   :  { %vm1892_vm14 = vcmp.ge.f32.partialorder %v1814_v17, 0.0  ;;  %v1908_v50 = vmul.f32 0.2, %v1814_v17  ;;  %6960 = vmatpush1.bf16.msra.mxu0 %v6959_v37 }
 0x2ea   :  { %v1818_v19 = vpop.f32.mrb[2].mxu1  ;;  %6961 = vmatprep.subr.bf16.mxu0 %v12782_v41 }
 0x2eb   :  { %v1924_v6 = vsel %vm1892_vm14, %v1814_v17, %v1908_v50  ;;  %v1819_v62 = vadd.f32 %v9897_v4, %v1818_v19  ;;  %v1820_v43 = vpop.f32.mrb[3].mxu1  ;;  %v1950_v17 = vld [vmem:[%s12729_s5 + $0x50] sm:$0xff]  ;;  %v1953_v50 = vld [vmem:[%s12729_s5 + $0x68] sm:$0xff] }
 0x2ec   :  { %v1975_v42 = vrot.slane %v1924_v6, 7  ;;  %v6962_v49 = vpack.c.bf16 %v1951_v47, %v1950_v17  ;;  %v6965_v51 = vpack.c.bf16 %v1953_v50, %v1952_v46  ;;  %v1954_v19 = vld [vmem:[%s12729_s5 + $0x70] sm:$0xff]  ;;  %v1955_v6 = vld [vmem:[%s12729_s5 + $0x78] sm:$0xff] }
 0x2ed   :  { %vm1893_vm15 = vcmp.ge.f32.partialorder %v1819_v62, 0.0  ;;  %v1909_v21 = vmul.f32 0.2, %v1819_v62 }
 0x2ee   :  { %v9915_v10 = vsel %vm120_vm0, 0.0, %v1975_v42  ;;  %v2023_v0 = vsel %vm120_vm0, %v1975_v42, 0.0  ;;  %6963 = vmatpush1.bf16.msra.mxu0 %v6962_v49 }
 0x2ef   :  { %v1925_v14 = vsel %vm1893_vm15, %v1819_v62, %v1909_v21  ;;  %v2067_v35 = vrot.slane %v9915_v10, 1  ;;  %v2068_v26 = vrot.slane %v2023_v0, 1  ;;  %v2110_v13 = vrot.slane %v2023_v0, 2  ;;  %6964 = vmatprep.subr.bf16.mxu0 %v12782_v41  ;;  %v1957_v21 = vld [vmem:[%s12729_s5 + $0x88] sm:$0xff] }
 0x2f0   :  { %v1976_v2 = vrot.slane %v1925_v14, 7  ;;  %v2109_v12 = vrot.slane %v9915_v10, 2  ;;  %v6968_v62 = vpack.c.bf16 %v1955_v6, %v1954_v19  ;;  %v6971_v9 = vpack.c.bf16 %v1957_v21, %v1956_v53 }
 0x2f1   :  { %v2069_v33 = vsel %vm185_vm2, %v2067_v35, %v2068_v26 }
 0x2f2   :  { %v9927_v59 = vsel %vm120_vm0, 0.0, %v1976_v2  ;;  %v2024_v25 = vsel %vm120_vm0, %v1976_v2, 0.0  ;;  %v2111_v55 = vsel %vm231_vm1, %v2109_v12, %v2110_v13  ;;  %6966 = vmatpush1.bf16.msra.mxu0 %v6965_v51 }
 0x2f3   :  { %v2070_v29 = vrot.slane %v9927_v59, 1  ;;  %v2071_v28 = vrot.slane %v2024_v25, 1  ;;  %v7426_v32 = vpack.i.bf16 %v9927_v59, %v9915_v10  ;;  %v2112_v52 = vrot.slane %v9927_v59, 2  ;;  %6967 = vmatprep.subr.bf16.mxu0 %v12782_v41 }
 0x2f4   :  { %v2113_v36 = vrot.slane %v2024_v25, 2 }
 0x2f5   :  { %7427 = vrot.lane.b32.xlu0 %v7426_v32, %s8662_s17  ;;  %v9945_v15 = vsel %vm185_vm2, %v2070_v29, %v2071_v28 }
 0x2f6   :  { %v2114_v56 = vsel %vm231_vm1, %v2112_v52, %v2113_v36  ;;  %v7431_v58 = vpack.i.bf16 %v9945_v15, %v2069_v33  ;;  %6969 = vmatpush1.bf16.msra.mxu0 %v6968_v62 }
 0x2f7   :  { %6658 = vmatprep.mubr.msk.f32.mxu0 %vm711_vm7, %v2114_v56  ;;  %v7446_v45 = vpack.i.bf16 %v2114_v56, %v2111_v55  ;;  %6970 = vmatprep.subr.bf16.mxu0 %v12782_v41 }
 0x2f8   :  { %7432 = vrot.lane.b32.xlu1 %v7431_v58, %s8664_s1 }
 0x2f9   :  { %7437 = vrot.lane.b32.xlu0 %v7431_v58, %s8656_s22 }
 0x2fa   :  { %6972 = vmatpush1.bf16.msra.mxu0 %v6971_v9 }
 0x2fb   :  { %7000 = vmatprep.subr.bf16.mxu0 %v12782_v41 }
 0x2fc   :  { %7442 = vrot.lane.b32.xlu1 %v7446_v45, %s8663_s26 }
 0x2fd   :  { %7447 = vrot.lane.b32.xlu0 %v7446_v45, %s8660_s27 }
 0x306   :  { %v1823_v43 = vpop.f32.mrb[4].mxu1 }
 0x307   :  { %v1824_v42 = vadd.f32 %v9897_v4, %v1823_v43  ;;  %v1825_v44 = vpop.f32.mrb[5].mxu1 }
 0x309   :  { %vm1894_vm6 = vcmp.ge.f32.partialorder %v1824_v42, 0.0  ;;  %v1910_v0 = vmul.f32 0.2, %v1824_v42 }
 0x30a   :  { %v1828_v14 = vpop.f32.mrb[6].mxu1 }
 0x30b   :  { %v1926_v2 = vsel %vm1894_vm6, %v1824_v42, %v1910_v0  ;;  %v1829_v61 = vadd.f32 %v9897_v4, %v1828_v14  ;;  %v1830_v63 = vpop.f32.mrb[7].mxu1 }
 0x30c   :  { %v1977_v35 = vrot.slane %v1926_v2, 7 }
 0x30d   :  { %vm1895_vm8 = vcmp.ge.f32.partialorder %v1829_v61, 0.0  ;;  %v1911_v26 = vmul.f32 0.2, %v1829_v61 }
 0x30e   :  { %v9994_v11 = vsel %vm120_vm0, 0.0, %v1977_v35  ;;  %v2025_v13 = vsel %vm120_vm0, %v1977_v35, 0.0 }
 0x30f   :  { %v2073_v25 = vrot.slane %v9994_v11, 1  ;;  %v2074_v12 = vrot.slane %v2025_v13, 1  ;;  %v1927_v29 = vsel %vm1895_vm8, %v1829_v61, %v1911_v26  ;;  %v7451_v28 = vpack.i.bf16 %v9994_v11, %v9927_v59 }
 0x310   :  { %v1978_v32 = vrot.slane %v1927_v29, 7  ;;  %v2115_v45 = vrot.slane %v9994_v11, 2  ;;  %v2116_v40 = vrot.slane %v2025_v13, 2 }
 0x311   :  { %v2075_v52 = vsel %vm185_vm2, %v2073_v25, %v2074_v12  ;;  %7452 = vrot.lane.b32.xlu1 %v7451_v28, %s8665_s24 }
 0x312   :  { %v7456_v36 = vpack.i.bf16 %v2075_v52, %v9945_v15  ;;  %v10004_v7 = vsel %vm120_vm0, 0.0, %v1978_v32  ;;  %v2026_v39 = vsel %vm120_vm0, %v1978_v32, 0.0  ;;  %v10020_v17 = vsel %vm231_vm1, %v2115_v45, %v2116_v40 }
 0x313   :  { %v2076_v33 = vrot.slane %v10004_v7, 1  ;;  %v2077_v30 = vrot.slane %v2026_v39, 1  ;;  %v2118_v55 = vrot.slane %v10004_v7, 2  ;;  %v2119_v56 = vrot.slane %v2026_v39, 2 }
 0x314   :  { %7457 = vrot.lane.b32.xlu0 %v7456_v36, %s8666_s25  ;;  %v7461_v58 = vpack.i.bf16 %v10004_v7, %v9994_v11 }
 0x315   :  { %v2078_v15 = vsel %vm185_vm2, %v2076_v33, %v2077_v30  ;;  %v10016_v37 = vsel %vm231_vm1, %v2118_v55, %v2119_v56 }
 0x316   :  { %7462 = vrot.lane.b32.xlu1 %v7461_v58, %s8662_s17  ;;  %v7466_v20 = vpack.i.bf16 %v2078_v15, %v2075_v52  ;;  %v7476_v47 = vpack.i.bf16 %v10016_v37, %v10020_v17 }
 0x318   :  { %7467 = vrot.lane.b32.xlu0 %v7466_v20, %s8664_s1 }
 0x31a   :  { %7472 = vrot.lane.b32.xlu1 %v7466_v20, %s8656_s22 }
 0x31c   :  { %7477 = vrot.lane.b32.xlu0 %v7476_v47, %s8663_s26 }
 0x31e   :  { %7482 = vrot.lane.b32.xlu1 %v7476_v47, %s8660_s27 }
 0x325   :  { %v1833_v49 = vpop.f32.mrb[8].mxu1 }
 0x326   :  { %v1834_v46 = vadd.f32 %v9897_v4, %v1833_v49  ;;  %v1835_v50 = vpop.f32.mrb[9].mxu1 }
 0x328   :  { %vm1896_vm9 = vcmp.ge.f32.partialorder %v1834_v46, 0.0  ;;  %v1912_v51 = vmul.f32 0.2, %v1834_v46 }
 0x329   :  { %v1838_v19 = vpop.f32.mrb[10].mxu1 }
 0x32a   :  { %v1928_v6 = vsel %vm1896_vm9, %v1834_v46, %v1912_v51  ;;  %v1839_v62 = vadd.f32 %v9897_v4, %v1838_v19  ;;  %v1840_v43 = vpop.f32.mrb[11].mxu1 }
 0x32b   :  { %v1979_v42 = vrot.slane %v1928_v6, 7 }
 0x32c   :  { %vm1897_vm10 = vcmp.ge.f32.partialorder %v1839_v62, 0.0  ;;  %v1913_v44 = vmul.f32 0.2, %v1839_v62 }
 0x32d   :  { %v10030_v53 = vsel %vm120_vm0, 0.0, %v1979_v42  ;;  %v2027_v21 = vsel %vm120_vm0, %v1979_v42, 0.0  ;;  %v1843_v9 = vpop.f32.mrb[12].mxu1 }
 0x32e   :  { %v2079_v0 = vrot.slane %v10030_v53, 1  ;;  %v2080_v14 = vrot.slane %v2027_v21, 1  ;;  %v1845_v2 = vpop.f32.mrb[13].mxu1  ;;  %v1929_v61 = vsel %vm1897_vm10, %v1839_v62, %v1913_v44  ;;  %v1844_v63 = vadd.f32 %v9897_v4, %v1843_v9 }
 0x32f   :  { %v7486_v35 = vpack.i.bf16 %v10030_v53, %v10004_v7  ;;  %v1980_v26 = vrot.slane %v1929_v61, 7  ;;  %v2121_v55 = vrot.slane %v10030_v53, 2  ;;  %v2122_v56 = vrot.slane %v2027_v21, 2 }
 0x330   :  { %v2081_v13 = vsel %vm185_vm2, %v2079_v0, %v2080_v14  ;;  %vm1898_vm14 = vcmp.ge.f32.partialorder %v1844_v63, 0.0  ;;  %v1914_v25 = vmul.f32 0.2, %v1844_v63 }
 0x331   :  { %7487 = vrot.lane.b32.xlu0 %v7486_v35, %s8665_s24  ;;  %v7491_v12 = vpack.i.bf16 %v2081_v13, %v2078_v15  ;;  %v10040_v29 = vsel %vm120_vm0, 0.0, %v1980_v26  ;;  %v2028_v28 = vsel %vm120_vm0, %v1980_v26, 0.0  ;;  %v10061_v50 = vsel %vm231_vm1, %v2121_v55, %v2122_v56 }
 0x332   :  { %v2082_v32 = vrot.slane %v10040_v29, 1  ;;  %v2083_v52 = vrot.slane %v2028_v28, 1  ;;  %v2124_v36 = vrot.slane %v10040_v29, 2  ;;  %v2125_v39 = vrot.slane %v2028_v28, 2 }
 0x333   :  { %7492 = vrot.lane.b32.xlu1 %v7491_v12, %s8666_s25  ;;  %v1930_v33 = vsel %vm1898_vm14, %v1844_v63, %v1914_v25  ;;  %v7496_v30 = vpack.i.bf16 %v10040_v29, %v10030_v53 }
 0x334   :  { %v1981_v58 = vrot.slane %v1930_v33, 7  ;;  %v2084_v45 = vsel %vm185_vm2, %v2082_v32, %v2083_v52  ;;  %v10056_v47 = vsel %vm231_vm1, %v2124_v36, %v2125_v39 }
 0x335   :  { %7497 = vrot.lane.b32.xlu0 %v7496_v30, %s8662_s17  ;;  %v7501_v40 = vpack.i.bf16 %v2084_v45, %v2081_v13  ;;  %v7511_v51 = vpack.i.bf16 %v10056_v47, %v10061_v50 }
 0x336   :  { %v10052_v15 = vsel %vm120_vm0, 0.0, %v1981_v58  ;;  %v2029_v20 = vsel %vm120_vm0, %v1981_v58, 0.0 }
 0x337   :  { %v2085_v49 = vrot.slane %v10052_v15, 1  ;;  %v2086_v46 = vrot.slane %v2029_v20, 1  ;;  %7502 = vrot.lane.b32.xlu1 %v7501_v40, %s8664_s1  ;;  %v7521_v62 = vpack.i.bf16 %v10052_v15, %v10040_v29  ;;  %v2127_v25 = vrot.slane %v10052_v15, 2 }
 0x338   :  { %v2128_v12 = vrot.slane %v2029_v20, 2 }
 0x339   :  { %7507 = vrot.lane.b32.xlu0 %v7501_v40, %s8656_s22  ;;  %v2087_v19 = vsel %vm185_vm2, %v2085_v49, %v2086_v46 }
 0x33a   :  { %v7526_v6 = vpack.i.bf16 %v2087_v19, %v2084_v45  ;;  %v10085_v36 = vsel %vm231_vm1, %v2127_v25, %v2128_v12 }
 0x33b   :  { %7512 = vrot.lane.b32.xlu1 %v7511_v51, %s8663_s26 }
 0x33d   :  { %7517 = vrot.lane.b32.xlu0 %v7511_v51, %s8660_s27 }
 0x33f   :  { %7522 = vrot.lane.b32.xlu1 %v7521_v62, %s8665_s24 }
 0x341   :  { %7527 = vrot.lane.b32.xlu0 %v7526_v6, %s8666_s25 }
 0x349   :  { %v1848_v43 = vpop.f32.mrb[14].mxu1 }
 0x34a   :  { %v1849_v42 = vadd.f32 %v9897_v4, %v1848_v43  ;;  %v1850_v44 = vpop.f32.mrb[15].mxu1 }
 0x34c   :  { %vm1899_vm15 = vcmp.ge.f32.partialorder %v1849_v42, 0.0  ;;  %v1915_v21 = vmul.f32 0.2, %v1849_v42 }
 0x34e   :  { %v1931_v9 = vsel %vm1899_vm15, %v1849_v42, %v1915_v21 }
 0x34f   :  { %v1982_v0 = vrot.slane %v1931_v9, 7 }
 0x351   :  { %v2014_v14 = vsel %vm120_vm0, 0.0, %v1982_v0  ;;  %v2030_v2 = vsel %vm120_vm0, %v1982_v0, 0.0 }
 0x352   :  { %v2155_v61 = vrot.slane %v2014_v14, 1  ;;  %v2156_v63 = vrot.slane %v2030_v2, 1  ;;  %v2161_v35 = vrot.slane %v2014_v14, 2  ;;  %v2162_v26 = vrot.slane %v2030_v2, 2 }
 0x353   :  { %v7531_v13 = vpack.i.bf16 %v2014_v14, %v10052_v15 }
 0x354   :  { %v2157_v28 = vsel %vm185_vm2, %v2155_v61, %v2156_v63  ;;  %v10081_v52 = vsel %vm231_vm1, %v2161_v35, %v2162_v26 }
 0x355   :  { %7532 = vrot.lane.b32.xlu1 %v7531_v13, %s8662_s17  ;;  %v7536_v32 = vpack.i.bf16 %v2157_v28, %v2087_v19  ;;  %v7541_v39 = vpack.i.bf16 %v10081_v52, %v10085_v36 }
 0x357   :  { %7537 = vrot.lane.b32.xlu0 %v7536_v32, %s8664_s1 }
 0x35b   :  { %7542 = vrot.lane.b32.xlu0 %v7541_v39, %s8663_s26 }
 0x361   :  { %v1853_v33 = vpop.f32.mrb[16].mxu1 }
 0x362   :  { %v1854_v30 = vadd.f32 %v9897_v4, %v1853_v33  ;;  %v1855_v55 = vpop.f32.mrb[17].mxu1 }
 0x364   :  { %vm1900_vm6 = vcmp.ge.f32.partialorder %v1854_v30, 0.0  ;;  %v1916_v56 = vmul.f32 0.2, %v1854_v30 }
 0x365   :  { %v1858_v58 = vpop.f32.mrb[18].mxu1 }
 0x366   :  { %v1932_v45 = vsel %vm1900_vm6, %v1854_v30, %v1916_v56  ;;  %v1859_v40 = vadd.f32 %v9897_v4, %v1858_v58  ;;  %v1860_v20 = vpop.f32.mrb[19].mxu1 }
 0x367   :  { %v1983_v49 = vrot.slane %v1932_v45, 7  ;;  %v7428_v63 = vpop.permute.xlu0 %7427 }
 0x368   :  { %vm1901_vm8 = vcmp.ge.f32.partialorder %v1859_v40, 0.0  ;;  %v1917_v46 = vmul.f32 0.2, %v1859_v40 }
 0x369   :  { %v10093_v51 = vsel %vm120_vm0, 0.0, %v1983_v49  ;;  %v2031_v6 = vsel %vm120_vm0, %v1983_v49, 0.0 }
 0x36a   :  { %v2088_v62 = vrot.slane %v10093_v51, 1  ;;  %v2089_v43 = vrot.slane %v2031_v6, 1  ;;  %v1933_v42 = vsel %vm1901_vm8, %v1859_v40, %v1917_v46  ;;  %v2130_v21 = vrot.slane %v10093_v51, 2  ;;  %v7433_v45 = vpop.permute.xlu1 %7432 }
 0x36b   :  { %v1984_v44 = vrot.slane %v1933_v42, 7  ;;  %v2131_v9 = vrot.slane %v2031_v6, 2  ;;  %v10114_v56 = vpop.permute.xlu0 %7437  ;;  %v7429_v6 = vunpack.i.l.bf16 %v7428_v63 }
 0x36c   :  { %v2090_v0 = vsel %vm185_vm2, %v2088_v62, %v2089_v43  ;;  %v7439_v20 = vunpack.i.l.bf16 %v10114_v56  ;;  %v7434_v43 = vunpack.i.l.bf16 %v7433_v45 }
 0x36d   :  { %v10100_v2 = vsel %vm120_vm0, 0.0, %v1984_v44  ;;  %v2032_v61 = vsel %vm120_vm0, %v1984_v44, 0.0  ;;  %v7546_v13 = vpack.i.bf16 %v2090_v0, %v2087_v19  ;;  %v2132_v12 = vsel %vm231_vm1, %v2130_v21, %v2131_v9 }
 0x36e   :  { %v2091_v35 = vrot.slane %v10100_v2, 1  ;;  %v2092_v26 = vrot.slane %v2032_v61, 1  ;;  %v7556_v25 = vpack.i.bf16 %v10100_v2, %v2014_v14  ;;  %v2133_v32 = vrot.slane %v10100_v2, 2  ;;  %v7443_v46 = vpop.permute.xlu1 %7442 }
 0x36f   :  { %v2134_v39 = vrot.slane %v2032_v61, 2  ;;  %7547 = vrot.lane.b32.xlu1 %v7546_v13, %s8656_s22  ;;  %v7551_v19 = vpack.i.bf16 %v2132_v12, %v10085_v36  ;;  %v7561_v14 = vpack.i.bf16 %v10100_v2, %v10093_v51  ;;  %v2479_v62 = vsel %vm711_vm7, %v9915_v10, %v7439_v20 }
 0x370   :  { %v10109_v33 = vsel %vm185_vm2, %v2091_v35, %v2092_v26  ;;  %7557 = vrot.lane.b32.xlu0 %v7556_v25, %s8665_s24  ;;  %v7430_v44 = vunpack.i.h.bf16 %v7428_v63  ;;  %v7444_v21 = vunpack.i.l.bf16 %v7443_v46  ;;  %v2507_v35 = vsel %vm1626_vm12, %v9545_v48, %v7429_v6 }
 0x371   :  { %v7566_v30 = vpack.i.bf16 %v10109_v33, %v2157_v28  ;;  %v7571_v55 = vpack.i.bf16 %v10109_v33, %v2090_v0  ;;  %v10121_v58 = vsel %vm231_vm1, %v2133_v32, %v2134_v39  ;;  %v10125_v28 = vpop.permute.xlu0 %7447  ;;  %v7435_v26 = vunpack.i.h.bf16 %v7433_v45 }
 0x372   :  { %v7576_v40 = vpack.i.bf16 %v10121_v58, %v2132_v12  ;;  %v7449_v49 = vunpack.i.l.bf16 %v10125_v28  ;;  %v2523_v12 = vsel %vm1643_vm13, %v2507_v35, %v7434_v43  ;;  %v7445_v45 = vunpack.i.h.bf16 %v7443_v46 }
 0x373   :  { %7552 = vrot.lane.b32.xlu1 %v7551_v19, %s8660_s27  ;;  %v2539_v39 = vsel %vm1660_vm3, %v2523_v12, %v7444_v21 }
 0x374   :  { %7562 = vrot.lane.b32.xlu0 %v7561_v14, %s8662_s17  ;;  %v2493_v42 = vsel %vm779_vm11, %v2479_v62, %v7449_v49 }
 0x375   :  { %v2508_v13 = vsel %vm1626_vm12, %v2493_v42, %v7430_v44 }
 0x376   :  { %v2524_v20 = vsel %vm1643_vm13, %v2508_v13, %v7435_v26 }
 0x377   :  { %7567 = vrot.lane.b32.xlu1 %v7566_v30, %s8666_s25 }
 0x378   :  { %7577 = vrot.lane.b32.xlu0 %v7576_v40, %s8663_s26 }
 0x37b   :  { %7572 = vrot.lane.b32.xlu1 %v7571_v55, %s8664_s1 }
 0x381   :  { %v1863_v9 = vpop.f32.mrb[20].mxu1 }
 0x382   :  { %v1864_v0 = vadd.f32 %v9897_v4, %v1863_v9  ;;  %v1865_v61 = vpop.f32.mrb[21].mxu1 }
 0x383   :  { %v7453_v25 = vpop.permute.xlu1 %7452 }
 0x384   :  { %vm1902_vm9 = vcmp.ge.f32.partialorder %v1864_v0, 0.0  ;;  %v1918_v10 = vmul.f32 0.2, %v1864_v0  ;;  %v7454_v32 = vunpack.i.l.bf16 %v7453_v25  ;;  %v7455_v6 = vunpack.i.h.bf16 %v7453_v25 }
 0x385   :  { %v1868_v63 = vpop.f32.mrb[22].mxu1 }
 0x386   :  { %v7458_v30 = vpop.permute.xlu0 %7457  ;;  %v1934_v55 = vsel %vm1902_vm9, %v1864_v0, %v1918_v10  ;;  %v1869_v19 = vadd.f32 %v9897_v4, %v1868_v63  ;;  %v1870_v40 = vpop.f32.mrb[23].mxu1  ;;  %v2555_v62 = vsel %vm1677_vm4, %v2539_v39, %v7454_v32  ;;  %v2540_v0 = vsel %vm1660_vm3, %v2524_v20, %v7445_v45 }
 0x387   :  { %v7459_v14 = vunpack.i.l.bf16 %v7458_v30  ;;  %v1985_v49 = vrot.slane %v1934_v55, 7  ;;  %v7460_v42 = vunpack.i.h.bf16 %v7458_v30  ;;  %v2556_v12 = vsel %vm1677_vm4, %v2540_v0, %v7455_v6 }
 0x388   :  { %vm1903_vm10 = vcmp.ge.f32.partialorder %v1869_v19, 0.0  ;;  %v1919_v43 = vmul.f32 0.2, %v1869_v19  ;;  %v7463_v13 = vpop.permute.xlu1 %7462  ;;  %v7440_v0 = vunpack.i.h.bf16 %v10114_v56 }
 0x389   :  { %v2571_v44 = vsel %vm1694_vm5, %v2555_v62, %v7459_v14  ;;  %v10146_v21 = vsel %vm120_vm0, 0.0, %v1985_v49  ;;  %v2033_v9 = vsel %vm120_vm0, %v1985_v49, 0.0  ;;  %v2572_v32 = vsel %vm1694_vm5, %v2556_v12, %v7460_v42 }
 0x38a   :  { %2686 = vmatmul.mubr.f32.vlgmr.msra.gmra.mrb[16].mxu0 %v2571_v44  ;;  %v2094_v61 = vrot.slane %v10146_v21, 1  ;;  %v2095_v46 = vrot.slane %v2033_v9, 1  ;;  %v2136_v35 = vrot.slane %v10146_v21, 2  ;;  %v2137_v26 = vrot.slane %v2033_v9, 2 }
 0x38b   :  { %6659 = vmatprep.mubr.msk.f32.mxu0 %vm711_vm7, %v10020_v17  ;;  %v1935_v25 = vsel %vm1903_vm10, %v1869_v19, %v1919_v43  ;;  %v7464_v12 = vunpack.i.l.bf16 %v7463_v13 }
 0x38c   :  { %v1986_v10 = vrot.slane %v1935_v25, 7  ;;  %v10157_v39 = vsel %vm231_vm1, %v2136_v35, %v2137_v26  ;;  %v2096_v63 = vsel %vm185_vm2, %v2094_v61, %v2095_v46  ;;  %v7473_v20 = vpop.permute.xlu1 %7472  ;;  %v7450_v26 = vunpack.i.h.bf16 %v10125_v28 }
 0x38d   :  { %v7586_v30 = vpack.i.bf16 %v10157_v39, %v10121_v58  ;;  %v7581_v19 = vpack.i.bf16 %v2096_v63, %v10109_v33  ;;  %v7468_v33 = vpop.permute.xlu0 %7467  ;;  %v7474_v44 = vunpack.i.l.bf16 %v7473_v20 }
 0x38e   :  { %2691 = vmatmul.mubr.f32.gmra.mrb[18].mxu0 %v2572_v32  ;;  %v10163_v55 = vsel %vm120_vm0, 0.0, %v1986_v10  ;;  %v2034_v17 = vsel %vm120_vm0, %v1986_v10, 0.0 }
 0x38f   :  { %6660 = vmatprep.mubr.msk.f32.mxu0 %vm711_vm7, %v10016_v37  ;;  %v2097_v14 = vrot.slane %v10163_v55, 1  ;;  %v2098_v40 = vrot.slane %v2034_v17, 1  ;;  %7587 = vrot.lane.b32.xlu0 %v7586_v30, %s8660_s27  ;;  %v7596_v45 = vpack.i.bf16 %v10163_v55, %v10146_v21  ;;  %v2139_v6 = vrot.slane %v10163_v55, 2 }
 0x390   :  { %7582 = vrot.lane.b32.xlu1 %v7581_v19, %s8656_s22  ;;  %v2140_v62 = vrot.slane %v2034_v17, 2  ;;  %v10181_v43 = vpop.permute.xlu1 %7482  ;;  %v2481_v32 = vsel %vm711_vm7, %v9994_v11, %v7474_v44  ;;  %v2480_v30 = vsel %vm711_vm7, %v9927_v59, %v7440_v0 }
 0x391   :  { %v10175_v49 = vsel %vm185_vm2, %v2097_v14, %v2098_v40  ;;  %v7484_v61 = vunpack.i.l.bf16 %v10181_v43  ;;  %v2494_v40 = vsel %vm779_vm11, %v2480_v30, %v7450_v26 }
 0x392   :  { %v7606_v37 = vpack.i.bf16 %v10175_v49, %v2096_v63  ;;  %v10185_v42 = vsel %vm231_vm1, %v2139_v6, %v2140_v62  ;;  %v7478_v63 = vpop.permute.xlu0 %7477  ;;  %v7469_v6 = vunpack.i.l.bf16 %v7468_v33  ;;  %v2509_v11 = vsel %vm1626_vm12, %v2494_v40, %v7464_v12 }
 0x393   :  { %7597 = vrot.lane.b32.xlu0 %v7596_v45, %s8662_s17  ;;  %v7611_v25 = vpack.i.bf16 %v10185_v42, %v10157_v39  ;;  %v2495_v17 = vsel %vm779_vm11, %v2481_v32, %v7484_v61 }
 0x394   :  { %7592 = vrot.lane.b32.xlu1 %v7596_v45, %s8665_s24  ;;  %v7465_v45 = vunpack.i.h.bf16 %v7463_v13  ;;  %v2525_v12 = vsel %vm1643_vm13, %v2509_v11, %v7469_v6 }
 0x397   :  { %7607 = vrot.lane.b32.xlu0 %v7606_v37, %s8664_s1 }
 0x398   :  { %7602 = vrot.lane.b32.xlu1 %v7606_v37, %s8666_s25  ;;  %v7475_v37 = vunpack.i.h.bf16 %v7473_v20  ;;  %v7479_v20 = vunpack.i.l.bf16 %v7478_v63 }
 0x39a   :  { %v1873_v9 = vpop.f32.mrb[24].mxu1  ;;  %v2482_v30 = vsel %vm711_vm7, %v10004_v7, %v7475_v37 }
 0x39b   :  { %v1874_v46 = vadd.f32 %v9897_v4, %v1873_v9  ;;  %v1875_v35 = vpop.f32.mrb[25].mxu1  ;;  %v7470_v9 = vunpack.i.h.bf16 %v7468_v33 }
 0x39c   :  { %7612 = vrot.lane.b32.xlu1 %v7611_v25, %s8663_s26  ;;  %v2510_v35 = vsel %vm1626_vm12, %v2495_v17, %v7465_v45  ;;  %v7480_v17 = vunpack.i.h.bf16 %v7478_v63  ;;  %v2541_v63 = vsel %vm1660_vm3, %v2525_v12, %v7479_v20 }
 0x39d   :  { %vm1904_vm14 = vcmp.ge.f32.partialorder %v1874_v46, 0.0  ;;  %v1920_v10 = vmul.f32 0.2, %v1874_v46  ;;  %v2526_v6 = vsel %vm1643_vm13, %v2510_v35, %v7470_v9 }
 0x39e   :  { %v1878_v56 = vpop.f32.mrb[26].mxu1  ;;  %v2542_v35 = vsel %vm1660_vm3, %v2526_v6, %v7480_v17 }
 0x39f   :  { %v1936_v19 = vsel %vm1904_vm14, %v1874_v46, %v1920_v10  ;;  %v1879_v28 = vadd.f32 %v9897_v4, %v1878_v56  ;;  %v1880_v14 = vpop.f32.mrb[27].mxu1  ;;  %v7485_v10 = vunpack.i.h.bf16 %v10181_v43 }
 0x3a0   :  { %v1987_v62 = vrot.slane %v1936_v19, 7 }
 0x3a1   :  { %vm1905_vm15 = vcmp.ge.f32.partialorder %v1879_v28, 0.0  ;;  %v1921_v44 = vmul.f32 0.2, %v1879_v28  ;;  %v2496_v7 = vsel %vm779_vm11, %v2482_v30, %v7485_v10 }
 0x3a2   :  { %v10205_v59 = vsel %vm120_vm0, 0.0, %v1987_v62  ;;  %v2035_v0 = vsel %vm120_vm0, %v1987_v62, 0.0 }
 0x3a3   :  { %v7488_v61 = vpop.permute.xlu0 %7487  ;;  %v2100_v46 = vrot.slane %v10205_v59, 1  ;;  %v2101_v26 = vrot.slane %v2035_v0, 1  ;;  %v2142_v13 = vrot.slane %v10205_v59, 2  ;;  %v2143_v25 = vrot.slane %v2035_v0, 2 }
 0x3a4   :  { %v1937_v33 = vsel %vm1905_vm15, %v1879_v28, %v1921_v44  ;;  %v7489_v19 = vunpack.i.l.bf16 %v7488_v61  ;;  %v7490_v62 = vunpack.i.h.bf16 %v7488_v61 }
 0x3a5   :  { %v7493_v32 = vpop.permute.xlu1 %7492  ;;  %v1988_v45 = vrot.slane %v1937_v33, 7  ;;  %v2102_v0 = vsel %vm185_vm2, %v2100_v46, %v2101_v26  ;;  %v10218_v44 = vsel %vm231_vm1, %v2142_v13, %v2143_v25 }
 0x3a6   :  { %v1883_v56 = vpop.f32.mrb[28].mxu1  ;;  %v7494_v11 = vunpack.i.l.bf16 %v7493_v32  ;;  %v7616_v33 = vpack.i.bf16 %v2102_v0, %v10175_v49  ;;  %v2557_v46 = vsel %vm1677_vm4, %v2541_v63, %v7489_v19  ;;  %v7621_v12 = vpack.i.bf16 %v10218_v44, %v10185_v42 }
 0x3a7   :  { %v1884_v14 = vadd.f32 %v9897_v4, %v1883_v56  ;;  %v1885_v40 = vpop.f32.mrb[29].mxu1  ;;  %v7498_v28 = vpop.permute.xlu0 %7497  ;;  %v10228_v26 = vsel %vm120_vm0, 0.0, %v1988_v45  ;;  %v2036_v13 = vsel %vm120_vm0, %v1988_v45, 0.0  ;;  %v7495_v20 = vunpack.i.h.bf16 %v7493_v32 }
 0x3a8   :  { %v7499_v10 = vunpack.i.l.bf16 %v7498_v28  ;;  %7617 = vrot.lane.b32.xlu0 %v7616_v33, %s8656_s22  ;;  %v2573_v49 = vsel %vm1694_vm5, %v2557_v46, %v7494_v11  ;;  %v2558_v19 = vsel %vm1677_vm4, %v2542_v35, %v7490_v62  ;;  %7622 = vrot.lane.b32.xlu1 %v7621_v12, %s8660_s27  ;;  %v2103_v45 = vrot.slane %v10228_v26, 1 }
 0x3a9   :  { %vm1906_vm6 = vcmp.ge.f32.partialorder %v1884_v14, 0.0  ;;  %v1922_v43 = vmul.f32 0.2, %v1884_v14  ;;  %v10223_v61 = vpop.permute.xlu1 %7502  ;;  %2696 = vmatmul.mubr.f32.gmra.mrb[20].mxu0 %v2573_v49  ;;  %v2104_v6 = vrot.slane %v2036_v13, 1  ;;  %v2145_v11 = vrot.slane %v10228_v26, 2 }
 0x3aa   :  { %v1888_v37 = vpop.f32.mrb[30].mxu1  ;;  %v7504_v40 = vunpack.i.l.bf16 %v10223_v61  ;;  %6661 = vmatprep.mubr.msk.f32.mxu0 %vm711_vm7, %v10061_v50  ;;  %v7626_v62 = vpack.i.bf16 %v10228_v26, %v10205_v59  ;;  %v2146_v63 = vrot.slane %v2036_v13, 2  ;;  %v7505_v50 = vunpack.i.h.bf16 %v10223_v61 }
 0x3ab   :  { %v1938_v56 = vsel %vm1906_vm6, %v1884_v14, %v1922_v43  ;;  %v1890_v9 = vpop.f32.mrb[31].mxu1  ;;  %v10235_v30 = vpop.permute.xlu0 %7507  ;;  %v1889_v32 = vadd.f32 %v9897_v4, %v1888_v37  ;;  %v2511_v4 = vsel %vm1626_vm12, %v2496_v7, %v7499_v10  ;;  %v2574_v37 = vsel %vm1694_vm5, %v2558_v19, %v7495_v20 }
 0x3ac   :  { %v1989_v25 = vrot.slane %v1938_v56, 7  ;;  %v7509_v46 = vunpack.i.l.bf16 %v10235_v30  ;;  %v7500_v9 = vunpack.i.h.bf16 %v7498_v28  ;;  %7627 = vrot.lane.b32.xlu0 %v7626_v62, %s8665_s24  ;;  %7632 = vrot.lane.b32.xlu1 %v7626_v62, %s8662_s17  ;;  %v2105_v20 = vsel %vm185_vm2, %v2103_v45, %v2104_v6 }
 0x3ad   :  { %v7513_v43 = vpop.permute.xlu1 %7512  ;;  %vm1907_vm8 = vcmp.ge.f32.partialorder %v1889_v32, 0.0  ;;  %2701 = vmatmul.mubr.f32.gmra.mrb[22].mxu0 %v2574_v37  ;;  %v1923_v12 = vmul.f32 0.2, %v1889_v32  ;;  %v7636_v49 = vpack.i.bf16 %v2105_v20, %v2102_v0  ;;  %v10272_v62 = vsel %vm231_vm1, %v2145_v11, %v2146_v63 }
 0x3ae   :  { %v10239_v17 = vsel %vm120_vm0, 0.0, %v1989_v25  ;;  %v2037_v14 = vsel %vm120_vm0, %v1989_v25, 0.0  ;;  %v2527_v25 = vsel %vm1643_vm13, %v2511_v4, %v7504_v40  ;;  %v2483_v28 = vsel %vm711_vm7, %v10030_v53, %v7509_v46  ;;  %6662 = vmatprep.mubr.msk.f32.mxu0 %vm711_vm7, %v10056_v47 }
 0x3af   :  { %v2106_v56 = vrot.slane %v10239_v17, 1  ;;  %v2107_v33 = vrot.slane %v2037_v14, 1  ;;  %v10256_v35 = vpop.permute.xlu0 %7517  ;;  %v7514_v7 = vunpack.i.l.bf16 %v7513_v43  ;;  %v2148_v40 = vrot.slane %v10239_v17, 2 }
 0x3b0   :  { %v7519_v13 = vunpack.i.l.bf16 %v10256_v35  ;;  %v2149_v4 = vrot.slane %v2037_v14, 2  ;;  %v7515_v46 = vunpack.i.h.bf16 %v7513_v43  ;;  %7637 = vrot.lane.b32.xlu0 %v7636_v49, %s8666_s25  ;;  %7642 = vrot.lane.b32.xlu1 %v7636_v49, %s8664_s1 }
 0x3b1   :  { %v7523_v10 = vpop.permute.xlu1 %7522  ;;  %v2108_v19 = vsel %vm185_vm2, %v2106_v56, %v2107_v33  ;;  %v2543_v56 = vsel %vm1660_vm3, %v2527_v25, %v7514_v7  ;;  %v7646_v33 = vpack.i.bf16 %v10272_v62, %v10218_v44 }
 0x3b2   :  { %v2497_v61 = vsel %vm779_vm11, %v2483_v28, %v7519_v13  ;;  %v7525_v47 = vunpack.i.h.bf16 %v7523_v10  ;;  %v7524_v45 = vunpack.i.l.bf16 %v7523_v10  ;;  %v1939_v13 = vsel %vm1907_vm8, %v1889_v32, %v1923_v12 }
 0x3b3   :  { %v2512_v37 = vsel %vm1626_vm12, %v2497_v61, %v7500_v9  ;;  %v7528_v53 = vpop.permute.xlu0 %7527  ;;  %v7651_v0 = vpack.i.bf16 %v2108_v19, %v2105_v20  ;;  %v10285_v28 = vsel %vm231_vm1, %v2148_v40, %v2149_v4  ;;  %v1990_v32 = vrot.slane %v1939_v13, 7 }
 0x3b4   :  { %v7529_v6 = vunpack.i.l.bf16 %v7528_v53  ;;  %v2528_v14 = vsel %vm1643_vm13, %v2512_v37, %v7505_v50  ;;  %v2559_v11 = vsel %vm1677_vm4, %v2543_v56, %v7524_v45  ;;  %v7530_v63 = vunpack.i.h.bf16 %v7528_v53  ;;  %7647 = vrot.lane.b32.xlu0 %v7646_v33, %s8663_s26 }
 0x3b5   :  { %v2544_v43 = vsel %vm1660_vm3, %v2528_v14, %v7515_v46  ;;  %7652 = vrot.lane.b32.xlu1 %v7651_v0, %s8656_s22  ;;  %v7656_v50 = vpack.i.bf16 %v10285_v28, %v10272_v62  ;;  %v2022_v7 = vsel %vm120_vm0, 0.0, %v1990_v32  ;;  %v2038_v10 = vsel %vm120_vm0, %v1990_v32, 0.0 }
 0x3b6   :  { %v2575_v9 = vsel %vm1694_vm5, %v2559_v11, %v7529_v6  ;;  %v2560_v25 = vsel %vm1677_vm4, %v2544_v43, %v7525_v47  ;;  %v7661_v20 = vpack.i.bf16 %v2022_v7, %v10239_v17  ;;  %v2159_v61 = vrot.slane %v2038_v10, 1 }
 0x3b7   :  { %2706 = vmatmul.mubr.f32.gmra.mrb[24].mxu0 %v2575_v9  ;;  %v2576_v12 = vsel %vm1694_vm5, %v2560_v25, %v7530_v63  ;;  %v2164_v40 = vrot.slane %v2022_v7, 2  ;;  %v2165_v4 = vrot.slane %v2038_v10, 2  ;;  %v7510_v47 = vunpack.i.h.bf16 %v10235_v30 }
 0x3b8   :  { %6663 = vmatprep.mubr.msk.f32.mxu0 %vm711_vm7, %v10085_v36  ;;  %7657 = vrot.lane.b32.xlu0 %v7656_v50, %s8660_s27  ;;  %v2158_v36 = vrot.slane %v2022_v7, 1  ;;  %v7520_v6 = vunpack.i.h.bf16 %v10256_v35 }
 0x3b9   :  { %2461 = vrot.lane.b32.xlu1 %v2108_v19, %s8666_s25  ;;  %v2484_v33 = vsel %vm711_vm7, %v10040_v29, %v7510_v47 }
 0x3ba   :  { %v2160_v49 = vsel %vm185_vm2, %v2158_v36, %v2159_v61  ;;  %v2498_v9 = vsel %vm779_vm11, %v2484_v33, %v7520_v6 }
 0x3bb   :  { %2711 = vmatmul.mubr.f32.gmra.mrb[26].mxu0 %v2576_v12 }
 0x3bc   :  { %6664 = vmatprep.mubr.msk.f32.mxu0 %vm711_vm7, %v10081_v52  ;;  %2327 = vrot.lane.b32.xlu0 %v2108_v19, %s8664_s1  ;;  %v10311_v52 = vsel %vm231_vm1, %v2164_v40, %v2165_v4 }
 0x3bd   :  { %7662 = vrot.lane.b32.xlu1 %v7661_v20, %s8665_s24 }
 0x3c0   :  { %7667 = vrot.lane.b32.xlu0 %v7661_v20, %s8662_s17 }
 0x3c1   :  { %2375 = vrot.lane.b32.xlu1 %v10285_v28, %s8663_s26 }
 0x3c4   :  { %2463 = vrot.lane.b32.xlu0 %v2160_v49, %s8666_s25 }
 0x3c5   :  { %2329 = vrot.lane.b32.xlu1 %v2160_v49, %s8664_s1 }
 0x3c7   :  { %v7533_v37 = vpop.permute.xlu1 %7532 }
 0x3c8   :  { %2377 = vrot.lane.b32.xlu0 %v10311_v52, %s8663_s26  ;;  %v7534_v0 = vunpack.i.l.bf16 %v7533_v37  ;;  %v7535_v32 = vunpack.i.h.bf16 %v7533_v37 }
 0x3c9   :  { %v7538_v19 = vpop.permute.xlu0 %7537 }
 0x3ca   :  { %v7539_v56 = vunpack.i.l.bf16 %v7538_v19  ;;  %v2513_v50 = vsel %vm1626_vm12, %v2498_v9, %v7534_v0  ;;  %v7540_v35 = vunpack.i.h.bf16 %v7538_v19 }
 0x3cc   :  { %v2529_v7 = vsel %vm1643_vm13, %v2513_v50, %v7539_v56 }
 0x3cd   :  { %v7543_v53 = vpop.permute.xlu0 %7542 }
 0x3ce   :  { %v7544_v11 = vunpack.i.l.bf16 %v7543_v53  ;;  %v7545_v20 = vunpack.i.h.bf16 %v7543_v53 }
 0x3d0   :  { %v2545_v61 = vsel %vm1660_vm3, %v2529_v7, %v7544_v11 }
 0x3e1   :  { %v7548_v46 = vpop.permute.xlu1 %7547 }
 0x3e2   :  { %v7558_v45 = vpop.permute.xlu0 %7557  ;;  %v7549_v13 = vunpack.i.l.bf16 %v7548_v46 }
 0x3e3   :  { %v7559_v30 = vunpack.i.l.bf16 %v7558_v45  ;;  %v7560_v56 = vunpack.i.h.bf16 %v7558_v45  ;;  %v7550_v45 = vunpack.i.h.bf16 %v7548_v46 }
 0x3e4   :  { %v2485_v25 = vsel %vm711_vm7, %v10052_v15, %v7549_v13 }
 0x3e5   :  { %v7553_v14 = vpop.permute.xlu1 %7552  ;;  %v2561_v15 = vsel %vm1677_vm4, %v2545_v61, %v7559_v30 }
 0x3e6   :  { %v7554_v43 = vunpack.i.l.bf16 %v7553_v14  ;;  %v7563_v63 = vpop.permute.xlu0 %7562  ;;  %v7555_v30 = vunpack.i.h.bf16 %v7553_v14 }
 0x3e7   :  { %v7564_v40 = vunpack.i.l.bf16 %v7563_v63  ;;  %v7565_v7 = vunpack.i.h.bf16 %v7563_v63 }
 0x3e8   :  { %v2499_v12 = vsel %vm779_vm11, %v2485_v25, %v7554_v43 }
 0x3e9   :  { %v2514_v29 = vsel %vm1626_vm12, %v2499_v12, %v7535_v32  ;;  %v7568_v10 = vpop.permute.xlu1 %7567  ;;  %v2515_v13 = vsel %vm1626_vm12, %v9545_v48, %v7564_v40  ;;  %v2486_v12 = vsel %vm711_vm7, %v10093_v51, %v7550_v45 }
 0x3ea   :  { %v7569_v36 = vunpack.i.l.bf16 %v7568_v10  ;;  %v2530_v49 = vsel %vm1643_vm13, %v2514_v29, %v7540_v35  ;;  %v7578_v37 = vpop.permute.xlu0 %7577  ;;  %v7570_v43 = vunpack.i.h.bf16 %v7568_v10 }
 0x3eb   :  { %v2546_v4 = vsel %vm1660_vm3, %v2530_v49, %v7545_v20  ;;  %v7579_v0 = vunpack.i.l.bf16 %v7578_v37  ;;  %v2500_v20 = vsel %vm779_vm11, %v2486_v12, %v7555_v30 }
 0x3ec   :  { %v2577_v19 = vsel %vm1694_vm5, %v2561_v15, %v7569_v36  ;;  %v2562_v53 = vsel %vm1677_vm4, %v2546_v4, %v9803_v27  ;;  %v2516_v36 = vsel %vm1626_vm12, %v2500_v20, %v7565_v7 }
 0x3ed   :  { %v7573_v47 = vpop.permute.xlu1 %7572  ;;  %2716 = vmatmul.mubr.f32.gmra.mrb[28].mxu0 %v2577_v19  ;;  %v2578_v11 = vsel %vm1694_vm5, %v2562_v53, %v9807_v23 }
 0x3ee   :  { %v7574_v6 = vunpack.i.l.bf16 %v7573_v47  ;;  %6665 = vmatprep.mubr.msk.f32.mxu0 %vm711_vm7, %v8770_v16  ;;  %v7575_v29 = vunpack.i.h.bf16 %v7573_v47 }
 0x3f0   :  { %v2531_v33 = vsel %vm1643_vm13, %v2515_v13, %v7574_v6  ;;  %v2532_v49 = vsel %vm1643_vm13, %v2516_v36, %v7575_v29 }
 0x3f1   :  { %2721 = vmatmul.mubr.f32.gmra.mrb[30].mxu0 %v2578_v11  ;;  %v2547_v9 = vsel %vm1660_vm3, %v2531_v33, %v7579_v0 }
 0x3f2   :  { %6666 = vmatprep.mubr.msk.f32.mxu0 %vm711_vm7, %v10121_v58  ;;  %v2563_v32 = vsel %vm1677_vm4, %v2547_v9, %v7560_v56 }
 0x3f3   :  { %v2579_v25 = vsel %vm1694_vm5, %v2563_v32, %v7570_v43 }
 0x3f5   :  { %2726 = vmatmul.mubr.f32.gmra.mrb[32].mxu0 %v2579_v25 }
 0x3f6   :  { %6667 = vmatprep.mubr.msk.f32.mxu0 %vm711_vm7, %v10157_v39  ;;  %v7580_v39 = vunpack.i.h.bf16 %v7578_v37 }
 0x3f8   :  { %v2548_v19 = vsel %vm1660_vm3, %v2532_v49, %v7580_v39 }
 0x401   :  { %v7588_v50 = vpop.permute.xlu0 %7587 }
 0x402   :  { %v7583_v35 = vpop.permute.xlu1 %7582  ;;  %v7589_v14 = vunpack.i.l.bf16 %v7588_v50  ;;  %v7590_v12 = vunpack.i.h.bf16 %v7588_v50 }
 0x403   :  { %v7584_v61 = vunpack.i.l.bf16 %v7583_v35  ;;  %v7585_v25 = vunpack.i.h.bf16 %v7583_v35 }
 0x405   :  { %v7598_v58 = vpop.permute.xlu0 %7597  ;;  %v2487_v4 = vsel %vm711_vm7, %v10100_v2, %v7584_v61 }
 0x406   :  { %v7593_v10 = vpop.permute.xlu1 %7592  ;;  %v7599_v51 = vunpack.i.l.bf16 %v7598_v58  ;;  %v2501_v13 = vsel %vm779_vm11, %v2487_v4, %v7589_v14  ;;  %v7600_v7 = vunpack.i.h.bf16 %v7598_v58 }
 0x407   :  { %v7594_v40 = vunpack.i.l.bf16 %v7593_v10  ;;  %v7595_v2 = vunpack.i.h.bf16 %v7593_v10 }
 0x408   :  { %v2517_v37 = vsel %vm1626_vm12, %v2501_v13, %v7599_v51 }
 0x409   :  { %v7608_v46 = vpop.permute.xlu0 %7607  ;;  %v2564_v53 = vsel %vm1677_vm4, %v2548_v19, %v7594_v40 }
 0x40a   :  { %v7603_v15 = vpop.permute.xlu1 %7602  ;;  %v7609_v47 = vunpack.i.l.bf16 %v7608_v46  ;;  %v7610_v29 = vunpack.i.h.bf16 %v7608_v46 }
 0x40b   :  { %v7604_v63 = vunpack.i.l.bf16 %v7603_v15  ;;  %v7605_v11 = vunpack.i.h.bf16 %v7603_v15 }
 0x40c   :  { %v2533_v33 = vsel %vm1643_vm13, %v2517_v37, %v7609_v47 }
 0x40d   :  { %v2580_v6 = vsel %vm1694_vm5, %v2564_v53, %v7604_v63 }
 0x40e   :  { %v7613_v0 = vpop.permute.xlu1 %7612  ;;  %2731 = vmatmul.mubr.f32.gmra.mrb[34].mxu0 %v2580_v6 }
 0x40f   :  { %v7614_v56 = vunpack.i.l.bf16 %v7613_v0  ;;  %6668 = vmatprep.mubr.msk.f32.mxu0 %vm711_vm7, %v10185_v42  ;;  %v2488_v42 = vsel %vm711_vm7, %v10146_v21, %v7585_v25  ;;  %v7615_v10 = vunpack.i.h.bf16 %v7613_v0 }
 0x410   :  { %v2502_v49 = vsel %vm779_vm11, %v2488_v42, %v7590_v12 }
 0x411   :  { %v2549_v43 = vsel %vm1660_vm3, %v2533_v33, %v7614_v56  ;;  %v2518_v39 = vsel %vm1626_vm12, %v2502_v49, %v7600_v7 }
 0x412   :  { %v2565_v9 = vsel %vm1677_vm4, %v2549_v43, %v7595_v2 }
 0x413   :  { %v2581_v32 = vsel %vm1694_vm5, %v2565_v9, %v7605_v11 }
 0x414   :  { %2736 = vmatmul.mubr.f32.gmra.mrb[36].mxu0 %v2581_v32 }
 0x415   :  { %6669 = vmatprep.mubr.msk.f32.mxu0 %vm711_vm7, %v10218_v44  ;;  %v2534_v44 = vsel %vm1643_vm13, %v2518_v39, %v7610_v29 }
 0x416   :  { %v2550_v46 = vsel %vm1660_vm3, %v2534_v44, %v7615_v10 }
 0x41a   :  { %v7618_v45 = vpop.permute.xlu0 %7617  ;;  %v7623_v30 = vpop.permute.xlu1 %7622 }
 0x41b   :  { %v7619_v36 = vunpack.i.l.bf16 %v7618_v45  ;;  %v7624_v35 = vunpack.i.l.bf16 %v7623_v30  ;;  %v7620_v53 = vunpack.i.h.bf16 %v7618_v45  ;;  %v7625_v33 = vunpack.i.h.bf16 %v7623_v30 }
 0x41d   :  { %v2489_v50 = vsel %vm711_vm7, %v10163_v55, %v7619_v36  ;;  %v2490_v9 = vsel %vm711_vm7, %v10205_v59, %v7620_v53 }
 0x41e   :  { %v7628_v20 = vpop.permute.xlu0 %7627  ;;  %v7633_v61 = vpop.permute.xlu1 %7632  ;;  %v2503_v19 = vsel %vm779_vm11, %v2489_v50, %v7624_v35  ;;  %v2504_v42 = vsel %vm779_vm11, %v2490_v9, %v7625_v33  ;;  %v6675_v33 = vld [vmem:[%s12727_s3 + $0x98] sm:$0xff] }
 0x41f   :  { %v7629_v40 = vunpack.i.l.bf16 %v7628_v20  ;;  %v7634_v15 = vunpack.i.l.bf16 %v7633_v61  ;;  %v7630_v55 = vunpack.i.h.bf16 %v7628_v20  ;;  %v7635_v32 = vunpack.i.h.bf16 %v7633_v61 }
 0x421   :  { %v2566_v51 = vsel %vm1677_vm4, %v2550_v46, %v7629_v40  ;;  %v2519_v6 = vsel %vm1626_vm12, %v2503_v19, %v7634_v15  ;;  %v2520_v30 = vsel %vm1626_vm12, %v2504_v42, %v7635_v32 }
 0x422   :  { %v7638_v14 = vpop.permute.xlu0 %7637  ;;  %v7643_v58 = vpop.permute.xlu1 %7642 }
 0x423   :  { %v7639_v21 = vunpack.i.l.bf16 %v7638_v14  ;;  %v7644_v4 = vunpack.i.l.bf16 %v7643_v58  ;;  %v7640_v56 = vunpack.i.h.bf16 %v7638_v14  ;;  %v7645_v12 = vunpack.i.h.bf16 %v7643_v58 }
 0x425   :  { %v2582_v63 = vsel %vm1694_vm5, %v2566_v51, %v7639_v21  ;;  %v2535_v37 = vsel %vm1643_vm13, %v2519_v6, %v7644_v4  ;;  %v2536_v10 = vsel %vm1643_vm13, %v2520_v30, %v7645_v12 }
 0x426   :  { %v7648_v47 = vpop.permute.xlu0 %7647  ;;  %2741 = vmatmul.mubr.f32.gmra.mrb[38].mxu0 %v2582_v63 }
 0x427   :  { %v7649_v13 = vunpack.i.l.bf16 %v7648_v47  ;;  %v7653_v0 = vpop.permute.xlu1 %7652  ;;  %6670 = vmatprep.mubr.msk.f32.mxu0 %vm711_vm7, %v10272_v62  ;;  %v7650_v62 = vunpack.i.h.bf16 %v7648_v47 }
 0x428   :  { %v7654_v20 = vunpack.i.l.bf16 %v7653_v0  ;;  %v7655_v61 = vunpack.i.h.bf16 %v7653_v0 }
 0x429   :  { %v2551_v2 = vsel %vm1660_vm3, %v2535_v37, %v7649_v13  ;;  %v2552_v49 = vsel %vm1660_vm3, %v2536_v10, %v7650_v62  ;;  %v6676_v10 = vld [vmem:[%s12727_s3 + $0xa0] sm:$0xff] }
 0x42a   :  { %v7658_v11 = vpop.permute.xlu0 %7657  ;;  %v2567_v43 = vsel %vm1677_vm4, %v2551_v2, %v7630_v55  ;;  %v2492_v58 = vsel %vm711_vm7, %v10239_v17, %v7655_v61  ;;  %v6674_v2 = vld [vmem:[%s12727_s3 + $0x90] sm:$0xff] }
 0x42b   :  { %v2462_v25 = vpop.permute.xlu1 %2461  ;;  %v2583_v45 = vsel %vm1694_vm5, %v2567_v43, %v7640_v56  ;;  %v7659_v59 = vunpack.i.l.bf16 %v7658_v11  ;;  %v7660_v40 = vunpack.i.h.bf16 %v7658_v11  ;;  %v10420_v56 = vld [vmem:[%s12730_s6] ss:$0 sm:$0xff]  ;;  %v6974_v43 = vpack.c.bf16 %v6675_v33, %v6674_v2  ;;  %v6685_v2 = vld [vmem:[%s12727_s3 + $0xe8] sm:$0xff] }
 0x42c   :  { %2746 = vmatmul.mubr.f32.gmra.mrb[40].mxu0 %v2583_v45 }
 0x42d   :  { %6671 = vmatprep.mubr.msk.f32.mxu0 %vm711_vm7, %v10285_v28  ;;  %v2491_v28 = vsel %vm711_vm7, %v10228_v26, %v7654_v20  ;;  %v2506_v63 = vsel %vm779_vm11, %v2492_v58, %v7660_v40  ;;  %6975 = vmatpush1.bf16.msra.mxu1 %v6974_v43  ;;  %v6679_v58 = vld [vmem:[%s12727_s3 + $0xb8] sm:$0xff] }
 0x42e   :  { %v2328_v7 = vpop.permute.xlu0 %2327  ;;  %v2505_v21 = vsel %vm779_vm11, %v2491_v28, %v7659_v59  ;;  %6976 = vmatprep.subr.bf16.mxu1 %v12782_v41  ;;  %v6677_v59 = vld [vmem:[%s12727_s3 + $0xa8] sm:$0xff]  ;;  %v6687_v43 = vld [vmem:[%s12727_s3 + $0xf8] sm:$0xff] }
 0x42f   :  { %v7663_v29 = vpop.permute.xlu1 %7662 }
 0x430   :  { %v7664_v36 = vunpack.i.l.bf16 %v7663_v29  ;;  %v7665_v4 = vunpack.i.h.bf16 %v7663_v29 }
 0x432   :  { %v7668_v39 = vpop.permute.xlu0 %7667  ;;  %v2568_v44 = vsel %vm1677_vm4, %v2552_v49, %v7664_v36  ;;  %v6977_v49 = vpack.c.bf16 %v6677_v59, %v6676_v10  ;;  %v6690_v59 = vld [vmem:[%s12727_s3 + $0x110] sm:$0xff] }
 0x433   :  { %v7670_v35 = vunpack.i.h.bf16 %v7668_v39  ;;  %v7669_v14 = vunpack.i.l.bf16 %v7668_v39  ;;  %v2376_v50 = vpop.permute.xlu1 %2375  ;;  %v2584_v15 = vsel %vm1694_vm5, %v2568_v44, %v2462_v25 }
 0x434   :  { %2751 = vmatmul.mubr.f32.gmra.mrb[42].mxu0 %v2584_v15  ;;  %6978 = vmatpush1.bf16.msra.mxu1 %v6977_v49 }
 0x435   :  { %v2521_v46 = vsel %vm1626_vm12, %v2505_v21, %v7669_v14  ;;  %6672 = vmatprep.mubr.msk.f32.mxu0 %vm711_vm7, %v10311_v52  ;;  %v2522_v53 = vsel %vm1626_vm12, %v2506_v63, %v7670_v35  ;;  %6979 = vmatprep.subr.bf16.mxu1 %v12782_v41  ;;  %v6678_v21 = vld [vmem:[%s12727_s3 + $0xb0] sm:$0xff] }
 0x436   :  { %v2537_v51 = vsel %vm1643_vm13, %v2521_v46, %v2328_v7  ;;  %v2464_v26 = vpop.permute.xlu0 %2463 }
 0x437   :  { %v2553_v19 = vsel %vm1660_vm3, %v2537_v51, %v2376_v50  ;;  %v2330_v47 = vpop.permute.xlu1 %2329 }
 0x438   :  { %v2569_v6 = vsel %vm1677_vm4, %v2553_v19, %v7665_v4  ;;  %v2538_v13 = vsel %vm1643_vm13, %v2522_v53, %v2330_v47  ;;  %v6680_v47 = vld [vmem:[%s12727_s3 + $0xc0] sm:$0xff]  ;;  %v6681_v53 = vld [vmem:[%s12727_s3 + $0xc8] sm:$0xff] }
 0x439   :  { %v2585_v17 = vsel %vm1694_vm5, %v2569_v6, %v2464_v26  ;;  %v6980_v26 = vpack.c.bf16 %v6679_v58, %v6678_v21 }
 0x43a   :  { %v2378_v0 = vpop.permute.xlu0 %2377  ;;  %2756 = vmatmul.mubr.f32.gmra.mrb[44].mxu0 %v2585_v17  ;;  %v6983_v17 = vpack.c.bf16 %v6681_v53, %v6680_v47 }
 0x43b   :  { %v2554_v52 = vsel %vm1660_vm3, %v2538_v13, %v2378_v0  ;;  %6673 = vmatprep.mubr.msk.f32.mxu0 %vm711_vm7, %v8770_v16  ;;  %6981 = vmatpush1.bf16.msra.mxu1 %v6980_v26  ;;  %v6682_v0 = vld [vmem:[%s12727_s3 + $0xd0] sm:$0xff] }
 0x43c   :  { %v2570_v55 = vsel %vm1677_vm4, %v2554_v52, %v9803_v27  ;;  %6982 = vmatprep.subr.bf16.mxu1 %v12782_v41  ;;  %v6683_v52 = vld [vmem:[%s12727_s3 + $0xd8] sm:$0xff] }
 0x43d   :  { %v2586_v37 = vsel %vm1694_vm5, %v2570_v55, %v9807_v23  ;;  %v6986_v55 = vpack.c.bf16 %v6683_v52, %v6682_v0 }
 0x43e   :  { %2761 = vmatmul.mubr.f32.gmra.mrb[46].mxu0 %v2586_v37  ;;  %v6684_v37 = vld [vmem:[%s12727_s3 + $0xe0] sm:$0xff] }
 0x43f   :  { %6984 = vmatpush1.bf16.msra.mxu1 %v6983_v17  ;;  %v6989_v33 = vpack.c.bf16 %v6685_v2, %v6684_v37 }
 0x440   :  { %6985 = vmatprep.subr.bf16.mxu1 %v12782_v41 }
 0x443   :  { %6987 = vmatpush1.bf16.msra.mxu1 %v6986_v55 }
 0x444   :  { %6988 = vmatprep.subr.bf16.mxu1 %v12782_v41 }
 0x447   :  { %6990 = vmatpush1.bf16.msra.mxu1 %v6989_v33 }
 0x448   :  { %6991 = vmatprep.subr.bf16.mxu1 %v12782_v41 }
 0x45d   :  { %v2687_v11 = vpop.f32.mrb[16].mxu0 }
 0x45e   :  { %v2688_v9 = vadd.f32 %v10420_v56, %v2687_v11  ;;  %v2689_v32 = vpop.f32.mrb[17].mxu0  ;;  %v6686_v11 = vld [vmem:[%s12727_s3 + $0xf0] sm:$0xff] }
 0x45f   :  { %v6688_v32 = vld [vmem:[%s12727_s3 + $0x100] sm:$0xff] }
 0x460   :  { %v10430_v25 = vadd.f32 %v2688_v9, %v9298_v5  ;;  %v6992_v9 = vpack.c.bf16 %v6687_v43, %v6686_v11 }
 0x461   :  { %v2692_v45 = vpop.f32.mrb[18].mxu0 }
 0x462   :  { %v2819_v12 = vrot.slane %v10430_v25, 7  ;;  %v2693_v62 = vadd.f32 %v10420_v56, %v2692_v45  ;;  %v2694_v42 = vpop.f32.mrb[19].mxu0  ;;  %v6689_v45 = vld [vmem:[%s12727_s3 + $0x108] sm:$0xff]  ;;  %6993 = vmatpush1.bf16.msra.mxu1 %v6992_v9 }
 0x463   :  { %6994 = vmatprep.subr.bf16.mxu1 %v12782_v41 }
 0x464   :  { %v10436_v7 = vsel %vm120_vm0, 0.0, %v2819_v12  ;;  %v2867_v30 = vsel %vm120_vm0, %v2819_v12, 0.0  ;;  %v10440_v20 = vadd.f32 %v2693_v62, %v9295_v3  ;;  %v6995_v12 = vpack.c.bf16 %v6689_v45, %v6688_v32 }
 0x465   :  { %v2911_v36 = vrot.slane %v10436_v7, 1  ;;  %v2912_v61 = vrot.slane %v2867_v30, 1  ;;  %v2953_v50 = vrot.slane %v10436_v7, 2  ;;  %v2954_v46 = vrot.slane %v2867_v30, 2 }
 0x466   :  { %v2820_v29 = vrot.slane %v10440_v20, 7  ;;  %6996 = vmatpush1.bf16.msra.mxu1 %v6995_v12 }
 0x467   :  { %v2913_v4 = vsel %vm185_vm2, %v2911_v36, %v2912_v61  ;;  %v2955_v6 = vsel %vm231_vm1, %v2953_v50, %v2954_v46  ;;  %6997 = vmatprep.subr.bf16.mxu1 %v12782_v41  ;;  %v6691_v36 = vld [vmem:[%s12727_s3 + $0x118] sm:$0xff] }
 0x468   :  { %v10451_v40 = vsel %vm120_vm0, 0.0, %v2820_v29  ;;  %v2868_v39 = vsel %vm120_vm0, %v2820_v29, 0.0 }
 0x469   :  { %v2914_v44 = vrot.slane %v10451_v40, 1  ;;  %v2915_v28 = vrot.slane %v2868_v39, 1  ;;  %v2957_v35 = vrot.slane %v2868_v39, 2  ;;  %v7671_v14 = vpack.i.bf16 %v10451_v40, %v10436_v7 }
 0x46a   :  { %v2956_v15 = vrot.slane %v10451_v40, 2 }
 0x46b   :  { %7672 = vrot.lane.b32.xlu1 %v7671_v14, %s8662_s17  ;;  %v10469_v51 = vsel %vm185_vm2, %v2914_v44, %v2915_v28  ;;  %v6998_v44 = vpack.c.bf16 %v6691_v36, %v6690_v59 }
 0x46c   :  { %v2958_v63 = vsel %vm231_vm1, %v2956_v15, %v2957_v35  ;;  %v7676_v19 = vpack.i.bf16 %v10469_v51, %v2913_v4 }
 0x46d   :  { %6694 = vmatprep.mubr.msk.f32.mxu1 %vm711_vm7, %v2958_v63  ;;  %v7686_v13 = vpack.i.bf16 %v2958_v63, %v2955_v6  ;;  %6999 = vmatpush1.bf16.msra.mxu1 %v6998_v44 }
 0x46e   :  { %7677 = vrot.lane.b32.xlu0 %v7676_v19, %s8664_s1  ;;  %7027 = vmatprep.subr.bf16.mxu1 %v12782_v41 }
 0x46f   :  { %7682 = vrot.lane.b32.xlu1 %v7676_v19, %s8656_s22 }
 0x472   :  { %7687 = vrot.lane.b32.xlu0 %v7686_v13, %s8663_s26 }
 0x473   :  { %7692 = vrot.lane.b32.xlu1 %v7686_v13, %s8660_s27 }
 0x47c   :  { %v2697_v62 = vpop.f32.mrb[20].mxu0 }
 0x47d   :  { %v2698_v42 = vadd.f32 %v10420_v56, %v2697_v62  ;;  %v2699_v30 = vpop.f32.mrb[21].mxu0 }
 0x47f   :  { %v10516_v29 = vadd.f32 %v2698_v42, %v9383_v60 }
 0x480   :  { %v2702_v10 = vpop.f32.mrb[22].mxu0 }
 0x481   :  { %v2821_v61 = vrot.slane %v10516_v29, 7  ;;  %v2703_v49 = vadd.f32 %v10420_v56, %v2702_v10  ;;  %v2704_v39 = vpop.f32.mrb[23].mxu0 }
 0x483   :  { %v10528_v28 = vsel %vm120_vm0, 0.0, %v2821_v61  ;;  %v2869_v35 = vsel %vm120_vm0, %v2821_v61, 0.0  ;;  %v10532_v14 = vadd.f32 %v2703_v49, %v9380_v57 }
 0x484   :  { %v2917_v50 = vrot.slane %v10528_v28, 1  ;;  %v2918_v15 = vrot.slane %v2869_v35, 1  ;;  %v7696_v58 = vpack.i.bf16 %v10528_v28, %v10451_v40  ;;  %v2959_v55 = vrot.slane %v10528_v28, 2 }
 0x485   :  { %v2822_v21 = vrot.slane %v10532_v14, 7  ;;  %v2960_v37 = vrot.slane %v2869_v35, 2 }
 0x486   :  { %v2919_v46 = vsel %vm185_vm2, %v2917_v50, %v2918_v15  ;;  %7697 = vrot.lane.b32.xlu0 %v7696_v58, %s8665_s24 }
 0x487   :  { %v10541_v4 = vsel %vm120_vm0, 0.0, %v2822_v21  ;;  %v2870_v26 = vsel %vm120_vm0, %v2822_v21, 0.0  ;;  %v7701_v63 = vpack.i.bf16 %v2919_v46, %v10469_v51  ;;  %v10565_v12 = vsel %vm231_vm1, %v2959_v55, %v2960_v37 }
 0x488   :  { %v2920_v19 = vrot.slane %v10541_v4, 1  ;;  %v2921_v47 = vrot.slane %v2870_v26, 1  ;;  %v2962_v53 = vrot.slane %v10541_v4, 2  ;;  %v2963_v6 = vrot.slane %v2870_v26, 2 }
 0x489   :  { %7702 = vrot.lane.b32.xlu1 %v7701_v63, %s8666_s25  ;;  %v7706_v52 = vpack.i.bf16 %v10541_v4, %v10528_v28 }
 0x48a   :  { %v2707_v17 = vpop.f32.mrb[24].mxu0  ;;  %v2922_v51 = vsel %vm185_vm2, %v2920_v19, %v2921_v47  ;;  %v10559_v43 = vsel %vm231_vm1, %v2962_v53, %v2963_v6 }
 0x48b   :  { %v2708_v13 = vadd.f32 %v10420_v56, %v2707_v17  ;;  %v2709_v0 = vpop.f32.mrb[25].mxu0  ;;  %7707 = vrot.lane.b32.xlu0 %v7706_v52, %s8662_s17  ;;  %v7711_v33 = vpack.i.bf16 %v2922_v51, %v2919_v46  ;;  %v7721_v10 = vpack.i.bf16 %v10559_v43, %v10565_v12 }
 0x48d   :  { %v10555_v2 = vadd.f32 %v2708_v13, %v9426_v34  ;;  %7712 = vrot.lane.b32.xlu1 %v7711_v33, %s8664_s1 }
 0x48e   :  { %v2712_v11 = vpop.f32.mrb[26].mxu0 }
 0x48f   :  { %v2823_v9 = vrot.slane %v10555_v2, 7  ;;  %v2713_v32 = vadd.f32 %v10420_v56, %v2712_v11  ;;  %v2714_v45 = vpop.f32.mrb[27].mxu0  ;;  %7717 = vrot.lane.b32.xlu0 %v7711_v33, %s8656_s22 }
 0x491   :  { %v10568_v62 = vsel %vm120_vm0, 0.0, %v2823_v9  ;;  %v2871_v42 = vsel %vm120_vm0, %v2823_v9, 0.0  ;;  %v10572_v30 = vadd.f32 %v2713_v32, %v9423_v38  ;;  %7722 = vrot.lane.b32.xlu1 %v7721_v10, %s8663_s26 }
 0x492   :  { %v2923_v59 = vrot.slane %v10568_v62, 1  ;;  %v2924_v36 = vrot.slane %v2871_v42, 1  ;;  %v7731_v35 = vpack.i.bf16 %v10568_v62, %v10541_v4  ;;  %v2965_v47 = vrot.slane %v10568_v62, 2 }
 0x493   :  { %v2824_v61 = vrot.slane %v10572_v30, 7  ;;  %7727 = vrot.lane.b32.xlu0 %v7721_v10, %s8660_s27  ;;  %v2966_v53 = vrot.slane %v2871_v42, 2 }
 0x494   :  { %v2925_v49 = vsel %vm185_vm2, %v2923_v59, %v2924_v36 }
 0x495   :  { %v10582_v39 = vsel %vm120_vm0, 0.0, %v2824_v61  ;;  %v2872_v44 = vsel %vm120_vm0, %v2824_v61, 0.0  ;;  %v7736_v50 = vpack.i.bf16 %v2925_v49, %v2922_v51  ;;  %7732 = vrot.lane.b32.xlu1 %v7731_v35, %s8665_s24  ;;  %v10602_v17 = vsel %vm231_vm1, %v2965_v47, %v2966_v53 }
 0x496   :  { %v2926_v15 = vrot.slane %v10582_v39, 1  ;;  %v2927_v21 = vrot.slane %v2872_v44, 1  ;;  %v2968_v58 = vrot.slane %v10582_v39, 2  ;;  %v2969_v46 = vrot.slane %v2872_v44, 2 }
 0x497   :  { %7737 = vrot.lane.b32.xlu0 %v7736_v50, %s8666_s25  ;;  %v7741_v63 = vpack.i.bf16 %v10582_v39, %v10568_v62 }
 0x498   :  { %v2928_v26 = vsel %vm185_vm2, %v2926_v15, %v2927_v21  ;;  %v10598_v6 = vsel %vm231_vm1, %v2968_v58, %v2969_v46 }
 0x499   :  { %v7746_v19 = vpack.i.bf16 %v2928_v26, %v2925_v49  ;;  %7742 = vrot.lane.b32.xlu1 %v7741_v63, %s8662_s17  ;;  %v7756_v13 = vpack.i.bf16 %v10598_v6, %v10602_v17 }
 0x49b   :  { %7747 = vrot.lane.b32.xlu0 %v7746_v19, %s8664_s1 }
 0x49d   :  { %7752 = vrot.lane.b32.xlu1 %v7746_v19, %s8656_s22 }
 0x49f   :  { %7757 = vrot.lane.b32.xlu0 %v7756_v13, %s8663_s26 }
 0x4a1   :  { %7762 = vrot.lane.b32.xlu1 %v7756_v13, %s8660_s27 }
 0x4c0   :  { %v2717_v0 = vpop.f32.mrb[28].mxu0 }
 0x4c1   :  { %v2718_v52 = vadd.f32 %v10420_v56, %v2717_v0  ;;  %v2719_v55 = vpop.f32.mrb[29].mxu0 }
 0x4c3   :  { %v10611_v37 = vadd.f32 %v2718_v52, %v9467_v22 }
 0x4c4   :  { %v2722_v51 = vpop.f32.mrb[30].mxu0 }
 0x4c5   :  { %v2825_v33 = vrot.slane %v10611_v37, 7  ;;  %v2723_v11 = vadd.f32 %v10420_v56, %v2722_v51  ;;  %v2724_v9 = vpop.f32.mrb[31].mxu0 }
 0x4c7   :  { %v10616_v32 = vsel %vm120_vm0, 0.0, %v2825_v33  ;;  %v2873_v45 = vsel %vm120_vm0, %v2825_v33, 0.0  ;;  %v10620_v42 = vadd.f32 %v2723_v11, %v9464_v18 }
 0x4c8   :  { %v2929_v10 = vrot.slane %v10616_v32, 1  ;;  %v2930_v59 = vrot.slane %v2873_v45, 1  ;;  %v2727_v36 = vpop.f32.mrb[32].mxu0  ;;  %v7766_v35 = vpack.i.bf16 %v10616_v32, %v10582_v39  ;;  %v2971_v52 = vrot.slane %v10616_v32, 2 }
 0x4c9   :  { %v2826_v61 = vrot.slane %v10620_v42, 7  ;;  %v2728_v49 = vadd.f32 %v10420_v56, %v2727_v36  ;;  %v2729_v44 = vpop.f32.mrb[33].mxu0  ;;  %v2972_v55 = vrot.slane %v2873_v45, 2 }
 0x4ca   :  { %v2931_v50 = vsel %vm185_vm2, %v2929_v10, %v2930_v59  ;;  %7767 = vrot.lane.b32.xlu0 %v7766_v35, %s8665_s24 }
 0x4cb   :  { %v2858_v15 = vsel %vm120_vm0, 0.0, %v2826_v61  ;;  %v2874_v21 = vsel %vm120_vm0, %v2826_v61, 0.0  ;;  %v10631_v58 = vadd.f32 %v2728_v49, %v9506_v1  ;;  %v7771_v46 = vpack.i.bf16 %v2931_v50, %v2928_v26 }
 0x4cc   :  { %v2999_v63 = vrot.slane %v2858_v15, 1  ;;  %v3000_v19 = vrot.slane %v2874_v21, 1  ;;  %v3005_v47 = vrot.slane %v2858_v15, 2  ;;  %v3006_v53 = vrot.slane %v2874_v21, 2 }
 0x4cd   :  { %v2827_v13 = vrot.slane %v10631_v58, 7  ;;  %7772 = vrot.lane.b32.xlu1 %v7771_v46, %s8666_s25  ;;  %v7776_v0 = vpack.i.bf16 %v2858_v15, %v10616_v32  ;;  %v10651_v45 = vsel %vm231_vm1, %v2971_v52, %v2972_v55 }
 0x4ce   :  { %v3001_v51 = vsel %vm185_vm2, %v2999_v63, %v3000_v19  ;;  %v10645_v9 = vsel %vm231_vm1, %v3005_v47, %v3006_v53 }
 0x4cf   :  { %v10640_v33 = vsel %vm120_vm0, 0.0, %v2827_v13  ;;  %v2875_v26 = vsel %vm120_vm0, %v2827_v13, 0.0  ;;  %7777 = vrot.lane.b32.xlu0 %v7776_v0, %s8662_s17  ;;  %v7781_v11 = vpack.i.bf16 %v3001_v51, %v2931_v50  ;;  %v7786_v44 = vpack.i.bf16 %v10645_v9, %v10651_v45 }
 0x4d0   :  { %v2932_v10 = vrot.slane %v10640_v33, 1  ;;  %v2933_v59 = vrot.slane %v2875_v26, 1  ;;  %v2974_v36 = vrot.slane %v10640_v33, 2  ;;  %v2975_v61 = vrot.slane %v2875_v26, 2 }
 0x4d1   :  { %7782 = vrot.lane.b32.xlu1 %v7781_v11, %s8664_s1 }
 0x4d2   :  { %v2934_v49 = vsel %vm185_vm2, %v2932_v10, %v2933_v59  ;;  %v2976_v21 = vsel %vm231_vm1, %v2974_v36, %v2975_v61 }
 0x4d3   :  { %v7791_v35 = vpack.i.bf16 %v2934_v49, %v2931_v50  ;;  %v7796_v46 = vpack.i.bf16 %v2976_v21, %v10651_v45 }
 0x4d5   :  { %7787 = vrot.lane.b32.xlu1 %v7786_v44, %s8663_s26  ;;  %7792 = vrot.lane.b32.xlu0 %v7791_v35, %s8656_s22 }
 0x4d9   :  { %7797 = vrot.lane.b32.xlu0 %v7796_v46, %s8660_s27 }
 0x4dd   :  { %v7673_v53 = vpop.permute.xlu1 %7672 }
 0x4e1   :  { %v2732_v63 = vpop.f32.mrb[34].mxu0  ;;  %v10673_v44 = vpop.permute.xlu1 %7682 }
 0x4e2   :  { %v2733_v19 = vadd.f32 %v10420_v56, %v2732_v63  ;;  %v2734_v47 = vpop.f32.mrb[35].mxu0  ;;  %v7685_v57 = vunpack.i.h.bf16 %v10673_v44 }
 0x4e4   :  { %v10663_v13 = vadd.f32 %v2733_v19, %v9503_v54 }
 0x4e6   :  { %v2828_v50 = vrot.slane %v10663_v13, 7 }
 0x4e7   :  { %v2737_v0 = vpop.f32.mrb[36].mxu0 }
 0x4e8   :  { %v10667_v52 = vsel %vm120_vm0, 0.0, %v2828_v50  ;;  %v2876_v55 = vsel %vm120_vm0, %v2828_v50, 0.0  ;;  %v2738_v26 = vadd.f32 %v10420_v56, %v2737_v0  ;;  %v2739_v11 = vpop.f32.mrb[37].mxu0 }
 0x4e9   :  { %v2935_v10 = vrot.slane %v10667_v52, 1  ;;  %v2936_v59 = vrot.slane %v2876_v55, 1  ;;  %v2977_v36 = vrot.slane %v10667_v52, 2  ;;  %v2978_v61 = vrot.slane %v2876_v55, 2 }
 0x4ea   :  { %v10676_v35 = vadd.f32 %v2738_v26, %v9562_v31  ;;  %v7801_v46 = vpack.i.bf16 %v10667_v52, %v2858_v15  ;;  %v7806_v55 = vpack.i.bf16 %v10667_v52, %v10640_v33 }
 0x4eb   :  { %v2937_v63 = vsel %vm185_vm2, %v2935_v10, %v2936_v59  ;;  %v10690_v26 = vsel %vm231_vm1, %v2977_v36, %v2978_v61 }
 0x4ec   :  { %v2829_v19 = vrot.slane %v10676_v35, 7  ;;  %7802 = vrot.lane.b32.xlu1 %v7801_v46, %s8665_s24  ;;  %v7811_v47 = vpack.i.bf16 %v2937_v63, %v3001_v51  ;;  %v7678_v51 = vpop.permute.xlu0 %7677  ;;  %v7693_v46 = vpop.permute.xlu1 %7692  ;;  %v7816_v31 = vpack.i.bf16 %v2937_v63, %v2934_v49  ;;  %v7821_v36 = vpack.i.bf16 %v10690_v26, %v2976_v21 }
 0x4ed   :  { %v7694_v61 = vunpack.i.l.bf16 %v7693_v46  ;;  %v7679_v1 = vunpack.i.l.bf16 %v7678_v51 }
 0x4ee   :  { %v10683_v50 = vsel %vm120_vm0, 0.0, %v2829_v19  ;;  %v2877_v0 = vsel %vm120_vm0, %v2829_v19, 0.0  ;;  %7812 = vrot.lane.b32.xlu0 %v7811_v47, %s8666_s25  ;;  %v7684_v47 = vunpack.i.l.bf16 %v10673_v44 }
 0x4ef   :  { %v2938_v15 = vrot.slane %v10683_v50, 1  ;;  %v2939_v11 = vrot.slane %v2877_v0, 1  ;;  %v2980_v10 = vrot.slane %v10683_v50, 2  ;;  %v2981_v59 = vrot.slane %v2877_v0, 2 }
 0x4f0   :  { %7807 = vrot.lane.b32.xlu1 %v7806_v55, %s8662_s17  ;;  %v3323_v49 = vsel %vm711_vm7, %v10436_v7, %v7684_v47  ;;  %v7688_v55 = vpop.permute.xlu0 %7687  ;;  %v7680_v47 = vunpack.i.h.bf16 %v7678_v51 }
 0x4f1   :  { %v10696_v19 = vsel %vm185_vm2, %v2938_v15, %v2939_v11  ;;  %v10702_v54 = vsel %vm231_vm1, %v2980_v10, %v2981_v59  ;;  %v3337_v21 = vsel %vm779_vm11, %v3323_v49, %v7694_v61  ;;  %v7675_v11 = vunpack.i.h.bf16 %v7673_v53 }
 0x4f2   :  { %7817 = vrot.lane.b32.xlu0 %v7816_v31, %s8664_s1  ;;  %v7826_v0 = vpack.i.bf16 %v10696_v19, %v2937_v63  ;;  %v7831_v15 = vpack.i.bf16 %v10702_v54, %v10690_v26  ;;  %v7674_v31 = vunpack.i.l.bf16 %v7673_v53  ;;  %v7689_v10 = vunpack.i.l.bf16 %v7688_v55 }
 0x4f3   :  { %v3352_v59 = vsel %vm1626_vm12, %v3337_v21, %v7675_v11  ;;  %v7690_v21 = vunpack.i.h.bf16 %v7688_v55 }
 0x4f4   :  { %7822 = vrot.lane.b32.xlu1 %v7821_v36, %s8663_s26  ;;  %v3351_v7 = vsel %vm1626_vm12, %v9545_v48, %v7674_v31  ;;  %v3368_v34 = vsel %vm1643_vm13, %v3352_v59, %v7680_v47 }
 0x4f5   :  { %v3367_v18 = vsel %vm1643_vm13, %v3351_v7, %v7679_v1 }
 0x4f6   :  { %7827 = vrot.lane.b32.xlu0 %v7826_v0, %s8656_s22  ;;  %v3383_v53 = vsel %vm1660_vm3, %v3367_v18, %v7689_v10  ;;  %v3384_v10 = vsel %vm1660_vm3, %v3368_v34, %v7690_v21  ;;  %v3324_v34 = vsel %vm711_vm7, %v10451_v40, %v7685_v57 }
 0x4f8   :  { %7832 = vrot.lane.b32.xlu1 %v7831_v15, %s8660_s27  ;;  %v7698_v63 = vpop.permute.xlu0 %7697 }
 0x4f9   :  { %v7699_v36 = vunpack.i.l.bf16 %v7698_v63  ;;  %v2742_v0 = vpop.f32.mrb[38].mxu0  ;;  %v7700_v49 = vunpack.i.h.bf16 %v7698_v63 }
 0x4fa   :  { %v2743_v22 = vadd.f32 %v10420_v56, %v2742_v0  ;;  %v2744_v38 = vpop.f32.mrb[39].mxu0 }
 0x4fb   :  { %v7703_v61 = vpop.permute.xlu1 %7702  ;;  %v3399_v51 = vsel %vm1677_vm4, %v3383_v53, %v7699_v36  ;;  %v7695_v38 = vunpack.i.h.bf16 %v7693_v46 }
 0x4fc   :  { %v7704_v15 = vunpack.i.l.bf16 %v7703_v61  ;;  %v10721_v11 = vadd.f32 %v2743_v22, %v9558_v24  ;;  %v7705_v1 = vunpack.i.h.bf16 %v7703_v61  ;;  %v3400_v22 = vsel %vm1677_vm4, %v3384_v10, %v7700_v49 }
 0x4fd   :  { %v7708_v31 = vpop.permute.xlu0 %7707  ;;  %v3338_v49 = vsel %vm779_vm11, %v3324_v34, %v7695_v38 }
 0x4fe   :  { %v3415_v7 = vsel %vm1694_vm5, %v3399_v51, %v7704_v15  ;;  %v2830_v0 = vrot.slane %v10721_v11, 7  ;;  %v7709_v63 = vunpack.i.l.bf16 %v7708_v31  ;;  %v7710_v40 = vunpack.i.h.bf16 %v7708_v31 }
 0x4ff   :  { %v10727_v18 = vpop.permute.xlu1 %7712  ;;  %3530 = vmatmul.mubr.f32.vlgmr.msra.gmra.mrb[32].mxu1 %v3415_v7  ;;  %v2747_v55 = vpop.f32.mrb[40].mxu0 }
 0x500   :  { %6695 = vmatprep.mubr.msk.f32.mxu1 %vm711_vm7, %v10565_v12  ;;  %v10734_v59 = vsel %vm120_vm0, 0.0, %v2830_v0  ;;  %v2878_v44 = vsel %vm120_vm0, %v2830_v0, 0.0  ;;  %v2748_v46 = vadd.f32 %v10420_v56, %v2747_v55  ;;  %v2749_v47 = vpop.f32.mrb[41].mxu0  ;;  %v3416_v12 = vsel %vm1694_vm5, %v3400_v22, %v7705_v1 }
 0x501   :  { %v10738_v36 = vpop.permute.xlu0 %7717  ;;  %v2941_v61 = vrot.slane %v10734_v59, 1  ;;  %v2942_v53 = vrot.slane %v2878_v44, 1  ;;  %v2983_v15 = vrot.slane %v10734_v59, 2  ;;  %v2984_v7 = vrot.slane %v2878_v44, 2 }
 0x502   :  { %v10747_v21 = vadd.f32 %v2748_v46, %v9635_v8  ;;  %v7719_v0 = vunpack.i.l.bf16 %v10738_v36  ;;  %v7841_v57 = vpack.i.bf16 %v10734_v59, %v10683_v50  ;;  %v3353_v1 = vsel %vm1626_vm12, %v3338_v49, %v7709_v63 }
 0x503   :  { %v7723_v51 = vpop.permute.xlu1 %7722  ;;  %3535 = vmatmul.mubr.f32.gmra.mrb[34].mxu1 %v3416_v12  ;;  %v2943_v55 = vsel %vm185_vm2, %v2941_v61, %v2942_v53  ;;  %v7714_v22 = vunpack.i.l.bf16 %v10727_v18  ;;  %v7715_v63 = vunpack.i.h.bf16 %v10727_v18 }
 0x504   :  { %12783 = vst [vmem:[#allocation18_spill] sm:$0xff] %v10747_v21  ;;  %6696 = vmatprep.mubr.msk.f32.mxu1 %vm711_vm7, %v10559_v43  ;;  %v2831_v38 = vrot.slane %v10747_v21, 7  ;;  %7842 = vrot.lane.b32.xlu1 %v7841_v57, %s8662_s17  ;;  %v7851_v46 = vpack.i.bf16 %v2943_v55, %v10696_v19  ;;  %v7724_v47 = vunpack.i.l.bf16 %v7723_v51  ;;  %v3325_v12 = vsel %vm711_vm7, %v10528_v28, %v7719_v0 }
 0x505   :  { %v10756_v10 = vpop.permute.xlu0 %7727  ;;  %7837 = vrot.lane.b32.xlu0 %v7841_v57, %s8665_s24  ;;  %v10773_v57 = vsel %vm231_vm1, %v2983_v15, %v2984_v7  ;;  %v3369_v3 = vsel %vm1643_vm13, %v3353_v1, %v7714_v22  ;;  %v12784_v7 = vld [vmem:[#allocation14_spill] sm:$0xff] }
 0x506   :  { %v7729_v44 = vunpack.i.l.bf16 %v10756_v10  ;;  %v10765_v43 = vsel %vm120_vm0, 0.0, %v2831_v38  ;;  %v2879_v31 = vsel %vm120_vm0, %v2831_v38, 0.0  ;;  %v7856_v1 = vpack.i.bf16 %v10773_v57, %v10702_v54 }
 0x507   :  { %v7733_v34 = vpop.permute.xlu1 %7732  ;;  %v2944_v61 = vrot.slane %v10765_v43, 1  ;;  %v2945_v53 = vrot.slane %v2879_v31, 1  ;;  %v2752_v49 = vpop.f32.mrb[42].mxu0  ;;  %v2986_v19 = vrot.slane %v10765_v43, 2  ;;  %v2987_v8 = vrot.slane %v2879_v31, 2 }
 0x508   :  { %v3339_v24 = vsel %vm779_vm11, %v3325_v12, %v7729_v44  ;;  %v2753_v38 = vadd.f32 %v10420_v56, %v2752_v49  ;;  %v2754_v18 = vpop.f32.mrb[43].mxu0  ;;  %7852 = vrot.lane.b32.xlu1 %v7851_v46, %s8664_s1  ;;  %v7734_v28 = vunpack.i.l.bf16 %v7733_v34  ;;  %v7735_v31 = vunpack.i.h.bf16 %v7733_v34 }
 0x509   :  { %v7738_v60 = vpop.permute.xlu0 %7737  ;;  %v3354_v5 = vsel %vm1626_vm12, %v3339_v24, %v7710_v40  ;;  %7847 = vrot.lane.b32.xlu0 %v7851_v46, %s8666_s25  ;;  %v2946_v44 = vsel %vm185_vm2, %v2944_v61, %v2945_v53  ;;  %v3385_v12 = vsel %vm1660_vm3, %v3369_v3, %v7724_v47  ;;  %v7725_v49 = vunpack.i.h.bf16 %v7723_v51 }
 0x50a   :  { %v7739_v15 = vunpack.i.l.bf16 %v7738_v60  ;;  %v10783_v0 = vadd.f32 %v2753_v38, %v12784_v7  ;;  %v7861_v22 = vpack.i.bf16 %v2946_v44, %v2943_v55  ;;  %v3401_v24 = vsel %vm1677_vm4, %v3385_v12, %v7734_v28 }
 0x50b   :  { %v10793_v18 = vsel %vm231_vm1, %v2986_v19, %v2987_v8  ;;  %v3370_v34 = vsel %vm1643_vm13, %v3354_v5, %v7715_v63  ;;  %v7740_v38 = vunpack.i.h.bf16 %v7738_v60  ;;  %v12786_v19 = vld [vmem:[#allocation17_spill] sm:$0xff] }
 0x50c   :  { %12785 = vst [vmem:[#allocation19_spill] sm:$0xff] %v10783_v0  ;;  %v2832_v40 = vrot.slane %v10783_v0, 7  ;;  %v3417_v46 = vsel %vm1694_vm5, %v3401_v24, %v7739_v15  ;;  %7862 = vrot.lane.b32.xlu1 %v7861_v22, %s8656_s22  ;;  %v3386_v51 = vsel %vm1660_vm3, %v3370_v34, %v7725_v49  ;;  %v7866_v63 = vpack.i.bf16 %v10793_v18, %v10773_v57 }
 0x50d   :  { %7857 = vrot.lane.b32.xlu0 %v7856_v1, %s8663_s26  ;;  %v2757_v3 = vpop.f32.mrb[44].mxu0  ;;  %3540 = vmatmul.mubr.f32.gmra.mrb[36].mxu1 %v3417_v46  ;;  %v3402_v53 = vsel %vm1677_vm4, %v3386_v51, %v7735_v31 }
 0x50e   :  { %v10800_v55 = vsel %vm120_vm0, 0.0, %v2832_v40  ;;  %v2880_v47 = vsel %vm120_vm0, %v2832_v40, 0.0  ;;  %v2758_v61 = vadd.f32 %v10420_v56, %v2757_v3  ;;  %v2759_v8 = vpop.f32.mrb[45].mxu0  ;;  %6697 = vmatprep.mubr.msk.f32.mxu1 %vm711_vm7, %v10602_v17  ;;  %v3418_v12 = vsel %vm1694_vm5, %v3402_v53, %v7740_v38  ;;  %v12788_v53 = vld [vmem:[#allocation16_spill] sm:$0xff] }
 0x50f   :  { %v2947_v5 = vrot.slane %v10800_v55, 1  ;;  %v2948_v60 = vrot.slane %v2880_v47, 1  ;;  %v7871_v15 = vpack.i.bf16 %v10800_v55, %v10765_v43  ;;  %v2989_v17 = vrot.slane %v10800_v55, 2 }
 0x510   :  { %v10811_v28 = vadd.f32 %v2758_v61, %v12786_v19  ;;  %v2990_v22 = vrot.slane %v2880_v47, 2 }
 0x511   :  { %7867 = vrot.lane.b32.xlu0 %v7866_v63, %s8660_s27  ;;  %v2762_v31 = vpop.f32.mrb[46].mxu0  ;;  %3545 = vmatmul.mubr.f32.gmra.mrb[38].mxu1 %v3418_v12  ;;  %v2949_v24 = vsel %vm185_vm2, %v2947_v5, %v2948_v60 }
 0x512   :  { %12787 = vst [vmem:[#allocation20_spill] sm:$0xff] %v10811_v28  ;;  %v2833_v49 = vrot.slane %v10811_v28, 7  ;;  %v2764_v1 = vpop.f32.mrb[47].mxu0  ;;  %7872 = vrot.lane.b32.xlu1 %v7871_v15, %s8665_s24  ;;  %6698 = vmatprep.mubr.msk.f32.mxu1 %vm711_vm7, %v10598_v6  ;;  %v2763_v34 = vadd.f32 %v10420_v56, %v2762_v31  ;;  %v7881_v38 = vpack.i.bf16 %v2949_v24, %v2946_v44 }
 0x513   :  { %v10833_v6 = vsel %vm231_vm1, %v2989_v17, %v2990_v22  ;;  %v7743_v22 = vpop.permute.xlu1 %7742 }
 0x514   :  { %v10824_v40 = vsel %vm120_vm0, 0.0, %v2833_v49  ;;  %v2881_v46 = vsel %vm120_vm0, %v2833_v49, 0.0  ;;  %v10837_v5 = vadd.f32 %v2763_v34, %v12788_v53  ;;  %v7891_v56 = vpack.i.bf16 %v10833_v6, %v10793_v18 }
 0x515   :  { %v2950_v3 = vrot.slane %v10824_v40, 1  ;;  %v2951_v51 = vrot.slane %v2881_v46, 1  ;;  %7877 = vrot.lane.b32.xlu0 %v7871_v15, %s8662_s17  ;;  %v2992_v47 = vrot.slane %v10824_v40, 2  ;;  %v2993_v61 = vrot.slane %v2881_v46, 2 }
 0x516   :  { %7882 = vrot.lane.b32.xlu1 %v7881_v38, %s8666_s25  ;;  %12789 = vst [vmem:[#allocation21_spill] sm:$0xff] %v10837_v5  ;;  %v2834_v63 = vrot.slane %v10837_v5, 7 }
 0x517   :  { %v2952_v8 = vsel %vm185_vm2, %v2950_v3, %v2951_v51  ;;  %v10843_v60 = vsel %vm231_vm1, %v2992_v47, %v2993_v61  ;;  %v7748_v51 = vpop.permute.xlu0 %7747  ;;  %v7720_v61 = vunpack.i.h.bf16 %v10738_v36 }
 0x518   :  { %v7896_v44 = vpack.i.bf16 %v2952_v8, %v2949_v24  ;;  %v7901_v15 = vpack.i.bf16 %v10843_v60, %v10833_v6  ;;  %v2866_v12 = vsel %vm120_vm0, 0.0, %v2834_v63  ;;  %v2882_v31 = vsel %vm120_vm0, %v2834_v63, 0.0 }
 0x519   :  { %7887 = vrot.lane.b32.xlu0 %v7881_v38, %s8664_s1  ;;  %v7906_v49 = vpack.i.bf16 %v2866_v12, %v10824_v40  ;;  %v3003_v1 = vrot.slane %v2882_v31, 1  ;;  %v3002_v17 = vrot.slane %v2866_v12, 1  ;;  %v3009_v24 = vrot.slane %v2882_v31, 2  ;;  %v7753_v38 = vpop.permute.xlu1 %7752 }
 0x51a   :  { %7892 = vrot.lane.b32.xlu1 %v7891_v56, %s8663_s26  ;;  %v3008_v34 = vrot.slane %v2866_v12, 2  ;;  %v7730_v56 = vunpack.i.h.bf16 %v10756_v10  ;;  %v7744_v63 = vunpack.i.l.bf16 %v7743_v22  ;;  %v3326_v12 = vsel %vm711_vm7, %v10541_v4, %v7720_v61 }
 0x51b   :  { %v3004_v46 = vsel %vm185_vm2, %v3002_v17, %v3003_v1  ;;  %v7749_v1 = vunpack.i.l.bf16 %v7748_v51  ;;  %v7750_v19 = vunpack.i.h.bf16 %v7748_v51 }
 0x51c   :  { %v10864_v3 = vsel %vm231_vm1, %v3008_v34, %v3009_v24  ;;  %v7745_v24 = vunpack.i.h.bf16 %v7743_v22 }
 0x51d   :  { %7897 = vrot.lane.b32.xlu0 %v7896_v44, %s8656_s22  ;;  %v7763_v47 = vpop.permute.xlu1 %7762 }
 0x51e   :  { %7902 = vrot.lane.b32.xlu1 %v7901_v15, %s8660_s27  ;;  %v7764_v44 = vunpack.i.l.bf16 %v7763_v47  ;;  %v7758_v15 = vpop.permute.xlu0 %7757 }
 0x51f   :  { %v7760_v22 = vunpack.i.h.bf16 %v7758_v15 }
 0x521   :  { %3305 = vrot.lane.b32.xlu0 %v2952_v8, %s8666_s25 }
 0x522   :  { %3171 = vrot.lane.b32.xlu1 %v2952_v8, %s8664_s1  ;;  %v7754_v8 = vunpack.i.l.bf16 %v7753_v38 }
 0x524   :  { %v3327_v31 = vsel %vm711_vm7, %v10568_v62, %v7754_v8 }
 0x525   :  { %7907 = vrot.lane.b32.xlu0 %v7906_v49, %s8665_s24  ;;  %v3341_v17 = vsel %vm779_vm11, %v3327_v31, %v7764_v44 }
 0x526   :  { %7912 = vrot.lane.b32.xlu1 %v7906_v49, %s8662_s17  ;;  %v3340_v49 = vsel %vm779_vm11, %v3326_v12, %v7730_v56  ;;  %v3356_v10 = vsel %vm1626_vm12, %v3341_v17, %v7745_v24 }
 0x527   :  { %v3355_v36 = vsel %vm1626_vm12, %v3340_v49, %v7744_v63  ;;  %v3372_v44 = vsel %vm1643_vm13, %v3356_v10, %v7750_v19 }
 0x528   :  { %v3371_v7 = vsel %vm1643_vm13, %v3355_v36, %v7749_v1  ;;  %v3388_v51 = vsel %vm1660_vm3, %v3372_v44, %v7760_v22  ;;  %v7755_v36 = vunpack.i.h.bf16 %v7753_v38 }
 0x529   :  { %3219 = vrot.lane.b32.xlu0 %v10843_v60, %s8663_s26 }
 0x52a   :  { %3307 = vrot.lane.b32.xlu1 %v3004_v46, %s8666_s25 }
 0x52d   :  { %3173 = vrot.lane.b32.xlu0 %v3004_v46, %s8664_s1  ;;  %v7759_v46 = vunpack.i.l.bf16 %v7758_v15 }
 0x52e   :  { %3221 = vrot.lane.b32.xlu1 %v10864_v3, %s8663_s26 }
 0x52f   :  { %v3387_v62 = vsel %vm1660_vm3, %v3371_v7, %v7759_v46 }
 0x53c   :  { %v7768_v34 = vpop.permute.xlu0 %7767 }
 0x53d   :  { %v7769_v53 = vunpack.i.l.bf16 %v7768_v34  ;;  %v7770_v8 = vunpack.i.h.bf16 %v7768_v34  ;;  %v7765_v34 = vunpack.i.h.bf16 %v7763_v47 }
 0x53f   :  { %v7773_v4 = vpop.permute.xlu1 %7772  ;;  %v3403_v56 = vsel %vm1677_vm4, %v3387_v62, %v7769_v53  ;;  %v3404_v49 = vsel %vm1677_vm4, %v3388_v51, %v7770_v8 }
 0x540   :  { %v7774_v61 = vunpack.i.l.bf16 %v7773_v4  ;;  %v7775_v12 = vunpack.i.h.bf16 %v7773_v4 }
 0x541   :  { %v7778_v31 = vpop.permute.xlu0 %7777 }
 0x542   :  { %v3419_v63 = vsel %vm1694_vm5, %v3403_v56, %v7774_v61  ;;  %v3420_v7 = vsel %vm1694_vm5, %v3404_v49, %v7775_v12  ;;  %v7780_v46 = vunpack.i.h.bf16 %v7778_v31  ;;  %v7779_v4 = vunpack.i.l.bf16 %v7778_v31 }
 0x543   :  { %3550 = vmatmul.mubr.f32.gmra.mrb[40].mxu1 %v3419_v63  ;;  %v7783_v1 = vpop.permute.xlu1 %7782 }
 0x544   :  { %6699 = vmatprep.mubr.msk.f32.mxu1 %vm711_vm7, %v10651_v45  ;;  %v7785_v62 = vunpack.i.h.bf16 %v7783_v1  ;;  %v7784_v8 = vunpack.i.l.bf16 %v7783_v1 }
 0x547   :  { %3555 = vmatmul.mubr.f32.gmra.mrb[42].mxu1 %v3420_v7  ;;  %v7793_v19 = vpop.permute.xlu0 %7792  ;;  %v7788_v10 = vpop.permute.xlu1 %7787 }
 0x548   :  { %6700 = vmatprep.mubr.msk.f32.mxu1 %vm711_vm7, %v10645_v9  ;;  %v7794_v15 = vunpack.i.l.bf16 %v7793_v19  ;;  %v3328_v9 = vsel %vm711_vm7, %v10582_v39, %v7755_v36  ;;  %v7789_v56 = vunpack.i.l.bf16 %v7788_v10  ;;  %v7790_v38 = vunpack.i.h.bf16 %v7788_v10 }
 0x549   :  { %v3342_v44 = vsel %vm779_vm11, %v3328_v9, %v7765_v34 }
 0x54a   :  { %v3329_v24 = vsel %vm711_vm7, %v10616_v32, %v7794_v15  ;;  %v3357_v12 = vsel %vm1626_vm12, %v3342_v44, %v7779_v4 }
 0x54b   :  { %v7798_v53 = vpop.permute.xlu0 %7797  ;;  %v3373_v47 = vsel %vm1643_vm13, %v3357_v12, %v7784_v8 }
 0x54c   :  { %v7799_v17 = vunpack.i.l.bf16 %v7798_v53  ;;  %v3389_v49 = vsel %vm1660_vm3, %v3373_v47, %v7789_v56  ;;  %v7800_v12 = vunpack.i.h.bf16 %v7798_v53 }
 0x54e   :  { %v3343_v45 = vsel %vm779_vm11, %v3329_v24, %v7799_v17 }
 0x54f   :  { %v3358_v61 = vsel %vm1626_vm12, %v3343_v45, %v7780_v46 }
 0x550   :  { %v3374_v32 = vsel %vm1643_vm13, %v3358_v61, %v7785_v62 }
 0x551   :  { %v3390_v7 = vsel %vm1660_vm3, %v3374_v32, %v7790_v38  ;;  %v7795_v32 = vunpack.i.h.bf16 %v7793_v19 }
 0x552   :  { %v3406_v45 = vsel %vm1677_vm4, %v3390_v7, %v9803_v27 }
 0x553   :  { %v3422_v61 = vsel %vm1694_vm5, %v3406_v45, %v9807_v23 }
 0x55e   :  { %v7803_v22 = vpop.permute.xlu1 %7802 }
 0x55f   :  { %v7804_v63 = vunpack.i.l.bf16 %v7803_v22  ;;  %v7805_v62 = vunpack.i.h.bf16 %v7803_v22 }
 0x560   :  { %v7813_v51 = vpop.permute.xlu0 %7812 }
 0x561   :  { %v7814_v31 = vunpack.i.l.bf16 %v7813_v51  ;;  %v3405_v39 = vsel %vm1677_vm4, %v3389_v49, %v7804_v63  ;;  %v7815_v9 = vunpack.i.h.bf16 %v7813_v51 }
 0x562   :  { %v7808_v15 = vpop.permute.xlu1 %7807 }
 0x563   :  { %v7809_v1 = vunpack.i.l.bf16 %v7808_v15  ;;  %v3421_v17 = vsel %vm1694_vm5, %v3405_v39, %v7814_v31  ;;  %v7810_v22 = vunpack.i.h.bf16 %v7808_v15 }
 0x564   :  { %v7818_v24 = vpop.permute.xlu0 %7817  ;;  %3560 = vmatmul.mubr.f32.gmra.mrb[44].mxu1 %v3421_v17 }
 0x565   :  { %v7819_v36 = vunpack.i.l.bf16 %v7818_v24  ;;  %6701 = vmatprep.mubr.msk.f32.mxu1 %vm711_vm7, %v8770_v16  ;;  %v3359_v46 = vsel %vm1626_vm12, %v9545_v48, %v7809_v1  ;;  %v7820_v47 = vunpack.i.h.bf16 %v7818_v24 }
 0x566   :  { %v7823_v34 = vpop.permute.xlu1 %7822 }
 0x567   :  { %v3375_v10 = vsel %vm1643_vm13, %v3359_v46, %v7819_v36  ;;  %v7824_v4 = vunpack.i.l.bf16 %v7823_v34  ;;  %v7825_v39 = vunpack.i.h.bf16 %v7823_v34 }
 0x568   :  { %3565 = vmatmul.mubr.f32.gmra.mrb[46].mxu1 %v3422_v61  ;;  %v7828_v38 = vpop.permute.xlu0 %7827 }
 0x569   :  { %6702 = vmatprep.mubr.msk.f32.mxu1 %vm711_vm7, %v10690_v26  ;;  %v3391_v8 = vsel %vm1660_vm3, %v3375_v10, %v7824_v4  ;;  %v3330_v26 = vsel %vm711_vm7, %v10640_v33, %v7795_v32  ;;  %v7829_v1 = vunpack.i.l.bf16 %v7828_v38 }
 0x56a   :  { %v3407_v56 = vsel %vm1677_vm4, %v3391_v8, %v7805_v62  ;;  %v7833_v63 = vpop.permute.xlu1 %7832  ;;  %v3344_v31 = vsel %vm779_vm11, %v3330_v26, %v7800_v12  ;;  %v7830_v8 = vunpack.i.h.bf16 %v7828_v38 }
 0x56b   :  { %v3423_v44 = vsel %vm1694_vm5, %v3407_v56, %v7815_v9  ;;  %v3360_v7 = vsel %vm1626_vm12, %v3344_v31, %v7810_v22  ;;  %v7834_v19 = vunpack.i.l.bf16 %v7833_v63  ;;  %v3331_v15 = vsel %vm711_vm7, %v10667_v52, %v7829_v1 }
 0x56c   :  { %3570 = vmatmul.mubr.f32.gmra.mrb[48].mxu1 %v3423_v44  ;;  %v3376_v17 = vsel %vm1643_vm13, %v3360_v7, %v7820_v47  ;;  %v7835_v22 = vunpack.i.h.bf16 %v7833_v63  ;;  %v3332_v31 = vsel %vm711_vm7, %v10683_v50, %v7830_v8 }
 0x56d   :  { %6703 = vmatprep.mubr.msk.f32.mxu1 %vm711_vm7, %v10702_v54  ;;  %v3392_v33 = vsel %vm1660_vm3, %v3376_v17, %v7825_v39  ;;  %v3345_v34 = vsel %vm779_vm11, %v3331_v15, %v7834_v19 }
 0x576   :  { %v7843_v51 = vpop.permute.xlu1 %7842 }
 0x577   :  { %v7838_v49 = vpop.permute.xlu0 %7837  ;;  %v7844_v24 = vunpack.i.l.bf16 %v7843_v51  ;;  %v7845_v38 = vunpack.i.h.bf16 %v7843_v51 }
 0x578   :  { %v7839_v54 = vunpack.i.l.bf16 %v7838_v49  ;;  %v7840_v52 = vunpack.i.h.bf16 %v7838_v49  ;;  %v3346_v49 = vsel %vm779_vm11, %v3332_v31, %v7835_v22 }
 0x579   :  { %v3361_v9 = vsel %vm1626_vm12, %v3345_v34, %v7844_v24  ;;  %v3362_v19 = vsel %vm1626_vm12, %v3346_v49, %v7845_v38 }
 0x57a   :  { %v7853_v53 = vpop.permute.xlu1 %7852  ;;  %v3408_v10 = vsel %vm1677_vm4, %v3392_v33, %v7839_v54 }
 0x57b   :  { %v7848_v45 = vpop.permute.xlu0 %7847  ;;  %v7854_v46 = vunpack.i.l.bf16 %v7853_v53  ;;  %v7855_v39 = vunpack.i.h.bf16 %v7853_v53 }
 0x57c   :  { %v7849_v36 = vunpack.i.l.bf16 %v7848_v45  ;;  %v7850_v32 = vunpack.i.h.bf16 %v7848_v45 }
 0x57d   :  { %v3377_v44 = vsel %vm1643_vm13, %v3361_v9, %v7854_v46  ;;  %v3378_v50 = vsel %vm1643_vm13, %v3362_v19, %v7855_v39 }
 0x57e   :  { %v3424_v4 = vsel %vm1694_vm5, %v3408_v10, %v7849_v36  ;;  %v7863_v62 = vpop.permute.xlu1 %7862 }
 0x57f   :  { %v7858_v61 = vpop.permute.xlu0 %7857  ;;  %3575 = vmatmul.mubr.f32.gmra.mrb[50].mxu1 %v3424_v4  ;;  %v7864_v17 = vunpack.i.l.bf16 %v7863_v62 }
 0x580   :  { %v7859_v56 = vunpack.i.l.bf16 %v7858_v61  ;;  %6704 = vmatprep.mubr.msk.f32.mxu1 %vm711_vm7, %v10773_v57  ;;  %v7860_v57 = vunpack.i.h.bf16 %v7858_v61 }
 0x581   :  { %v3333_v36 = vsel %vm711_vm7, %v10734_v59, %v7864_v17 }
 0x582   :  { %v3393_v12 = vsel %vm1660_vm3, %v3377_v44, %v7859_v56  ;;  %v3394_v53 = vsel %vm1660_vm3, %v3378_v50, %v7860_v57  ;;  %v7865_v56 = vunpack.i.h.bf16 %v7863_v62 }
 0x583   :  { %v7868_v47 = vpop.permute.xlu0 %7867  ;;  %v3409_v26 = vsel %vm1677_vm4, %v3393_v12, %v7840_v52 }
 0x584   :  { %v3425_v7 = vsel %vm1694_vm5, %v3409_v26, %v7850_v32  ;;  %v7873_v1 = vpop.permute.xlu1 %7872  ;;  %v7869_v45 = vunpack.i.l.bf16 %v7868_v47  ;;  %v7870_v44 = vunpack.i.h.bf16 %v7868_v47 }
 0x585   :  { %3580 = vmatmul.mubr.f32.gmra.mrb[52].mxu1 %v3425_v7  ;;  %v7874_v63 = vunpack.i.l.bf16 %v7873_v1  ;;  %v7875_v59 = vunpack.i.h.bf16 %v7873_v1  ;;  %v3334_v7 = vsel %vm711_vm7, %v10765_v43, %v7865_v56 }
 0x586   :  { %6705 = vmatprep.mubr.msk.f32.mxu1 %vm711_vm7, %v10793_v18  ;;  %v3347_v46 = vsel %vm779_vm11, %v3333_v36, %v7869_v45 }
 0x587   :  { %v7878_v54 = vpop.permute.xlu0 %7877  ;;  %v3410_v18 = vsel %vm1677_vm4, %v3394_v53, %v7874_v63 }
 0x588   :  { %v7879_v51 = vunpack.i.l.bf16 %v7878_v54  ;;  %v7883_v15 = vpop.permute.xlu1 %7882  ;;  %v7880_v12 = vunpack.i.h.bf16 %v7878_v54 }
 0x589   :  { %v7884_v24 = vunpack.i.l.bf16 %v7883_v15  ;;  %v7885_v22 = vunpack.i.h.bf16 %v7883_v15 }
 0x58a   :  { %v3363_v34 = vsel %vm1626_vm12, %v3347_v46, %v7879_v51 }
 0x58b   :  { %v7888_v33 = vpop.permute.xlu0 %7887  ;;  %v3426_v4 = vsel %vm1694_vm5, %v3410_v18, %v7884_v24 }
 0x58c   :  { %v7889_v10 = vunpack.i.l.bf16 %v7888_v33  ;;  %v7893_v61 = vpop.permute.xlu1 %7892  ;;  %3585 = vmatmul.mubr.f32.gmra.mrb[54].mxu1 %v3426_v4  ;;  %v7890_v38 = vunpack.i.h.bf16 %v7888_v33 }
 0x58d   :  { %v7894_v9 = vunpack.i.l.bf16 %v7893_v61  ;;  %6706 = vmatprep.mubr.msk.f32.mxu1 %vm711_vm7, %v10833_v6  ;;  %v3348_v6 = vsel %vm779_vm11, %v3334_v7, %v7870_v44  ;;  %v7895_v1 = vunpack.i.h.bf16 %v7893_v61  ;;  %v6713_v7 = vld [vmem:[%s12729_s5 + $0xa8] sm:$0xff] }
 0x58e   :  { %v3379_v8 = vsel %vm1643_vm13, %v3363_v34, %v7889_v10  ;;  %v3364_v47 = vsel %vm1626_vm12, %v3348_v6, %v7880_v12  ;;  %v6715_v6 = vld [vmem:[%s12729_s5 + $0xb8] sm:$0xff] }
 0x58f   :  { %v7898_v52 = vpop.permute.xlu0 %7897  ;;  %v3395_v32 = vsel %vm1660_vm3, %v3379_v8, %v7894_v9  ;;  %v3380_v17 = vsel %vm1643_vm13, %v3364_v47, %v7890_v38  ;;  %v6712_v38 = vld [vmem:[%s12729_s5 + $0xa0] sm:$0xff] }
 0x590   :  { %v7903_v26 = vpop.permute.xlu1 %7902  ;;  %v3411_v31 = vsel %vm1677_vm4, %v3395_v32, %v7875_v59  ;;  %v7899_v62 = vunpack.i.l.bf16 %v7898_v52  ;;  %v7900_v63 = vunpack.i.h.bf16 %v7898_v52  ;;  %v3396_v51 = vsel %vm1660_vm3, %v3380_v17, %v7895_v1  ;;  %v6716_v47 = vld [vmem:[%s12729_s5 + $0xc0] sm:$0xff]  ;;  %v6717_v1 = vld [vmem:[%s12729_s5 + $0xc8] sm:$0xff] }
 0x591   :  { %v3427_v39 = vsel %vm1694_vm5, %v3411_v31, %v7885_v22  ;;  %v7904_v54 = vunpack.i.l.bf16 %v7903_v26  ;;  %v7905_v15 = vunpack.i.h.bf16 %v7903_v26  ;;  %v6710_v22 = vld [vmem:[%s12729_s5 + $0x90] sm:$0xff]  ;;  %v6711_v26 = vld [vmem:[%s12729_s5 + $0x98] sm:$0xff]  ;;  %v7010_v17 = vpack.c.bf16 %v6717_v1, %v6716_v47 }
 0x592   :  { %3590 = vmatmul.mubr.f32.gmra.mrb[56].mxu1 %v3427_v39  ;;  %v3335_v43 = vsel %vm711_vm7, %v10800_v55, %v7899_v62  ;;  %v7001_v31 = vpack.c.bf16 %v6711_v26, %v6710_v22  ;;  %v6714_v39 = vld [vmem:[%s12729_s5 + $0xb0] sm:$0xff] }
 0x593   :  { %v3306_v57 = vpop.permute.xlu0 %3305  ;;  %6707 = vmatprep.mubr.msk.f32.mxu1 %vm711_vm7, %v10843_v60  ;;  %v3336_v60 = vsel %vm711_vm7, %v10824_v40, %v7900_v63  ;;  %v3349_v36 = vsel %vm779_vm11, %v3335_v43, %v7904_v54  ;;  %v7007_v62 = vpack.c.bf16 %v6715_v6, %v6714_v39  ;;  %v6724_v6 = vld [vmem:[%s12729_s5 + $0x100] sm:$0xff] }
 0x594   :  { %v3172_v49 = vpop.permute.xlu1 %3171  ;;  %v3350_v40 = vsel %vm779_vm11, %v3336_v60, %v7905_v15  ;;  %7002 = vmatpush1.bf16.msra.mxu0 %v7001_v31 }
 0x595   :  { %7003 = vmatprep.subr.bf16.mxu0 %v12782_v41 }
 0x597   :  { %v7908_v19 = vpop.permute.xlu0 %7907 }
 0x598   :  { %v7909_v45 = vunpack.i.l.bf16 %v7908_v19  ;;  %v7913_v50 = vpop.permute.xlu1 %7912  ;;  %v7910_v55 = vunpack.i.h.bf16 %v7908_v19 }
 0x599   :  { %v7914_v24 = vunpack.i.l.bf16 %v7913_v50  ;;  %v7915_v33 = vunpack.i.h.bf16 %v7913_v50  ;;  %v6719_v50 = vld [vmem:[%s12729_s5 + $0xd8] sm:$0xff] }
 0x59a   :  { %v3412_v53 = vsel %vm1677_vm4, %v3396_v51, %v7909_v45  ;;  %v6718_v45 = vld [vmem:[%s12729_s5 + $0xd0] sm:$0xff] }
 0x59b   :  { %v3220_v18 = vpop.permute.xlu0 %3219  ;;  %v3428_v46 = vsel %vm1694_vm5, %v3412_v53, %v3306_v57  ;;  %v3365_v10 = vsel %vm1626_vm12, %v3349_v36, %v7914_v24  ;;  %v3366_v9 = vsel %vm1626_vm12, %v3350_v40, %v7915_v33  ;;  %v7004_v57 = vpack.c.bf16 %v6713_v7, %v6712_v38 }
 0x59c   :  { %3595 = vmatmul.mubr.f32.gmra.mrb[58].mxu1 %v3428_v46  ;;  %v3381_v4 = vsel %vm1643_vm13, %v3365_v10, %v3172_v49  ;;  %v3308_v34 = vpop.permute.xlu1 %3307  ;;  %v11019_v49 = vld [vmem:[%s12728_s4 + $0x1] ss:$0 sm:$0xff]  ;;  %v7013_v15 = vpack.c.bf16 %v6719_v50, %v6718_v45  ;;  %v6721_v46 = vld [vmem:[%s12729_s5 + $0xe8] sm:$0xff]  ;;  %v6726_v50 = vld [vmem:[%s12729_s5 + $0x110] sm:$0xff] }
 0x59d   :  { %6708 = vmatprep.mubr.msk.f32.mxu1 %vm711_vm7, %v10864_v3  ;;  %v3397_v61 = vsel %vm1660_vm3, %v3381_v4, %v3220_v18  ;;  %7005 = vmatpush1.bf16.msra.mxu0 %v7004_v57  ;;  %v6720_v18 = vld [vmem:[%s12729_s5 + $0xe0] sm:$0xff] }
 0x59e   :  { %v3413_v56 = vsel %vm1677_vm4, %v3397_v61, %v7910_v55  ;;  %7006 = vmatprep.subr.bf16.mxu0 %v12782_v41  ;;  %v7016_v4 = vpack.c.bf16 %v6721_v46, %v6720_v18 }
 0x59f   :  { %v3174_v8 = vpop.permute.xlu0 %3173  ;;  %v3429_v52 = vsel %vm1694_vm5, %v3413_v56, %v3308_v34 }
 0x5a0   :  { %v3382_v59 = vsel %vm1643_vm13, %v3366_v9, %v3174_v8  ;;  %v3222_v44 = vpop.permute.xlu1 %3221  ;;  %3600 = vmatmul.mubr.f32.gmra.mrb[60].mxu1 %v3429_v52  ;;  %v6723_v52 = vld [vmem:[%s12729_s5 + $0xf8] sm:$0xff] }
 0x5a1   :  { %v3398_v32 = vsel %vm1660_vm3, %v3382_v59, %v3222_v44  ;;  %6709 = vmatprep.mubr.msk.f32.mxu1 %vm711_vm7, %v8770_v16  ;;  %7008 = vmatpush1.bf16.msra.mxu0 %v7007_v62  ;;  %v6722_v59 = vld [vmem:[%s12729_s5 + $0xf0] sm:$0xff]  ;;  %v6725_v62 = vld [vmem:[%s12729_s5 + $0x108] sm:$0xff] }
 0x5a2   :  { %v3414_v3 = vsel %vm1677_vm4, %v3398_v32, %v9803_v27  ;;  %7009 = vmatprep.subr.bf16.mxu0 %v12782_v41 }
 0x5a3   :  { %v3430_v12 = vsel %vm1694_vm5, %v3414_v3, %v9807_v23  ;;  %v7019_v3 = vpack.c.bf16 %v6723_v52, %v6722_v59 }
 0x5a4   :  { %3605 = vmatmul.mubr.f32.gmra.mrb[62].mxu1 %v3430_v12 }
 0x5a5   :  { %7011 = vmatpush1.bf16.msra.mxu0 %v7010_v17 }
 0x5a6   :  { %7012 = vmatprep.subr.bf16.mxu0 %v12782_v41 }
 0x5a9   :  { %7014 = vmatpush1.bf16.msra.mxu0 %v7013_v15 }
 0x5aa   :  { %7015 = vmatprep.subr.bf16.mxu0 %v12782_v41 }
 0x5ad   :  { %7017 = vmatpush1.bf16.msra.mxu0 %v7016_v4 }
 0x5ae   :  { %7018 = vmatprep.subr.bf16.mxu0 %v12782_v41 }
 0x5b1   :  { %7020 = vmatpush1.bf16.msra.mxu0 %v7019_v3 }
 0x5b2   :  { %7021 = vmatprep.subr.bf16.mxu0 %v12782_v41 }
 0x5d2   :  { %v3531_v63 = vpop.f32.mrb[32].mxu1 }
 0x5d3   :  { %v3532_v54 = vadd.f32 %v11019_v49, %v3531_v63  ;;  %v3533_v19 = vpop.f32.mrb[33].mxu1  ;;  %v7022_v63 = vpack.c.bf16 %v6725_v62, %v6724_v6 }
 0x5d5   :  { %vm3610_vm9 = vcmp.ge.f32.partialorder %v3532_v54, 0.0  ;;  %v3626_v43 = vmul.f32 0.2, %v3532_v54  ;;  %7023 = vmatpush1.bf16.msra.mxu0 %v7022_v63 }
 0x5d6   :  { %v3536_v51 = vpop.f32.mrb[34].mxu1  ;;  %7024 = vmatprep.subr.bf16.mxu0 %v12782_v41 }
 0x5d7   :  { %v3642_v24 = vsel %vm3610_vm9, %v3532_v54, %v3626_v43  ;;  %v3537_v53 = vadd.f32 %v11019_v49, %v3536_v51  ;;  %v3538_v60 = vpop.f32.mrb[35].mxu1  ;;  %v6727_v51 = vld [vmem:[%s12729_s5 + $0x118] sm:$0xff] }
 0x5d8   :  { %v3695_v36 = vrot.slane %v3642_v24, 7  ;;  %v7025_v24 = vpack.c.bf16 %v6727_v51, %v6726_v50 }
 0x5d9   :  { %vm3611_vm10 = vcmp.ge.f32.partialorder %v3537_v53, 0.0  ;;  %v3627_v33 = vmul.f32 0.2, %v3537_v53 }
 0x5da   :  { %v11039_v10 = vsel %vm120_vm0, 0.0, %v3695_v36  ;;  %v3743_v55 = vsel %vm120_vm0, %v3695_v36, 0.0  ;;  %7026 = vmatpush1.bf16.msra.mxu0 %v7025_v24 }
 0x5db   :  { %v3643_v34 = vsel %vm3611_vm10, %v3537_v53, %v3627_v33  ;;  %v3787_v40 = vrot.slane %v11039_v10, 1  ;;  %v3788_v8 = vrot.slane %v3743_v55, 1  ;;  %v3830_v9 = vrot.slane %v3743_v55, 2  ;;  %7054 = vmatprep.subr.bf16.mxu0 %v12782_v41 }
 0x5dc   :  { %v3696_v61 = vrot.slane %v3643_v34, 7  ;;  %v3829_v56 = vrot.slane %v11039_v10, 2 }
 0x5dd   :  { %v3789_v39 = vsel %vm185_vm2, %v3787_v40, %v3788_v8 }
 0x5de   :  { %v11052_v44 = vsel %vm120_vm0, 0.0, %v3696_v61  ;;  %v3744_v32 = vsel %vm120_vm0, %v3696_v61, 0.0  ;;  %v3831_v7 = vsel %vm231_vm1, %v3829_v56, %v3830_v9 }
 0x5df   :  { %v3790_v12 = vrot.slane %v11052_v44, 1  ;;  %v3791_v22 = vrot.slane %v3744_v32, 1  ;;  %v7916_v26 = vpack.i.bf16 %v11052_v44, %v11039_v10  ;;  %v3832_v31 = vrot.slane %v11052_v44, 2 }
 0x5e0   :  { %v3833_v38 = vrot.slane %v3744_v32, 2  ;;  %v3541_v47 = vpop.f32.mrb[36].mxu1 }
 0x5e1   :  { %7917 = vrot.lane.b32.xlu0 %v7916_v26, %s8662_s17  ;;  %v3792_v57 = vsel %vm185_vm2, %v3790_v12, %v3791_v22  ;;  %v3542_v54 = vadd.f32 %v11019_v49, %v3541_v47  ;;  %v3543_v19 = vpop.f32.mrb[37].mxu1 }
 0x5e2   :  { %v3834_v1 = vsel %vm231_vm1, %v3832_v31, %v3833_v38  ;;  %v7921_v17 = vpack.i.bf16 %v3792_v57, %v3789_v39 }
 0x5e3   :  { %6730 = vmatprep.mubr.msk.f32.mxu0 %vm711_vm7, %v3834_v1  ;;  %v7936_v43 = vpack.i.bf16 %v3834_v1, %v3831_v7  ;;  %vm3612_vm14 = vcmp.ge.f32.partialorder %v3542_v54, 0.0  ;;  %v3628_v45 = vmul.f32 0.2, %v3542_v54 }
 0x5e4   :  { %7922 = vrot.lane.b32.xlu1 %v7921_v17, %s8664_s1  ;;  %v3546_v15 = vpop.f32.mrb[38].mxu1 }
 0x5e5   :  { %7927 = vrot.lane.b32.xlu0 %v7921_v17, %s8656_s22  ;;  %v3644_v53 = vsel %vm3612_vm14, %v3542_v54, %v3628_v45  ;;  %v3547_v60 = vadd.f32 %v11019_v49, %v3546_v15  ;;  %v3548_v36 = vpop.f32.mrb[39].mxu1 }
 0x5e6   :  { %v3697_v33 = vrot.slane %v3644_v53, 7 }
 0x5e7   :  { %vm3613_vm15 = vcmp.ge.f32.partialorder %v3547_v60, 0.0  ;;  %v3629_v18 = vmul.f32 0.2, %v3547_v60 }
 0x5e8   :  { %7932 = vrot.lane.b32.xlu1 %v7936_v43, %s8663_s26  ;;  %v11087_v46 = vsel %vm120_vm0, 0.0, %v3697_v33  ;;  %v3745_v55 = vsel %vm120_vm0, %v3697_v33, 0.0 }
 0x5e9   :  { %7937 = vrot.lane.b32.xlu0 %v7936_v43, %s8660_s27  ;;  %v3793_v4 = vrot.slane %v11087_v46, 1  ;;  %v3794_v34 = vrot.slane %v3745_v55, 1  ;;  %v3645_v61 = vsel %vm3613_vm15, %v3547_v60, %v3629_v18  ;;  %v7941_v40 = vpack.i.bf16 %v11087_v46, %v11052_v44 }
 0x5ea   :  { %v3698_v8 = vrot.slane %v3645_v61, 7  ;;  %v3835_v31 = vrot.slane %v11087_v46, 2  ;;  %v3836_v38 = vrot.slane %v3745_v55, 2 }
 0x5eb   :  { %v3795_v9 = vsel %vm185_vm2, %v3793_v4, %v3794_v34 }
 0x5ec   :  { %7942 = vrot.lane.b32.xlu1 %v7941_v40, %s8665_s24  ;;  %v7946_v56 = vpack.i.bf16 %v3795_v9, %v3792_v57  ;;  %v11096_v59 = vsel %vm120_vm0, 0.0, %v3698_v8  ;;  %v3746_v52 = vsel %vm120_vm0, %v3698_v8, 0.0  ;;  %v11112_v6 = vsel %vm231_vm1, %v3835_v31, %v3836_v38 }
 0x5ed   :  { %v3796_v32 = vrot.slane %v11096_v59, 1  ;;  %v3797_v3 = vrot.slane %v3746_v52, 1  ;;  %v3838_v12 = vrot.slane %v11096_v59, 2  ;;  %v3839_v22 = vrot.slane %v3746_v52, 2 }
 0x5ee   :  { %7947 = vrot.lane.b32.xlu0 %v7946_v56, %s8666_s25  ;;  %v7951_v26 = vpack.i.bf16 %v11096_v59, %v11087_v46 }
 0x5ef   :  { %v3798_v7 = vsel %vm185_vm2, %v3796_v32, %v3797_v3  ;;  %v11108_v57 = vsel %vm231_vm1, %v3838_v12, %v3839_v22 }
 0x5f0   :  { %7952 = vrot.lane.b32.xlu1 %v7951_v26, %s8662_s17  ;;  %v7956_v39 = vpack.i.bf16 %v3798_v7, %v3795_v9  ;;  %v7966_v62 = vpack.i.bf16 %v11108_v57, %v11112_v6 }
 0x5f2   :  { %7957 = vrot.lane.b32.xlu0 %v7956_v39, %s8664_s1 }
 0x5f4   :  { %7962 = vrot.lane.b32.xlu1 %v7956_v39, %s8656_s22 }
 0x5f6   :  { %7967 = vrot.lane.b32.xlu0 %v7966_v62, %s8663_s26 }
 0x5f8   :  { %7972 = vrot.lane.b32.xlu1 %v7966_v62, %s8660_s27 }
 0x616   :  { %v3551_v47 = vpop.f32.mrb[40].mxu1 }
 0x617   :  { %v3552_v1 = vadd.f32 %v11019_v49, %v3551_v47  ;;  %v3553_v17 = vpop.f32.mrb[41].mxu1 }
 0x619   :  { %vm3614_vm6 = vcmp.ge.f32.partialorder %v3552_v1, 0.0  ;;  %v3630_v63 = vmul.f32 0.2, %v3552_v1 }
 0x61a   :  { %v3556_v54 = vpop.f32.mrb[42].mxu1 }
 0x61b   :  { %v3646_v19 = vsel %vm3614_vm6, %v3552_v1, %v3630_v63  ;;  %v3557_v43 = vadd.f32 %v11019_v49, %v3556_v54  ;;  %v3558_v45 = vpop.f32.mrb[43].mxu1 }
 0x61c   :  { %v3699_v50 = vrot.slane %v3646_v19, 7 }
 0x61d   :  { %vm3615_vm8 = vcmp.ge.f32.partialorder %v3557_v43, 0.0  ;;  %v3631_v51 = vmul.f32 0.2, %v3557_v43 }
 0x61e   :  { %v11122_v15 = vsel %vm120_vm0, 0.0, %v3699_v50  ;;  %v3747_v24 = vsel %vm120_vm0, %v3699_v50, 0.0 }
 0x61f   :  { %v3799_v53 = vrot.slane %v11122_v15, 1  ;;  %v3800_v60 = vrot.slane %v3747_v24, 1  ;;  %v3647_v36 = vsel %vm3615_vm8, %v3557_v43, %v3631_v51  ;;  %v7976_v33 = vpack.i.bf16 %v11122_v15, %v11096_v59 }
 0x620   :  { %v3700_v18 = vrot.slane %v3647_v36, 7  ;;  %v3841_v32 = vrot.slane %v11122_v15, 2  ;;  %v3842_v3 = vrot.slane %v3747_v24, 2 }
 0x621   :  { %v3801_v55 = vsel %vm185_vm2, %v3799_v53, %v3800_v60  ;;  %7977 = vrot.lane.b32.xlu0 %v7976_v33, %s8665_s24 }
 0x622   :  { %v7981_v4 = vpack.i.bf16 %v3801_v55, %v3798_v7  ;;  %v11131_v34 = vsel %vm120_vm0, 0.0, %v3700_v18  ;;  %v3748_v61 = vsel %vm120_vm0, %v3700_v18, 0.0  ;;  %v11147_v31 = vsel %vm231_vm1, %v3841_v32, %v3842_v3 }
 0x623   :  { %v3802_v40 = vrot.slane %v11131_v34, 1  ;;  %v3803_v8 = vrot.slane %v3748_v61, 1  ;;  %v3844_v9 = vrot.slane %v11131_v34, 2  ;;  %v3845_v56 = vrot.slane %v3748_v61, 2 }
 0x624   :  { %7982 = vrot.lane.b32.xlu1 %v7981_v4, %s8666_s25  ;;  %v7986_v52 = vpack.i.bf16 %v11131_v34, %v11122_v15 }
 0x625   :  { %v3804_v12 = vsel %vm185_vm2, %v3802_v40, %v3803_v8  ;;  %v11143_v26 = vsel %vm231_vm1, %v3844_v9, %v3845_v56 }
 0x626   :  { %7987 = vrot.lane.b32.xlu0 %v7986_v52, %s8662_s17  ;;  %v7991_v22 = vpack.i.bf16 %v3804_v12, %v3801_v55  ;;  %v8001_v38 = vpack.i.bf16 %v11143_v26, %v11147_v31 }
 0x628   :  { %7992 = vrot.lane.b32.xlu1 %v7991_v22, %s8664_s1 }
 0x62a   :  { %7997 = vrot.lane.b32.xlu0 %v7991_v22, %s8656_s22 }
 0x62c   :  { %8002 = vrot.lane.b32.xlu1 %v8001_v38, %s8663_s26 }
 0x62e   :  { %8007 = vrot.lane.b32.xlu0 %v8001_v38, %s8660_s27 }
 0x637   :  { %v3561_v7 = vpop.f32.mrb[44].mxu1 }
 0x638   :  { %v3562_v39 = vadd.f32 %v11019_v49, %v3561_v7  ;;  %v3563_v62 = vpop.f32.mrb[45].mxu1 }
 0x63a   :  { %vm3616_vm9 = vcmp.ge.f32.partialorder %v3562_v39, 0.0  ;;  %v3632_v47 = vmul.f32 0.2, %v3562_v39 }
 0x63b   :  { %v3566_v1 = vpop.f32.mrb[46].mxu1 }
 0x63c   :  { %v3648_v17 = vsel %vm3616_vm9, %v3562_v39, %v3632_v47  ;;  %v3567_v63 = vadd.f32 %v11019_v49, %v3566_v1  ;;  %v3568_v54 = vpop.f32.mrb[47].mxu1 }
 0x63d   :  { %v3701_v19 = vrot.slane %v3648_v17, 7 }
 0x63e   :  { %vm3617_vm10 = vcmp.ge.f32.partialorder %v3567_v63, 0.0  ;;  %v3633_v43 = vmul.f32 0.2, %v3567_v63 }
 0x63f   :  { %v11157_v45 = vsel %vm120_vm0, 0.0, %v3701_v19  ;;  %v3749_v50 = vsel %vm120_vm0, %v3701_v19, 0.0  ;;  %v3571_v53 = vpop.f32.mrb[48].mxu1 }
 0x640   :  { %v3805_v51 = vrot.slane %v11157_v45, 1  ;;  %v3806_v24 = vrot.slane %v3749_v50, 1  ;;  %v3649_v60 = vsel %vm3617_vm10, %v3567_v63, %v3633_v43  ;;  %v3572_v36 = vadd.f32 %v11019_v49, %v3571_v53  ;;  %v3573_v33 = vpop.f32.mrb[49].mxu1 }
 0x641   :  { %v8011_v18 = vpack.i.bf16 %v11157_v45, %v11131_v34  ;;  %v3702_v55 = vrot.slane %v3649_v60, 7  ;;  %v3847_v7 = vrot.slane %v11157_v45, 2 }
 0x642   :  { %v3807_v4 = vsel %vm185_vm2, %v3805_v51, %v3806_v24  ;;  %vm3618_vm14 = vcmp.ge.f32.partialorder %v3572_v36, 0.0  ;;  %v3634_v61 = vmul.f32 0.2, %v3572_v36 }
 0x643   :  { %8012 = vrot.lane.b32.xlu1 %v8011_v18, %s8665_s24  ;;  %v8016_v40 = vpack.i.bf16 %v3807_v4, %v3804_v12  ;;  %v11167_v8 = vsel %vm120_vm0, 0.0, %v3702_v55  ;;  %v3750_v9 = vsel %vm120_vm0, %v3702_v55, 0.0  ;;  %v3848_v12 = vrot.slane %v3749_v50, 2 }
 0x644   :  { %v3875_v56 = vrot.slane %v11167_v8, 1  ;;  %v3876_v52 = vrot.slane %v3750_v9, 1  ;;  %v3881_v32 = vrot.slane %v11167_v8, 2  ;;  %v3882_v3 = vrot.slane %v3750_v9, 2 }
 0x645   :  { %8017 = vrot.lane.b32.xlu0 %v8016_v40, %s8666_s25  ;;  %v3650_v22 = vsel %vm3618_vm14, %v3572_v36, %v3634_v61  ;;  %v8021_v38 = vpack.i.bf16 %v11167_v8, %v11157_v45  ;;  %v11192_v51 = vsel %vm231_vm1, %v3847_v7, %v3848_v12 }
 0x646   :  { %v3703_v39 = vrot.slane %v3650_v22, 7  ;;  %v11177_v62 = vsel %vm185_vm2, %v3875_v56, %v3876_v52  ;;  %v11186_v63 = vsel %vm231_vm1, %v3881_v32, %v3882_v3 }
 0x647   :  { %8022 = vrot.lane.b32.xlu1 %v8021_v38, %s8662_s17  ;;  %v8026_v47 = vpack.i.bf16 %v11177_v62, %v3807_v4  ;;  %v8031_v24 = vpack.i.bf16 %v11186_v63, %v11192_v51 }
 0x648   :  { %v11182_v1 = vsel %vm120_vm0, 0.0, %v3703_v39  ;;  %v3751_v17 = vsel %vm120_vm0, %v3703_v39, 0.0 }
 0x649   :  { %v3808_v54 = vrot.slane %v11182_v1, 1  ;;  %v3809_v19 = vrot.slane %v3751_v17, 1  ;;  %v3850_v43 = vrot.slane %v11182_v1, 2  ;;  %v3851_v50 = vrot.slane %v3751_v17, 2  ;;  %8027 = vrot.lane.b32.xlu0 %v8026_v47, %s8664_s1 }
 0x64b   :  { %v11197_v53 = vsel %vm185_vm2, %v3808_v54, %v3809_v19  ;;  %v11202_v36 = vsel %vm231_vm1, %v3850_v43, %v3851_v50 }
 0x64c   :  { %v8036_v60 = vpack.i.bf16 %v11197_v53, %v3807_v4  ;;  %v8041_v33 = vpack.i.bf16 %v11202_v36, %v11192_v51 }
 0x64d   :  { %8032 = vrot.lane.b32.xlu0 %v8031_v24, %s8663_s26 }
 0x64e   :  { %8037 = vrot.lane.b32.xlu1 %v8036_v60, %s8656_s22 }
 0x652   :  { %8042 = vrot.lane.b32.xlu1 %v8041_v33, %s8660_s27  ;;  %v3576_v18 = vpop.f32.mrb[50].mxu1 }
 0x653   :  { %v7918_v55 = vpop.permute.xlu0 %7917  ;;  %v3577_v61 = vadd.f32 %v11019_v49, %v3576_v18  ;;  %v3578_v40 = vpop.f32.mrb[51].mxu1 }
 0x654   :  { %v7919_v56 = vunpack.i.l.bf16 %v7918_v55  ;;  %v7920_v19 = vunpack.i.h.bf16 %v7918_v55 }
 0x655   :  { %vm3619_vm15 = vcmp.ge.f32.partialorder %v3577_v61, 0.0  ;;  %v3635_v9 = vmul.f32 0.2, %v3577_v61 }
 0x656   :  { %v7923_v4 = vpop.permute.xlu1 %7922  ;;  %v4227_v43 = vsel %vm1626_vm12, %v9545_v48, %v7919_v56 }
 0x657   :  { %v11209_v52 = vpop.permute.xlu0 %7927  ;;  %v3651_v32 = vsel %vm3619_vm15, %v3577_v61, %v3635_v9  ;;  %v7924_v7 = vunpack.i.l.bf16 %v7923_v4  ;;  %v7925_v18 = vunpack.i.h.bf16 %v7923_v4 }
 0x658   :  { %v3704_v3 = vrot.slane %v3651_v32, 7  ;;  %v3581_v22 = vpop.f32.mrb[52].mxu1  ;;  %v7929_v39 = vunpack.i.l.bf16 %v11209_v52 }
 0x659   :  { %v3582_v38 = vadd.f32 %v11019_v49, %v3581_v22  ;;  %v3583_v12 = vpop.f32.mrb[53].mxu1  ;;  %v4243_v32 = vsel %vm1643_vm13, %v4227_v43, %v7924_v7 }
 0x65a   :  { %v7933_v47 = vpop.permute.xlu1 %7932  ;;  %v11214_v17 = vsel %vm120_vm0, 0.0, %v3704_v3  ;;  %v3752_v54 = vsel %vm120_vm0, %v3704_v3, 0.0  ;;  %v4199_v55 = vsel %vm711_vm7, %v11039_v10, %v7929_v39 }
 0x65b   :  { %v11219_v50 = vpop.permute.xlu0 %7937  ;;  %v3811_v24 = vrot.slane %v11214_v17, 1  ;;  %v3812_v60 = vrot.slane %v3752_v54, 1  ;;  %v3853_v33 = vrot.slane %v11214_v17, 2  ;;  %v3854_v61 = vrot.slane %v3752_v54, 2 }
 0x65c   :  { %vm3620_vm6 = vcmp.ge.f32.partialorder %v3582_v38, 0.0  ;;  %v3636_v40 = vmul.f32 0.2, %v3582_v38  ;;  %v8046_v9 = vpack.i.bf16 %v11214_v17, %v11167_v8  ;;  %v7939_v56 = vunpack.i.l.bf16 %v11219_v50 }
 0x65d   :  { %v3813_v3 = vsel %vm185_vm2, %v3811_v24, %v3812_v60  ;;  %v7935_v12 = vunpack.i.h.bf16 %v7933_v47  ;;  %v7934_v28 = vunpack.i.l.bf16 %v7933_v47  ;;  %v8051_v10 = vpack.i.bf16 %v11214_v17, %v11182_v1 }
 0x65e   :  { %v3652_v22 = vsel %vm3620_vm6, %v3582_v38, %v3636_v40  ;;  %8047 = vrot.lane.b32.xlu0 %v8046_v9, %s8665_s24  ;;  %v8056_v4 = vpack.i.bf16 %v3813_v3, %v11177_v62  ;;  %v8061_v54 = vpack.i.bf16 %v3813_v3, %v11197_v53  ;;  %v4213_v8 = vsel %vm779_vm11, %v4199_v55, %v7939_v56  ;;  %v7943_v7 = vpop.permute.xlu1 %7942 }
 0x65f   :  { %v3705_v5 = vrot.slane %v3652_v22, 7  ;;  %v4228_v39 = vsel %vm1626_vm12, %v4213_v8, %v7920_v19  ;;  %v3586_v43 = vpop.f32.mrb[54].mxu1  ;;  %v7945_v38 = vunpack.i.h.bf16 %v7943_v7  ;;  %v7944_v24 = vunpack.i.l.bf16 %v7943_v7 }
 0x660   :  { %8057 = vrot.lane.b32.xlu1 %v8056_v4, %s8666_s25  ;;  %v11239_v60 = vsel %vm231_vm1, %v3853_v33, %v3854_v61  ;;  %v3587_v47 = vadd.f32 %v11019_v49, %v3586_v43  ;;  %v3588_v40 = vpop.f32.mrb[55].mxu1  ;;  %v7948_v9 = vpop.permute.xlu0 %7947  ;;  %v4244_v55 = vsel %vm1643_vm13, %v4228_v39, %v7925_v18  ;;  %v4259_v33 = vsel %vm1660_vm3, %v4243_v32, %v7934_v28 }
 0x661   :  { %v11242_v62 = vsel %vm120_vm0, 0.0, %v3705_v5  ;;  %v3753_v53 = vsel %vm120_vm0, %v3705_v5, 0.0  ;;  %v7949_v8 = vunpack.i.l.bf16 %v7948_v9  ;;  %v8066_v5 = vpack.i.bf16 %v11239_v60, %v11202_v36 }
 0x662   :  { %v3814_v19 = vrot.slane %v11242_v62, 1  ;;  %v3815_v56 = vrot.slane %v3753_v53, 1  ;;  %v3856_v22 = vrot.slane %v11242_v62, 2  ;;  %v3857_v4 = vrot.slane %v3753_v53, 2  ;;  %8052 = vrot.lane.b32.xlu0 %v8051_v10, %s8662_s17 }
 0x663   :  { %vm3621_vm8 = vcmp.ge.f32.partialorder %v3587_v47, 0.0  ;;  %v3637_v61 = vmul.f32 0.2, %v3587_v47  ;;  %v4275_v18 = vsel %vm1677_vm4, %v4259_v33, %v7944_v24  ;;  %v4260_v39 = vsel %vm1660_vm3, %v4244_v55, %v7935_v12 }
 0x664   :  { %8062 = vrot.lane.b32.xlu1 %v8061_v54, %s8664_s1  ;;  %v3816_v7 = vsel %vm185_vm2, %v3814_v19, %v3815_v56  ;;  %v7950_v53 = vunpack.i.h.bf16 %v7948_v9  ;;  %v4291_v10 = vsel %vm1694_vm5, %v4275_v18, %v7949_v8  ;;  %v11259_v28 = vsel %vm231_vm1, %v3856_v22, %v3857_v4 }
 0x665   :  { %v3653_v43 = vsel %vm3621_vm8, %v3587_v47, %v3637_v61  ;;  %4406 = vmatmul.mubr.f32.vlgmr.msra.gmra.mrb[48].mxu0 %v4291_v10  ;;  %v8071_v54 = vpack.i.bf16 %v3816_v7, %v3813_v3  ;;  %v4276_v36 = vsel %vm1677_vm4, %v4260_v39, %v7945_v38  ;;  %v3591_v40 = vpop.f32.mrb[56].mxu1  ;;  %v8076_v55 = vpack.i.bf16 %v11259_v28, %v11239_v60 }
 0x666   :  { %v3706_v32 = vrot.slane %v3653_v43, 7  ;;  %8067 = vrot.lane.b32.xlu0 %v8066_v5, %s8663_s26  ;;  %6731 = vmatprep.mubr.msk.f32.mxu0 %vm711_vm7, %v11112_v6  ;;  %v3592_v47 = vadd.f32 %v11019_v49, %v3591_v40  ;;  %v3593_v9 = vpop.f32.mrb[57].mxu1  ;;  %v4292_v19 = vsel %vm1694_vm5, %v4276_v36, %v7950_v53 }
 0x668   :  { %v11266_v12 = vsel %vm120_vm0, 0.0, %v3706_v32  ;;  %v3754_v24 = vsel %vm120_vm0, %v3706_v32, 0.0  ;;  %8072 = vrot.lane.b32.xlu1 %v8071_v54, %s8656_s22  ;;  %vm3622_vm9 = vcmp.ge.f32.partialorder %v3592_v47, 0.0  ;;  %v3638_v6 = vmul.f32 0.2, %v3592_v47 }
 0x669   :  { %v3817_v3 = vrot.slane %v11266_v12, 1  ;;  %v3818_v38 = vrot.slane %v3754_v24, 1  ;;  %4411 = vmatmul.mubr.f32.gmra.mrb[50].mxu0 %v4292_v19  ;;  %v3859_v56 = vrot.slane %v11266_v12, 2  ;;  %v3860_v22 = vrot.slane %v3754_v24, 2 }
 0x66a   :  { %8077 = vrot.lane.b32.xlu0 %v8076_v55, %s8660_s27  ;;  %6732 = vmatprep.mubr.msk.f32.mxu0 %vm711_vm7, %v11108_v57  ;;  %v8081_v4 = vpack.i.bf16 %v11266_v12, %v11242_v62  ;;  %v3654_v33 = vsel %vm3622_vm9, %v3592_v47, %v3638_v6 }
 0x66b   :  { %v3819_v61 = vsel %vm185_vm2, %v3817_v3, %v3818_v38  ;;  %v3707_v8 = vrot.slane %v3654_v33, 7  ;;  %v11289_v57 = vsel %vm231_vm1, %v3859_v56, %v3860_v22 }
 0x66c   :  { %8082 = vrot.lane.b32.xlu1 %v8081_v4, %s8665_s24  ;;  %v8091_v5 = vpack.i.bf16 %v3819_v61, %v3816_v7  ;;  %v8101_v47 = vpack.i.bf16 %v11289_v57, %v11259_v28 }
 0x66d   :  { %v11285_v18 = vsel %vm120_vm0, 0.0, %v3707_v8  ;;  %v3755_v39 = vsel %vm120_vm0, %v3707_v8, 0.0 }
 0x66e   :  { %8087 = vrot.lane.b32.xlu0 %v8081_v4, %s8662_s17  ;;  %v3820_v53 = vrot.slane %v11285_v18, 1  ;;  %v3821_v10 = vrot.slane %v3755_v39, 1  ;;  %v3862_v32 = vrot.slane %v11285_v18, 2  ;;  %v3863_v54 = vrot.slane %v3755_v39, 2 }
 0x66f   :  { %v3596_v43 = vpop.f32.mrb[58].mxu1 }
 0x670   :  { %v3598_v36 = vpop.f32.mrb[59].mxu1  ;;  %v3597_v40 = vadd.f32 %v11019_v49, %v3596_v43  ;;  %8092 = vrot.lane.b32.xlu1 %v8091_v5, %s8666_s25  ;;  %v3822_v7 = vsel %vm185_vm2, %v3820_v53, %v3821_v10  ;;  %v11300_v3 = vsel %vm231_vm1, %v3862_v32, %v3863_v54 }
 0x671   :  { %v8106_v9 = vpack.i.bf16 %v3822_v7, %v3819_v61  ;;  %v8111_v4 = vpack.i.bf16 %v11300_v3, %v11289_v57 }
 0x672   :  { %8097 = vrot.lane.b32.xlu0 %v8091_v5, %s8664_s1  ;;  %vm3623_vm10 = vcmp.ge.f32.partialorder %v3597_v40, 0.0  ;;  %v3639_v24 = vmul.f32 0.2, %v3597_v40 }
 0x673   :  { %v3601_v55 = vpop.f32.mrb[60].mxu1 }
 0x674   :  { %v3655_v38 = vsel %vm3623_vm10, %v3597_v40, %v3639_v24  ;;  %v3602_v19 = vadd.f32 %v11019_v49, %v3601_v55  ;;  %v3603_v6 = vpop.f32.mrb[61].mxu1  ;;  %8102 = vrot.lane.b32.xlu1 %v8101_v47, %s8663_s26 }
 0x675   :  { %v3708_v56 = vrot.slane %v3655_v38, 7  ;;  %v7953_v6 = vpop.permute.xlu1 %7952 }
 0x676   :  { %8107 = vrot.lane.b32.xlu0 %v8106_v9, %s8656_s22  ;;  %vm3624_vm14 = vcmp.ge.f32.partialorder %v3602_v19, 0.0  ;;  %v3640_v22 = vmul.f32 0.2, %v3602_v19 }
 0x677   :  { %v11308_v33 = vsel %vm120_vm0, 0.0, %v3708_v56  ;;  %v3756_v61 = vsel %vm120_vm0, %v3708_v56, 0.0  ;;  %v3606_v8 = vpop.f32.mrb[62].mxu1 }
 0x678   :  { %v3823_v5 = vrot.slane %v11308_v33, 1  ;;  %v3824_v39 = vrot.slane %v3756_v61, 1  ;;  %v3608_v43 = vpop.f32.mrb[63].mxu1  ;;  %8112 = vrot.lane.b32.xlu1 %v8111_v4, %s8660_s27  ;;  %v3865_v53 = vrot.slane %v11308_v33, 2  ;;  %v3656_v10 = vsel %vm3624_vm14, %v3602_v19, %v3640_v22 }
 0x679   :  { %v3607_v32 = vadd.f32 %v11019_v49, %v3606_v8  ;;  %v8116_v54 = vpack.i.bf16 %v11308_v33, %v11285_v18  ;;  %v3866_v36 = vrot.slane %v3756_v61, 2  ;;  %v3709_v40 = vrot.slane %v3656_v10, 7  ;;  %v11338_v10 = vpop.permute.xlu1 %7962 }
 0x67a   :  { %v3825_v24 = vsel %vm185_vm2, %v3823_v5, %v3824_v39  ;;  %vm6616_vm14 = vcmask 256000  }
 0x67b   :  { %8117 = vrot.lane.b32.xlu0 %v8116_v54, %s8665_s24  ;;  %v8126_v47 = vpack.i.bf16 %v3825_v24, %v3822_v7  ;;  %v11320_v9 = vsel %vm120_vm0, 0.0, %v3709_v40  ;;  %v3757_v55 = vsel %vm120_vm0, %v3709_v40, 0.0  ;;  %v3641_v38 = vmul.f32 0.2, %v3607_v32 }
 0x67c   :  { %8122 = vrot.lane.b32.xlu1 %v8116_v54, %s8662_s17  ;;  %v3826_v49 = vrot.slane %v11320_v9, 1  ;;  %v3827_v19 = vrot.slane %v3757_v55, 1  ;;  %vm3625_vm15 = vcmp.ge.f32.partialorder %v3607_v32, 0.0  ;;  %v3868_v56 = vrot.slane %v11320_v9, 2  ;;  %v7958_v54 = vpop.permute.xlu0 %7957 }
 0x67d   :  { %v3869_v22 = vrot.slane %v3757_v55, 2  ;;  %v11327_v4 = vsel %vm231_vm1, %v3865_v53, %v3866_v36  ;;  %v3657_v61 = vsel %vm3625_vm15, %v3607_v32, %v3641_v38  ;;  %v11346_v36 = vpop.permute.xlu1 %7972  ;;  %v7940_v55 = vunpack.i.h.bf16 %v11219_v50 }
 0x67e   :  { %v3828_v7 = vsel %vm185_vm2, %v3826_v49, %v3827_v19  ;;  %v8136_v5 = vpack.i.bf16 %v11327_v4, %v11300_v3  ;;  %v3710_v43 = vrot.slane %v3657_v61, 7  ;;  %v7964_v38 = vunpack.i.l.bf16 %v11338_v10 }
 0x67f   :  { %8127 = vrot.lane.b32.xlu0 %v8126_v47, %s8666_s25  ;;  %v8141_v8 = vpack.i.bf16 %v3828_v7, %v3825_v24  ;;  %v11335_v39 = vsel %vm231_vm1, %v3868_v56, %v3869_v22  ;;  %v7930_v24 = vunpack.i.h.bf16 %v11209_v52  ;;  %v7954_v49 = vunpack.i.l.bf16 %v7953_v6 }
 0x680   :  { %8132 = vrot.lane.b32.xlu1 %v8126_v47, %s8664_s1  ;;  %v8146_v53 = vpack.i.bf16 %v11335_v39, %v11327_v4  ;;  %v3742_v32 = vsel %vm120_vm0, 0.0, %v3710_v43  ;;  %v3758_v47 = vsel %vm120_vm0, %v3710_v43, 0.0  ;;  %v7974_v19 = vunpack.i.l.bf16 %v11346_v36 }
 0x681   :  { %v8151_v40 = vpack.i.bf16 %v3742_v32, %v11320_v9  ;;  %v3878_v56 = vrot.slane %v3742_v32, 1  ;;  %v3879_v22 = vrot.slane %v3758_v47, 1  ;;  %v4200_v61 = vsel %vm711_vm7, %v11052_v44, %v7930_v24 }
 0x682   :  { %v4214_v52 = vsel %vm779_vm11, %v4200_v61, %v7940_v55  ;;  %v4201_v50 = vsel %vm711_vm7, %v11087_v46, %v7964_v38  ;;  %v7959_v43 = vunpack.i.l.bf16 %v7958_v54  ;;  %v3884_v24 = vrot.slane %v3742_v32, 2 }
 0x683   :  { %8137 = vrot.lane.b32.xlu0 %v8136_v5, %s8663_s26  ;;  %v4229_v5 = vsel %vm1626_vm12, %v4214_v52, %v7954_v49  ;;  %v3880_v44 = vsel %vm185_vm2, %v3878_v56, %v3879_v22  ;;  %v3885_v21 = vrot.slane %v3758_v47, 2  ;;  %v7960_v38 = vunpack.i.h.bf16 %v7958_v54 }
 0x684   :  { %8142 = vrot.lane.b32.xlu1 %v8141_v8, %s8656_s22  ;;  %v7968_v8 = vpop.permute.xlu0 %7967 }
 0x685   :  { %v7969_v0 = vunpack.i.l.bf16 %v7968_v8  ;;  %v11372_v61 = vsel %vm231_vm1, %v3884_v24, %v3885_v21  ;;  %v7970_v52 = vunpack.i.h.bf16 %v7968_v8 }
 0x687   :  { %8147 = vrot.lane.b32.xlu0 %v8146_v53, %s8660_s27  ;;  %v4215_v53 = vsel %vm779_vm11, %v4201_v50, %v7974_v19 }
 0x688   :  { %4181 = vrot.lane.b32.xlu1 %v3828_v7, %s8666_s25 }
 0x68b   :  { %4047 = vrot.lane.b32.xlu0 %v3828_v7, %s8664_s1  ;;  %v7955_v7 = vunpack.i.h.bf16 %v7953_v6  ;;  %v4245_v6 = vsel %vm1643_vm13, %v4229_v5, %v7959_v43 }
 0x68c   :  { %8152 = vrot.lane.b32.xlu1 %v8151_v40, %s8665_s24  ;;  %v4261_v56 = vsel %vm1660_vm3, %v4245_v6, %v7969_v0 }
 0x68d   :  { %v4230_v55 = vsel %vm1626_vm12, %v4215_v53, %v7955_v7 }
 0x68e   :  { %v4246_v22 = vsel %vm1643_vm13, %v4230_v55, %v7960_v38 }
 0x68f   :  { %8157 = vrot.lane.b32.xlu0 %v8151_v40, %s8662_s17  ;;  %v4262_v21 = vsel %vm1660_vm3, %v4246_v22, %v7970_v52 }
 0x690   :  { %4095 = vrot.lane.b32.xlu1 %v11335_v39, %s8663_s26 }
 0x693   :  { %4183 = vrot.lane.b32.xlu0 %v3880_v44, %s8666_s25  ;;  %v7978_v40 = vpop.permute.xlu0 %7977 }
 0x694   :  { %4049 = vrot.lane.b32.xlu1 %v3880_v44, %s8664_s1  ;;  %v7979_v46 = vunpack.i.l.bf16 %v7978_v40  ;;  %v7980_v32 = vunpack.i.h.bf16 %v7978_v40  ;;  %v7965_v40 = vunpack.i.h.bf16 %v11338_v10 }
 0x696   :  { %v7983_v49 = vpop.permute.xlu1 %7982  ;;  %v4277_v47 = vsel %vm1677_vm4, %v4261_v56, %v7979_v46  ;;  %v4278_v0 = vsel %vm1677_vm4, %v4262_v21, %v7980_v32 }
 0x697   :  { %v7984_v19 = vunpack.i.l.bf16 %v7983_v49  ;;  %4097 = vrot.lane.b32.xlu0 %v11372_v61, %s8663_s26  ;;  %v7985_v50 = vunpack.i.h.bf16 %v7983_v49 }
 0x698   :  { %v7988_v5 = vpop.permute.xlu0 %7987 }
 0x699   :  { %v4293_v54 = vsel %vm1694_vm5, %v4277_v47, %v7984_v19  ;;  %v4294_v7 = vsel %vm1694_vm5, %v4278_v0, %v7985_v50  ;;  %v7989_v46 = vunpack.i.l.bf16 %v7988_v5  ;;  %v7990_v19 = vunpack.i.h.bf16 %v7988_v5 }
 0x69a   :  { %4416 = vmatmul.mubr.f32.gmra.mrb[52].mxu0 %v4293_v54  ;;  %v7993_v8 = vpop.permute.xlu1 %7992 }
 0x69b   :  { %6733 = vmatprep.mubr.msk.f32.mxu0 %vm711_vm7, %v11147_v31  ;;  %v7975_v31 = vunpack.i.h.bf16 %v11346_v36  ;;  %v7994_v6 = vunpack.i.l.bf16 %v7993_v8  ;;  %v7995_v52 = vunpack.i.h.bf16 %v7993_v8 }
 0x69c   :  { %v7998_v43 = vpop.permute.xlu0 %7997 }
 0x69d   :  { %v7999_v44 = vunpack.i.l.bf16 %v7998_v43 }
 0x69e   :  { %4421 = vmatmul.mubr.f32.gmra.mrb[54].mxu0 %v4294_v7  ;;  %v8003_v55 = vpop.permute.xlu1 %8002 }
 0x69f   :  { %6734 = vmatprep.mubr.msk.f32.mxu0 %vm711_vm7, %v11143_v26  ;;  %v4203_v38 = vsel %vm711_vm7, %v11122_v15, %v7999_v44  ;;  %v4202_v26 = vsel %vm711_vm7, %v11096_v59, %v7965_v40  ;;  %v8004_v56 = vunpack.i.l.bf16 %v8003_v55  ;;  %v8005_v5 = vunpack.i.h.bf16 %v8003_v55 }
 0x6a0   :  { %v8008_v53 = vpop.permute.xlu0 %8007  ;;  %v4216_v32 = vsel %vm779_vm11, %v4202_v26, %v7975_v31 }
 0x6a1   :  { %v8009_v24 = vunpack.i.l.bf16 %v8008_v53  ;;  %v4231_v10 = vsel %vm1626_vm12, %v4216_v32, %v7989_v46 }
 0x6a2   :  { %v4247_v50 = vsel %vm1643_vm13, %v4231_v10, %v7994_v6 }
 0x6a3   :  { %v4217_v49 = vsel %vm779_vm11, %v4203_v38, %v8009_v24  ;;  %v4263_v21 = vsel %vm1660_vm3, %v4247_v50, %v8004_v56  ;;  %v8000_v56 = vunpack.i.h.bf16 %v7998_v43 }
 0x6a4   :  { %v4232_v36 = vsel %vm1626_vm12, %v4217_v49, %v7990_v19 }
 0x6a5   :  { %v4248_v7 = vsel %vm1643_vm13, %v4232_v36, %v7995_v52 }
 0x6a6   :  { %v4264_v8 = vsel %vm1660_vm3, %v4248_v7, %v8005_v5 }
 0x6b5   :  { %v8013_v47 = vpop.permute.xlu1 %8012 }
 0x6b6   :  { %v8014_v22 = vunpack.i.l.bf16 %v8013_v47  ;;  %v8015_v0 = vunpack.i.h.bf16 %v8013_v47  ;;  %v8010_v47 = vunpack.i.h.bf16 %v8008_v53 }
 0x6b7   :  { %v8018_v15 = vpop.permute.xlu0 %8017 }
 0x6b8   :  { %v8019_v54 = vunpack.i.l.bf16 %v8018_v15  ;;  %v4279_v59 = vsel %vm1677_vm4, %v4263_v21, %v8014_v22  ;;  %v8020_v44 = vunpack.i.h.bf16 %v8018_v15  ;;  %v4280_v31 = vsel %vm1677_vm4, %v4264_v8, %v8015_v0 }
 0x6b9   :  { %v8023_v40 = vpop.permute.xlu1 %8022 }
 0x6ba   :  { %v4295_v24 = vsel %vm1694_vm5, %v4279_v59, %v8019_v54  ;;  %v4296_v46 = vsel %vm1694_vm5, %v4280_v31, %v8020_v44  ;;  %v8025_v32 = vunpack.i.h.bf16 %v8023_v40  ;;  %v8024_v36 = vunpack.i.l.bf16 %v8023_v40 }
 0x6bb   :  { %4426 = vmatmul.mubr.f32.gmra.mrb[56].mxu0 %v4295_v24  ;;  %v8028_v49 = vpop.permute.xlu0 %8027 }
 0x6bc   :  { %6735 = vmatprep.mubr.msk.f32.mxu0 %vm711_vm7, %v11192_v51  ;;  %v8030_v52 = vunpack.i.h.bf16 %v8028_v49  ;;  %v8029_v50 = vunpack.i.l.bf16 %v8028_v49 }
 0x6bf   :  { %4431 = vmatmul.mubr.f32.gmra.mrb[58].mxu0 %v4296_v46  ;;  %v8033_v10 = vpop.permute.xlu0 %8032 }
 0x6c0   :  { %6736 = vmatprep.mubr.msk.f32.mxu0 %vm711_vm7, %v11186_v63  ;;  %v8038_v38 = vpop.permute.xlu1 %8037  ;;  %v4204_v63 = vsel %vm711_vm7, %v11131_v34, %v8000_v56  ;;  %v8034_v15 = vunpack.i.l.bf16 %v8033_v10  ;;  %v8035_v43 = vunpack.i.h.bf16 %v8033_v10 }
 0x6c1   :  { %v8039_v6 = vunpack.i.l.bf16 %v8038_v38  ;;  %v4218_v54 = vsel %vm779_vm11, %v4204_v63, %v8010_v47  ;;  %v8040_v47 = vunpack.i.h.bf16 %v8038_v38 }
 0x6c2   :  { %v4233_v0 = vsel %vm1626_vm12, %v4218_v54, %v8024_v36 }
 0x6c3   :  { %v4205_v19 = vsel %vm711_vm7, %v11157_v45, %v8039_v6  ;;  %v4249_v53 = vsel %vm1643_vm13, %v4233_v0, %v8029_v50  ;;  %v4206_v0 = vsel %vm711_vm7, %v11182_v1, %v8040_v47 }
 0x6c4   :  { %v8043_v55 = vpop.permute.xlu1 %8042  ;;  %v4265_v44 = vsel %vm1660_vm3, %v4249_v53, %v8034_v15 }
 0x6c5   :  { %v8044_v26 = vunpack.i.l.bf16 %v8043_v55 }
 0x6c7   :  { %v4219_v51 = vsel %vm779_vm11, %v4205_v19, %v8044_v26 }
 0x6c8   :  { %v4234_v22 = vsel %vm1626_vm12, %v4219_v51, %v8025_v32 }
 0x6c9   :  { %v4250_v45 = vsel %vm1643_vm13, %v4234_v22, %v8030_v52  ;;  %v8045_v22 = vunpack.i.h.bf16 %v8043_v55 }
 0x6ca   :  { %v4266_v24 = vsel %vm1660_vm3, %v4250_v45, %v8035_v43 }
 0x6cb   :  { %v4282_v6 = vsel %vm1677_vm4, %v4266_v24, %v9803_v27 }
 0x6cc   :  { %v4298_v32 = vsel %vm1694_vm5, %v4282_v6, %v9807_v23 }
 0x6d0   :  { %v8048_v21 = vpop.permute.xlu0 %8047 }
 0x6d1   :  { %v8049_v59 = vunpack.i.l.bf16 %v8048_v21  ;;  %v8050_v10 = vunpack.i.h.bf16 %v8048_v21  ;;  %v4220_v21 = vsel %vm779_vm11, %v4206_v0, %v8045_v22 }
 0x6d2   :  { %v8058_v7 = vpop.permute.xlu1 %8057 }
 0x6d3   :  { %v8059_v5 = vunpack.i.l.bf16 %v8058_v7  ;;  %v4281_v34 = vsel %vm1677_vm4, %v4265_v44, %v8049_v59  ;;  %v8060_v50 = vunpack.i.h.bf16 %v8058_v7 }
 0x6d4   :  { %v8053_v8 = vpop.permute.xlu0 %8052 }
 0x6d5   :  { %v8054_v40 = vunpack.i.l.bf16 %v8053_v8  ;;  %v4297_v31 = vsel %vm1694_vm5, %v4281_v34, %v8059_v5  ;;  %v8055_v63 = vunpack.i.h.bf16 %v8053_v8 }
 0x6d6   :  { %v8063_v46 = vpop.permute.xlu1 %8062  ;;  %4436 = vmatmul.mubr.f32.gmra.mrb[60].mxu0 %v4297_v31 }
 0x6d7   :  { %v8064_v49 = vunpack.i.l.bf16 %v8063_v46  ;;  %6737 = vmatprep.mubr.msk.f32.mxu0 %vm711_vm7, %v8770_v16  ;;  %v4235_v26 = vsel %vm1626_vm12, %v9545_v48, %v8054_v40  ;;  %v8065_v45 = vunpack.i.h.bf16 %v8063_v46  ;;  %v4236_v55 = vsel %vm1626_vm12, %v4220_v21, %v8055_v63 }
 0x6d8   :  { %v8068_v19 = vpop.permute.xlu0 %8067 }
 0x6d9   :  { %v4251_v51 = vsel %vm1643_vm13, %v4235_v26, %v8064_v49  ;;  %v8069_v56 = vunpack.i.l.bf16 %v8068_v19  ;;  %v4252_v7 = vsel %vm1643_vm13, %v4236_v55, %v8065_v45 }
 0x6da   :  { %v8073_v36 = vpop.permute.xlu1 %8072  ;;  %4441 = vmatmul.mubr.f32.gmra.mrb[62].mxu0 %v4298_v32 }
 0x6db   :  { %6738 = vmatprep.mubr.msk.f32.mxu0 %vm711_vm7, %v11239_v60  ;;  %v4267_v52 = vsel %vm1660_vm3, %v4251_v51, %v8069_v56  ;;  %v8070_v60 = vunpack.i.h.bf16 %v8068_v19  ;;  %v8074_v59 = vunpack.i.l.bf16 %v8073_v36 }
 0x6dc   :  { %v8078_v15 = vpop.permute.xlu0 %8077  ;;  %v4283_v54 = vsel %vm1677_vm4, %v4267_v52, %v8050_v10 }
 0x6dd   :  { %v4299_v38 = vsel %vm1694_vm5, %v4283_v54, %v8060_v50  ;;  %v8079_v44 = vunpack.i.l.bf16 %v8078_v15  ;;  %v4207_v1 = vsel %vm711_vm7, %v11214_v17, %v8074_v59  ;;  %v4268_v31 = vsel %vm1660_vm3, %v4252_v7, %v8070_v60 }
 0x6de   :  { %v8083_v43 = vpop.permute.xlu1 %8082  ;;  %4446 = vmatmul.mubr.f32.gmra.mrb[64].mxu0 %v4299_v38  ;;  %v8075_v17 = vunpack.i.h.bf16 %v8073_v36  ;;  %v8080_v63 = vunpack.i.h.bf16 %v8078_v15 }
 0x6df   :  { %6739 = vmatprep.mubr.msk.f32.mxu0 %vm711_vm7, %v11259_v28  ;;  %v8084_v5 = vunpack.i.l.bf16 %v8083_v43  ;;  %v4221_v28 = vsel %vm779_vm11, %v4207_v1, %v8079_v44  ;;  %v8085_v32 = vunpack.i.h.bf16 %v8083_v43 }
 0x6e0   :  { %v8088_v53 = vpop.permute.xlu0 %8087  ;;  %v4208_v45 = vsel %vm711_vm7, %v11242_v62, %v8075_v17 }
 0x6e1   :  { %v8089_v8 = vunpack.i.l.bf16 %v8088_v53  ;;  %v4284_v6 = vsel %vm1677_vm4, %v4268_v31, %v8084_v5  ;;  %v8090_v0 = vunpack.i.h.bf16 %v8088_v53  ;;  %v4222_v55 = vsel %vm779_vm11, %v4208_v45, %v8080_v63 }
 0x6e2   :  { %v8093_v24 = vpop.permute.xlu1 %8092 }
 0x6e3   :  { %v8094_v34 = vunpack.i.l.bf16 %v8093_v24  ;;  %v4237_v19 = vsel %vm1626_vm12, %v4221_v28, %v8089_v8  ;;  %v8095_v10 = vunpack.i.h.bf16 %v8093_v24  ;;  %v4238_v15 = vsel %vm1626_vm12, %v4222_v55, %v8090_v0 }
 0x6e4   :  { %v8098_v40 = vpop.permute.xlu0 %8097 }
 0x6e5   :  { %v8099_v46 = vunpack.i.l.bf16 %v8098_v40  ;;  %v4300_v49 = vsel %vm1694_vm5, %v4284_v6, %v8094_v34  ;;  %v8100_v38 = vunpack.i.h.bf16 %v8098_v40 }
 0x6e6   :  { %v8103_v26 = vpop.permute.xlu1 %8102  ;;  %4451 = vmatmul.mubr.f32.gmra.mrb[66].mxu0 %v4300_v49 }
 0x6e7   :  { %v8104_v51 = vunpack.i.l.bf16 %v8103_v26  ;;  %6740 = vmatprep.mubr.msk.f32.mxu0 %vm711_vm7, %v11289_v57  ;;  %v4253_v47 = vsel %vm1643_vm13, %v4237_v19, %v8099_v46  ;;  %v8105_v36 = vunpack.i.h.bf16 %v8103_v26  ;;  %v4254_v5 = vsel %vm1643_vm13, %v4238_v15, %v8100_v38 }
 0x6e8   :  { %v8108_v56 = vpop.permute.xlu0 %8107 }
 0x6e9   :  { %v4269_v22 = vsel %vm1660_vm3, %v4253_v47, %v8104_v51  ;;  %v8109_v21 = vunpack.i.l.bf16 %v8108_v56  ;;  %v8110_v49 = vunpack.i.h.bf16 %v8108_v56 }
 0x6ea   :  { %v8113_v52 = vpop.permute.xlu1 %8112  ;;  %v4285_v50 = vsel %vm1677_vm4, %v4269_v22, %v8085_v32 }
 0x6eb   :  { %v4301_v54 = vsel %vm1694_vm5, %v4285_v50, %v8095_v10  ;;  %v8114_v60 = vunpack.i.l.bf16 %v8113_v52  ;;  %v4209_v53 = vsel %vm711_vm7, %v11266_v12, %v8109_v21  ;;  %v8115_v26 = vunpack.i.h.bf16 %v8113_v52 }
 0x6ec   :  { %4456 = vmatmul.mubr.f32.gmra.mrb[68].mxu0 %v4301_v54  ;;  %v4210_v50 = vsel %vm711_vm7, %v11285_v18, %v8110_v49 }
 0x6ed   :  { %v8118_v57 = vpop.permute.xlu0 %8117  ;;  %6741 = vmatprep.mubr.msk.f32.mxu0 %vm711_vm7, %v11300_v3  ;;  %v4270_v3 = vsel %vm1660_vm3, %v4254_v5, %v8105_v36  ;;  %v4223_v1 = vsel %vm779_vm11, %v4209_v53, %v8114_v60  ;;  %v4224_v54 = vsel %vm779_vm11, %v4210_v50, %v8115_v26  ;;  %v11512_v26 = vld [vmem:[%s12730_s6 + $0x1] ss:$0 sm:$0xff] }
 0x6ee   :  { %v8123_v43 = vpop.permute.xlu1 %8122  ;;  %v8119_v59 = vunpack.i.l.bf16 %v8118_v57  ;;  %v8120_v19 = vunpack.i.h.bf16 %v8118_v57 }
 0x6ef   :  { %v8124_v7 = vunpack.i.l.bf16 %v8123_v43  ;;  %v8125_v51 = vunpack.i.h.bf16 %v8123_v43 }
 0x6f0   :  { %v4286_v34 = vsel %vm1677_vm4, %v4270_v3, %v8119_v59 }
 0x6f1   :  { %v8128_v62 = vpop.permute.xlu0 %8127  ;;  %v4239_v40 = vsel %vm1626_vm12, %v4223_v1, %v8124_v7 }
 0x6f2   :  { %v8129_v44 = vunpack.i.l.bf16 %v8128_v62  ;;  %v8133_v24 = vpop.permute.xlu1 %8132  ;;  %v8130_v17 = vunpack.i.h.bf16 %v8128_v62 }
 0x6f3   :  { %v8134_v8 = vunpack.i.l.bf16 %v8133_v24  ;;  %v8135_v47 = vunpack.i.h.bf16 %v8133_v24 }
 0x6f4   :  { %v4302_v31 = vsel %vm1694_vm5, %v4286_v34, %v8129_v44 }
 0x6f5   :  { %v4255_v46 = vsel %vm1643_vm13, %v4239_v40, %v8134_v8  ;;  %v8138_v6 = vpop.permute.xlu0 %8137  ;;  %4461 = vmatmul.mubr.f32.gmra.mrb[70].mxu0 %v4302_v31 }
 0x6f6   :  { %v8139_v28 = vunpack.i.l.bf16 %v8138_v6  ;;  %6742 = vmatprep.mubr.msk.f32.mxu0 %vm711_vm7, %v11327_v4  ;;  %v8143_v12 = vpop.permute.xlu1 %8142  ;;  %v4240_v4 = vsel %vm1626_vm12, %v4224_v54, %v8125_v51  ;;  %v8140_v52 = vunpack.i.h.bf16 %v8138_v6 }
 0x6f7   :  { %v8144_v45 = vunpack.i.l.bf16 %v8143_v12  ;;  %v4256_v0 = vsel %vm1643_vm13, %v4240_v4, %v8135_v47  ;;  %v8145_v57 = vunpack.i.h.bf16 %v8143_v12 }
 0x6f8   :  { %v4271_v32 = vsel %vm1660_vm3, %v4255_v46, %v8139_v28  ;;  %v4272_v55 = vsel %vm1660_vm3, %v4256_v0, %v8140_v52 }
 0x6f9   :  { %v8148_v10 = vpop.permute.xlu0 %8147  ;;  %v4287_v22 = vsel %vm1677_vm4, %v4271_v32, %v8120_v19  ;;  %v4211_v43 = vsel %vm711_vm7, %v11308_v33, %v8144_v45  ;;  %v4212_v7 = vsel %vm711_vm7, %v11320_v9, %v8145_v57 }
 0x6fa   :  { %v4182_v63 = vpop.permute.xlu1 %4181  ;;  %v4303_v56 = vsel %vm1694_vm5, %v4287_v22, %v8130_v17  ;;  %v8149_v21 = vunpack.i.l.bf16 %v8148_v10  ;;  %v8150_v60 = vunpack.i.h.bf16 %v8148_v10 }
 0x6fb   :  { %4466 = vmatmul.mubr.f32.gmra.mrb[72].mxu0 %v4303_v56 }
 0x6fc   :  { %6743 = vmatprep.mubr.msk.f32.mxu0 %vm711_vm7, %v11335_v39  ;;  %v4225_v44 = vsel %vm779_vm11, %v4211_v43, %v8149_v21  ;;  %v4226_v8 = vsel %vm779_vm11, %v4212_v7, %v8150_v60 }
 0x6fd   :  { %v4048_v38 = vpop.permute.xlu0 %4047 }
 0x6fe   :  { %v8153_v36 = vpop.permute.xlu1 %8152 }
 0x6ff   :  { %v8154_v18 = vunpack.i.l.bf16 %v8153_v36  ;;  %v8155_v33 = vunpack.i.h.bf16 %v8153_v36 }
 0x701   :  { %v8158_v59 = vpop.permute.xlu0 %8157  ;;  %v4288_v15 = vsel %vm1677_vm4, %v4272_v55, %v8154_v18 }
 0x702   :  { %v8160_v39 = vunpack.i.h.bf16 %v8158_v59  ;;  %v8159_v5 = vunpack.i.l.bf16 %v8158_v59  ;;  %v4096_v62 = vpop.permute.xlu1 %4095  ;;  %v4304_v53 = vsel %vm1694_vm5, %v4288_v15, %v4182_v63 }
 0x703   :  { %4471 = vmatmul.mubr.f32.gmra.mrb[74].mxu0 %v4304_v53 }
 0x704   :  { %v4241_v24 = vsel %vm1626_vm12, %v4225_v44, %v8159_v5  ;;  %6744 = vmatprep.mubr.msk.f32.mxu0 %vm711_vm7, %v11372_v61  ;;  %v4242_v40 = vsel %vm1626_vm12, %v4226_v8, %v8160_v39  ;;  %v4502_v5 = vld [vmem:[%s12731_s7] sm:$0xff]  ;;  %v4504_v44 = vld [vmem:[%s12731_s7 + $0x10] sm:$0xff] }
 0x705   :  { %v4257_v3 = vsel %vm1643_vm13, %v4241_v24, %v4048_v38  ;;  %v4184_v1 = vpop.permute.xlu0 %4183  ;;  %v4505_v24 = vld [vmem:[%s12731_s7 + $0x18] sm:$0xff] }
 0x706   :  { %v4273_v9 = vsel %vm1660_vm3, %v4257_v3, %v4096_v62  ;;  %v4050_v34 = vpop.permute.xlu1 %4049  ;;  %v4503_v62 = vld [vmem:[%s12731_s7 + $0x8] sm:$0xff]  ;;  %v4506_v3 = vld [vmem:[%s12731_s7 + $0x20] sm:$0xff] }
 0x707   :  { %v4258_v31 = vsel %vm1643_vm13, %v4242_v40, %v4050_v34  ;;  %v4289_v46 = vsel %vm1677_vm4, %v4273_v9, %v8155_v33  ;;  %v7028_v53 = vpack.c.bf16 %v4503_v62, %v4502_v5  ;;  %v7031_v33 = vpack.c.bf16 %v4505_v24, %v4504_v44  ;;  %v4508_v9 = vld [vmem:[%s12731_s7 + $0x30] sm:$0xff]  ;;  %v4509_v34 = vld [vmem:[%s12731_s7 + $0x38] sm:$0xff] }
 0x708   :  { %v4305_v6 = vsel %vm1694_vm5, %v4289_v46, %v4184_v1  ;;  %v4507_v1 = vld [vmem:[%s12731_s7 + $0x28] sm:$0xff]  ;;  %v7037_v40 = vpack.c.bf16 %v4509_v34, %v4508_v9 }
 0x709   :  { %v4098_v49 = vpop.permute.xlu0 %4097  ;;  %4476 = vmatmul.mubr.f32.gmra.mrb[76].mxu0 %v4305_v6  ;;  %7029 = vmatpush1.bf16.msra.mxu1 %v7028_v53  ;;  %v7034_v8 = vpack.c.bf16 %v4507_v1, %v4506_v3  ;;  %v4511_v46 = vld [vmem:[%s12731_s7 + $0x48] sm:$0xff] }
 0x70a   :  { %v4274_v61 = vsel %vm1660_vm3, %v4258_v31, %v4098_v49  ;;  %6745 = vmatprep.mubr.msk.f32.mxu0 %vm711_vm7, %v8770_v16  ;;  %7030 = vmatprep.subr.bf16.mxu1 %v12782_v41  ;;  %v4510_v31 = vld [vmem:[%s12731_s7 + $0x40] sm:$0xff]  ;;  %v4512_v49 = vld [vmem:[%s12731_s7 + $0x50] sm:$0xff] }
 0x70b   :  { %v4290_v28 = vsel %vm1677_vm4, %v4274_v61, %v9803_v27  ;;  %v7040_v6 = vpack.c.bf16 %v4511_v46, %v4510_v31  ;;  %v4513_v61 = vld [vmem:[%s12731_s7 + $0x58] sm:$0xff] }
 0x70c   :  { %v4306_v12 = vsel %vm1694_vm5, %v4290_v28, %v9807_v23  ;;  %v7043_v28 = vpack.c.bf16 %v4513_v61, %v4512_v49 }
 0x70d   :  { %4481 = vmatmul.mubr.f32.gmra.mrb[78].mxu0 %v4306_v12  ;;  %7032 = vmatpush1.bf16.msra.mxu1 %v7031_v33  ;;  %v4514_v12 = vld [vmem:[%s12731_s7 + $0x60] sm:$0xff] }
 0x70e   :  { %7033 = vmatprep.subr.bf16.mxu1 %v12782_v41 }
 0x711   :  { %7035 = vmatpush1.bf16.msra.mxu1 %v7034_v8 }
 0x712   :  { %7036 = vmatprep.subr.bf16.mxu1 %v12782_v41 }
 0x715   :  { %7038 = vmatpush1.bf16.msra.mxu1 %v7037_v40 }
 0x716   :  { %7039 = vmatprep.subr.bf16.mxu1 %v12782_v41 }
 0x719   :  { %7041 = vmatpush1.bf16.msra.mxu1 %v7040_v6 }
 0x71a   :  { %7042 = vmatprep.subr.bf16.mxu1 %v12782_v41 }
 0x71d   :  { %7044 = vmatpush1.bf16.msra.mxu1 %v7043_v28 }
 0x71e   :  { %7045 = vmatprep.subr.bf16.mxu1 %v12782_v41 }
 0x738   :  { %v4407_v19 = vpop.f32.mrb[48].mxu0 }
 0x739   :  { %v4408_v51 = vadd.f32 %v11512_v26, %v4407_v19  ;;  %v4409_v17 = vpop.f32.mrb[49].mxu0  ;;  %v4515_v19 = vld [vmem:[%s12731_s7 + $0x68] sm:$0xff] }
 0x73a   :  { %v4516_v17 = vld [vmem:[%s12731_s7 + $0x70] sm:$0xff] }
 0x73b   :  { %v4486_v32 = vadd.f32 %v4408_v51, %v10430_v25  ;;  %v7046_v51 = vpack.c.bf16 %v4515_v19, %v4514_v12 }
 0x73c   :  { %v4412_v47 = vpop.f32.mrb[50].mxu0 }
 0x73d   :  { %v4537_v10 = vrot.slane %v4486_v32, 7  ;;  %v4413_v22 = vadd.f32 %v11512_v26, %v4412_v47  ;;  %v4414_v50 = vpop.f32.mrb[51].mxu0  ;;  %v4517_v32 = vld [vmem:[%s12731_s7 + $0x78] sm:$0xff]  ;;  %7047 = vmatpush1.bf16.msra.mxu1 %v7046_v51 }
 0x73e   :  { %7048 = vmatprep.subr.bf16.mxu1 %v12782_v41 }
 0x73f   :  { %v11518_v63 = vsel %vm120_vm0, 0.0, %v4537_v10  ;;  %v4585_v56 = vsel %vm120_vm0, %v4537_v10, 0.0  ;;  %v4487_v54 = vadd.f32 %v4413_v22, %v10440_v20  ;;  %v7049_v10 = vpack.c.bf16 %v4517_v32, %v4516_v17 }
 0x740   :  { %v4629_v52 = vrot.slane %v11518_v63, 1  ;;  %v4630_v45 = vrot.slane %v4585_v56, 1  ;;  %v4671_v0 = vrot.slane %v11518_v63, 2  ;;  %v4672_v38 = vrot.slane %v4585_v56, 2 }
 0x741   :  { %v4538_v4 = vrot.slane %v4487_v54, 7  ;;  %v4518_v54 = vld [vmem:[%s12731_s7 + $0x80] sm:$0xff]  ;;  %7050 = vmatpush1.bf16.msra.mxu1 %v7049_v10 }
 0x742   :  { %v4631_v55 = vsel %vm185_vm2, %v4629_v52, %v4630_v45  ;;  %v4673_v59 = vsel %vm231_vm1, %v4671_v0, %v4672_v38  ;;  %7051 = vmatprep.subr.bf16.mxu1 %v12782_v41 }
 0x743   :  { %v11525_v25 = vsel %vm120_vm0, 0.0, %v4538_v4  ;;  %v4586_v57 = vsel %vm120_vm0, %v4538_v4, 0.0  ;;  %v4519_v4 = vld [vmem:[%s12731_s7 + $0x88] sm:$0xff] }
 0x744   :  { %v4632_v36 = vrot.slane %v11525_v25, 1  ;;  %v4633_v21 = vrot.slane %v4586_v57, 1  ;;  %v4675_v18 = vrot.slane %v4586_v57, 2  ;;  %v8161_v43 = vpack.i.bf16 %v11525_v25, %v11518_v63 }
 0x745   :  { %v4674_v20 = vrot.slane %v11525_v25, 2  ;;  %v7052_v45 = vpack.c.bf16 %v4519_v4, %v4518_v54 }
 0x746   :  { %8162 = vrot.lane.b32.xlu1 %v8161_v43, %s8662_s17  ;;  %v11535_v60 = vsel %vm185_vm2, %v4632_v36, %v4633_v21 }
 0x747   :  { %v4676_v15 = vsel %vm231_vm1, %v4674_v20, %v4675_v18  ;;  %v8166_v7 = vpack.i.bf16 %v11535_v60, %v4631_v55  ;;  %7053 = vmatpush1.bf16.msra.mxu1 %v7052_v45 }
 0x748   :  { %6747 = vmatprep.mubr.msk.f32.mxu1 %vm711_vm7, %v4676_v15  ;;  %v8181_v39 = vpack.i.bf16 %v4676_v15, %v4673_v59 }
 0x749   :  { %8167 = vrot.lane.b32.xlu0 %v8166_v7, %s8664_s1 }
 0x74a   :  { %8172 = vrot.lane.b32.xlu1 %v8166_v7, %s8656_s22 }
 0x74d   :  { %8177 = vrot.lane.b32.xlu0 %v8181_v39, %s8663_s26 }
 0x74e   :  { %8182 = vrot.lane.b32.xlu1 %v8181_v39, %s8660_s27 }
 0x76d   :  { %v4417_v47 = vpop.f32.mrb[52].mxu0 }
 0x76e   :  { %v4418_v22 = vadd.f32 %v11512_v26, %v4417_v47  ;;  %v4419_v50 = vpop.f32.mrb[53].mxu0 }
 0x770   :  { %v4488_v56 = vadd.f32 %v4418_v22, %v10516_v29 }
 0x771   :  { %v4422_v52 = vpop.f32.mrb[54].mxu0 }
 0x772   :  { %v4539_v0 = vrot.slane %v4488_v56, 7  ;;  %v4423_v38 = vadd.f32 %v11512_v26, %v4422_v52  ;;  %v4424_v57 = vpop.f32.mrb[55].mxu0 }
 0x774   :  { %v11611_v36 = vsel %vm120_vm0, 0.0, %v4539_v0  ;;  %v4587_v29 = vsel %vm120_vm0, %v4539_v0, 0.0  ;;  %v4489_v21 = vadd.f32 %v4423_v38, %v10532_v14 }
 0x775   :  { %v4635_v18 = vrot.slane %v11611_v36, 1  ;;  %v4636_v43 = vrot.slane %v4587_v29, 1  ;;  %v8186_v55 = vpack.i.bf16 %v11611_v36, %v11525_v25  ;;  %v4677_v24 = vrot.slane %v11611_v36, 2 }
 0x776   :  { %v4540_v20 = vrot.slane %v4489_v21, 7  ;;  %v4678_v33 = vrot.slane %v4587_v29, 2 }
 0x777   :  { %v4637_v59 = vsel %vm185_vm2, %v4635_v18, %v4636_v43  ;;  %8187 = vrot.lane.b32.xlu0 %v8186_v55, %s8665_s24 }
 0x778   :  { %v11620_v15 = vsel %vm120_vm0, 0.0, %v4540_v20  ;;  %v4588_v7 = vsel %vm120_vm0, %v4540_v20, 0.0  ;;  %v8191_v39 = vpack.i.bf16 %v4637_v59, %v11535_v60  ;;  %v11638_v8 = vsel %vm231_vm1, %v4677_v24, %v4678_v33 }
 0x779   :  { %v4638_v14 = vrot.slane %v11620_v15, 1  ;;  %v4639_v5 = vrot.slane %v4588_v7, 1  ;;  %v4680_v62 = vrot.slane %v11620_v15, 2  ;;  %v4681_v53 = vrot.slane %v4588_v7, 2 }
 0x77a   :  { %8192 = vrot.lane.b32.xlu1 %v8191_v39, %s8666_s25  ;;  %v8196_v44 = vpack.i.bf16 %v11620_v15, %v11611_v36 }
 0x77b   :  { %v4640_v3 = vsel %vm185_vm2, %v4638_v14, %v4639_v5  ;;  %v11634_v60 = vsel %vm231_vm1, %v4680_v62, %v4681_v53 }
 0x77c   :  { %8197 = vrot.lane.b32.xlu0 %v8196_v44, %s8662_s17  ;;  %v8201_v1 = vpack.i.bf16 %v4640_v3, %v4637_v59  ;;  %v8211_v9 = vpack.i.bf16 %v11634_v60, %v11638_v8 }
 0x77e   :  { %8202 = vrot.lane.b32.xlu1 %v8201_v1, %s8664_s1 }
 0x780   :  { %8207 = vrot.lane.b32.xlu0 %v8201_v1, %s8656_s22 }
 0x782   :  { %8212 = vrot.lane.b32.xlu1 %v8211_v9, %s8663_s26 }
 0x784   :  { %8217 = vrot.lane.b32.xlu0 %v8211_v9, %s8660_s27 }
 0x78e   :  { %v4427_v34 = vpop.f32.mrb[56].mxu0 }
 0x78f   :  { %v4428_v40 = vadd.f32 %v11512_v26, %v4427_v34  ;;  %v4429_v31 = vpop.f32.mrb[57].mxu0 }
 0x791   :  { %v4490_v46 = vadd.f32 %v4428_v40, %v10555_v2 }
 0x792   :  { %v4432_v6 = vpop.f32.mrb[58].mxu0 }
 0x793   :  { %v4541_v49 = vrot.slane %v4490_v46, 7  ;;  %v4433_v61 = vadd.f32 %v11512_v26, %v4432_v6  ;;  %v4434_v28 = vpop.f32.mrb[59].mxu0 }
 0x795   :  { %v11649_v12 = vsel %vm120_vm0, 0.0, %v4541_v49  ;;  %v4589_v19 = vsel %vm120_vm0, %v4541_v49, 0.0  ;;  %v4491_v51 = vadd.f32 %v4433_v61, %v10572_v30 }
 0x796   :  { %v4641_v17 = vrot.slane %v11649_v12, 1  ;;  %v4642_v32 = vrot.slane %v4589_v19, 1  ;;  %v8221_v10 = vpack.i.bf16 %v11649_v12, %v11620_v15  ;;  %v4683_v0 = vrot.slane %v11649_v12, 2 }
 0x797   :  { %v4542_v47 = vrot.slane %v4491_v51, 7  ;;  %v4684_v38 = vrot.slane %v4589_v19, 2 }
 0x798   :  { %v4643_v2 = vsel %vm185_vm2, %v4641_v17, %v4642_v32  ;;  %8222 = vrot.lane.b32.xlu1 %v8221_v10, %s8665_s24 }
 0x799   :  { %v11658_v22 = vsel %vm120_vm0, 0.0, %v4542_v47  ;;  %v4590_v50 = vsel %vm120_vm0, %v4542_v47, 0.0  ;;  %v8226_v56 = vpack.i.bf16 %v4643_v2, %v4640_v3  ;;  %v11675_v18 = vsel %vm231_vm1, %v4683_v0, %v4684_v38 }
 0x79a   :  { %v4644_v54 = vrot.slane %v11658_v22, 1  ;;  %v4645_v30 = vrot.slane %v4590_v50, 1  ;;  %v4686_v4 = vrot.slane %v11658_v22, 2  ;;  %v4687_v52 = vrot.slane %v4590_v50, 2 }
 0x79b   :  { %8227 = vrot.lane.b32.xlu0 %v8226_v56, %s8666_s25  ;;  %v8231_v45 = vpack.i.bf16 %v11658_v22, %v11649_v12 }
 0x79c   :  { %v4646_v57 = vsel %vm185_vm2, %v4644_v54, %v4645_v30  ;;  %v11671_v21 = vsel %vm231_vm1, %v4686_v4, %v4687_v52 }
 0x79d   :  { %8232 = vrot.lane.b32.xlu1 %v8231_v45, %s8662_s17  ;;  %v8236_v29 = vpack.i.bf16 %v4646_v57, %v4643_v2  ;;  %v8246_v43 = vpack.i.bf16 %v11671_v21, %v11675_v18 }
 0x79f   :  { %8237 = vrot.lane.b32.xlu0 %v8236_v29, %s8664_s1 }
 0x7a1   :  { %8242 = vrot.lane.b32.xlu1 %v8236_v29, %s8656_s22 }
 0x7a3   :  { %8247 = vrot.lane.b32.xlu0 %v8246_v43, %s8663_s26 }
 0x7a5   :  { %8252 = vrot.lane.b32.xlu1 %v8246_v43, %s8660_s27 }
 0x7a9   :  { %v4437_v20 = vpop.f32.mrb[60].mxu0 }
 0x7aa   :  { %v4438_v55 = vadd.f32 %v11512_v26, %v4437_v20  ;;  %v4439_v59 = vpop.f32.mrb[61].mxu0 }
 0x7ac   :  { %v4492_v7 = vadd.f32 %v4438_v55, %v10611_v37 }
 0x7ad   :  { %v4442_v39 = vpop.f32.mrb[62].mxu0 }
 0x7ae   :  { %v4543_v14 = vrot.slane %v4492_v7, 7  ;;  %v4443_v5 = vadd.f32 %v11512_v26, %v4442_v39  ;;  %v4444_v62 = vpop.f32.mrb[63].mxu0 }
 0x7b0   :  { %v11686_v53 = vsel %vm120_vm0, 0.0, %v4543_v14  ;;  %v4591_v44 = vsel %vm120_vm0, %v4543_v14, 0.0  ;;  %v4493_v24 = vadd.f32 %v4443_v5, %v10620_v42 }
 0x7b1   :  { %v4647_v33 = vrot.slane %v11686_v53, 1  ;;  %v4648_v3 = vrot.slane %v4591_v44, 1  ;;  %v4447_v9 = vpop.f32.mrb[64].mxu0  ;;  %v8256_v37 = vpack.i.bf16 %v11686_v53, %v11658_v22  ;;  %v4689_v51 = vrot.slane %v11686_v53, 2 }
 0x7b2   :  { %v4544_v1 = vrot.slane %v4493_v24, 7  ;;  %v4448_v34 = vadd.f32 %v11512_v26, %v4447_v9  ;;  %v4449_v40 = vpop.f32.mrb[65].mxu0  ;;  %v4690_v17 = vrot.slane %v4591_v44, 2 }
 0x7b3   :  { %v4649_v31 = vsel %vm185_vm2, %v4647_v33, %v4648_v3  ;;  %8257 = vrot.lane.b32.xlu0 %v8256_v37, %s8665_s24 }
 0x7b4   :  { %v4576_v46 = vsel %vm120_vm0, 0.0, %v4544_v1  ;;  %v4592_v6 = vsel %vm120_vm0, %v4544_v1, 0.0  ;;  %v8261_v42 = vpack.i.bf16 %v4649_v31, %v4646_v57  ;;  %v4494_v32 = vadd.f32 %v4448_v34, %v10631_v58 }
 0x7b5   :  { %v4717_v49 = vrot.slane %v4576_v46, 1  ;;  %v4718_v61 = vrot.slane %v4592_v6, 1  ;;  %v4723_v28 = vrot.slane %v4576_v46, 2  ;;  %v4724_v19 = vrot.slane %v4592_v6, 2 }
 0x7b6   :  { %8262 = vrot.lane.b32.xlu1 %v8261_v42, %s8666_s25  ;;  %v8266_v47 = vpack.i.bf16 %v4576_v46, %v11686_v53  ;;  %v4545_v2 = vrot.slane %v4494_v32, 7  ;;  %v11713_v58 = vsel %vm231_vm1, %v4689_v51, %v4690_v17 }
 0x7b7   :  { %v4719_v10 = vsel %vm185_vm2, %v4717_v49, %v4718_v61  ;;  %v11705_v56 = vsel %vm231_vm1, %v4723_v28, %v4724_v19 }
 0x7b8   :  { %8267 = vrot.lane.b32.xlu0 %v8266_v47, %s8662_s17  ;;  %v8271_v50 = vpack.i.bf16 %v4719_v10, %v4649_v31  ;;  %v11708_v54 = vsel %vm120_vm0, 0.0, %v4545_v2  ;;  %v4593_v30 = vsel %vm120_vm0, %v4545_v2, 0.0  ;;  %v8276_v43 = vpack.i.bf16 %v11705_v56, %v11713_v58 }
 0x7b9   :  { %v4452_v4 = vpop.f32.mrb[66].mxu0  ;;  %v4650_v52 = vrot.slane %v11708_v54, 1  ;;  %v4651_v45 = vrot.slane %v4593_v30, 1  ;;  %v4692_v0 = vrot.slane %v11708_v54, 2  ;;  %v4693_v38 = vrot.slane %v4593_v30, 2 }
 0x7ba   :  { %8272 = vrot.lane.b32.xlu1 %v8271_v50, %s8664_s1  ;;  %v4454_v57 = vpop.f32.mrb[67].mxu0  ;;  %v4453_v29 = vadd.f32 %v11512_v26, %v4452_v4 }
 0x7bb   :  { %v4652_v20 = vsel %vm185_vm2, %v4650_v52, %v4651_v45  ;;  %v4694_v7 = vsel %vm231_vm1, %v4692_v0, %v4693_v38 }
 0x7bc   :  { %v4495_v55 = vadd.f32 %v4453_v29, %v10663_v13  ;;  %v8281_v59 = vpack.i.bf16 %v4652_v20, %v4649_v31  ;;  %v8286_v33 = vpack.i.bf16 %v4694_v7, %v11713_v58 }
 0x7be   :  { %8277 = vrot.lane.b32.xlu1 %v8276_v43, %s8663_s26  ;;  %v4546_v39 = vrot.slane %v4495_v55, 7  ;;  %8282 = vrot.lane.b32.xlu0 %v8281_v59, %s8656_s22 }
 0x7bf   :  { %v4457_v14 = vpop.f32.mrb[68].mxu0 }
 0x7c0   :  { %v4458_v5 = vadd.f32 %v11512_v26, %v4457_v14  ;;  %v4459_v62 = vpop.f32.mrb[69].mxu0  ;;  %v11727_v44 = vsel %vm120_vm0, 0.0, %v4546_v39  ;;  %v4594_v24 = vsel %vm120_vm0, %v4546_v39, 0.0  ;;  %v12790_v39 = vld [vmem:[#allocation18_spill] sm:$0xff] }
 0x7c1   :  { %v4653_v13 = vrot.slane %v11727_v44, 1  ;;  %v4654_v3 = vrot.slane %v4594_v24, 1  ;;  %v4695_v9 = vrot.slane %v11727_v44, 2  ;;  %v8291_v37 = vpack.i.bf16 %v11727_v44, %v4576_v46 }
 0x7c2   :  { %v4496_v1 = vadd.f32 %v4458_v5, %v10676_v35  ;;  %8287 = vrot.lane.b32.xlu0 %v8286_v33, %s8660_s27  ;;  %v4696_v40 = vrot.slane %v4594_v24, 2  ;;  %v8296_v46 = vpack.i.bf16 %v11727_v44, %v11708_v54 }
 0x7c3   :  { %v4655_v34 = vsel %vm185_vm2, %v4653_v13, %v4654_v3  ;;  %8292 = vrot.lane.b32.xlu1 %v8291_v37, %s8665_s24  ;;  %v11776_v13 = vpop.permute.xlu1 %8162 }
 0x7c4   :  { %v4547_v31 = vrot.slane %v4496_v1, 7  ;;  %v8301_v6 = vpack.i.bf16 %v4655_v34, %v4719_v10  ;;  %v8306_v42 = vpack.i.bf16 %v4655_v34, %v4652_v20  ;;  %v11749_v10 = vsel %vm231_vm1, %v4695_v9, %v4696_v40 }
 0x7c5   :  { %v8311_v4 = vpack.i.bf16 %v11749_v10, %v4694_v7 }
 0x7c6   :  { %v11739_v49 = vsel %vm120_vm0, 0.0, %v4547_v31  ;;  %v4595_v61 = vsel %vm120_vm0, %v4547_v31, 0.0  ;;  %8302 = vrot.lane.b32.xlu0 %v8301_v6, %s8666_s25 }
 0x7c7   :  { %v4656_v35 = vrot.slane %v11739_v49, 1  ;;  %v4657_v28 = vrot.slane %v4595_v61, 1  ;;  %v4698_v51 = vrot.slane %v11739_v49, 2  ;;  %v4699_v17 = vrot.slane %v4595_v61, 2  ;;  %8297 = vrot.lane.b32.xlu1 %v8296_v46, %s8662_s17 }
 0x7c8   :  { %v4462_v19 = vpop.f32.mrb[70].mxu0 }
 0x7c9   :  { %v4463_v32 = vadd.f32 %v11512_v26, %v4462_v19  ;;  %v4464_v47 = vpop.f32.mrb[71].mxu0  ;;  %v4658_v2 = vsel %vm185_vm2, %v4656_v35, %v4657_v28  ;;  %v11757_v45 = vsel %vm231_vm1, %v4698_v51, %v4699_v17  ;;  %v12791_v28 = vld [vmem:[#allocation19_spill] sm:$0xff]  ;;  %v11794_v17 = vpop.permute.xlu1 %8172 }
 0x7ca   :  { %8307 = vrot.lane.b32.xlu0 %v8306_v42, %s8664_s1  ;;  %v8316_v30 = vpack.i.bf16 %v4658_v2, %v4655_v34  ;;  %v8321_v55 = vpack.i.bf16 %v11757_v45, %v11749_v10 }
 0x7cb   :  { %v4497_v50 = vadd.f32 %v4463_v32, %v10721_v11  ;;  %8312 = vrot.lane.b32.xlu1 %v8311_v4, %s8663_s26 }
 0x7cd   :  { %v4548_v52 = vrot.slane %v4497_v50, 7 }
 0x7ce   :  { %v4467_v0 = vpop.f32.mrb[72].mxu0  ;;  %8317 = vrot.lane.b32.xlu0 %v8316_v30, %s8656_s22 }
 0x7cf   :  { %v11761_v38 = vsel %vm120_vm0, 0.0, %v4548_v52  ;;  %v4596_v57 = vsel %vm120_vm0, %v4548_v52, 0.0  ;;  %v4468_v29 = vadd.f32 %v11512_v26, %v4467_v0  ;;  %v4469_v11 = vpop.f32.mrb[73].mxu0  ;;  %8322 = vrot.lane.b32.xlu1 %v8321_v55, %s8660_s27 }
 0x7d0   :  { %v4659_v43 = vrot.slane %v11761_v38, 1  ;;  %v4660_v20 = vrot.slane %v4596_v57, 1  ;;  %v4701_v59 = vrot.slane %v11761_v38, 2  ;;  %v4702_v7 = vrot.slane %v4596_v57, 2  ;;  %v8168_v11 = vpop.permute.xlu0 %8167 }
 0x7d1   :  { %v4498_v14 = vadd.f32 %v4468_v29, %v12790_v39  ;;  %v8326_v5 = vpack.i.bf16 %v11761_v38, %v11739_v49 }
 0x7d2   :  { %v4661_v62 = vsel %vm185_vm2, %v4659_v43, %v4660_v20  ;;  %v11783_v9 = vsel %vm231_vm1, %v4701_v59, %v4702_v7  ;;  %v12792_v43 = vld [vmem:[#allocation20_spill] sm:$0xff]  ;;  %v11814_v59 = vpop.permute.xlu1 %8182 }
 0x7d3   :  { %v4549_v24 = vrot.slane %v4498_v14, 7  ;;  %8327 = vrot.lane.b32.xlu0 %v8326_v5, %s8665_s24  ;;  %v8336_v33 = vpack.i.bf16 %v4661_v62, %v4658_v2  ;;  %8332 = vrot.lane.b32.xlu1 %v8326_v5, %s8662_s17  ;;  %v8346_v46 = vpack.i.bf16 %v11783_v9, %v11757_v45 }
 0x7d5   :  { %v11779_v3 = vsel %vm120_vm0, 0.0, %v4549_v24  ;;  %v4597_v1 = vsel %vm120_vm0, %v4549_v24, 0.0 }
 0x7d6   :  { %v4662_v37 = vrot.slane %v11779_v3, 1  ;;  %v4663_v34 = vrot.slane %v4597_v1, 1  ;;  %v4704_v40 = vrot.slane %v11779_v3, 2  ;;  %v4705_v31 = vrot.slane %v4597_v1, 2  ;;  %v4472_v6 = vpop.f32.mrb[74].mxu0 }
 0x7d7   :  { %v4473_v42 = vadd.f32 %v11512_v26, %v4472_v6  ;;  %8337 = vrot.lane.b32.xlu0 %v8336_v33, %s8666_s25  ;;  %v4474_v61 = vpop.f32.mrb[75].mxu0  ;;  %8342 = vrot.lane.b32.xlu1 %v8336_v33, %s8664_s1  ;;  %v8174_v1 = vunpack.i.l.bf16 %v11794_v17 }
 0x7d8   :  { %v4664_v35 = vsel %vm185_vm2, %v4662_v37, %v4663_v34  ;;  %v11798_v32 = vsel %vm231_vm1, %v4704_v40, %v4705_v31  ;;  %v8184_v34 = vunpack.i.l.bf16 %v11814_v59  ;;  %v8178_v61 = vpop.permute.xlu0 %8177 }
 0x7d9   :  { %v4499_v19 = vadd.f32 %v4473_v42, %v12791_v28  ;;  %v8351_v51 = vpack.i.bf16 %v4664_v35, %v4661_v62  ;;  %v8356_v0 = vpack.i.bf16 %v11798_v32, %v11783_v9 }
 0x7db   :  { %v4550_v47 = vrot.slane %v4499_v19, 7  ;;  %8347 = vrot.lane.b32.xlu0 %v8346_v46, %s8663_s26  ;;  %8352 = vrot.lane.b32.xlu1 %v8351_v51, %s8656_s22  ;;  %v8164_v19 = vunpack.i.l.bf16 %v11776_v13  ;;  %v5041_v46 = vsel %vm711_vm7, %v11518_v63, %v8174_v1  ;;  %v12793_v51 = vld [vmem:[#allocation21_spill] sm:$0xff] }
 0x7dc   :  { %v4477_v2 = vpop.f32.mrb[76].mxu0 }
 0x7dd   :  { %v11802_v50 = vsel %vm120_vm0, 0.0, %v4550_v47  ;;  %v4598_v30 = vsel %vm120_vm0, %v4550_v47, 0.0  ;;  %v4478_v4 = vadd.f32 %v11512_v26, %v4477_v2  ;;  %v4479_v52 = vpop.f32.mrb[77].mxu0 }
 0x7de   :  { %v4665_v57 = vrot.slane %v11802_v50, 1  ;;  %v4666_v29 = vrot.slane %v4598_v30, 1  ;;  %v8361_v55 = vpack.i.bf16 %v11802_v50, %v11779_v3  ;;  %v4707_v7 = vrot.slane %v11802_v50, 2 }
 0x7df   :  { %v4500_v20 = vadd.f32 %v4478_v4, %v12792_v43  ;;  %8357 = vrot.lane.b32.xlu0 %v8356_v0, %s8660_s27  ;;  %v4708_v39 = vrot.slane %v4598_v30, 2  ;;  %v8169_v30 = vunpack.i.l.bf16 %v8168_v11  ;;  %v5055_v4 = vsel %vm779_vm11, %v5041_v46, %v8184_v34 }
 0x7e0   :  { %v4482_v14 = vpop.f32.mrb[78].mxu0  ;;  %v4667_v5 = vsel %vm185_vm2, %v4665_v57, %v4666_v29  ;;  %8362 = vrot.lane.b32.xlu1 %v8361_v55, %s8665_s24  ;;  %v8165_v0 = vunpack.i.h.bf16 %v11776_v13  ;;  %v8179_v57 = vunpack.i.l.bf16 %v8178_v61 }
 0x7e1   :  { %v4551_v62 = vrot.slane %v4500_v20, 7  ;;  %v4484_v24 = vpop.f32.mrb[79].mxu0  ;;  %v8371_v33 = vpack.i.bf16 %v4667_v5, %v4664_v35  ;;  %v4483_v37 = vadd.f32 %v11512_v26, %v4482_v14  ;;  %v11830_v26 = vsel %vm231_vm1, %v4707_v7, %v4708_v39 }
 0x7e2   :  { %v8381_v29 = vpack.i.bf16 %v11830_v26, %v11798_v32  ;;  %v5069_v20 = vsel %vm1626_vm12, %v9545_v48, %v8164_v19  ;;  %v8170_v14 = vunpack.i.h.bf16 %v8168_v11 }
 0x7e3   :  { %v11823_v40 = vsel %vm120_vm0, 0.0, %v4551_v62  ;;  %v4599_v31 = vsel %vm120_vm0, %v4551_v62, 0.0  ;;  %8367 = vrot.lane.b32.xlu0 %v8361_v55, %s8662_s17  ;;  %v4501_v47 = vadd.f32 %v4483_v37, %v12793_v51  ;;  %v5070_v55 = vsel %vm1626_vm12, %v5055_v4, %v8165_v0 }
 0x7e4   :  { %v4668_v6 = vrot.slane %v11823_v40, 1  ;;  %v4669_v42 = vrot.slane %v4599_v31, 1  ;;  %v4710_v35 = vrot.slane %v11823_v40, 2  ;;  %v4711_v28 = vrot.slane %v4599_v31, 2  ;;  %8372 = vrot.lane.b32.xlu1 %v8371_v33, %s8666_s25 }
 0x7e5   :  { %v4552_v7 = vrot.slane %v4501_v47, 7  ;;  %v5085_v13 = vsel %vm1643_vm13, %v5069_v20, %v8169_v30  ;;  %v5086_v34 = vsel %vm1643_vm13, %v5070_v55, %v8170_v14  ;;  %v8180_v31 = vunpack.i.h.bf16 %v8178_v61 }
 0x7e6   :  { %v4670_v2 = vsel %vm185_vm2, %v4668_v6, %v4669_v42  ;;  %v11844_v63 = vsel %vm231_vm1, %v4710_v35, %v4711_v28  ;;  %v5101_v62 = vsel %vm1660_vm3, %v5085_v13, %v8179_v57  ;;  %v8175_v20 = vunpack.i.h.bf16 %v11794_v17 }
 0x7e7   :  { %8377 = vrot.lane.b32.xlu0 %v8371_v33, %s8664_s1  ;;  %v8386_v52 = vpack.i.bf16 %v4670_v2, %v4667_v5  ;;  %v8391_v24 = vpack.i.bf16 %v11844_v63, %v11830_v26  ;;  %v4584_v6 = vsel %vm120_vm0, 0.0, %v4552_v7  ;;  %v5102_v35 = vsel %vm1660_vm3, %v5086_v34, %v8180_v31 }
 0x7e8   :  { %8382 = vrot.lane.b32.xlu1 %v8381_v29, %s8663_s26  ;;  %v8396_v28 = vpack.i.bf16 %v4584_v6, %v11823_v40  ;;  %v4600_v61 = vsel %vm120_vm0, %v4552_v7, 0.0  ;;  %v4720_v47 = vrot.slane %v4584_v6, 1  ;;  %v8185_v55 = vunpack.i.h.bf16 %v11814_v59 }
 0x7e9   :  { %v8188_v43 = vpop.permute.xlu0 %8187  ;;  %v4727_v30 = vrot.slane %v4600_v61, 2 }
 0x7ea   :  { %v8189_v39 = vunpack.i.l.bf16 %v8188_v43  ;;  %v8190_v1 = vunpack.i.h.bf16 %v8188_v43 }
 0x7eb   :  { %8387 = vrot.lane.b32.xlu0 %v8386_v52, %s8656_s22  ;;  %v4726_v52 = vrot.slane %v4584_v6, 2 }
 0x7ec   :  { %v8193_v5 = vpop.permute.xlu1 %8192  ;;  %v5117_v37 = vsel %vm1677_vm4, %v5101_v62, %v8189_v39  ;;  %8392 = vrot.lane.b32.xlu1 %v8391_v24, %s8660_s27  ;;  %v5118_v19 = vsel %vm1677_vm4, %v5102_v35, %v8190_v1  ;;  %v5042_v62 = vsel %vm711_vm7, %v11525_v25, %v8175_v20 }
 0x7ed   :  { %v8194_v33 = vunpack.i.l.bf16 %v8193_v5  ;;  %v8195_v11 = vunpack.i.h.bf16 %v8193_v5  ;;  %v11879_v0 = vsel %vm231_vm1, %v4726_v52, %v4727_v30  ;;  %v5056_v1 = vsel %vm779_vm11, %v5042_v62, %v8185_v55 }
 0x7ee   :  { %v8198_v51 = vpop.permute.xlu0 %8197 }
 0x7ef   :  { %v5133_v42 = vsel %vm1694_vm5, %v5117_v37, %v8194_v33  ;;  %5023 = vrot.lane.b32.xlu0 %v4670_v2, %s8666_s25  ;;  %v5134_v46 = vsel %vm1694_vm5, %v5118_v19, %v8195_v11  ;;  %v8199_v39 = vunpack.i.l.bf16 %v8198_v51  ;;  %v8200_v24 = vunpack.i.h.bf16 %v8198_v51 }
 0x7f0   :  { %5248 = vmatmul.mubr.f32.vlgmr.msra.gmra.mrb[64].mxu1 %v5133_v42  ;;  %4889 = vrot.lane.b32.xlu1 %v4670_v2, %s8664_s1 }
 0x7f1   :  { %6748 = vmatprep.mubr.msk.f32.mxu1 %vm711_vm7, %v11638_v8  ;;  %v4721_v8 = vrot.slane %v4600_v61, 1  ;;  %v5071_v17 = vsel %vm1626_vm12, %v5056_v1, %v8199_v39 }
 0x7f2   :  { %v8208_v4 = vpop.permute.xlu0 %8207 }
 0x7f3   :  { %8397 = vrot.lane.b32.xlu0 %v8396_v28, %s8665_s24  ;;  %v4722_v2 = vsel %vm185_vm2, %v4720_v47, %v4721_v8  ;;  %v8209_v29 = vunpack.i.l.bf16 %v8208_v4  ;;  %v8210_v20 = vunpack.i.h.bf16 %v8208_v4 }
 0x7f4   :  { %5253 = vmatmul.mubr.f32.gmra.mrb[66].mxu1 %v5134_v46  ;;  %8402 = vrot.lane.b32.xlu1 %v8396_v28, %s8662_s17 }
 0x7f5   :  { %6749 = vmatprep.mubr.msk.f32.mxu1 %vm711_vm7, %v11634_v60  ;;  %v8203_v60 = vpop.permute.xlu1 %8202  ;;  %v5043_v14 = vsel %vm711_vm7, %v11611_v36, %v8209_v29 }
 0x7f6   :  { %v8218_v57 = vpop.permute.xlu0 %8217  ;;  %v8204_v13 = vunpack.i.l.bf16 %v8203_v60  ;;  %v8205_v31 = vunpack.i.h.bf16 %v8203_v60 }
 0x7f7   :  { %4937 = vrot.lane.b32.xlu0 %v11844_v63, %s8663_s26  ;;  %v8219_v43 = vunpack.i.l.bf16 %v8218_v57  ;;  %v8220_v55 = vunpack.i.h.bf16 %v8218_v57 }
 0x7f8   :  { %5025 = vrot.lane.b32.xlu1 %v4722_v2, %s8666_s25  ;;  %v5087_v6 = vsel %vm1643_vm13, %v5071_v17, %v8204_v13 }
 0x7f9   :  { %v8213_v7 = vpop.permute.xlu1 %8212  ;;  %v5057_v5 = vsel %vm779_vm11, %v5043_v14, %v8219_v43 }
 0x7fa   :  { %v8214_v33 = vunpack.i.l.bf16 %v8213_v7  ;;  %v5072_v59 = vsel %vm1626_vm12, %v5057_v5, %v8200_v24  ;;  %v8215_v19 = vunpack.i.h.bf16 %v8213_v7  ;;  %v5044_v5 = vsel %vm711_vm7, %v11620_v15, %v8210_v20 }
 0x7fb   :  { %4891 = vrot.lane.b32.xlu0 %v4722_v2, %s8664_s1  ;;  %v5088_v28 = vsel %vm1643_vm13, %v5072_v59, %v8205_v31  ;;  %v5058_v24 = vsel %vm779_vm11, %v5044_v5, %v8220_v55 }
 0x7fc   :  { %4939 = vrot.lane.b32.xlu1 %v11879_v0, %s8663_s26  ;;  %v5103_v42 = vsel %vm1660_vm3, %v5087_v6, %v8214_v33  ;;  %v5104_v51 = vsel %vm1660_vm3, %v5088_v28, %v8215_v19 }
 0x80a   :  { %v8223_v37 = vpop.permute.xlu1 %8222 }
 0x80b   :  { %v8224_v34 = vunpack.i.l.bf16 %v8223_v37  ;;  %v8225_v35 = vunpack.i.h.bf16 %v8223_v37 }
 0x80d   :  { %v8228_v36 = vpop.permute.xlu0 %8227  ;;  %v5119_v25 = vsel %vm1677_vm4, %v5103_v42, %v8224_v34  ;;  %v5120_v47 = vsel %vm1677_vm4, %v5104_v51, %v8225_v35 }
 0x80e   :  { %v8229_v11 = vunpack.i.l.bf16 %v8228_v36  ;;  %v8230_v61 = vunpack.i.h.bf16 %v8228_v36 }
 0x80f   :  { %v8233_v8 = vpop.permute.xlu1 %8232 }
 0x810   :  { %v5135_v46 = vsel %vm1694_vm5, %v5119_v25, %v8229_v11  ;;  %v5136_v30 = vsel %vm1694_vm5, %v5120_v47, %v8230_v61  ;;  %v8235_v62 = vunpack.i.h.bf16 %v8233_v8 }
 0x811   :  { %5258 = vmatmul.mubr.f32.gmra.mrb[68].mxu1 %v5135_v46  ;;  %v8238_v52 = vpop.permute.xlu0 %8237 }
 0x812   :  { %6750 = vmatprep.mubr.msk.f32.mxu1 %vm711_vm7, %v11675_v18  ;;  %v8234_v18 = vunpack.i.l.bf16 %v8233_v8  ;;  %v8239_v14 = vunpack.i.l.bf16 %v8238_v52  ;;  %v8240_v37 = vunpack.i.h.bf16 %v8238_v52 }
 0x813   :  { %v8243_v2 = vpop.permute.xlu1 %8242 }
 0x814   :  { %v8244_v29 = vunpack.i.l.bf16 %v8243_v2  ;;  %v5073_v1 = vsel %vm1626_vm12, %v5058_v24, %v8234_v18  ;;  %v8245_v51 = vunpack.i.h.bf16 %v8243_v2 }
 0x815   :  { %5263 = vmatmul.mubr.f32.gmra.mrb[70].mxu1 %v5136_v30  ;;  %v8248_v7 = vpop.permute.xlu0 %8247  ;;  %v5089_v17 = vsel %vm1643_vm13, %v5073_v1, %v8239_v14 }
 0x816   :  { %6751 = vmatprep.mubr.msk.f32.mxu1 %vm711_vm7, %v11671_v21  ;;  %v5045_v39 = vsel %vm711_vm7, %v11649_v12, %v8244_v29  ;;  %v8249_v21 = vunpack.i.l.bf16 %v8248_v7  ;;  %v8250_v36 = vunpack.i.h.bf16 %v8248_v7 }
 0x817   :  { %v8253_v60 = vpop.permute.xlu1 %8252 }
 0x818   :  { %v8254_v43 = vunpack.i.l.bf16 %v8253_v60  ;;  %v5105_v34 = vsel %vm1660_vm3, %v5089_v17, %v8249_v21  ;;  %v8255_v47 = vunpack.i.h.bf16 %v8253_v60 }
 0x81a   :  { %v5059_v13 = vsel %vm779_vm11, %v5045_v39, %v8254_v43 }
 0x81b   :  { %v5074_v4 = vsel %vm1626_vm12, %v5059_v13, %v8235_v62 }
 0x81c   :  { %v5090_v6 = vsel %vm1643_vm13, %v5074_v4, %v8240_v37 }
 0x81d   :  { %v5106_v25 = vsel %vm1660_vm3, %v5090_v6, %v8250_v36 }
 0x825   :  { %v8258_v33 = vpop.permute.xlu0 %8257 }
 0x826   :  { %v8259_v57 = vunpack.i.l.bf16 %v8258_v33  ;;  %v8260_v31 = vunpack.i.h.bf16 %v8258_v33 }
 0x828   :  { %v8263_v12 = vpop.permute.xlu1 %8262  ;;  %v5121_v15 = vsel %vm1677_vm4, %v5105_v34, %v8259_v57  ;;  %v5122_v19 = vsel %vm1677_vm4, %v5106_v25, %v8260_v31 }
 0x829   :  { %v8264_v59 = vunpack.i.l.bf16 %v8263_v12  ;;  %v8265_v11 = vunpack.i.h.bf16 %v8263_v12 }
 0x82a   :  { %v8268_v28 = vpop.permute.xlu0 %8267 }
 0x82b   :  { %v5137_v42 = vsel %vm1694_vm5, %v5121_v15, %v8264_v59  ;;  %v5138_v61 = vsel %vm1694_vm5, %v5122_v19, %v8265_v11  ;;  %v8269_v52 = vunpack.i.l.bf16 %v8268_v28  ;;  %v8270_v18 = vunpack.i.h.bf16 %v8268_v28 }
 0x82c   :  { %5268 = vmatmul.mubr.f32.gmra.mrb[72].mxu1 %v5137_v42  ;;  %v8273_v35 = vpop.permute.xlu1 %8272 }
 0x82d   :  { %6752 = vmatprep.mubr.msk.f32.mxu1 %vm711_vm7, %v11713_v58  ;;  %v8274_v29 = vunpack.i.l.bf16 %v8273_v35  ;;  %v5046_v58 = vsel %vm711_vm7, %v11658_v22, %v8245_v51  ;;  %v8275_v2 = vunpack.i.h.bf16 %v8273_v35 }
 0x82e   :  { %v5060_v7 = vsel %vm779_vm11, %v5046_v58, %v8255_v47 }
 0x830   :  { %5273 = vmatmul.mubr.f32.gmra.mrb[74].mxu1 %v5138_v61  ;;  %v8283_v46 = vpop.permute.xlu0 %8282  ;;  %v8278_v8 = vpop.permute.xlu1 %8277 }
 0x831   :  { %6753 = vmatprep.mubr.msk.f32.mxu1 %vm711_vm7, %v11705_v56  ;;  %v8284_v30 = vunpack.i.l.bf16 %v8283_v46  ;;  %v8279_v20 = vunpack.i.l.bf16 %v8278_v8  ;;  %v5075_v56 = vsel %vm1626_vm12, %v5060_v7, %v8269_v52  ;;  %v8280_v5 = vunpack.i.h.bf16 %v8278_v8 }
 0x832   :  { %v5091_v13 = vsel %vm1643_vm13, %v5075_v56, %v8274_v29  ;;  %v8285_v15 = vunpack.i.h.bf16 %v8283_v46 }
 0x833   :  { %v5047_v39 = vsel %vm711_vm7, %v11686_v53, %v8284_v30  ;;  %v5107_v33 = vsel %vm1660_vm3, %v5091_v13, %v8279_v20 }
 0x834   :  { %v8288_v43 = vpop.permute.xlu0 %8287  ;;  %v5048_v46 = vsel %vm711_vm7, %v11708_v54, %v8285_v15 }
 0x835   :  { %v8289_v55 = vunpack.i.l.bf16 %v8288_v43  ;;  %v8293_v14 = vpop.permute.xlu1 %8292  ;;  %v8290_v42 = vunpack.i.h.bf16 %v8288_v43 }
 0x836   :  { %v8294_v22 = vunpack.i.l.bf16 %v8293_v14  ;;  %v8295_v28 = vunpack.i.h.bf16 %v8293_v14 }
 0x837   :  { %v5061_v60 = vsel %vm779_vm11, %v5047_v39, %v8289_v55  ;;  %v5062_v52 = vsel %vm779_vm11, %v5048_v46, %v8290_v42 }
 0x838   :  { %v5076_v62 = vsel %vm1626_vm12, %v5061_v60, %v8270_v18  ;;  %v8303_v21 = vpop.permute.xlu0 %8302  ;;  %v5123_v53 = vsel %vm1677_vm4, %v5107_v33, %v8294_v22 }
 0x839   :  { %v8304_v24 = vunpack.i.l.bf16 %v8303_v21  ;;  %v5092_v1 = vsel %vm1643_vm13, %v5076_v62, %v8275_v2  ;;  %v8298_v57 = vpop.permute.xlu1 %8297  ;;  %v8305_v61 = vunpack.i.h.bf16 %v8303_v21 }
 0x83a   :  { %v5108_v4 = vsel %vm1660_vm3, %v5092_v1, %v8280_v5  ;;  %v8299_v17 = vunpack.i.l.bf16 %v8298_v57  ;;  %v8300_v19 = vunpack.i.h.bf16 %v8298_v57 }
 0x83b   :  { %v5139_v37 = vsel %vm1694_vm5, %v5123_v53, %v8304_v24  ;;  %v5124_v59 = vsel %vm1677_vm4, %v5108_v4, %v9803_v27 }
 0x83c   :  { %v8308_v12 = vpop.permute.xlu0 %8307  ;;  %5278 = vmatmul.mubr.f32.gmra.mrb[76].mxu1 %v5139_v37  ;;  %v5077_v31 = vsel %vm1626_vm12, %v9545_v48, %v8299_v17  ;;  %v5140_v11 = vsel %vm1694_vm5, %v5124_v59, %v9807_v23  ;;  %v5078_v58 = vsel %vm1626_vm12, %v5062_v52, %v8300_v19 }
 0x83d   :  { %v8309_v34 = vunpack.i.l.bf16 %v8308_v12  ;;  %6754 = vmatprep.mubr.msk.f32.mxu1 %vm711_vm7, %v8770_v16  ;;  %v8313_v36 = vpop.permute.xlu1 %8312  ;;  %v8310_v51 = vunpack.i.h.bf16 %v8308_v12 }
 0x83e   :  { %v8314_v35 = vunpack.i.l.bf16 %v8313_v36  ;;  %v8315_v20 = vunpack.i.h.bf16 %v8313_v36 }
 0x83f   :  { %v5093_v6 = vsel %vm1643_vm13, %v5077_v31, %v8309_v34 }
 0x840   :  { %v8318_v25 = vpop.permute.xlu0 %8317  ;;  %5283 = vmatmul.mubr.f32.gmra.mrb[78].mxu1 %v5140_v11  ;;  %v5109_v8 = vsel %vm1660_vm3, %v5093_v6, %v8314_v35 }
 0x841   :  { %6755 = vmatprep.mubr.msk.f32.mxu1 %vm711_vm7, %v11749_v10  ;;  %v8323_v47 = vpop.permute.xlu1 %8322  ;;  %v5125_v30 = vsel %vm1677_vm4, %v5109_v8, %v8295_v28  ;;  %v8319_v55 = vunpack.i.l.bf16 %v8318_v25  ;;  %v5094_v10 = vsel %vm1643_vm13, %v5078_v58, %v8310_v51 }
 0x842   :  { %v5141_v43 = vsel %vm1694_vm5, %v5125_v30, %v8305_v61  ;;  %v8324_v18 = vunpack.i.l.bf16 %v8323_v47  ;;  %v5110_v14 = vsel %vm1660_vm3, %v5094_v10, %v8315_v20  ;;  %v8325_v59 = vunpack.i.h.bf16 %v8323_v47 }
 0x843   :  { %v5049_v56 = vsel %vm711_vm7, %v11727_v44, %v8319_v55  ;;  %v8320_v44 = vunpack.i.h.bf16 %v8318_v25 }
 0x844   :  { %5288 = vmatmul.mubr.f32.gmra.mrb[80].mxu1 %v5141_v43  ;;  %v5063_v22 = vsel %vm779_vm11, %v5049_v56, %v8324_v18 }
 0x845   :  { %v8328_v29 = vpop.permute.xlu0 %8327  ;;  %6756 = vmatprep.mubr.msk.f32.mxu1 %vm711_vm7, %v11757_v45  ;;  %v8333_v54 = vpop.permute.xlu1 %8332  ;;  %v5050_v31 = vsel %vm711_vm7, %v11739_v49, %v8320_v44 }
 0x846   :  { %v8329_v7 = vunpack.i.l.bf16 %v8328_v29  ;;  %v8334_v2 = vunpack.i.l.bf16 %v8333_v54  ;;  %v8330_v1 = vunpack.i.h.bf16 %v8328_v29  ;;  %v8335_v15 = vunpack.i.h.bf16 %v8333_v54 }
 0x847   :  { %v5064_v35 = vsel %vm779_vm11, %v5050_v31, %v8325_v59 }
 0x848   :  { %v5126_v13 = vsel %vm1677_vm4, %v5110_v14, %v8329_v7  ;;  %v5079_v45 = vsel %vm1626_vm12, %v5063_v22, %v8334_v2  ;;  %v5080_v19 = vsel %vm1626_vm12, %v5064_v35, %v8335_v15 }
 0x849   :  { %v8338_v39 = vpop.permute.xlu0 %8337  ;;  %v8343_v5 = vpop.permute.xlu1 %8342 }
 0x84a   :  { %v8339_v60 = vunpack.i.l.bf16 %v8338_v39  ;;  %v8344_v21 = vunpack.i.l.bf16 %v8343_v5  ;;  %v8340_v4 = vunpack.i.h.bf16 %v8338_v39 }
 0x84c   :  { %v5142_v62 = vsel %vm1694_vm5, %v5126_v13, %v8339_v60  ;;  %v5095_v53 = vsel %vm1643_vm13, %v5079_v45, %v8344_v21 }
 0x84d   :  { %v8348_v24 = vpop.permute.xlu0 %8347  ;;  %5293 = vmatmul.mubr.f32.gmra.mrb[82].mxu1 %v5142_v62  ;;  %v8353_v57 = vpop.permute.xlu1 %8352 }
 0x84e   :  { %v8349_v33 = vunpack.i.l.bf16 %v8348_v24  ;;  %6757 = vmatprep.mubr.msk.f32.mxu1 %vm711_vm7, %v11783_v9  ;;  %v8345_v9 = vunpack.i.h.bf16 %v8343_v5  ;;  %v8350_v36 = vunpack.i.h.bf16 %v8348_v24  ;;  %v8354_v11 = vunpack.i.l.bf16 %v8353_v57 }
 0x84f   :  { %v8355_v10 = vunpack.i.h.bf16 %v8353_v57 }
 0x850   :  { %v5111_v37 = vsel %vm1660_vm3, %v5095_v53, %v8349_v33  ;;  %v5096_v51 = vsel %vm1643_vm13, %v5080_v19, %v8345_v9  ;;  %v5051_v8 = vsel %vm711_vm7, %v11761_v38, %v8354_v11 }
 0x851   :  { %v8358_v17 = vpop.permute.xlu0 %8357  ;;  %v5127_v12 = vsel %vm1677_vm4, %v5111_v37, %v8330_v1  ;;  %v5052_v5 = vsel %vm711_vm7, %v11779_v3, %v8355_v10 }
 0x852   :  { %v5143_v34 = vsel %vm1694_vm5, %v5127_v12, %v8340_v4  ;;  %v8363_v6 = vpop.permute.xlu1 %8362  ;;  %v8359_v25 = vunpack.i.l.bf16 %v8358_v17  ;;  %v8360_v54 = vunpack.i.h.bf16 %v8358_v17 }
 0x853   :  { %5298 = vmatmul.mubr.f32.gmra.mrb[84].mxu1 %v5143_v34  ;;  %v8364_v28 = vunpack.i.l.bf16 %v8363_v6  ;;  %v8365_v18 = vunpack.i.h.bf16 %v8363_v6 }
 0x854   :  { %6758 = vmatprep.mubr.msk.f32.mxu1 %vm711_vm7, %v11798_v32  ;;  %v5112_v32 = vsel %vm1660_vm3, %v5096_v51, %v8350_v36  ;;  %v5065_v30 = vsel %vm779_vm11, %v5051_v8, %v8359_v25  ;;  %v5066_v21 = vsel %vm779_vm11, %v5052_v5, %v8360_v54  ;;  %v5345_v54 = vld [vmem:[%s12733_s9 + $0x8] sm:$0xff]  ;;  %v5347_v5 = vld [vmem:[%s12733_s9 + $0x18] sm:$0xff] }
 0x855   :  { %v8368_v42 = vpop.permute.xlu0 %8367  ;;  %v5128_v29 = vsel %vm1677_vm4, %v5112_v32, %v8364_v28  ;;  %v12029_v32 = vld [vmem:[%s12732_s8] ss:$0 sm:$0xff] }
 0x856   :  { %v8369_v61 = vunpack.i.l.bf16 %v8368_v42  ;;  %v8373_v49 = vpop.permute.xlu1 %8372  ;;  %v8370_v39 = vunpack.i.h.bf16 %v8368_v42 }
 0x857   :  { %v8374_v46 = vunpack.i.l.bf16 %v8373_v49  ;;  %v8375_v56 = vunpack.i.h.bf16 %v8373_v49 }
 0x858   :  { %v5081_v43 = vsel %vm1626_vm12, %v5065_v30, %v8369_v61 }
 0x859   :  { %v8378_v47 = vpop.permute.xlu0 %8377  ;;  %v5144_v58 = vsel %vm1694_vm5, %v5128_v29, %v8374_v46 }
 0x85a   :  { %v8379_v52 = vunpack.i.l.bf16 %v8378_v47  ;;  %v8383_v55 = vpop.permute.xlu1 %8382  ;;  %5303 = vmatmul.mubr.f32.gmra.mrb[86].mxu1 %v5144_v58  ;;  %v8380_v60 = vunpack.i.h.bf16 %v8378_v47  ;;  %v12794_v47 = vmov 0.0  }
 0x85b   :  { %v8384_v7 = vunpack.i.l.bf16 %v8383_v55  ;;  %6759 = vmatprep.mubr.msk.f32.mxu1 %vm711_vm7, %v11830_v26  ;;  %v5082_v26 = vsel %vm1626_vm12, %v5066_v21, %v8370_v39  ;;  %v8385_v24 = vunpack.i.h.bf16 %v8383_v55 }
 0x85c   :  { %v5097_v20 = vsel %vm1643_vm13, %v5081_v43, %v8379_v52  ;;  %v5098_v33 = vsel %vm1643_vm13, %v5082_v26, %v8380_v60  ;;  %v12795_v43 = vld [vmem:[#allocation3_spill] sm:$0xff] }
 0x85d   :  { %v8388_v38 = vpop.permute.xlu0 %8387  ;;  %v5113_v2 = vsel %vm1660_vm3, %v5097_v20, %v8384_v7  ;;  %v5114_v37 = vsel %vm1660_vm3, %v5098_v33, %v8385_v24 }
 0x85e   :  { %v8393_v14 = vpop.permute.xlu1 %8392  ;;  %v5129_v13 = vsel %vm1677_vm4, %v5113_v2, %v8365_v18  ;;  %v8389_v45 = vunpack.i.l.bf16 %v8388_v38  ;;  %v8390_v1 = vunpack.i.h.bf16 %v8388_v38  ;;  %v5344_v38 = vld [vmem:[%s12733_s9] sm:$0xff] }
 0x85f   :  { %v5145_v22 = vsel %vm1694_vm5, %v5129_v13, %v8375_v56  ;;  %v8394_v4 = vunpack.i.l.bf16 %v8393_v14  ;;  %v8395_v17 = vunpack.i.h.bf16 %v8393_v14  ;;  %v7055_v18 = vpack.c.bf16 %v5345_v54, %v5344_v38  ;;  %v12796_v2 = vld [vmem:[#allocation2_spill] sm:$0xff]  ;;  %v5346_v13 = vld [vmem:[%s12733_s9 + $0x10] sm:$0xff] }
 0x860   :  { %5308 = vmatmul.mubr.f32.gmra.mrb[88].mxu1 %v5145_v22  ;;  %v5053_v57 = vsel %vm711_vm7, %v11802_v50, %v8389_v45  ;;  %v5054_v34 = vsel %vm711_vm7, %v11823_v40, %v8390_v1  ;;  %v7058_v21 = vpack.c.bf16 %v5347_v5, %v5346_v13 }
 0x861   :  { %v5024_v62 = vpop.permute.xlu0 %5023  ;;  %6760 = vmatprep.mubr.msk.f32.mxu1 %vm711_vm7, %v11844_v63  ;;  %v5067_v6 = vsel %vm779_vm11, %v5053_v57, %v8394_v4  ;;  %v5068_v35 = vsel %vm779_vm11, %v5054_v34, %v8395_v17  ;;  %7056 = vmatpush1.bf16.msra.mxu0 %v7055_v18  ;;  %v5348_v57 = vld [vmem:[%s12733_s9 + $0x20] sm:$0xff] }
 0x862   :  { %v4890_v44 = vpop.permute.xlu1 %4889  ;;  %7057 = vmatprep.subr.bf16.mxu0 %v12782_v41 }
 0x865   :  { %v8398_v53 = vpop.permute.xlu0 %8397  ;;  %7059 = vmatpush1.bf16.msra.mxu0 %v7058_v21 }
 0x866   :  { %v8399_v3 = vunpack.i.l.bf16 %v8398_v53  ;;  %v8403_v12 = vpop.permute.xlu1 %8402  ;;  %v8400_v50 = vunpack.i.h.bf16 %v8398_v53  ;;  %7060 = vmatprep.subr.bf16.mxu0 %v12782_v41 }
 0x867   :  { %v8405_v63 = vunpack.i.h.bf16 %v8403_v12  ;;  %v8404_v31 = vunpack.i.l.bf16 %v8403_v12 }
 0x868   :  { %v5130_v59 = vsel %vm1677_vm4, %v5114_v37, %v8399_v3  ;;  %v5349_v37 = vld [vmem:[%s12733_s9 + $0x28] sm:$0xff] }
 0x869   :  { %v4938_v15 = vpop.permute.xlu0 %4937  ;;  %v5146_v9 = vsel %vm1694_vm5, %v5130_v59, %v5024_v62  ;;  %v5083_v36 = vsel %vm1626_vm12, %v5067_v6, %v8404_v31  ;;  %v5084_v28 = vsel %vm1626_vm12, %v5068_v35, %v8405_v63  ;;  %v7061_v59 = vpack.c.bf16 %v5349_v37, %v5348_v57  ;;  %v5351_v6 = vld [vmem:[%s12733_s9 + $0x38] sm:$0xff]  ;;  %v5354_v35 = vld [vmem:[%s12733_s9 + $0x50] sm:$0xff] }
 0x86a   :  { %5313 = vmatmul.mubr.f32.gmra.mrb[90].mxu1 %v5146_v9  ;;  %v5099_v11 = vsel %vm1643_vm13, %v5083_v36, %v4890_v44  ;;  %v5026_v42 = vpop.permute.xlu1 %5025  ;;  %v5350_v9 = vld [vmem:[%s12733_s9 + $0x30] sm:$0xff] }
 0x86b   :  { %6761 = vmatprep.mubr.msk.f32.mxu1 %vm711_vm7, %v11879_v0  ;;  %v5115_v40 = vsel %vm1660_vm3, %v5099_v11, %v4938_v15  ;;  %7062 = vmatpush1.bf16.msra.mxu0 %v7061_v59  ;;  %v7064_v36 = vpack.c.bf16 %v5351_v6, %v5350_v9  ;;  %v5353_v11 = vld [vmem:[%s12733_s9 + $0x48] sm:$0xff] }
 0x86c   :  { %v5131_v61 = vsel %vm1677_vm4, %v5115_v40, %v8400_v50  ;;  %7063 = vmatprep.subr.bf16.mxu0 %v12782_v41  ;;  %v5352_v50 = vld [vmem:[%s12733_s9 + $0x40] sm:$0xff]  ;;  %v5355_v40 = vld [vmem:[%s12733_s9 + $0x58] sm:$0xff] }
 0x86d   :  { %v4892_v25 = vpop.permute.xlu0 %4891  ;;  %v5147_v51 = vsel %vm1694_vm5, %v5131_v61, %v5026_v42  ;;  %v7067_v42 = vpack.c.bf16 %v5353_v11, %v5352_v50 }
 0x86e   :  { %v5100_v19 = vsel %vm1643_vm13, %v5084_v28, %v4892_v25  ;;  %v4940_v49 = vpop.permute.xlu1 %4939  ;;  %5318 = vmatmul.mubr.f32.gmra.mrb[92].mxu1 %v5147_v51  ;;  %v7070_v25 = vpack.c.bf16 %v5355_v40, %v5354_v35  ;;  %v5356_v28 = vld [vmem:[%s12733_s9 + $0x60] sm:$0xff] }
 0x86f   :  { %v5116_v0 = vsel %vm1660_vm3, %v5100_v19, %v4940_v49  ;;  %6762 = vmatprep.mubr.msk.f32.mxu1 %vm711_vm7, %v8770_v16  ;;  %7065 = vmatpush1.bf16.msra.mxu0 %v7064_v36  ;;  %v5357_v19 = vld [vmem:[%s12733_s9 + $0x68] sm:$0xff]  ;;  %v12800_v40 = vld [vmem:[#allocation6_spill] sm:$0xff] }
 0x870   :  { %v5132_v8 = vsel %vm1677_vm4, %v5116_v0, %v9803_v27  ;;  %7066 = vmatprep.subr.bf16.mxu0 %v12782_v41  ;;  %v7073_v61 = vpack.c.bf16 %v5357_v19, %v5356_v28 }
 0x871   :  { %v5148_v46 = vsel %vm1694_vm5, %v5132_v8, %v9807_v23  ;;  %v5358_v8 = vld [vmem:[%s12733_s9 + $0x70] sm:$0xff] }
 0x872   :  { %5323 = vmatmul.mubr.f32.gmra.mrb[94].mxu1 %v5148_v46  ;;  %v5359_v46 = vld [vmem:[%s12733_s9 + $0x78] sm:$0xff] }
 0x873   :  { %6314 = vmatprep.mubr.f32.mxu1 %v12794_v47  ;;  %7068 = vmatpush1.bf16.msra.mxu0 %v7067_v42 }
 0x874   :  { %7069 = vmatprep.subr.bf16.mxu0 %v12782_v41 }
 0x877   :  { %7071 = vmatpush1.bf16.msra.mxu0 %v7070_v25 }
 0x878   :  { %7072 = vmatprep.subr.bf16.mxu0 %v12782_v41 }
 0x87b   :  { %7074 = vmatpush1.bf16.msra.mxu0 %v7073_v61 }
 0x87c   :  { %7075 = vmatprep.subr.bf16.mxu0 %v12782_v41 }
 0x8c3   :  { %v5249_v30 = vpop.f32.mrb[64].mxu1 }
 0x8c4   :  { %v5250_v52 = vadd.f32 %v12029_v32, %v5249_v30  ;;  %v5251_v29 = vpop.f32.mrb[65].mxu1  ;;  %v12797_v30 = vld [vmem:[#allocation5_spill] sm:$0xff] }
 0x8c5   :  { %v7076_v29 = vpack.c.bf16 %v5359_v46, %v5358_v8 }
 0x8c6   :  { %v5328_v58 = vadd.f32 %v5250_v52, %v12795_v43  ;;  %v5360_v43 = vld [vmem:[%s12733_s9 + $0x80] sm:$0xff] }
 0x8c7   :  { %v5254_v20 = vpop.f32.mrb[66].mxu1  ;;  %7077 = vmatpush1.bf16.msra.mxu0 %v7076_v29 }
 0x8c8   :  { %v5379_v55 = vrot.slane %v5328_v58, 7  ;;  %v5255_v10 = vadd.f32 %v12029_v32, %v5254_v20  ;;  %v5256_v7 = vpop.f32.mrb[67].mxu1  ;;  %v5361_v58 = vld [vmem:[%s12733_s9 + $0x88] sm:$0xff]  ;;  %7078 = vmatprep.subr.bf16.mxu0 %v12782_v41 }
 0x8c9   :  { %v7079_v38 = vpack.c.bf16 %v5361_v58, %v5360_v43 }
 0x8ca   :  { %v12041_v39 = vsel %vm120_vm0, 0.0, %v5379_v55  ;;  %v5427_v56 = vsel %vm120_vm0, %v5379_v55, 0.0  ;;  %v5329_v60 = vadd.f32 %v5255_v10, %v12796_v2 }
 0x8cb   :  { %v5471_v62 = vrot.slane %v12041_v39, 1  ;;  %v5472_v22 = vrot.slane %v5427_v56, 1  ;;  %v5513_v26 = vrot.slane %v12041_v39, 2  ;;  %v5514_v24 = vrot.slane %v5427_v56, 2  ;;  %v12798_v56 = vld [vmem:[#allocation4_spill] sm:$0xff]  ;;  %7080 = vmatpush1.bf16.msra.mxu0 %v7079_v38 }
 0x8cc   :  { %v5380_v14 = vrot.slane %v5329_v60, 7 }
 0x8cd   :  { %v5473_v17 = vsel %vm185_vm2, %v5471_v62, %v5472_v22  ;;  %v5515_v34 = vsel %vm231_vm1, %v5513_v26, %v5514_v24 }
 0x8ce   :  { %v12055_v45 = vsel %vm120_vm0, 0.0, %v5380_v14  ;;  %v5428_v33 = vsel %vm120_vm0, %v5380_v14, 0.0 }
 0x8cf   :  { %v5474_v44 = vrot.slane %v12055_v45, 1  ;;  %v5475_v1 = vrot.slane %v5428_v33, 1  ;;  %v5517_v53 = vrot.slane %v5428_v33, 2  ;;  %v8406_v4 = vpack.i.bf16 %v12055_v45, %v12041_v39 }
 0x8d0   :  { %v5516_v3 = vrot.slane %v12055_v45, 2 }
 0x8d1   :  { %8407 = vrot.lane.b32.xlu0 %v8406_v4, %s8662_s17  ;;  %v12072_v12 = vsel %vm185_vm2, %v5474_v44, %v5475_v1 }
 0x8d2   :  { %v5518_v63 = vsel %vm231_vm1, %v5516_v3, %v5517_v53  ;;  %v8411_v31 = vpack.i.bf16 %v12072_v12, %v5473_v17 }
 0x8d3   :  { %6764 = vmatprep.mubr.msk.f32.mxu0 %vm711_vm7, %v5518_v63  ;;  %v8426_v15 = vpack.i.bf16 %v5518_v63, %v5515_v34 }
 0x8d4   :  { %8412 = vrot.lane.b32.xlu1 %v8411_v31, %s8664_s1 }
 0x8d5   :  { %8417 = vrot.lane.b32.xlu0 %v8411_v31, %s8656_s22 }
 0x8d8   :  { %8422 = vrot.lane.b32.xlu1 %v8426_v15, %s8663_s26 }
 0x8d9   :  { %8427 = vrot.lane.b32.xlu0 %v8426_v15, %s8660_s27  ;;  %v12799_v15 = vld [vmem:[#allocation7_spill] sm:$0xff] }
 0x8e4   :  { %v5259_v51 = vpop.f32.mrb[68].mxu1 }
 0x8e5   :  { %v5260_v49 = vadd.f32 %v12029_v32, %v5259_v51  ;;  %v5261_v0 = vpop.f32.mrb[69].mxu1 }
 0x8e7   :  { %v5330_v52 = vadd.f32 %v5260_v49, %v12797_v30 }
 0x8e8   :  { %v5264_v20 = vpop.f32.mrb[70].mxu1 }
 0x8e9   :  { %v5381_v55 = vrot.slane %v5330_v52, 7  ;;  %v5265_v10 = vadd.f32 %v12029_v32, %v5264_v20  ;;  %v5266_v7 = vpop.f32.mrb[71].mxu1 }
 0x8eb   :  { %v12128_v54 = vsel %vm120_vm0, 0.0, %v5381_v55  ;;  %v5429_v18 = vsel %vm120_vm0, %v5381_v55, 0.0  ;;  %v5331_v2 = vadd.f32 %v5265_v10, %v12798_v56 }
 0x8ec   :  { %v5477_v60 = vrot.slane %v12128_v54, 1  ;;  %v5478_v14 = vrot.slane %v5429_v18, 1  ;;  %v8431_v5 = vpack.i.bf16 %v12128_v54, %v12055_v45  ;;  %v5519_v4 = vrot.slane %v12128_v54, 2 }
 0x8ed   :  { %v5382_v13 = vrot.slane %v5331_v2, 7  ;;  %v5520_v3 = vrot.slane %v5429_v18, 2 }
 0x8ee   :  { %v5479_v62 = vsel %vm185_vm2, %v5477_v60, %v5478_v14  ;;  %8432 = vrot.lane.b32.xlu1 %v8431_v5, %s8665_s24 }
 0x8ef   :  { %v12137_v22 = vsel %vm120_vm0, 0.0, %v5382_v13  ;;  %v5430_v21 = vsel %vm120_vm0, %v5382_v13, 0.0  ;;  %v8436_v26 = vpack.i.bf16 %v5479_v62, %v12072_v12  ;;  %v12155_v12 = vsel %vm231_vm1, %v5519_v4, %v5520_v3  ;;  %v12801_v13 = vld [vmem:[#allocation9_spill] sm:$0xff] }
 0x8f0   :  { %v5480_v24 = vrot.slane %v12137_v22, 1  ;;  %v5481_v33 = vrot.slane %v5430_v21, 1  ;;  %v5522_v44 = vrot.slane %v12137_v22, 2  ;;  %v5523_v1 = vrot.slane %v5430_v21, 2 }
 0x8f1   :  { %8437 = vrot.lane.b32.xlu0 %v8436_v26, %s8666_s25  ;;  %v8441_v53 = vpack.i.bf16 %v12137_v22, %v12128_v54 }
 0x8f2   :  { %v5482_v57 = vsel %vm185_vm2, %v5480_v24, %v5481_v33  ;;  %v12151_v17 = vsel %vm231_vm1, %v5522_v44, %v5523_v1  ;;  %v12802_v1 = vld [vmem:[#allocation8_spill] sm:$0xff] }
 0x8f3   :  { %8442 = vrot.lane.b32.xlu1 %v8441_v53, %s8662_s17  ;;  %v8446_v37 = vpack.i.bf16 %v5482_v57, %v5479_v62  ;;  %v8456_v59 = vpack.i.bf16 %v12151_v17, %v12155_v12 }
 0x8f5   :  { %8447 = vrot.lane.b32.xlu0 %v8446_v37, %s8664_s1 }
 0x8f7   :  { %8452 = vrot.lane.b32.xlu1 %v8446_v37, %s8656_s22 }
 0x8f9   :  { %8457 = vrot.lane.b32.xlu0 %v8456_v59, %s8663_s26 }
 0x8fb   :  { %8462 = vrot.lane.b32.xlu1 %v8456_v59, %s8660_s27 }
 0x8ff   :  { %v5269_v34 = vpop.f32.mrb[72].mxu1 }
 0x900   :  { %v5270_v63 = vadd.f32 %v12029_v32, %v5269_v34  ;;  %v5271_v31 = vpop.f32.mrb[73].mxu1 }
 0x902   :  { %v5332_v9 = vadd.f32 %v5270_v63, %v12799_v15 }
 0x903   :  { %v5274_v6 = vpop.f32.mrb[74].mxu1 }
 0x904   :  { %v5383_v36 = vrot.slane %v5332_v9, 7  ;;  %v5275_v50 = vadd.f32 %v12029_v32, %v5274_v6  ;;  %v5276_v11 = vpop.f32.mrb[75].mxu1 }
 0x906   :  { %v12166_v42 = vsel %vm120_vm0, 0.0, %v5383_v36  ;;  %v5431_v35 = vsel %vm120_vm0, %v5383_v36, 0.0  ;;  %v5333_v25 = vadd.f32 %v5275_v50, %v12800_v40 }
 0x907   :  { %v5483_v28 = vrot.slane %v12166_v42, 1  ;;  %v5484_v19 = vrot.slane %v5431_v35, 1  ;;  %v8466_v51 = vpack.i.bf16 %v12166_v42, %v12137_v22  ;;  %v5525_v20 = vrot.slane %v12166_v42, 2 }
 0x908   :  { %v5384_v61 = vrot.slane %v5333_v25, 7  ;;  %v5526_v55 = vrot.slane %v5431_v35, 2 }
 0x909   :  { %v5485_v49 = vsel %vm185_vm2, %v5483_v28, %v5484_v19  ;;  %8467 = vrot.lane.b32.xlu0 %v8466_v51, %s8665_s24  ;;  %v12803_v28 = vld [vmem:[#allocation11_spill] sm:$0xff] }
 0x90a   :  { %v12175_v0 = vsel %vm120_vm0, 0.0, %v5384_v61  ;;  %v5432_v8 = vsel %vm120_vm0, %v5384_v61, 0.0  ;;  %v8471_v46 = vpack.i.bf16 %v5485_v49, %v5482_v57  ;;  %v12192_v56 = vsel %vm231_vm1, %v5525_v20, %v5526_v55 }
 0x90b   :  { %v5486_v30 = vrot.slane %v12175_v0, 1  ;;  %v5487_v52 = vrot.slane %v5432_v8, 1  ;;  %v5528_v29 = vrot.slane %v12175_v0, 2  ;;  %v5529_v43 = vrot.slane %v5432_v8, 2 }
 0x90c   :  { %8472 = vrot.lane.b32.xlu1 %v8471_v46, %s8666_s25  ;;  %v8476_v58 = vpack.i.bf16 %v12175_v0, %v12166_v42 }
 0x90d   :  { %v5488_v10 = vsel %vm185_vm2, %v5486_v30, %v5487_v52  ;;  %v12188_v38 = vsel %vm231_vm1, %v5528_v29, %v5529_v43 }
 0x90e   :  { %8477 = vrot.lane.b32.xlu0 %v8476_v58, %s8662_s17  ;;  %v8481_v7 = vpack.i.bf16 %v5488_v10, %v5485_v49  ;;  %v8491_v14 = vpack.i.bf16 %v12188_v38, %v12192_v56 }
 0x90f   :  { %v5279_v18 = vpop.f32.mrb[76].mxu1 }
 0x910   :  { %8482 = vrot.lane.b32.xlu1 %v8481_v7, %s8664_s1  ;;  %v5280_v2 = vadd.f32 %v12029_v32, %v5279_v18  ;;  %v5281_v60 = vpop.f32.mrb[77].mxu1 }
 0x912   :  { %8487 = vrot.lane.b32.xlu0 %v8481_v7, %s8656_s22  ;;  %v5334_v5 = vadd.f32 %v5280_v2, %v12801_v13  ;;  %v12804_v2 = vld [vmem:[#allocation10_spill] sm:$0xff] }
 0x913   :  { %v5284_v62 = vpop.f32.mrb[78].mxu1 }
 0x914   :  { %8492 = vrot.lane.b32.xlu1 %v8491_v14, %s8663_s26  ;;  %v5385_v21 = vrot.slane %v5334_v5, 7  ;;  %v5285_v26 = vadd.f32 %v12029_v32, %v5284_v62  ;;  %v5286_v24 = vpop.f32.mrb[79].mxu1 }
 0x916   :  { %8497 = vrot.lane.b32.xlu0 %v8491_v14, %s8660_s27  ;;  %v12203_v33 = vsel %vm120_vm0, 0.0, %v5385_v21  ;;  %v5433_v44 = vsel %vm120_vm0, %v5385_v21, 0.0  ;;  %v5335_v53 = vadd.f32 %v5285_v26, %v12802_v1 }
 0x917   :  { %v5489_v4 = vrot.slane %v12203_v33, 1  ;;  %v5490_v3 = vrot.slane %v5433_v44, 1  ;;  %v5289_v37 = vpop.f32.mrb[80].mxu1  ;;  %v8501_v59 = vpack.i.bf16 %v12203_v33, %v12175_v0  ;;  %v5531_v40 = vrot.slane %v12203_v33, 2 }
 0x918   :  { %v5386_v57 = vrot.slane %v5335_v53, 7  ;;  %v5290_v34 = vadd.f32 %v12029_v32, %v5289_v37  ;;  %v5291_v63 = vpop.f32.mrb[81].mxu1  ;;  %v5532_v25 = vrot.slane %v5433_v44, 2 }
 0x919   :  { %v5491_v31 = vsel %vm185_vm2, %v5489_v4, %v5490_v3  ;;  %8502 = vrot.lane.b32.xlu1 %v8501_v59, %s8665_s24 }
 0x91a   :  { %v5418_v15 = vsel %vm120_vm0, 0.0, %v5386_v57  ;;  %v5434_v9 = vsel %vm120_vm0, %v5386_v57, 0.0  ;;  %v8506_v6 = vpack.i.bf16 %v5491_v31, %v5488_v10  ;;  %v5336_v19 = vadd.f32 %v5290_v34, %v12803_v28  ;;  %v12805_v34 = vld [vmem:[#allocation13_spill] sm:$0xff] }
 0x91b   :  { %v5559_v36 = vrot.slane %v5418_v15, 1  ;;  %v5560_v50 = vrot.slane %v5434_v9, 1  ;;  %v5565_v11 = vrot.slane %v5418_v15, 2  ;;  %v5566_v35 = vrot.slane %v5434_v9, 2 }
 0x91c   :  { %8507 = vrot.lane.b32.xlu0 %v8506_v6, %s8666_s25  ;;  %v8511_v61 = vpack.i.bf16 %v5418_v15, %v12203_v33  ;;  %v5387_v49 = vrot.slane %v5336_v19, 7  ;;  %v12231_v20 = vsel %vm231_vm1, %v5531_v40, %v5532_v25 }
 0x91d   :  { %v5561_v51 = vsel %vm185_vm2, %v5559_v36, %v5560_v50  ;;  %v12222_v30 = vsel %vm231_vm1, %v5565_v11, %v5566_v35 }
 0x91e   :  { %8512 = vrot.lane.b32.xlu1 %v8511_v61, %s8662_s17  ;;  %v8516_v8 = vpack.i.bf16 %v5561_v51, %v5491_v31  ;;  %v12225_v52 = vsel %vm120_vm0, 0.0, %v5387_v49  ;;  %v5435_v29 = vsel %vm120_vm0, %v5387_v49, 0.0  ;;  %v8521_v14 = vpack.i.bf16 %v12222_v30, %v12231_v20 }
 0x91f   :  { %v5492_v55 = vrot.slane %v12225_v52, 1  ;;  %v5493_v10 = vrot.slane %v5435_v29, 1  ;;  %v5534_v7 = vrot.slane %v12225_v52, 2  ;;  %v5535_v18 = vrot.slane %v5435_v29, 2 }
 0x920   :  { %v5294_v46 = vpop.f32.mrb[82].mxu1  ;;  %8517 = vrot.lane.b32.xlu0 %v8516_v8, %s8664_s1 }
 0x921   :  { %v5295_v43 = vadd.f32 %v12029_v32, %v5294_v46  ;;  %v5296_v58 = vpop.f32.mrb[83].mxu1  ;;  %v5494_v13 = vsel %vm185_vm2, %v5492_v55, %v5493_v10  ;;  %v5536_v21 = vsel %vm231_vm1, %v5534_v7, %v5535_v18 }
 0x922   :  { %v8526_v62 = vpack.i.bf16 %v5494_v13, %v5491_v31  ;;  %v8531_v57 = vpack.i.bf16 %v5536_v21, %v12231_v20  ;;  %v12806_v58 = vld [vmem:[#allocation12_spill] sm:$0xff] }
 0x923   :  { %v5337_v60 = vadd.f32 %v5295_v43, %v12804_v2 }
 0x924   :  { %8522 = vrot.lane.b32.xlu0 %v8521_v14, %s8663_s26  ;;  %8527 = vrot.lane.b32.xlu1 %v8526_v62, %s8656_s22 }
 0x925   :  { %v5388_v5 = vrot.slane %v5337_v60, 7 }
 0x926   :  { %v5299_v26 = vpop.f32.mrb[84].mxu1 }
 0x927   :  { %v12242_v24 = vsel %vm120_vm0, 0.0, %v5388_v5  ;;  %v5436_v44 = vsel %vm120_vm0, %v5388_v5, 0.0  ;;  %v5300_v1 = vadd.f32 %v12029_v32, %v5299_v26  ;;  %v5301_v53 = vpop.f32.mrb[85].mxu1  ;;  %v12807_v26 = vld [vmem:[#allocation15_spill] sm:$0xff] }
 0x928   :  { %v5495_v4 = vrot.slane %v12242_v24, 1  ;;  %v5496_v3 = vrot.slane %v5436_v44, 1  ;;  %v5537_v37 = vrot.slane %v12242_v24, 2  ;;  %v5538_v59 = vrot.slane %v5436_v44, 2  ;;  %8532 = vrot.lane.b32.xlu1 %v8531_v57, %s8660_s27 }
 0x929   :  { %v5338_v63 = vadd.f32 %v5300_v1, %v12805_v34  ;;  %v8536_v31 = vpack.i.bf16 %v12242_v24, %v5418_v15  ;;  %v8541_v40 = vpack.i.bf16 %v12242_v24, %v12225_v52 }
 0x92a   :  { %v5497_v9 = vsel %vm185_vm2, %v5495_v4, %v5496_v3  ;;  %v12262_v25 = vsel %vm231_vm1, %v5537_v37, %v5538_v59 }
 0x92b   :  { %v5389_v6 = vrot.slane %v5338_v63, 7  ;;  %8537 = vrot.lane.b32.xlu0 %v8536_v31, %s8665_s24  ;;  %v8546_v36 = vpack.i.bf16 %v5497_v9, %v5561_v51  ;;  %v8551_v50 = vpack.i.bf16 %v5497_v9, %v5494_v13  ;;  %v8556_v29 = vpack.i.bf16 %v12262_v25, %v5536_v21 }
 0x92d   :  { %v12256_v11 = vsel %vm120_vm0, 0.0, %v5389_v6  ;;  %v5437_v35 = vsel %vm120_vm0, %v5389_v6, 0.0  ;;  %8547 = vrot.lane.b32.xlu1 %v8546_v36, %s8666_s25  ;;  %v5304_v51 = vpop.f32.mrb[86].mxu1 }
 0x92e   :  { %v5498_v15 = vrot.slane %v12256_v11, 1  ;;  %v5499_v28 = vrot.slane %v5437_v35, 1  ;;  %v5540_v19 = vrot.slane %v12256_v11, 2  ;;  %v5541_v61 = vrot.slane %v5437_v35, 2  ;;  %v5306_v8 = vpop.f32.mrb[87].mxu1 }
 0x92f   :  { %8542 = vrot.lane.b32.xlu0 %v8541_v40, %s8662_s17  ;;  %v5305_v49 = vadd.f32 %v12029_v32, %v5304_v51 }
 0x930   :  { %v5500_v46 = vsel %vm185_vm2, %v5498_v15, %v5499_v28  ;;  %v12273_v10 = vsel %vm231_vm1, %v5540_v19, %v5541_v61  ;;  %v12808_v28 = vld [vmem:[#allocation14_spill] sm:$0xff] }
 0x931   :  { %v8561_v43 = vpack.i.bf16 %v5500_v46, %v5497_v9  ;;  %v5339_v55 = vadd.f32 %v5305_v49, %v12806_v58  ;;  %8552 = vrot.lane.b32.xlu1 %v8551_v50, %s8664_s1  ;;  %v8566_v2 = vpack.i.bf16 %v12273_v10, %v12262_v25 }
 0x933   :  { %8557 = vrot.lane.b32.xlu0 %v8556_v29, %s8663_s26  ;;  %v5390_v7 = vrot.slane %v5339_v55, 7  ;;  %v5309_v18 = vpop.f32.mrb[88].mxu1 }
 0x934   :  { %v5310_v13 = vadd.f32 %v12029_v32, %v5309_v18  ;;  %v5311_v5 = vpop.f32.mrb[89].mxu1 }
 0x935   :  { %v12280_v60 = vsel %vm120_vm0, 0.0, %v5390_v7  ;;  %v5438_v14 = vsel %vm120_vm0, %v5390_v7, 0.0  ;;  %8562 = vrot.lane.b32.xlu1 %v8561_v43, %s8656_s22  ;;  %v12809_v5 = vld [vmem:[#allocation17_spill] sm:$0xff] }
 0x936   :  { %v5501_v62 = vrot.slane %v12280_v60, 1  ;;  %v5502_v21 = vrot.slane %v5438_v14, 1  ;;  %v5340_v44 = vadd.f32 %v5310_v13, %v12807_v26  ;;  %v8571_v1 = vpack.i.bf16 %v12280_v60, %v12256_v11 }
 0x937   :  { %8567 = vrot.lane.b32.xlu0 %v8566_v2, %s8660_s27  ;;  %v5543_v53 = vrot.slane %v12280_v60, 2  ;;  %v5544_v3 = vrot.slane %v5438_v14, 2 }
 0x938   :  { %v5503_v4 = vsel %vm185_vm2, %v5501_v62, %v5502_v21  ;;  %v5391_v57 = vrot.slane %v5340_v44, 7 }
 0x939   :  { %v8581_v37 = vpack.i.bf16 %v5503_v4, %v5500_v46  ;;  %8572 = vrot.lane.b32.xlu1 %v8571_v1, %s8665_s24  ;;  %v12302_v40 = vsel %vm231_vm1, %v5543_v53, %v5544_v3 }
 0x93a   :  { %v12295_v59 = vsel %vm120_vm0, 0.0, %v5391_v57  ;;  %v5439_v34 = vsel %vm120_vm0, %v5391_v57, 0.0  ;;  %v8591_v51 = vpack.i.bf16 %v12302_v40, %v12273_v10 }
 0x93b   :  { %8577 = vrot.lane.b32.xlu0 %v8571_v1, %s8662_s17  ;;  %v5504_v63 = vrot.slane %v12295_v59, 1  ;;  %v5505_v31 = vrot.slane %v5439_v34, 1  ;;  %v5546_v6 = vrot.slane %v12295_v59, 2  ;;  %v5547_v36 = vrot.slane %v5439_v34, 2 }
 0x93d   :  { %v5314_v9 = vpop.f32.mrb[90].mxu1  ;;  %8582 = vrot.lane.b32.xlu1 %v8581_v37, %s8666_s25  ;;  %v5506_v15 = vsel %vm185_vm2, %v5504_v63, %v5505_v31  ;;  %v12311_v8 = vsel %vm231_vm1, %v5546_v6, %v5547_v36 }
 0x93e   :  { %v5315_v50 = vadd.f32 %v12029_v32, %v5314_v9  ;;  %v5316_v35 = vpop.f32.mrb[91].mxu1  ;;  %v8596_v61 = vpack.i.bf16 %v5506_v15, %v5503_v4  ;;  %v8601_v2 = vpack.i.bf16 %v12311_v8, %v12302_v40 }
 0x93f   :  { %8587 = vrot.lane.b32.xlu0 %v8581_v37, %s8664_s1 }
 0x940   :  { %v5341_v19 = vadd.f32 %v5315_v50, %v12808_v28  ;;  %v12810_v50 = vld [vmem:[#allocation16_spill] sm:$0xff] }
 0x941   :  { %8592 = vrot.lane.b32.xlu1 %v8591_v51, %s8663_s26  ;;  %v5319_v46 = vpop.f32.mrb[92].mxu1 }
 0x942   :  { %v5392_v49 = vrot.slane %v5341_v19, 7  ;;  %v5320_v58 = vadd.f32 %v12029_v32, %v5319_v46  ;;  %v5321_v55 = vpop.f32.mrb[93].mxu1 }
 0x943   :  { %8597 = vrot.lane.b32.xlu0 %v8596_v61, %s8656_s22  ;;  %v8408_v3 = vpop.permute.xlu0 %8407 }
 0x944   :  { %v12316_v29 = vsel %vm120_vm0, 0.0, %v5392_v49  ;;  %v5440_v43 = vsel %vm120_vm0, %v5392_v49, 0.0  ;;  %v5342_v62 = vadd.f32 %v5320_v58, %v12809_v5 }
 0x945   :  { %v5507_v7 = vrot.slane %v12316_v29, 1  ;;  %v5508_v18 = vrot.slane %v5440_v43, 1  ;;  %v5549_v14 = vrot.slane %v12316_v29, 2  ;;  %v5550_v13 = vrot.slane %v5440_v43, 2  ;;  %8602 = vrot.lane.b32.xlu1 %v8601_v2, %s8660_s27  ;;  %v5324_v26 = vpop.f32.mrb[94].mxu1 }
 0x946   :  { %v8606_v21 = vpack.i.bf16 %v12316_v29, %v12295_v59  ;;  %v5393_v44 = vrot.slane %v5342_v62, 7  ;;  %v5326_v1 = vpop.f32.mrb[95].mxu1  ;;  %v5325_v4 = vadd.f32 %v12029_v32, %v5324_v26  ;;  %v8413_v46 = vpop.permute.xlu1 %8412 }
 0x947   :  { %v5509_v53 = vsel %vm185_vm2, %v5507_v7, %v5508_v18  ;;  %v12336_v63 = vsel %vm231_vm1, %v5549_v14, %v5550_v13  ;;  %v12346_v28 = vpop.permute.xlu0 %8417  ;;  %v8409_v14 = vunpack.i.l.bf16 %v8408_v3  ;;  %v8414_v26 = vunpack.i.l.bf16 %v8413_v46 }
 0x948   :  { %8607 = vrot.lane.b32.xlu0 %v8606_v21, %s8665_s24  ;;  %v8616_v57 = vpack.i.bf16 %v5509_v53, %v5506_v15  ;;  %v12332_v37 = vsel %vm120_vm0, 0.0, %v5393_v44  ;;  %v5441_v34 = vsel %vm120_vm0, %v5393_v44, 0.0  ;;  %v5343_v35 = vadd.f32 %v5325_v4, %v12810_v50 }
 0x949   :  { %v5510_v31 = vrot.slane %v12332_v37, 1  ;;  %v5511_v9 = vrot.slane %v5441_v34, 1  ;;  %v5552_v6 = vrot.slane %v12332_v37, 2  ;;  %v5553_v36 = vrot.slane %v5441_v34, 2  ;;  %8612 = vrot.lane.b32.xlu1 %v8606_v21, %s8662_s17 }
 0x94a   :  { %v8626_v15 = vpack.i.bf16 %v12336_v63, %v12311_v8  ;;  %v5394_v51 = vrot.slane %v5343_v35, 7  ;;  %v8419_v55 = vunpack.i.l.bf16 %v12346_v28  ;;  %v8423_v13 = vpop.permute.xlu1 %8422  ;;  %v8410_v1 = vunpack.i.h.bf16 %v8408_v3 }
 0x94b   :  { %v5512_v32 = vsel %vm185_vm2, %v5510_v31, %v5511_v9  ;;  %v12350_v61 = vsel %vm231_vm1, %v5552_v6, %v5553_v36  ;;  %v12357_v43 = vpop.permute.xlu0 %8427  ;;  %v8415_v36 = vunpack.i.h.bf16 %v8413_v46 }
 0x94c   :  { %8617 = vrot.lane.b32.xlu0 %v8616_v57, %s8666_s25  ;;  %v8631_v19 = vpack.i.bf16 %v5512_v32, %v5509_v53  ;;  %v8636_v49 = vpack.i.bf16 %v12350_v61, %v12336_v63  ;;  %v5426_v58 = vsel %vm120_vm0, 0.0, %v5394_v51  ;;  %v5442_v7 = vsel %vm120_vm0, %v5394_v51, 0.0 }
 0x94d   :  { %8622 = vrot.lane.b32.xlu1 %v8616_v57, %s8664_s1  ;;  %v8429_v18 = vunpack.i.l.bf16 %v12357_v43  ;;  %v8641_v2 = vpack.i.bf16 %v5426_v58, %v12332_v37  ;;  %v5563_v5 = vrot.slane %v5442_v7, 1  ;;  %v5883_v62 = vsel %vm711_vm7, %v12041_v39, %v8419_v55 }
 0x94e   :  { %v5562_v21 = vrot.slane %v5426_v58, 1  ;;  %v8424_v53 = vunpack.i.l.bf16 %v8423_v13  ;;  %v5569_v4 = vrot.slane %v5442_v7, 2  ;;  %v5911_v57 = vsel %vm1626_vm12, %v9545_v48, %v8409_v14 }
 0x94f   :  { %v5897_v44 = vsel %vm779_vm11, %v5883_v62, %v8429_v18  ;;  %v5568_v6 = vrot.slane %v5426_v58, 2  ;;  %vm8667_vm0 = vmmov 0  }
 0x950   :  { %8627 = vrot.lane.b32.xlu0 %v8626_v15, %s8663_s26  ;;  %v5912_v31 = vsel %vm1626_vm12, %v5897_v44, %v8410_v1  ;;  %v5564_v39 = vsel %vm185_vm2, %v5562_v21, %v5563_v5  ;;  %v8420_v44 = vunpack.i.h.bf16 %v12346_v28 }
 0x951   :  { %8632 = vrot.lane.b32.xlu1 %v8631_v19, %s8656_s22  ;;  %v5928_v51 = vsel %vm1643_vm13, %v5912_v31, %v8415_v36  ;;  %v12384_v55 = vsel %vm231_vm1, %v5568_v6, %v5569_v4 }
 0x954   :  { %8637 = vrot.lane.b32.xlu0 %v8636_v49, %s8660_s27  ;;  %v8425_v49 = vunpack.i.h.bf16 %v8423_v13 }
 0x955   :  { %5865 = vrot.lane.b32.xlu1 %v5512_v32, %s8666_s25 }
 0x956   :  { %v5944_v7 = vsel %vm1660_vm3, %v5928_v51, %v8425_v49 }
 0x958   :  { %5731 = vrot.lane.b32.xlu0 %v5512_v32, %s8664_s1  ;;  %v5927_v32 = vsel %vm1643_vm13, %v5911_v57, %v8414_v26 }
 0x959   :  { %8642 = vrot.lane.b32.xlu1 %v8641_v2, %s8665_s24  ;;  %v5943_v50 = vsel %vm1660_vm3, %v5927_v32, %v8424_v53 }
 0x95c   :  { %8647 = vrot.lane.b32.xlu0 %v8641_v2, %s8662_s17 }
 0x95d   :  { %5779 = vrot.lane.b32.xlu1 %v12350_v61, %s8663_s26 }
 0x960   :  { %v8433_v34 = vpop.permute.xlu1 %8432  ;;  %5867 = vrot.lane.b32.xlu0 %v5564_v39, %s8666_s25 }
 0x961   :  { %v8434_v9 = vunpack.i.l.bf16 %v8433_v34  ;;  %v8435_v15 = vunpack.i.h.bf16 %v8433_v34  ;;  %5733 = vrot.lane.b32.xlu1 %v5564_v39, %s8664_s1 }
 0x963   :  { %v8438_v3 = vpop.permute.xlu0 %8437  ;;  %v5959_v19 = vsel %vm1677_vm4, %v5943_v50, %v8434_v9  ;;  %v5960_v2 = vsel %vm1677_vm4, %v5944_v7, %v8435_v15 }
 0x964   :  { %v8439_v35 = vunpack.i.l.bf16 %v8438_v3  ;;  %v8440_v46 = vunpack.i.h.bf16 %v8438_v3  ;;  %5781 = vrot.lane.b32.xlu0 %v12384_v55, %s8663_s26 }
 0x965   :  { %v8443_v18 = vpop.permute.xlu1 %8442 }
 0x966   :  { %v5975_v58 = vsel %vm1694_vm5, %v5959_v19, %v8439_v35  ;;  %v5976_v14 = vsel %vm1694_vm5, %v5960_v2, %v8440_v46  ;;  %v8444_v53 = vunpack.i.l.bf16 %v8443_v18  ;;  %v8445_v31 = vunpack.i.h.bf16 %v8443_v18 }
 0x967   :  { %6090 = vmatmul.mubr.f32.vlgmr.msra.gmra.mrb[80].mxu0 %v5975_v58  ;;  %v8448_v5 = vpop.permute.xlu0 %8447 }
 0x968   :  { %6765 = vmatprep.mubr.msk.f32.mxu0 %vm711_vm7, %v12155_v12  ;;  %v8430_v12 = vunpack.i.h.bf16 %v12357_v43  ;;  %v8449_v57 = vunpack.i.l.bf16 %v8448_v5  ;;  %v8450_v32 = vunpack.i.h.bf16 %v8448_v5 }
 0x969   :  { %v8453_v13 = vpop.permute.xlu1 %8452 }
 0x96a   :  { %v8454_v21 = vunpack.i.l.bf16 %v8453_v13 }
 0x96b   :  { %6095 = vmatmul.mubr.f32.gmra.mrb[82].mxu0 %v5976_v14  ;;  %v8458_v1 = vpop.permute.xlu0 %8457 }
 0x96c   :  { %6766 = vmatprep.mubr.msk.f32.mxu0 %vm711_vm7, %v12151_v17  ;;  %v5885_v4 = vsel %vm711_vm7, %v12128_v54, %v8454_v21  ;;  %v5884_v17 = vsel %vm711_vm7, %v12055_v45, %v8420_v44  ;;  %v8459_v39 = vunpack.i.l.bf16 %v8458_v1  ;;  %v8460_v49 = vunpack.i.h.bf16 %v8458_v1 }
 0x96d   :  { %v8463_v62 = vpop.permute.xlu1 %8462  ;;  %v5898_v9 = vsel %vm779_vm11, %v5884_v17, %v8430_v12  ;;  %v8455_v12 = vunpack.i.h.bf16 %v8453_v13 }
 0x96e   :  { %v8464_v26 = vunpack.i.l.bf16 %v8463_v62  ;;  %v5913_v28 = vsel %vm1626_vm12, %v5898_v9, %v8444_v53  ;;  %v8465_v53 = vunpack.i.h.bf16 %v8463_v62 }
 0x96f   :  { %v5929_v3 = vsel %vm1643_vm13, %v5913_v28, %v8449_v57 }
 0x970   :  { %v5899_v34 = vsel %vm779_vm11, %v5885_v4, %v8464_v26  ;;  %v5945_v35 = vsel %vm1660_vm3, %v5929_v3, %v8459_v39 }
 0x971   :  { %v5914_v43 = vsel %vm1626_vm12, %v5899_v34, %v8445_v31  ;;  %v5886_v31 = vsel %vm711_vm7, %v12137_v22, %v8455_v12 }
 0x972   :  { %v5930_v51 = vsel %vm1643_vm13, %v5914_v43, %v8450_v32 }
 0x973   :  { %v5946_v18 = vsel %vm1660_vm3, %v5930_v51, %v8460_v49 }
 0x97b   :  { %v8468_v6 = vpop.permute.xlu0 %8467 }
 0x97c   :  { %v8469_v36 = vunpack.i.l.bf16 %v8468_v6  ;;  %v8470_v15 = vunpack.i.h.bf16 %v8468_v6 }
 0x97e   :  { %v8473_v54 = vpop.permute.xlu1 %8472  ;;  %v5961_v45 = vsel %vm1677_vm4, %v5945_v35, %v8469_v36  ;;  %v5962_v14 = vsel %vm1677_vm4, %v5946_v18, %v8470_v15 }
 0x97f   :  { %v8474_v50 = vunpack.i.l.bf16 %v8473_v54  ;;  %v8475_v46 = vunpack.i.h.bf16 %v8473_v54 }
 0x980   :  { %v8478_v19 = vpop.permute.xlu0 %8477 }
 0x981   :  { %v5977_v58 = vsel %vm1694_vm5, %v5961_v45, %v8474_v50  ;;  %v5978_v5 = vsel %vm1694_vm5, %v5962_v14, %v8475_v46  ;;  %v8480_v4 = vunpack.i.h.bf16 %v8478_v19  ;;  %v8479_v57 = vunpack.i.l.bf16 %v8478_v19 }
 0x982   :  { %v8483_v7 = vpop.permute.xlu1 %8482  ;;  %6100 = vmatmul.mubr.f32.gmra.mrb[84].mxu0 %v5977_v58 }
 0x983   :  { %6767 = vmatprep.mubr.msk.f32.mxu0 %vm711_vm7, %v12192_v56  ;;  %v8484_v17 = vunpack.i.l.bf16 %v8483_v7  ;;  %v8485_v6 = vunpack.i.h.bf16 %v8483_v7 }
 0x984   :  { %v8488_v2 = vpop.permute.xlu0 %8487 }
 0x985   :  { %v8489_v21 = vunpack.i.l.bf16 %v8488_v2  ;;  %v8490_v18 = vunpack.i.h.bf16 %v8488_v2 }
 0x986   :  { %6105 = vmatmul.mubr.f32.gmra.mrb[86].mxu0 %v5978_v5  ;;  %v8493_v26 = vpop.permute.xlu1 %8492 }
 0x987   :  { %6768 = vmatprep.mubr.msk.f32.mxu0 %vm711_vm7, %v12188_v38  ;;  %v5887_v56 = vsel %vm711_vm7, %v12166_v42, %v8489_v21  ;;  %v8494_v39 = vunpack.i.l.bf16 %v8493_v26  ;;  %v5900_v38 = vsel %vm779_vm11, %v5886_v31, %v8465_v53  ;;  %v8495_v32 = vunpack.i.h.bf16 %v8493_v26 }
 0x988   :  { %v8498_v44 = vpop.permute.xlu0 %8497  ;;  %v5915_v62 = vsel %vm1626_vm12, %v5900_v38, %v8479_v57 }
 0x989   :  { %v8499_v1 = vunpack.i.l.bf16 %v8498_v44  ;;  %v5931_v42 = vsel %vm1643_vm13, %v5915_v62, %v8484_v17  ;;  %v8500_v14 = vunpack.i.h.bf16 %v8498_v44 }
 0x98a   :  { %v5947_v54 = vsel %vm1660_vm3, %v5931_v42, %v8494_v39 }
 0x98b   :  { %v5901_v34 = vsel %vm779_vm11, %v5887_v56, %v8499_v1  ;;  %v8503_v13 = vpop.permute.xlu1 %8502 }
 0x98c   :  { %v5916_v9 = vsel %vm1626_vm12, %v5901_v34, %v8480_v4  ;;  %v8504_v28 = vunpack.i.l.bf16 %v8503_v13  ;;  %v8505_v22 = vunpack.i.h.bf16 %v8503_v13 }
 0x98d   :  { %v5932_v36 = vsel %vm1643_vm13, %v5916_v9, %v8485_v6 }
 0x98e   :  { %v8508_v43 = vpop.permute.xlu0 %8507  ;;  %v5963_v50 = vsel %vm1677_vm4, %v5947_v54, %v8504_v28  ;;  %v5948_v19 = vsel %vm1660_vm3, %v5932_v36, %v8495_v32 }
 0x98f   :  { %v8509_v3 = vunpack.i.l.bf16 %v8508_v43  ;;  %v8510_v35 = vunpack.i.h.bf16 %v8508_v43  ;;  %v5964_v49 = vsel %vm1677_vm4, %v5948_v19, %v8505_v22 }
 0x990   :  { %v8513_v51 = vpop.permute.xlu1 %8512 }
 0x991   :  { %v5979_v15 = vsel %vm1694_vm5, %v5963_v50, %v8509_v3  ;;  %v5980_v46 = vsel %vm1694_vm5, %v5964_v49, %v8510_v35  ;;  %v8514_v21 = vunpack.i.l.bf16 %v8513_v51  ;;  %v8515_v57 = vunpack.i.h.bf16 %v8513_v51 }
 0x992   :  { %v8518_v45 = vpop.permute.xlu0 %8517  ;;  %6110 = vmatmul.mubr.f32.gmra.mrb[88].mxu0 %v5979_v15 }
 0x993   :  { %6769 = vmatprep.mubr.msk.f32.mxu0 %vm711_vm7, %v12231_v20  ;;  %v8519_v26 = vunpack.i.l.bf16 %v8518_v45  ;;  %v5888_v20 = vsel %vm711_vm7, %v12175_v0, %v8490_v18  ;;  %v8520_v17 = vunpack.i.h.bf16 %v8518_v45 }
 0x994   :  { %v5902_v4 = vsel %vm779_vm11, %v5888_v20, %v8500_v14 }
 0x995   :  { %v5917_v2 = vsel %vm1626_vm12, %v5902_v4, %v8514_v21 }
 0x996   :  { %v8523_v58 = vpop.permute.xlu0 %8522  ;;  %6115 = vmatmul.mubr.f32.gmra.mrb[90].mxu0 %v5980_v46  ;;  %v8528_v7 = vpop.permute.xlu1 %8527  ;;  %v5933_v31 = vsel %vm1643_vm13, %v5917_v2, %v8519_v26 }
 0x997   :  { %6770 = vmatprep.mubr.msk.f32.mxu0 %vm711_vm7, %v12222_v30  ;;  %v8529_v5 = vunpack.i.l.bf16 %v8528_v7  ;;  %v8524_v53 = vunpack.i.l.bf16 %v8523_v58  ;;  %v8525_v38 = vunpack.i.h.bf16 %v8523_v58  ;;  %v8530_v35 = vunpack.i.h.bf16 %v8528_v7 }
 0x999   :  { %v5889_v34 = vsel %vm711_vm7, %v12203_v33, %v8529_v5  ;;  %v5949_v13 = vsel %vm1660_vm3, %v5933_v31, %v8524_v53  ;;  %v5890_v7 = vsel %vm711_vm7, %v12225_v52, %v8530_v35 }
 0x99a   :  { %v8533_v12 = vpop.permute.xlu1 %8532 }
 0x99b   :  { %v8534_v56 = vunpack.i.l.bf16 %v8533_v12  ;;  %v8535_v45 = vunpack.i.h.bf16 %v8533_v12 }
 0x99d   :  { %v8538_v1 = vpop.permute.xlu0 %8537  ;;  %v5903_v44 = vsel %vm779_vm11, %v5889_v34, %v8534_v56  ;;  %v5904_v26 = vsel %vm779_vm11, %v5890_v7, %v8535_v45 }
 0x99e   :  { %v8539_v30 = vunpack.i.l.bf16 %v8538_v1  ;;  %v5918_v39 = vsel %vm1626_vm12, %v5903_v44, %v8515_v57  ;;  %v8540_v51 = vunpack.i.h.bf16 %v8538_v1 }
 0x99f   :  { %v8548_v9 = vpop.permute.xlu1 %8547  ;;  %v5934_v33 = vsel %vm1643_vm13, %v5918_v39, %v8520_v17 }
 0x9a0   :  { %v8549_v6 = vunpack.i.l.bf16 %v8548_v9  ;;  %v5965_v28 = vsel %vm1677_vm4, %v5949_v13, %v8539_v30  ;;  %v5950_v43 = vsel %vm1660_vm3, %v5934_v33, %v8525_v38  ;;  %v8550_v18 = vunpack.i.h.bf16 %v8548_v9 }
 0x9a1   :  { %v8543_v0 = vpop.permute.xlu0 %8542  ;;  %v5966_v3 = vsel %vm1677_vm4, %v5950_v43, %v9803_v27 }
 0x9a2   :  { %v8544_v62 = vunpack.i.l.bf16 %v8543_v0  ;;  %v5981_v42 = vsel %vm1694_vm5, %v5965_v28, %v8549_v6  ;;  %v5982_v19 = vsel %vm1694_vm5, %v5966_v3, %v9807_v23  ;;  %v8545_v14 = vunpack.i.h.bf16 %v8543_v0 }
 0x9a3   :  { %v8553_v36 = vpop.permute.xlu1 %8552  ;;  %6120 = vmatmul.mubr.f32.gmra.mrb[92].mxu0 %v5981_v42 }
 0x9a4   :  { %v8554_v54 = vunpack.i.l.bf16 %v8553_v36  ;;  %6771 = vmatprep.mubr.msk.f32.mxu0 %vm711_vm7, %v8770_v16  ;;  %v5919_v50 = vsel %vm1626_vm12, %v9545_v48, %v8544_v62  ;;  %v8555_v5 = vunpack.i.h.bf16 %v8553_v36  ;;  %v5920_v20 = vsel %vm1626_vm12, %v5904_v26, %v8545_v14 }
 0x9a5   :  { %v8558_v32 = vpop.permute.xlu0 %8557 }
 0x9a6   :  { %v8559_v22 = vunpack.i.l.bf16 %v8558_v32  ;;  %v5935_v15 = vsel %vm1643_vm13, %v5919_v50, %v8554_v54  ;;  %v8560_v53 = vunpack.i.h.bf16 %v8558_v32 }
 0x9a7   :  { %v8563_v49 = vpop.permute.xlu1 %8562  ;;  %6125 = vmatmul.mubr.f32.gmra.mrb[94].mxu0 %v5982_v19 }
 0x9a8   :  { %v5951_v58 = vsel %vm1660_vm3, %v5935_v15, %v8559_v22  ;;  %6772 = vmatprep.mubr.msk.f32.mxu0 %vm711_vm7, %v12262_v25  ;;  %v8564_v56 = vunpack.i.l.bf16 %v8563_v49  ;;  %v5936_v25 = vsel %vm1643_vm13, %v5920_v20, %v8555_v5  ;;  %v8565_v0 = vunpack.i.h.bf16 %v8563_v49 }
 0x9a9   :  { %v8568_v46 = vpop.permute.xlu0 %8567  ;;  %v5967_v48 = vsel %vm1677_vm4, %v5951_v58, %v8540_v51  ;;  %v5952_v17 = vsel %vm1660_vm3, %v5936_v25, %v8560_v53 }
 0x9aa   :  { %v5983_v21 = vsel %vm1694_vm5, %v5967_v48, %v8550_v18  ;;  %v8569_v57 = vunpack.i.l.bf16 %v8568_v46  ;;  %v5891_v30 = vsel %vm711_vm7, %v12242_v24, %v8564_v56  ;;  %v8570_v33 = vunpack.i.h.bf16 %v8568_v46 }
 0x9ab   :  { %v8573_v12 = vpop.permute.xlu1 %8572  ;;  %6130 = vmatmul.mubr.f32.gmra.mrb[96].mxu0 %v5983_v21  ;;  %v5892_v36 = vsel %vm711_vm7, %v12256_v11, %v8565_v0 }
 0x9ac   :  { %6773 = vmatprep.mubr.msk.f32.mxu0 %vm711_vm7, %v12273_v10  ;;  %v8574_v4 = vunpack.i.l.bf16 %v8573_v12  ;;  %v5905_v10 = vsel %vm779_vm11, %v5891_v30, %v8569_v57  ;;  %v8575_v24 = vunpack.i.h.bf16 %v8573_v12 }
 0x9ad   :  { %v8578_v1 = vpop.permute.xlu0 %8577 }
 0x9ae   :  { %v8579_v2 = vunpack.i.l.bf16 %v8578_v1  ;;  %v5968_v39 = vsel %vm1677_vm4, %v5952_v17, %v8574_v4  ;;  %v8580_v32 = vunpack.i.h.bf16 %v8578_v1 }
 0x9af   :  { %v8583_v34 = vpop.permute.xlu1 %8582 }
 0x9b0   :  { %v8584_v44 = vunpack.i.l.bf16 %v8583_v34  ;;  %v5921_v13 = vsel %vm1626_vm12, %v5905_v10, %v8579_v2  ;;  %v8585_v42 = vunpack.i.h.bf16 %v8583_v34 }
 0x9b1   :  { %v8588_v52 = vpop.permute.xlu0 %8587 }
 0x9b2   :  { %v8589_v31 = vunpack.i.l.bf16 %v8588_v52  ;;  %v5984_v9 = vsel %vm1694_vm5, %v5968_v39, %v8584_v44  ;;  %v8590_v22 = vunpack.i.h.bf16 %v8588_v52 }
 0x9b3   :  { %v8593_v38 = vpop.permute.xlu1 %8592  ;;  %6135 = vmatmul.mubr.f32.gmra.mrb[98].mxu0 %v5984_v9 }
 0x9b4   :  { %v8594_v62 = vunpack.i.l.bf16 %v8593_v38  ;;  %6774 = vmatprep.mubr.msk.f32.mxu0 %vm711_vm7, %v12302_v40  ;;  %v5937_v28 = vsel %vm1643_vm13, %v5921_v13, %v8589_v31  ;;  %v8595_v15 = vunpack.i.h.bf16 %v8593_v38  ;;  %v5906_v40 = vsel %vm779_vm11, %v5892_v36, %v8570_v33 }
 0x9b5   :  { %v8598_v6 = vpop.permute.xlu0 %8597  ;;  %v5922_v45 = vsel %vm1626_vm12, %v5906_v40, %v8580_v32 }
 0x9b6   :  { %v5953_v43 = vsel %vm1660_vm3, %v5937_v28, %v8594_v62  ;;  %v8599_v51 = vunpack.i.l.bf16 %v8598_v6  ;;  %v5938_v49 = vsel %vm1643_vm13, %v5922_v45, %v8590_v22  ;;  %v8600_v4 = vunpack.i.h.bf16 %v8598_v6 }
 0x9b7   :  { %v8603_v3 = vpop.permute.xlu1 %8602  ;;  %v5969_v54 = vsel %vm1677_vm4, %v5953_v43, %v8575_v24  ;;  %v5954_v5 = vsel %vm1660_vm3, %v5938_v49, %v8595_v15 }
 0x9b8   :  { %v5985_v35 = vsel %vm1694_vm5, %v5969_v54, %v8585_v42  ;;  %v8604_v46 = vunpack.i.l.bf16 %v8603_v3  ;;  %v5893_v7 = vsel %vm711_vm7, %v12280_v60, %v8599_v51  ;;  %v8605_v52 = vunpack.i.h.bf16 %v8603_v3 }
 0x9b9   :  { %6140 = vmatmul.mubr.f32.gmra.mrb[100].mxu0 %v5985_v35 }
 0x9ba   :  { %v8608_v50 = vpop.permute.xlu0 %8607  ;;  %6775 = vmatprep.mubr.msk.f32.mxu0 %vm711_vm7, %v12311_v8  ;;  %v5907_v26 = vsel %vm779_vm11, %v5893_v7, %v8604_v46  ;;  %v6206_v7 = vld [vmem:[%s12734_s11 + $0x20] sm:$0xff] }
 0x9bb   :  { %v8609_v19 = vunpack.i.l.bf16 %v8608_v50  ;;  %v8613_v11 = vpop.permute.xlu1 %8612  ;;  %v8610_v56 = vunpack.i.h.bf16 %v8608_v50 }
 0x9bc   :  { %v8614_v18 = vunpack.i.l.bf16 %v8613_v11  ;;  %v8615_v44 = vunpack.i.h.bf16 %v8613_v11 }
 0x9bd   :  { %v5970_v48 = vsel %vm1677_vm4, %v5954_v5, %v8609_v19 }
 0x9be   :  { %v8618_v58 = vpop.permute.xlu0 %8617  ;;  %v5923_v20 = vsel %vm1626_vm12, %v5907_v26, %v8614_v18 }
 0x9bf   :  { %v8619_v14 = vunpack.i.l.bf16 %v8618_v58  ;;  %v8623_v21 = vpop.permute.xlu1 %8622  ;;  %v8620_v57 = vunpack.i.h.bf16 %v8618_v58 }
 0x9c0   :  { %v8624_v12 = vunpack.i.l.bf16 %v8623_v21  ;;  %v8625_v31 = vunpack.i.h.bf16 %v8623_v21  ;;  %v6202_v21 = vld [vmem:[%s12734_s11] sm:$0xff] }
 0x9c1   :  { %v5986_v8 = vsel %vm1694_vm5, %v5970_v48, %v8619_v14  ;;  %v6203_v48 = vld [vmem:[%s12734_s11 + $0x8] sm:$0xff] }
 0x9c2   :  { %v8628_v1 = vpop.permute.xlu0 %8627  ;;  %6145 = vmatmul.mubr.f32.gmra.mrb[102].mxu0 %v5986_v8  ;;  %v5939_v25 = vsel %vm1643_vm13, %v5923_v20, %v8624_v12  ;;  %v6212_v8 = vld [vmem:[%s12734_s11 + $0x50] sm:$0xff]  ;;  %v6211_v20 = vld [vmem:[%s12734_s11 + $0x48] sm:$0xff] }
 0x9c3   :  { %v8629_v53 = vunpack.i.l.bf16 %v8628_v1  ;;  %6776 = vmatprep.mubr.msk.f32.mxu0 %vm711_vm7, %v12336_v63  ;;  %v8633_v60 = vpop.permute.xlu1 %8632  ;;  %v5894_v63 = vsel %vm711_vm7, %v12295_v59, %v8600_v4  ;;  %v8630_v6 = vunpack.i.h.bf16 %v8628_v1  ;;  %v6208_v1 = vld [vmem:[%s12734_s11 + $0x30] sm:$0xff]  ;;  %v6218_v4 = vld [vmem:[%s12734_s11 + $0x80] sm:$0xff] }
 0x9c4   :  { %v8634_v39 = vunpack.i.l.bf16 %v8633_v60  ;;  %v5908_v0 = vsel %vm779_vm11, %v5894_v63, %v8605_v52  ;;  %v8635_v24 = vunpack.i.h.bf16 %v8633_v60  ;;  %v7087_v60 = vpack.c.bf16 %v6211_v20, %v6208_v1  ;;  %v6210_v52 = vld [vmem:[%s12734_s11 + $0x40] sm:$0xff] }
 0x9c5   :  { %v5955_v34 = vsel %vm1660_vm3, %v5939_v25, %v8629_v53  ;;  %v5924_v38 = vsel %vm1626_vm12, %v5908_v0, %v8615_v44  ;;  %v6204_v53 = vld [vmem:[%s12734_s11 + $0x10] sm:$0xff]  ;;  %v6215_v25 = vld [vmem:[%s12734_s11 + $0x68] sm:$0xff]  ;;  %v6217_v44 = vld [vmem:[%s12734_s11 + $0x78] sm:$0xff] }
 0x9c6   :  { %v8638_v30 = vpop.permute.xlu0 %8637  ;;  %v5971_v2 = vsel %vm1677_vm4, %v5955_v34, %v8610_v56  ;;  %v5940_v13 = vsel %vm1643_vm13, %v5924_v38, %v8625_v31  ;;  %v5895_v28 = vsel %vm711_vm7, %v12316_v29, %v8634_v39  ;;  %v5896_v54 = vsel %vm711_vm7, %v12332_v37, %v8635_v24  ;;  %v6207_v56 = vld [vmem:[%s12734_s11 + $0x28] sm:$0xff]  ;;  %v6221_v39 = vld [vmem:[%s12734_s11 + $0x98] sm:$0xff]  ;;  %v6216_v0 = vld [vmem:[%s12734_s11 + $0x70] sm:$0xff] }
 0x9c7   :  { %v5987_v17 = vsel %vm1694_vm5, %v5971_v2, %v8620_v57  ;;  %v5866_v9 = vpop.permute.xlu1 %5865  ;;  %v8639_v62 = vunpack.i.l.bf16 %v8638_v30  ;;  %v5956_v36 = vsel %vm1660_vm3, %v5940_v13, %v8630_v6  ;;  %v12577_v57 = vld [vmem:[%s12735_s10] ss:$0 sm:$0xff]  ;;  %v7113_v34 = vpack.c.bf16 %v6207_v56, %v6204_v53  ;;  %v6219_v6 = vld [vmem:[%s12734_s11 + $0x88] sm:$0xff]  ;;  %v6244_v53 = vld [vmem:[%s12734_s11 + $0x150] sm:$0xff] }
 0x9c8   :  { %6150 = vmatmul.mubr.f32.gmra.mrb[104].mxu0 %v5987_v17  ;;  %v6214_v2 = vld [vmem:[%s12734_s11 + $0x60] sm:$0xff]  ;;  %v6213_v17 = vld [vmem:[%s12734_s11 + $0x58] sm:$0xff]  ;;  %v7121_v24 = vpack.c.bf16 %v6219_v6, %v6216_v0  ;;  %v6247_v56 = vld [vmem:[%s12734_s11 + $0x168] sm:$0xff] }
 0x9c9   :  { %6777 = vmatprep.mubr.msk.f32.mxu0 %vm711_vm7, %v12350_v61  ;;  %v8640_v61 = vunpack.i.h.bf16 %v8638_v30  ;;  %v5909_v32 = vsel %vm779_vm11, %v5895_v28, %v8639_v62  ;;  %v7089_v30 = vpack.c.bf16 %v6218_v4, %v6215_v25  ;;  %7114 = vmatprep.subr.bf16.mxu0 %v7113_v34  ;;  %v7117_v63 = vpack.c.bf16 %v6213_v17, %v6210_v52  ;;  %v6220_v62 = vld [vmem:[%s12734_s11 + $0x90] sm:$0xff]  ;;  %v6246_v0 = vld [vmem:[%s12734_s11 + $0x160] sm:$0xff] }
 0x9ca   :  { %v5732_v10 = vpop.permute.xlu0 %5731  ;;  %7116 = vmatpush3.bf16.msra.mxu0 %v7113_v34  ;;  %v7091_v13 = vpack.c.bf16 %v6217_v44, %v6214_v2  ;;  %v7111_v25 = vpack.c.bf16 %v6247_v56, %v6244_v53 }
 0x9cb   :  { %v8643_v33 = vpop.permute.xlu1 %8642  ;;  %v5910_v51 = vsel %vm779_vm11, %v5896_v54, %v8640_v61  ;;  %7118 = vmatprep.subr.bf16.mxu0 %v7117_v63  ;;  %v6230_v61 = vld [vmem:[%s12734_s11 + $0xe0] sm:$0xff] }
 0x9cc   :  { %v8644_v59 = vunpack.i.l.bf16 %v8643_v33  ;;  %v8645_v15 = vunpack.i.h.bf16 %v8643_v33  ;;  %v6223_v33 = vld [vmem:[%s12734_s11 + $0xa8] sm:$0xff] }
 0x9cd   :  { %v7095_v54 = vpack.c.bf16 %v6223_v33, %v6220_v62 }
 0x9ce   :  { %v8648_v42 = vpop.permute.xlu0 %8647  ;;  %v5972_v3 = vsel %vm1677_vm4, %v5956_v36, %v8644_v59  ;;  %v6222_v59 = vld [vmem:[%s12734_s11 + $0xa0] sm:$0xff]  ;;  %v6227_v36 = vld [vmem:[%s12734_s11 + $0xc8] sm:$0xff]  ;;  %7120 = vmatpush3.bf16.msra.mxu0 %v7117_v63 }
 0x9cf   :  { %v8649_v43 = vunpack.i.l.bf16 %v8648_v42  ;;  %v8650_v22 = vunpack.i.h.bf16 %v8648_v42  ;;  %v5780_v50 = vpop.permute.xlu1 %5779  ;;  %v5988_v29 = vsel %vm1694_vm5, %v5972_v3, %v5866_v9  ;;  %v6224_v9 = vld [vmem:[%s12734_s11 + $0xb0] sm:$0xff]  ;;  %v6225_v42 = vld [vmem:[%s12734_s11 + $0xb8] sm:$0xff]  ;;  %7122 = vmatprep.subr.bf16.mxu0 %v7121_v24 }
 0x9d0   :  { %6155 = vmatmul.mubr.f32.gmra.mrb[106].mxu0 %v5988_v29  ;;  %v7093_v28 = vpack.c.bf16 %v6224_v9, %v6221_v39  ;;  %v6229_v29 = vld [vmem:[%s12734_s11 + $0xd8] sm:$0xff] }
 0x9d1   :  { %v5925_v35 = vsel %vm1626_vm12, %v5909_v32, %v8649_v43  ;;  %6778 = vmatprep.mubr.msk.f32.mxu0 %vm711_vm7, %v12384_v55  ;;  %v5926_v49 = vsel %vm1626_vm12, %v5910_v51, %v8650_v22  ;;  %v6226_v22 = vld [vmem:[%s12734_s11 + $0xc0] sm:$0xff] }
 0x9d2   :  { %v5941_v40 = vsel %vm1643_vm13, %v5925_v35, %v5732_v10  ;;  %v5868_v19 = vpop.permute.xlu0 %5867  ;;  %v7097_v35 = vpack.c.bf16 %v6230_v61, %v6227_v36  ;;  %7124 = vmatpush3.bf16.msra.mxu0 %v7121_v24  ;;  %v7099_v51 = vpack.c.bf16 %v6229_v29, %v6226_v22 }
 0x9d3   :  { %v5957_v45 = vsel %vm1660_vm3, %v5941_v40, %v5780_v50  ;;  %v5734_v11 = vpop.permute.xlu1 %5733  ;;  %v7125_v50 = vpack.c.bf16 %v6225_v42, %v6222_v59  ;;  %v6231_v40 = vld [vmem:[%s12734_s11 + $0xe8] sm:$0xff] }
 0x9d4   :  { %v5973_v37 = vsel %vm1677_vm4, %v5957_v45, %v8645_v15  ;;  %v5942_v58 = vsel %vm1643_vm13, %v5926_v49, %v5734_v11  ;;  %v6228_v15 = vld [vmem:[%s12734_s11 + $0xd0] sm:$0xff] }
 0x9d5   :  { %v5989_v46 = vsel %vm1694_vm5, %v5973_v37, %v5868_v19  ;;  %v6233_v19 = vld [vmem:[%s12734_s11 + $0xf8] sm:$0xff]  ;;  %v6236_v45 = vld [vmem:[%s12734_s11 + $0x110] sm:$0xff]  ;;  %7126 = vmatprep.subr.bf16.mxu0 %v7125_v50  ;;  %v7129_v11 = vpack.c.bf16 %v6231_v40, %v6228_v15 }
 0x9d6   :  { %v5782_v18 = vpop.permute.xlu0 %5781  ;;  %6160 = vmatmul.mubr.f32.gmra.mrb[108].mxu0 %v5989_v46  ;;  %v6232_v37 = vld [vmem:[%s12734_s11 + $0xf0] sm:$0xff]  ;;  %v7101_v49 = vpack.c.bf16 %v6236_v45, %v6233_v19  ;;  %v6235_v46 = vld [vmem:[%s12734_s11 + $0x108] sm:$0xff] }
 0x9d7   :  { %v5958_v14 = vsel %vm1660_vm3, %v5942_v58, %v5782_v18  ;;  %6779 = vmatprep.mubr.msk.f32.mxu0 %vm711_vm7, %v8770_v16  ;;  %v7081_v16 = vpack.c.bf16 %v6206_v7, %v6203_v48  ;;  %v6234_v58 = vld [vmem:[%s12734_s11 + $0x100] sm:$0xff]  ;;  %v6237_v18 = vld [vmem:[%s12734_s11 + $0x118] sm:$0xff]  ;;  %7128 = vmatpush3.bf16.msra.mxu0 %v7125_v50 }
 0x9d8   :  { %v5974_v55 = vsel %vm1677_vm4, %v5958_v14, %v9803_v27  ;;  %v6205_v27 = vld [vmem:[%s12734_s11 + $0x18] sm:$0xff]  ;;  %v6239_v14 = vld [vmem:[%s12734_s11 + $0x128] sm:$0xff]  ;;  %7130 = vmatprep.subr.bf16.mxu0 %v7129_v11  ;;  %v6238_v48 = vld [vmem:[%s12734_s11 + $0x120] sm:$0xff]  ;;  %v7133_v7 = vpack.c.bf16 %v6237_v18, %v6234_v58 }
 0x9d9   :  { %v5990_v5 = vsel %vm1694_vm5, %v5974_v55, %v9807_v23  ;;  %v6209_v23 = vld [vmem:[%s12734_s11 + $0x38] sm:$0xff]  ;;  %v7083_v26 = vpack.c.bf16 %v6205_v27, %v6202_v21  ;;  %7082 = vmatprep.subr.bf16.mxu1 %v7081_v16  ;;  %v6242_v55 = vld [vmem:[%s12734_s11 + $0x140] sm:$0xff]  ;;  %v6240_v27 = vld [vmem:[%s12734_s11 + $0x130] sm:$0xff] }
 0x9da   :  { %6165 = vmatmul.mubr.f32.gmra.mrb[110].mxu0 %v5990_v5  ;;  %v7085_v12 = vpack.c.bf16 %v6212_v8, %v6209_v23  ;;  %v7103_v5 = vpack.c.bf16 %v6235_v46, %v6232_v37  ;;  %v7105_v21 = vpack.c.bf16 %v6242_v55, %v6239_v14  ;;  %v6241_v16 = vld [vmem:[%s12734_s11 + $0x138] sm:$0xff]  ;;  %v6243_v23 = vld [vmem:[%s12734_s11 + $0x148] sm:$0xff] }
 0x9db   :  { %7084 = vmatpush1.bf16.msra.mxu1 %v7083_v26  ;;  %v6245_v8 = vld [vmem:[%s12734_s11 + $0x158] sm:$0xff]  ;;  %v6248_v26 = vld [vmem:[%s12734_s11 + $0x170] sm:$0xff]  ;;  %7132 = vmatpush3.bf16.msra.mxu0 %v7129_v11  ;;  %v7137_v1 = vpack.c.bf16 %v6243_v23, %v6240_v27 }
 0x9dc   :  { %7086 = vmatprep.subr.bf16.mxu1 %v7085_v12  ;;  %v7107_v12 = vpack.c.bf16 %v6241_v16, %v6238_v48  ;;  %7134 = vmatprep.subr.bf16.mxu0 %v7133_v7  ;;  %v7109_v20 = vpack.c.bf16 %v6248_v26, %v6245_v8 }
 0x9df   :  { %7088 = vmatpush1.bf16.msra.mxu1 %v7087_v60  ;;  %7136 = vmatpush3.bf16.msra.mxu0 %v7133_v7 }
 0x9e0   :  { %7090 = vmatprep.subr.bf16.mxu1 %v7089_v30  ;;  %7138 = vmatprep.subr.bf16.mxu0 %v7137_v1 }
 0x9e3   :  { %7092 = vmatpush1.bf16.msra.mxu1 %v7091_v13  ;;  %7140 = vmatpush3.bf16.msra.mxu0 %v7137_v1 }
 0x9e4   :  { %7094 = vmatprep.subr.bf16.mxu1 %v7093_v28 }
 0x9e7   :  { %7096 = vmatpush1.bf16.msra.mxu1 %v7095_v54 }
 0x9e8   :  { %7098 = vmatprep.subr.bf16.mxu1 %v7097_v35 }
 0x9eb   :  { %7100 = vmatpush1.bf16.msra.mxu1 %v7099_v51 }
 0x9ec   :  { %7102 = vmatprep.subr.bf16.mxu1 %v7101_v49 }
 0x9ef   :  { %7104 = vmatpush1.bf16.msra.mxu1 %v7103_v5 }
 0x9f0   :  { %7106 = vmatprep.subr.bf16.mxu1 %v7105_v21  ;;  %v6461_v21 = vld [vmem:[%s12736_s13] sm:$0x7] }
 0x9f3   :  { %7108 = vmatpush1.bf16.msra.mxu1 %v7107_v12 }
 0x9f4   :  { %7110 = vmatprep.subr.bf16.mxu1 %v7109_v20 }
 0x9f7   :  { %7112 = vmatpush1.bf16.msra.mxu1 %v7111_v25 }
 0xa3a   :  { %v6091_v31 = vpop.f32.mrb[80].mxu0 }
 0xa3b   :  { %v6092_v10 = vadd.f32 %v12577_v57, %v6091_v31  ;;  %v6093_v38 = vpop.f32.mrb[81].mxu0 }
 0xa3d   :  { %6170 = vxpose.xlu1.b32.start [1/16] (narrow) %v6092_v10, 32  ;;  %v6249_v10 = vld [vmem:[%s12734_s11 + $0x178] sm:$0xff] }
 0xa3e   :  { %v6096_v43 = vpop.f32.mrb[82].mxu0  ;;  %v7141_v38 = vpack.c.bf16 %v6249_v10, %v6246_v0 }
 0xa3f   :  { %v6097_v32 = vadd.f32 %v12577_v57, %v6096_v43  ;;  %v6098_v3 = vpop.f32.mrb[83].mxu0 }
 0xa40   :  { %7142 = vmatprep.subr.bf16.mxu0 %v7141_v38 }
 0xa41   :  { %6171 = vxpose.xlu1.b32.cont [2/16] (narrow) %v6097_v32, 32  ;;  %7144 = vmatpush3.bf16.msra.mxu0 %v7141_v38 }
 0xa42   :  { %7153 = vmatprep.subr.bf16.mxu0 %v12782_v41 }
 0xa55   :  { %v6101_v4 = vpop.f32.mrb[84].mxu0 }
 0xa56   :  { %v6102_v60 = vadd.f32 %v12577_v57, %v6101_v4  ;;  %v6103_v34 = vpop.f32.mrb[85].mxu0 }
 0xa58   :  { %6172 = vxpose.xlu1.b32.cont [3/16] (narrow) %v6102_v60, 32 }
 0xa59   :  { %v6106_v52 = vpop.f32.mrb[86].mxu0 }
 0xa5a   :  { %v6107_v30 = vadd.f32 %v12577_v57, %v6106_v52  ;;  %v6108_v2 = vpop.f32.mrb[87].mxu0 }
 0xa5c   :  { %6173 = vxpose.xlu1.b32.cont [4/16] (narrow) %v6107_v30, 32 }
 0xa65   :  { %v6111_v44 = vpop.f32.mrb[88].mxu0 }
 0xa66   :  { %v6112_v17 = vadd.f32 %v12577_v57, %v6111_v44  ;;  %v6113_v31 = vpop.f32.mrb[89].mxu0 }
 0xa68   :  { %6174 = vxpose.xlu1.b32.cont [5/16] (narrow) %v6112_v17, 32 }
 0xa69   :  { %v6116_v63 = vpop.f32.mrb[90].mxu0 }
 0xa6a   :  { %v6117_v39 = vadd.f32 %v12577_v57, %v6116_v63  ;;  %v6118_v9 = vpop.f32.mrb[91].mxu0 }
 0xa6c   :  { %6175 = vxpose.xlu1.b32.cont [6/16] (narrow) %v6117_v39, 32 }
 0xa76   :  { %v6121_v6 = vpop.f32.mrb[92].mxu0 }
 0xa77   :  { %v6122_v13 = vadd.f32 %v12577_v57, %v6121_v6  ;;  %v6123_v62 = vpop.f32.mrb[93].mxu0 }
 0xa79   :  { %6176 = vxpose.xlu1.b32.cont [7/16] (narrow) %v6122_v13, 32 }
 0xa7a   :  { %v6126_v24 = vpop.f32.mrb[94].mxu0 }
 0xa7b   :  { %v6127_v28 = vadd.f32 %v12577_v57, %v6126_v24  ;;  %v6128_v33 = vpop.f32.mrb[95].mxu0 }
 0xa7d   :  { %6177 = vxpose.xlu1.b32.cont [8/16] (narrow) %v6127_v28, 32 }
 0xa7e   :  { %v6131_v59 = vpop.f32.mrb[96].mxu0 }
 0xa7f   :  { %v6132_v42 = vadd.f32 %v12577_v57, %v6131_v59  ;;  %v6133_v43 = vpop.f32.mrb[97].mxu0 }
 0xa81   :  { %6178 = vxpose.xlu1.b32.cont [9/16] (narrow) %v6132_v42, 32 }
 0xa86   :  { %v6136_v36 = vpop.f32.mrb[98].mxu0 }
 0xa87   :  { %v6137_v61 = vadd.f32 %v12577_v57, %v6136_v36  ;;  %v6138_v32 = vpop.f32.mrb[99].mxu0 }
 0xa89   :  { %6179 = vxpose.xlu1.b32.cont [10/16] (narrow) %v6137_v61, 32 }
 0xa8c   :  { %v6141_v3 = vpop.f32.mrb[100].mxu0 }
 0xa8d   :  { %v6142_v54 = vadd.f32 %v12577_v57, %v6141_v3  ;;  %v6143_v22 = vpop.f32.mrb[101].mxu0 }
 0xa8f   :  { %6180 = vxpose.xlu1.b32.cont [11/16] (narrow) %v6142_v54, 32 }
 0xa95   :  { %v6146_v50 = vpop.f32.mrb[102].mxu0 }
 0xa96   :  { %v6147_v35 = vadd.f32 %v12577_v57, %v6146_v50  ;;  %v6148_v29 = vpop.f32.mrb[103].mxu0 }
 0xa98   :  { %6181 = vxpose.xlu1.b32.cont [12/16] (narrow) %v6147_v35, 32 }
 0xa9b   :  { %v6151_v15 = vpop.f32.mrb[104].mxu0 }
 0xa9c   :  { %v6152_v40 = vadd.f32 %v12577_v57, %v6151_v15  ;;  %v6153_v19 = vpop.f32.mrb[105].mxu0 }
 0xa9e   :  { %6182 = vxpose.xlu1.b32.cont [13/16] (narrow) %v6152_v40, 32 }
 0xaa3   :  { %v6156_v45 = vpop.f32.mrb[106].mxu0 }
 0xaa4   :  { %v6157_v51 = vadd.f32 %v12577_v57, %v6156_v45  ;;  %v6158_v37 = vpop.f32.mrb[107].mxu0 }
 0xaa6   :  { %6183 = vxpose.xlu1.b32.cont [14/16] (narrow) %v6157_v51, 32 }
 0xaa9   :  { %v6161_v11 = vpop.f32.mrb[108].mxu0 }
 0xaaa   :  { %v6162_v49 = vadd.f32 %v12577_v57, %v6161_v11  ;;  %v6163_v46 = vpop.f32.mrb[109].mxu0 }
 0xaac   :  { %6184 = vxpose.xlu1.b32.cont [15/16] (narrow) %v6162_v49, 32 }
 0xaad   :  { %v6166_v58 = vpop.f32.mrb[110].mxu0 }
 0xaae   :  { %v6167_v18 = vadd.f32 %v12577_v57, %v6166_v58  ;;  %v6168_v14 = vpop.f32.mrb[111].mxu0  ;;  %v8668_v57 = vmov 0  }
 0xaaf   :  { %8651 = vset.pattern.permute.xlu0 %v8668_v57 }
 0xab0   :  { %6185 = vxpose.xlu1.b32.end [16/16] (narrow) %v6167_v18, 32  ;;  %6464 = vperm.xlu0 %8651, %v6461_v21  }
 0xaf4   :  { %v6186_v55 = vpop.trf.xlu1 }
 0xaf5   :  { %6315 = vmatmul.mubr.f32.vlgmr.msra.gmra.mrb[96].mxu1 %v6186_v55  ;;  %6894 = vmatprep.mubr.f32.mxu0 %v6186_v55 }
 0xaf6   :  { %6320 = vmatprep.mubr.f32.mxu1 %v12794_v47 }
 0xaf8   :  { %v6187_v5 = vpop.trf.xlu1 }
 0xaf9   :  { %6321 = vmatmul.mubr.f32.gmra.mrb[98].mxu1 %v6187_v5  ;;  %6895 = vmatmul.mubr.f32.vlgmr.msra.gmra.mrb[112].mxu0 %v6187_v5 }
 0xafa   :  { %6326 = vmatprep.mubr.f32.mxu1 %v12794_v47 }
 0xafc   :  { %v6188_v48 = vpop.trf.xlu1 }
 0xafd   :  { %6327 = vmatmul.mubr.f32.gmra.mrb[100].mxu1 %v6188_v48  ;;  %6897 = vmatprep.mubr.f32.mxu0 %v6188_v48 }
 0xafe   :  { %6332 = vmatprep.mubr.f32.mxu1 %v12794_v47 }
 0xb00   :  { %v6189_v7 = vpop.trf.xlu1 }
 0xb01   :  { %6333 = vmatmul.mubr.f32.gmra.mrb[102].mxu1 %v6189_v7  ;;  %6898 = vmatmul.mubr.f32.gmra.mrb[114].mxu0 %v6189_v7 }
 0xb02   :  { %6534 = vmatprep.mubr.f32.mxu1 %v12794_v47  ;;  %6908 = vmatprep.mubr.msk.f32.mxu0 %vm8667_vm0, %v12794_v47 }
 0xb2f   :  { %v6465_v50 = vpop.permute.xlu0 %6464 }
 0xbc8   :  { %v6316_v16 = vpop.f32.mrb[96].mxu1 }
 0xbc9   :  { %v6318_v27 = vpop.f32.mrb[97].mxu1  ;;  %v6436_v23 = vmul.f32 0.2, %v6316_v16  ;;  %vm6424_vm1 = vcmp.ge.f32.partialorder %v6316_v16, 0.0 }
 0xbca   :  { %v6437_v8 = vmul.f32 0.2, %v6318_v27  ;;  %vm6425_vm12 = vcmp.ge.f32.partialorder %v6318_v27, 0.0 }
 0xbcb   :  { %v6448_v56 = vsel %vm6424_vm1, %v6316_v16, %v6436_v23 }
 0xbcc   :  { %v6322_v26 = vpop.f32.mrb[98].mxu1  ;;  %v6896_v12 = vpop.f32.mrb[112].mxu0  ;;  %v6449_v2 = vsel %vm6425_vm12, %v6318_v27, %v6437_v8 }
 0xbcd   :  { %vm6427_vm2 = vcmp.ge.f32.partialorder %v6322_v26, 0.0  ;;  %v6439_v1 = vmul.f32 0.2, %v6322_v26  ;;  %vm6429_vm7 = vcmp.ge.f32.partialorder %v6896_v12, 0.0  ;;  %v6441_v20 = vmul.f32 0.2, %v6896_v12 }
 0xbce   :  { %v6324_v47 = vpop.f32.mrb[99].mxu1  ;;  %v6405_v53 = vpop.f32.mrb[113].mxu0 }
 0xbcf   :  { %v6451_v25 = vsel %vm6427_vm2, %v6322_v26, %v6439_v1  ;;  %vm6428_vm13 = vcmp.ge.f32.partialorder %v6324_v47, 0.0  ;;  %v6440_v4 = vmul.f32 0.2, %v6324_v47  ;;  %v6453_v34 = vsel %vm6429_vm7, %v6896_v12, %v6441_v20 }
 0xbd0   :  { %v7147_v60 = vpack.c.bf16 %v6451_v25, %v6448_v56  ;;  %vm6426_vm3 = vcmp.ge.f32.partialorder %v6405_v53, 0.0  ;;  %v6438_v52 = vmul.f32 0.2, %v6405_v53  ;;  %v6328_v30 = vpop.f32.mrb[100].mxu1 }
 0xbd1   :  { %v6452_v44 = vsel %vm6428_vm13, %v6324_v47, %v6440_v4  ;;  %v6330_v17 = vpop.f32.mrb[101].mxu1  ;;  %v6442_v9 = vmul.f32 0.2, %v6328_v30  ;;  %vm6430_vm4 = vcmp.ge.f32.partialorder %v6328_v30, 0.0 }
 0xbd2   :  { %v6450_v31 = vsel %vm6426_vm3, %v6405_v53, %v6438_v52  ;;  %v7145_v63 = vpack.c.bf16 %v6452_v44, %v6449_v2  ;;  %v6443_v0 = vmul.f32 0.2, %v6330_v17  ;;  %vm6431_vm8 = vcmp.ge.f32.partialorder %v6330_v17, 0.0 }
 0xbd3   :  { %v7154_v39 = vpack.c.bf16 %v6453_v34, %v6450_v31  ;;  %v6454_v28 = vsel %vm6430_vm4, %v6328_v30, %v6442_v9 }
 0xbd4   :  { %7146 = vmatprep.subr.bf16.mxu1 %v7145_v63  ;;  %v6334_v10 = vpop.f32.mrb[102].mxu1  ;;  %v6899_v38 = vpop.f32.mrb[114].mxu0  ;;  %v6455_v61 = vsel %vm6431_vm8, %v6330_v17, %v6443_v0 }
 0xbd5   :  { %7155 = vmatpush3.bf16.msra.mxu0 %v7154_v39  ;;  %vm6433_vm5 = vcmp.ge.f32.partialorder %v6334_v10, 0.0  ;;  %v6445_v6 = vmul.f32 0.2, %v6334_v10  ;;  %vm6435_vm6 = vcmp.ge.f32.partialorder %v6899_v38, 0.0  ;;  %v6447_v13 = vmul.f32 0.2, %v6899_v38  ;;  %7148 = vmatpush1.bf16.msra.mxu1 %v7147_v60 }
 0xbd6   :  { %v6336_v62 = vpop.f32.mrb[103].mxu1  ;;  %v6415_v24 = vpop.f32.mrb[115].mxu0  ;;  %7156 = vmatprep.subr.bf16.mxu0 %v12782_v41  ;;  %v6460_v41 = vld [vmem:[%s12737_s12] sm:$0x7] }
 0xbd7   :  { %v6457_v33 = vsel %vm6433_vm5, %v6334_v10, %v6445_v6  ;;  %vm6434_vm9 = vcmp.ge.f32.partialorder %v6336_v62, 0.0  ;;  %v6446_v59 = vmul.f32 0.2, %v6336_v62  ;;  %v6459_v43 = vsel %vm6435_vm6, %v6899_v38, %v6447_v13 }
 0xbd8   :  { %v7151_v42 = vpack.c.bf16 %v6457_v33, %v6454_v28  ;;  %vm6432_vm10 = vcmp.ge.f32.partialorder %v6415_v24, 0.0  ;;  %v6444_v36 = vmul.f32 0.2, %v6415_v24 }
 0xbd9   :  { %v6458_v32 = vsel %vm6434_vm9, %v6336_v62, %v6446_v59 }
 0xbda   :  { %v6456_v3 = vsel %vm6432_vm10, %v6415_v24, %v6444_v36  ;;  %v7149_v54 = vpack.c.bf16 %v6458_v32, %v6455_v61 }
 0xbdb   :  { %v7157_v22 = vpack.c.bf16 %v6459_v43, %v6456_v3 }
 0xbdc   :  { %7150 = vmatprep.subr.bf16.mxu1 %v7149_v54 }
 0xbdd   :  { %7158 = vmatpush3.bf16.msra.mxu0 %v7157_v22  ;;  %7152 = vmatpush1.bf16.msra.mxu1 %v7151_v42 }
 0xbe0   :  { %6780 = vmatmul.mubr.msk.f32.vlgmr.msra.gmra.mrb[104].mxu1 %vm779_vm11, %v6460_v41  ;;  %6909 = vmatmul.mubr.msk.f32.vlgmr.msra.gmra.mrb[116].mxu0 %vm779_vm11, %v6460_v41 }
 0xcb3   :  { %v6536_v35 = vpop.f32.mrb[104].mxu1  ;;  %v6607_v29 = vpop.f32.mrb[116].mxu0 }
 0xcb4   :  { %v6537_v15 = vadd.f32 %v6536_v35, %v6465_v50  ;;  %v6538_v40 = vpop.f32.mrb[105].mxu1  ;;  %v6608_v19 = vadd.f32 %v6607_v29, %v6465_v50  ;;  %v6910_v45 = vpop.f32.mrb[117].mxu0 }
 0xcb5   :  { %v6539_v51 = vadd.f32 %v6538_v40, %v6465_v50 }
 0xcb6   :  { %6617 = vst.msk [vmem:[%s12738_s14 + $0x8] sm:$0x7] %vm6616_vm14, %v6608_v19 }
 0xcb7   :  { %v6613_v37 = vcombine.low %v6537_v15, %v6539_v51 }
 0xcb9   :  { %6615 = vst [vmem:[%s12738_s14] sm:$0x77] %v6613_v37 }

</bundles_post_ra>
